<compile_context>
chip_gen: v7x
topology: tpu7x:2x2x1
jax: 0.10.0
libtpu: 0.0.40
codegen_flags: <defaults>
</compile_context>

<pallas_src>
import functools
import math

import jax
import jax.numpy as jnp
from jax import lax
from jax.experimental import pallas as pl
from jax.experimental.pallas import tpu as pltpu

# ---------------- ViT-B/16 configuration ----------------
PATCH = 16
IN_CH = 3
EMBED = 768
DEPTH = 12
HEADS = 12
HEAD_DIM = EMBED // HEADS
MLP = 4 * EMBED
LN_EPS = 1e-6  # timm ViT uses LayerNorm(eps=1e-6)


# ---------------- Pallas kernels ----------------
def _gelu_exact(x):
    # nn.GELU default: 0.5 * x * (1 + erf(x / sqrt(2)))
    return 0.5 * x * (1.0 + lax.erf(x * (1.0 / math.sqrt(2.0))))


def _linear_kernel(*refs, activation, fuse_ln, add_residual):
    """[optional LN] -> x @ w + b -> [optional GELU] -> [optional +residual].

    Note: GELU and residual are never combined in this model (residual is
    added after the activation, which is only correct because activation is
    None whenever residual is not None)."""
    if fuse_ln:
        x_ref, g_ref, beta_ref, w_ref, b_ref, *rest = refs
    else:
        x_ref, w_ref, b_ref, *rest = refs
    if add_residual:
        r_ref, o_ref = rest
    else:
        (o_ref,) = rest

    x = x_ref[...]
    if fuse_ln:
        xf = x.astype(jnp.float32)
        mu = jnp.mean(xf, axis=-1, keepdims=True)
        xc = xf - mu
        var = jnp.mean(xc * xc, axis=-1, keepdims=True)
        xf = xc * lax.rsqrt(var + LN_EPS)
        xf = xf * g_ref[...].astype(jnp.float32) + beta_ref[...].astype(jnp.float32)
        x = xf.astype(w_ref.dtype)

    acc = jnp.dot(x, w_ref[...], preferred_element_type=jnp.float32)
    acc = acc + b_ref[...].astype(jnp.float32)
    if activation == "gelu":
        acc = _gelu_exact(acc)
    if add_residual:
        acc = acc + r_ref[...].astype(jnp.float32)
    o_ref[...] = acc.astype(o_ref.dtype)


def _attn_kernel(qkv_ref, o_ref, *, scale, heads, head_dim, embed):
    # one image per grid step; qkv_ref is (1, S, 3*EMBED) with columns laid out
    # [Q(h0..h11) | K(h0..h11) | V(h0..h11)], o_ref is (1, S, EMBED).
    # All 12 heads are processed inside one kernel (unrolled) so softmax/exp of
    # one head can overlap the MXU work of the next and per-step overhead is
    # amortized; all layout slicing stays in VMEM (no HBM transposes).
    for h in range(heads):
        lo = h * head_dim
        q = qkv_ref[0, :, lo:lo + head_dim]                       # (S, Dh) bf16
        k = qkv_ref[0, :, embed + lo:embed + lo + head_dim]       # (S, Dh)
        v = qkv_ref[0, :, 2 * embed + lo:2 * embed + lo + head_dim]
        s = lax.dot_general(q, k, (((1,), (1,)), ((), ())),
                            preferred_element_type=jnp.float32)   # (S, S) f32
        s = s * scale
        s = s - jnp.max(s, axis=-1, keepdims=True)
        p = jnp.exp(s)
        denom = jnp.sum(p, axis=-1, keepdims=True)
        p = p * pl.reciprocal(denom, approx=True)                 # EUP slot
        o = jnp.dot(p.astype(v.dtype), v,
                    preferred_element_type=jnp.float32)           # (S, Dh)
        o_ref[0, :, lo:lo + head_dim] = o.astype(o_ref.dtype)


# ---------------- Pallas wrappers ----------------
def _pick_tile(dim, ladder):
    for t in ladder:
        if dim % t == 0:
            return t
    return dim  # fall back to full extent (satisfies the (8,128) rule)


def linear(x, w, b, *, activation=None, ln_g=None, ln_b=None,
           residual=None, out_dtype=None):
    """[LN](x) @ w + b, optional GELU, optional fused residual add.

    x:(M,K) w:(K,N) b:(N,).  Tiled as grid=(M/tm, N/tn); the activation block
    carries the full K axis so a fused LayerNorm reduces entirely in-tile.
    """
    m, k = x.shape
    n = w.shape[1]
    # 256-wide N tiles map cleanly onto the 128-lane vregs / MXU on all chips
    # (v5e prefers <=256); M tiles bounded so bf16 blocks stay well under the
    # v7x 32 MiB scoped-VMEM default with double buffering.
    tm = _pick_tile(m, (256, 128, 64, 32, 16, 8))
    tn = _pick_tile(n, (256, 128))
    out_dtype = out_dtype if out_dtype is not None else x.dtype
    fuse_ln = ln_g is not None
    grid = (m // tm, n // tn)

    x_spec = pl.BlockSpec((tm, k), lambda i, j: (i, 0))
    w_spec = pl.BlockSpec((k, tn), lambda i, j: (0, j))
    b_spec = pl.BlockSpec((1, tn), lambda i, j: (0, j))
    io_spec = pl.BlockSpec((tm, tn), lambda i, j: (i, j))
    g_spec = pl.BlockSpec((1, k), lambda i, j: (0, 0))

    inputs = [x]
    in_specs = [x_spec]
    if fuse_ln:
        inputs += [ln_g.reshape(1, k), ln_b.reshape(1, k)]
        in_specs += [g_spec, g_spec]
    inputs += [w, b.reshape(1, n)]
    in_specs += [w_spec, b_spec]

    io_aliases = {}
    if residual is not None:
        io_aliases = {len(inputs): 0}   # write the output in place of residual
        inputs.append(residual)
        in_specs.append(io_spec)

    kernel = functools.partial(_linear_kernel, activation=activation,
                               fuse_ln=fuse_ln,
                               add_residual=residual is not None)

    flops = 2 * m * k * n
    transcendentals = m * n if activation == "gelu" else 0
    bytes_accessed = (x.size * x.dtype.itemsize
                      + w.size * w.dtype.itemsize
                      + m * n * jnp.dtype(out_dtype).itemsize)

    return pl.pallas_call(
        kernel,
        out_shape=jax.ShapeDtypeStruct((m, n), out_dtype),
        grid=grid,
        in_specs=in_specs,
        out_specs=io_spec,
        input_output_aliases=io_aliases,
        compiler_params=pltpu.CompilerParams(
            dimension_semantics=("parallel", "parallel")),
        cost_estimate=pl.CostEstimate(flops=flops,
                                      transcendentals=transcendentals,
                                      bytes_accessed=bytes_accessed),
    )(*inputs)


def attention(qkv, *, heads, head_dim):
    """qkv: (B, S, 3*EMBED) bf16 -> (B, S, EMBED). All heads of one image per step."""
    b, s, three_e = qkv.shape
    e = heads * head_dim
    scale = head_dim ** -0.5
    kernel = functools.partial(_attn_kernel, scale=scale, heads=heads,
                               head_dim=head_dim, embed=e)
    flops = 4 * b * heads * s * s * head_dim
    bytes_accessed = qkv.size * qkv.dtype.itemsize + b * s * e * qkv.dtype.itemsize
    return pl.pallas_call(
        kernel,
        out_shape=jax.ShapeDtypeStruct((b, s, e), qkv.dtype),
        grid=(b,),
        in_specs=[pl.BlockSpec((1, s, three_e), lambda i: (i, 0, 0))],
        out_specs=pl.BlockSpec((1, s, e), lambda i: (i, 0, 0)),
        compiler_params=pltpu.CompilerParams(dimension_semantics=("parallel",)),
        cost_estimate=pl.CostEstimate(flops=flops,
                                      transcendentals=b * heads * s * s,
                                      bytes_accessed=bytes_accessed),
    )(qkv)


# ---------------- parameters (deterministic synthetic init) ----------------
def init_params(key, img_size, num_target, num_aux):
    n_patches = (img_size // PATCH) ** 2
    seq = n_patches + 1
    ks = jax.random.split(key, 10)

    def nrm(k, shape, std=0.02, dtype=jnp.bfloat16):
        return (std * jax.random.normal(k, shape, jnp.float32)).astype(dtype)

    blocks = {
        "ln1_g": jnp.ones((DEPTH, EMBED), jnp.float32),
        "ln1_b": jnp.zeros((DEPTH, EMBED), jnp.float32),
        "qkv_w": nrm(ks[5], (DEPTH, EMBED, 3 * EMBED)),
        "qkv_b": jnp.zeros((DEPTH, 3 * EMBED), jnp.float32),
        "proj_w": nrm(ks[6], (DEPTH, EMBED, EMBED)),
        "proj_b": jnp.zeros((DEPTH, EMBED), jnp.float32),
        "ln2_g": jnp.ones((DEPTH, EMBED), jnp.float32),
        "ln2_b": jnp.zeros((DEPTH, EMBED), jnp.float32),
        "mlp1_w": nrm(ks[7], (DEPTH, EMBED, MLP)),
        "mlp1_b": jnp.zeros((DEPTH, MLP), jnp.float32),
        "mlp2_w": nrm(ks[8], (DEPTH, MLP, EMBED)),
        "mlp2_b": jnp.zeros((DEPTH, EMBED), jnp.float32),
    }

    # fc1 / fc2 merged into a single lane-dense, 128-padded head matmul.
    nt_na = num_target + num_aux
    n_pad = max(128, ((nt_na + 127) // 128) * 128)
    fc1_w = nrm(ks[3], (EMBED, num_target))
    fc2_w = nrm(ks[4], (EMBED, num_aux))
    head_w = jnp.zeros((EMBED, n_pad), jnp.bfloat16)
    head_w = head_w.at[:, :num_target].set(fc1_w)
    head_w = head_w.at[:, num_target:nt_na].set(fc2_w)
    head_b = jnp.zeros((n_pad,), jnp.float32)

    return {
        # patch-embed conv (768, 3, 16, 16) flattened as (C*kh*kw, 768)
        "patch_w": nrm(ks[0], (IN_CH * PATCH * PATCH, EMBED)),
        "patch_b": jnp.zeros((EMBED,), jnp.float32),
        "cls": nrm(ks[1], (1, 1, EMBED)),
        "pos": nrm(ks[2], (1, seq, EMBED)),
        "norm_g": jnp.ones((EMBED,), jnp.float32),
        "norm_b": jnp.zeros((EMBED,), jnp.float32),
        "head_w": head_w,
        "head_b": head_b,
        "blocks": blocks,
    }


# ---------------- forward pass (== AuxViT.forward) ----------------
def aux_vit_forward(params, x, *, num_target, num_aux):
    B, C, H, W = x.shape
    ph, pw = H // PATCH, W // PATCH
    n_patches = ph * pw
    seq = n_patches + 1

    # --- PatchEmbed: Conv2d(k=16, s=16) as per-patch matmul (glue reshapes) ---
    patches = x.reshape(B, C, ph, PATCH, pw, PATCH)
    patches = patches.transpose(0, 2, 4, 1, 3, 5).reshape(
        B * n_patches, C * PATCH * PATCH).astype(jnp.bfloat16)
    tok = linear(patches, params["patch_w"], params["patch_b"])
    tok = tok.reshape(B, n_patches, EMBED)

    # --- prepend CLS token, add positional embedding (eval: dropout = id) ---
    cls = jnp.broadcast_to(params["cls"], (B, 1, EMBED))
    xt = jnp.concatenate([cls, tok], axis=1) + params["pos"]
    xt = xt.reshape(B * seq, EMBED)

    def block_fn(carry, p):
        xc = carry
        # attention sub-block (pre-norm); LN fused into the QKV matmul
        qkv = linear(xc, p["qkv_w"], p["qkv_b"],
                     ln_g=p["ln1_g"], ln_b=p["ln1_b"])            # (B*S, 3D)
        o = attention(qkv.reshape(B, seq, 3 * EMBED),
                      heads=HEADS, head_dim=HEAD_DIM)             # (B, S, D)
        o = o.reshape(B * seq, EMBED)
        xc = linear(o, p["proj_w"], p["proj_b"], residual=xc)
        # MLP sub-block (pre-norm); LN + exact GELU fused into the first matmul
        h = linear(xc, p["mlp1_w"], p["mlp1_b"],
                   ln_g=p["ln2_g"], ln_b=p["ln2_b"], activation="gelu")
        xc = linear(h, p["mlp2_w"], p["mlp2_b"], residual=xc)
        return xc, None

    # TODO(synk): cross-pallas_call prefetch of layer l+1 weights (P10 futures)
    # would further hide weight DMA at small batch; not implemented here.
    xt, _ = lax.scan(block_fn, xt, params["blocks"])

    # 'token' pooling: final norm is per-token, so apply it (fused) only to the
    # CLS features, then the merged fc1|fc2 head matmul (f32 outputs).
    feats = xt.reshape(B, seq, EMBED)[:, 0]                       # (B, 768)
    y = linear(feats, params["head_w"], params["head_b"],
               ln_g=params["norm_g"], ln_b=params["norm_b"],
               out_dtype=jnp.float32)                             # (B, n_pad)
    out1 = y[:, :num_target]
    out2 = y[:, num_target:num_target + num_aux]
    return out1, out2


if __name__ == "__main__":
    IMG = 32          # small image: (32/16)^2 = 4 patches + CLS = 5 tokens
    B = 2
    NUM_TARGET_GENES = 32
    NUM_AUX_GENES = 48

    key = jax.random.PRNGKey(0)
    kp, kx = jax.random.split(key)
    params = init_params(kp, IMG, NUM_TARGET_GENES, NUM_AUX_GENES)
    x = jax.random.normal(kx, (B, IN_CH, IMG, IMG), jnp.float32)  # NCHW

    fwd = jax.jit(functools.partial(aux_vit_forward,
                                    num_target=NUM_TARGET_GENES,
                                    num_aux=NUM_AUX_GENES))
    out1, out2 = fwd(params, x)
    jax.block_until_ready((out1, out2))

    assert out1.shape == (B, NUM_TARGET_GENES) and out1.dtype == jnp.float32
    assert out2.shape == (B, NUM_AUX_GENES) and out2.dtype == jnp.float32
    assert bool(jnp.all(jnp.isfinite(out1))) and bool(jnp.all(jnp.isfinite(out2)))
    print("KERNEL_OK")
</pallas_src>

<mosaic_0001>
module attributes {stable_mosaic.version = 11 : i64} {
  func.func @_linear_kernel(%arg0: i32, %arg1: i32, %arg2: memref<8x768xbf16, #tpu.memory_space<vmem>>, %arg3: memref<768x256xbf16, #tpu.memory_space<vmem>>, %arg4: memref<1x256xf32, #tpu.memory_space<vmem>>, %arg5: memref<8x256xbf16, #tpu.memory_space<vmem>>) attributes {dimension_semantics = [#tpu.dimension_semantics<parallel>, #tpu.dimension_semantics<parallel>], iteration_bounds = array<i64: 1, 3>, scalar_prefetch = 0 : i64, scratch_operands = 0 : i64, tpu.core_type = #tpu.core_type<tc>, window_params = [{transform_indices = @transform_0, window_bounds = array<i64: 8, 768>}, {transform_indices = @transform_1, window_bounds = array<i64: 768, 256>}, {transform_indices = @transform_2, window_bounds = array<i64: 1, 256>}, {transform_indices = @transform_3, window_bounds = array<i64: 8, 256>}]} {
    %c0 = arith.constant 0 : index
    %c0_0 = arith.constant 0 : index
    %0 = vector.load %arg2[%c0, %c0_0] : memref<8x768xbf16, #tpu.memory_space<vmem>>, vector<8x768xbf16>
    %c0_1 = arith.constant 0 : index
    %c0_2 = arith.constant 0 : index
    %1 = vector.load %arg3[%c0_1, %c0_2] : memref<768x256xbf16, #tpu.memory_space<vmem>>, vector<768x256xbf16>
    %cst = arith.constant dense<0.000000e+00> : vector<8x256xf32>
    %2 = tpu.matmul %0, %1, %cst {dimension_numbers = #tpu.dot_dimension_numbers<[1], [0], [0], [1], [0, 0, 1, 1], [], []>} : vector<8x768xbf16>, vector<768x256xbf16>, vector<8x256xf32> -> vector<8x256xf32>
    %c0_3 = arith.constant 0 : index
    %c0_4 = arith.constant 0 : index
    %3 = vector.load %arg4[%c0_3, %c0_4] : memref<1x256xf32, #tpu.memory_space<vmem>>, vector<1x256xf32>
    %4 = vector.broadcast %3 : vector<1x256xf32> to vector<8x256xf32>
    %5 = arith.addf %2, %4 : vector<8x256xf32>
    %6 = arith.truncf %5 : vector<8x256xf32> to vector<8x256xbf16>
    %c0_5 = arith.constant 0 : index
    %c0_6 = arith.constant 0 : index
    %7 = vector.load %arg5[%c0_5, %c0_6] : memref<8x256xbf16, #tpu.memory_space<vmem>>, vector<8x256xbf16>
    tpu.vector_store %arg5[%c0_5, %c0_6], %6 {strides = array<i32>} : memref<8x256xbf16, #tpu.memory_space<vmem>>, vector<8x256xbf16>,
    return
  }
  func.func @transform_0(%arg0: i32, %arg1: i32) -> (i32, i32) {
    %c0_i32 = arith.constant 0 : i32
    %c0_i32_0 = arith.constant 0 : i32
    return %arg0, %c0_i32 : i32, i32
  }
  func.func @transform_1(%arg0: i32, %arg1: i32) -> (i32, i32) {
    %c0_i32 = arith.constant 0 : i32
    %c0_i32_0 = arith.constant 0 : i32
    return %c0_i32, %arg1 : i32, i32
  }
  func.func @transform_2(%arg0: i32, %arg1: i32) -> (i32, i32) {
    %c0_i32 = arith.constant 0 : i32
    %c0_i32_0 = arith.constant 0 : i32
    return %c0_i32, %arg1 : i32, i32
  }
  func.func @transform_3(%arg0: i32, %arg1: i32) -> (i32, i32) {
    %c0_i32 = arith.constant 0 : i32
    return %arg0, %arg1 : i32, i32
  }
}

module attributes {stable_mosaic.version = 11 : i64} {
  func.func @_attn_kernel(%arg0: i32, %arg1: memref<1x5x2304xbf16, #tpu.memory_space<vmem>>, %arg2: memref<1x5x768xbf16, #tpu.memory_space<vmem>>) attributes {dimension_semantics = [#tpu.dimension_semantics<parallel>], iteration_bounds = array<i64: 2>, scalar_prefetch = 0 : i64, scratch_operands = 0 : i64, tpu.core_type = #tpu.core_type<tc>, window_params = [{transform_indices = @transform_0, window_bounds = array<i64: 1, 5, 2304>}, {transform_indices = @transform_1, window_bounds = array<i64: 1, 5, 768>}]} {
    %c0 = arith.constant 0 : index
    %c0_0 = arith.constant 0 : index
    %c0_1 = arith.constant 0 : index
    %0 = vector.load %arg1[%c0, %c0_0, %c0_1] : memref<1x5x2304xbf16, #tpu.memory_space<vmem>>, vector<1x5x64xbf16>
    %1 = vector.shape_cast %0 : vector<1x5x64xbf16> to vector<5x64xbf16>
    %c0_2 = arith.constant 0 : index
    %c0_3 = arith.constant 0 : index
    %c768 = arith.constant 768 : index
    %2 = vector.load %arg1[%c0_2, %c0_3, %c768] : memref<1x5x2304xbf16, #tpu.memory_space<vmem>>, vector<1x5x64xbf16>
    %3 = vector.shape_cast %2 : vector<1x5x64xbf16> to vector<5x64xbf16>
    %c0_4 = arith.constant 0 : index
    %c0_5 = arith.constant 0 : index
    %c1536 = arith.constant 1536 : index
    %4 = vector.load %arg1[%c0_4, %c0_5, %c1536] : memref<1x5x2304xbf16, #tpu.memory_space<vmem>>, vector<1x5x64xbf16>
    %5 = vector.shape_cast %4 : vector<1x5x64xbf16> to vector<5x64xbf16>
    %cst = arith.constant dense<0.000000e+00> : vector<5x5xf32>
    %6 = tpu.matmul %1, %3, %cst {dimension_numbers = #tpu.dot_dimension_numbers<[1], [1], [0], [0], [0, 0, 1, 0], [], []>} : vector<5x64xbf16>, vector<5x64xbf16>, vector<5x5xf32> -> vector<5x5xf32>
    %cst_6 = arith.constant 1.250000e-01 : f32
    %7 = vector.broadcast %cst_6 : f32 to vector<5x5xf32>
    %8 = arith.mulf %6, %7 : vector<5x5xf32>
    %cst_7 = arith.constant dense<0xFF800000> : vector<5xf32>
    %9 = vector.multi_reduction <maximumf>, %8, %cst_7 [1] : vector<5x5xf32> to vector<5xf32>
    %10 = vector.shape_cast %9 : vector<5xf32> to vector<5x1xf32>
    %11 = vector.broadcast %10 : vector<5x1xf32> to vector<5x5xf32>
    %12 = arith.subf %8, %11 : vector<5x5xf32>
    %13 = math.exp %12 : vector<5x5xf32>
    %cst_8 = arith.constant dense<0.000000e+00> : vector<5xf32>
    %14 = vector.multi_reduction <add>, %13, %cst_8 [1] : vector<5x5xf32> to vector<5xf32>
    %15 = vector.shape_cast %14 : vector<5xf32> to vector<5x1xf32>
    %16 = tpu.reciprocal %15 {approx = true} : vector<5x1xf32> -> vector<5x1xf32>
    %17 = vector.broadcast %16 : vector<5x1xf32> to vector<5x5xf32>
    %18 = arith.mulf %13, %17 : vector<5x5xf32>
    %19 = arith.truncf %18 : vector<5x5xf32> to vector<5x5xbf16>
    %cst_9 = arith.constant dense<0.000000e+00> : vector<5x64xf32>
    %20 = tpu.matmul %19, %5, %cst_9 {dimension_numbers = #tpu.dot_dimension_numbers<[1], [0], [0], [1], [0, 0, 1, 1], [], []>} : vector<5x5xbf16>, vector<5x64xbf16>, vector<5x64xf32> -> vector<5x64xf32>
    %21 = arith.truncf %20 : vector<5x64xf32> to vector<5x64xbf16>
    %c0_10 = arith.constant 0 : index
    %c0_11 = arith.constant 0 : index
    %c0_12 = arith.constant 0 : index
    %22 = vector.load %arg2[%c0_10, %c0_11, %c0_12] : memref<1x5x768xbf16, #tpu.memory_space<vmem>>, vector<1x5x64xbf16>
    %23 = vector.shape_cast %22 : vector<1x5x64xbf16> to vector<5x64xbf16>
    %24 = vector.shape_cast %21 : vector<5x64xbf16> to vector<1x5x64xbf16>
    tpu.vector_store %arg2[%c0_10, %c0_11, %c0_12], %24 {strides = array<i32>} : memref<1x5x768xbf16, #tpu.memory_space<vmem>>, vector<1x5x64xbf16>,
    %c0_13 = arith.constant 0 : index
    %c0_14 = arith.constant 0 : index
    %c64 = arith.constant 64 : index
    %25 = vector.load %arg1[%c0_13, %c0_14, %c64] : memref<1x5x2304xbf16, #tpu.memory_space<vmem>>, vector<1x5x64xbf16>
    %26 = vector.shape_cast %25 : vector<1x5x64xbf16> to vector<5x64xbf16>
    %c0_15 = arith.constant 0 : index
    %c0_16 = arith.constant 0 : index
    %c832 = arith.constant 832 : index
    %27 = vector.load %arg1[%c0_15, %c0_16, %c832] : memref<1x5x2304xbf16, #tpu.memory_space<vmem>>, vector<1x5x64xbf16>
    %28 = vector.shape_cast %27 : vector<1x5x64xbf16> to vector<5x64xbf16>
    %c0_17 = arith.constant 0 : index
    %c0_18 = arith.constant 0 : index
    %c1600 = arith.constant 1600 : index
    %29 = vector.load %arg1[%c0_17, %c0_18, %c1600] : memref<1x5x2304xbf16, #tpu.memory_space<vmem>>, vector<1x5x64xbf16>
    %30 = vector.shape_cast %29 : vector<1x5x64xbf16> to vector<5x64xbf16>
    %cst_19 = arith.constant dense<0.000000e+00> : vector<5x5xf32>
    %31 = tpu.matmul %26, %28, %cst_19 {dimension_numbers = #tpu.dot_dimension_numbers<[1], [1], [0], [0], [0, 0, 1, 0], [], []>} : vector<5x64xbf16>, vector<5x64xbf16>, vector<5x5xf32> -> vector<5x5xf32>
    %cst_20 = arith.constant 1.250000e-01 : f32
    %32 = vector.broadcast %cst_20 : f32 to vector<5x5xf32>
    %33 = arith.mulf %31, %32 : vector<5x5xf32>
    %cst_21 = arith.constant dense<0xFF800000> : vector<5xf32>
    %34 = vector.multi_reduction <maximumf>, %33, %cst_21 [1] : vector<5x5xf32> to vector<5xf32>
    %35 = vector.shape_cast %34 : vector<5xf32> to vector<5x1xf32>
    %36 = vector.broadcast %35 : vector<5x1xf32> to vector<5x5xf32>
    %37 = arith.subf %33, %36 : vector<5x5xf32>
    %38 = math.exp %37 : vector<5x5xf32>
    %cst_22 = arith.constant dense<0.000000e+00> : vector<5xf32>
    %39 = vector.multi_reduction <add>, %38, %cst_22 [1] : vector<5x5xf32> to vector<5xf32>
    %40 = vector.shape_cast %39 : vector<5xf32> to vector<5x1xf32>
    %41 = tpu.reciprocal %40 {approx = true} : vector<5x1xf32> -> vector<5x1xf32>
    %42 = vector.broadcast %41 : vector<5x1xf32> to vector<5x5xf32>
    %43 = arith.mulf %38, %42 : vector<5x5xf32>
    %44 = arith.truncf %43 : vector<5x5xf32> to vector<5x5xbf16>
    %cst_23 = arith.constant dense<0.000000e+00> : vector<5x64xf32>
    %45 = tpu.matmul %44, %30, %cst_23 {dimension_numbers = #tpu.dot_dimension_numbers<[1], [0], [0], [1], [0, 0, 1, 1], [], []>} : vector<5x5xbf16>, vector<5x64xbf16>, vector<5x64xf32> -> vector<5x64xf32>
    %46 = arith.truncf %45 : vector<5x64xf32> to vector<5x64xbf16>
    %c0_24 = arith.constant 0 : index
    %c0_25 = arith.constant 0 : index
    %c64_26 = arith.constant 64 : index
    %47 = vector.load %arg2[%c0_24, %c0_25, %c64_26] : memref<1x5x768xbf16, #tpu.memory_space<vmem>>, vector<1x5x64xbf16>
    %48 = vector.shape_cast %47 : vector<1x5x64xbf16> to vector<5x64xbf16>
    %49 = vector.shape_cast %46 : vector<5x64xbf16> to vector<1x5x64xbf16>
    tpu.vector_store %arg2[%c0_24, %c0_25, %c64_26], %49 {strides = array<i32>} : memref<1x5x768xbf16, #tpu.memory_space<vmem>>, vector<1x5x64xbf16>,
    %c0_27 = arith.constant 0 : index
    %c0_28 = arith.constant 0 : index
    %c128 = arith.constant 128 : index
    %50 = vector.load %arg1[%c0_27, %c0_28, %c128] : memref<1x5x2304xbf16, #tpu.memory_space<vmem>>, vector<1x5x64xbf16>
    %51 = vector.shape_cast %50 : vector<1x5x64xbf16> to vector<5x64xbf16>
    %c0_29 = arith.constant 0 : index
    %c0_30 = arith.constant 0 : index
    %c896 = arith.constant 896 : index
    %52 = vector.load %arg1[%c0_29, %c0_30, %c896] : memref<1x5x2304xbf16, #tpu.memory_space<vmem>>, vector<1x5x64xbf16>
    %53 = vector.shape_cast %52 : vector<1x5x64xbf16> to vector<5x64xbf16>
    %c0_31 = arith.constant 0 : index
    %c0_32 = arith.constant 0 : index
    %c1664 = arith.constant 1664 : index
    %54 = vector.load %arg1[%c0_31, %c0_32, %c1664] : memref<1x5x2304xbf16, #tpu.memory_space<vmem>>, vector<1x5x64xbf16>
    %55 = vector.shape_cast %54 : vector<1x5x64xbf16> to vector<5x64xbf16>
    %cst_33 = arith.constant dense<0.000000e+00> : vector<5x5xf32>
    %56 = tpu.matmul %51, %53, %cst_33 {dimension_numbers = #tpu.dot_dimension_numbers<[1], [1], [0], [0], [0, 0, 1, 0], [], []>} : vector<5x64xbf16>, vector<5x64xbf16>, vector<5x5xf32> -> vector<5x5xf32>
    %cst_34 = arith.constant 1.250000e-01 : f32
    %57 = vector.broadcast %cst_34 : f32 to vector<5x5xf32>
    %58 = arith.mulf %56, %57 : vector<5x5xf32>
    %cst_35 = arith.constant dense<0xFF800000> : vector<5xf32>
    %59 = vector.multi_reduction <maximumf>, %58, %cst_35 [1] : vector<5x5xf32> to vector<5xf32>
    %60 = vector.shape_cast %59 : vector<5xf32> to vector<5x1xf32>
    %61 = vector.broadcast %60 : vector<5x1xf32> to vector<5x5xf32>
    %62 = arith.subf %58, %61 : vector<5x5xf32>
    %63 = math.exp %62 : vector<5x5xf32>
    %cst_36 = arith.constant dense<0.000000e+00> : vector<5xf32>
    %64 = vector.multi_reduction <add>, %63, %cst_36 [1] : vector<5x5xf32> to vector<5xf32>
    %65 = vector.shape_cast %64 : vector<5xf32> to vector<5x1xf32>
    %66 = tpu.reciprocal %65 {approx = true} : vector<5x1xf32> -> vector<5x1xf32>
    %67 = vector.broadcast %66 : vector<5x1xf32> to vector<5x5xf32>
    %68 = arith.mulf %63, %67 : vector<5x5xf32>
    %69 = arith.truncf %68 : vector<5x5xf32> to vector<5x5xbf16>
    %cst_37 = arith.constant dense<0.000000e+00> : vector<5x64xf32>
    %70 = tpu.matmul %69, %55, %cst_37 {dimension_numbers = #tpu.dot_dimension_numbers<[1], [0], [0], [1], [0, 0, 1, 1], [], []>} : vector<5x5xbf16>, vector<5x64xbf16>, vector<5x64xf32> -> vector<5x64xf32>
    %71 = arith.truncf %70 : vector<5x64xf32> to vector<5x64xbf16>
    %c0_38 = arith.constant 0 : index
    %c0_39 = arith.constant 0 : index
    %c128_40 = arith.constant 128 : index
    %72 = vector.load %arg2[%c0_38, %c0_39, %c128_40] : memref<1x5x768xbf16, #tpu.memory_space<vmem>>, vector<1x5x64xbf16>
    %73 = vector.shape_cast %72 : vector<1x5x64xbf16> to vector<5x64xbf16>
    %74 = vector.shape_cast %71 : vector<5x64xbf16> to vector<1x5x64xbf16>
    tpu.vector_store %arg2[%c0_38, %c0_39, %c128_40], %74 {strides = array<i32>} : memref<1x5x768xbf16, #tpu.memory_space<vmem>>, vector<1x5x64xbf16>,
    %c0_41 = arith.constant 0 : index
    %c0_42 = arith.constant 0 : index
    %c192 = arith.constant 192 : index
    %75 = vector.load %arg1[%c0_41, %c0_42, %c192] : memref<1x5x2304xbf16, #tpu.memory_space<vmem>>, vector<1x5x64xbf16>
    %76 = vector.shape_cast %75 : vector<1x5x64xbf16> to vector<5x64xbf16>
    %c0_43 = arith.constant 0 : index
    %c0_44 = arith.constant 0 : index
    %c960 = arith.constant 960 : index
    %77 = vector.load %arg1[%c0_43, %c0_44, %c960] : memref<1x5x2304xbf16, #tpu.memory_space<vmem>>, vector<1x5x64xbf16>
    %78 = vector.shape_cast %77 : vector<1x5x64xbf16> to vector<5x64xbf16>
    %c0_45 = arith.constant 0 : index
    %c0_46 = arith.constant 0 : index
    %c1728 = arith.constant 1728 : index
    %79 = vector.load %arg1[%c0_45, %c0_46, %c1728] : memref<1x5x2304xbf16, #tpu.memory_space<vmem>>, vector<1x5x64xbf16>
    %80 = vector.shape_cast %79 : vector<1x5x64xbf16> to vector<5x64xbf16>
    %cst_47 = arith.constant dense<0.000000e+00> : vector<5x5xf32>
    %81 = tpu.matmul %76, %78, %cst_47 {dimension_numbers = #tpu.dot_dimension_numbers<[1], [1], [0], [0], [0, 0, 1, 0], [], []>} : vector<5x64xbf16>, vector<5x64xbf16>, vector<5x5xf32> -> vector<5x5xf32>
    %cst_48 = arith.constant 1.250000e-01 : f32
    %82 = vector.broadcast %cst_48 : f32 to vector<5x5xf32>
    %83 = arith.mulf %81, %82 : vector<5x5xf32>
    %cst_49 = arith.constant dense<0xFF800000> : vector<5xf32>
    %84 = vector.multi_reduction <maximumf>, %83, %cst_49 [1] : vector<5x5xf32> to vector<5xf32>
    %85 = vector.shape_cast %84 : vector<5xf32> to vector<5x1xf32>
    %86 = vector.broadcast %85 : vector<5x1xf32> to vector<5x5xf32>
    %87 = arith.subf %83, %86 : vector<5x5xf32>
    %88 = math.exp %87 : vector<5x5xf32>
    %cst_50 = arith.constant dense<0.000000e+00> : vector<5xf32>
    %89 = vector.multi_reduction <add>, %88, %cst_50 [1] : vector<5x5xf32> to vector<5xf32>
    %90 = vector.shape_cast %89 : vector<5xf32> to vector<5x1xf32>
    %91 = tpu.reciprocal %90 {approx = true} : vector<5x1xf32> -> vector<5x1xf32>
    %92 = vector.broadcast %91 : vector<5x1xf32> to vector<5x5xf32>
    %93 = arith.mulf %88, %92 : vector<5x5xf32>
    %94 = arith.truncf %93 : vector<5x5xf32> to vector<5x5xbf16>
    %cst_51 = arith.constant dense<0.000000e+00> : vector<5x64xf32>
    %95 = tpu.matmul %94, %80, %cst_51 {dimension_numbers = #tpu.dot_dimension_numbers<[1], [0], [0], [1], [0, 0, 1, 1], [], []>} : vector<5x5xbf16>, vector<5x64xbf16>, vector<5x64xf32> -> vector<5x64xf32>
    %96 = arith.truncf %95 : vector<5x64xf32> to vector<5x64xbf16>
    %c0_52 = arith.constant 0 : index
    %c0_53 = arith.constant 0 : index
    %c192_54 = arith.constant 192 : index
    %97 = vector.load %arg2[%c0_52, %c0_53, %c192_54] : memref<1x5x768xbf16, #tpu.memory_space<vmem>>, vector<1x5x64xbf16>
    %98 = vector.shape_cast %97 : vector<1x5x64xbf16> to vector<5x64xbf16>
    %99 = vector.shape_cast %96 : vector<5x64xbf16> to vector<1x5x64xbf16>
    tpu.vector_store %arg2[%c0_52, %c0_53, %c192_54], %99 {strides = array<i32>} : memref<1x5x768xbf16, #tpu.memory_space<vmem>>, vector<1x5x64xbf16>,
    %c0_55 = arith.constant 0 : index
    %c0_56 = arith.constant 0 : index
    %c256 = arith.constant 256 : index
    %100 = vector.load %arg1[%c0_55, %c0_56, %c256] : memref<1x5x2304xbf16, #tpu.memory_space<vmem>>, vector<1x5x64xbf16>
    %101 = vector.shape_cast %100 : vector<1x5x64xbf16> to vector<5x64xbf16>
    %c0_57 = arith.constant 0 : index
    %c0_58 = arith.constant 0 : index
    %c1024 = arith.constant 1024 : index
    %102 = vector.load %arg1[%c0_57, %c0_58, %c1024] : memref<1x5x2304xbf16, #tpu.memory_space<vmem>>, vector<1x5x64xbf16>
    %103 = vector.shape_cast %102 : vector<1x5x64xbf16> to vector<5x64xbf16>
    %c0_59 = arith.constant 0 : index
    %c0_60 = arith.constant 0 : index
    %c1792 = arith.constant 1792 : index
    %104 = vector.load %arg1[%c0_59, %c0_60, %c1792] : memref<1x5x2304xbf16, #tpu.memory_space<vmem>>, vector<1x5x64xbf16>
    %105 = vector.shape_cast %104 : vector<1x5x64xbf16> to vector<5x64xbf16>
    %cst_61 = arith.constant dense<0.000000e+00> : vector<5x5xf32>
    %106 = tpu.matmul %101, %103, %cst_61 {dimension_numbers = #tpu.dot_dimension_numbers<[1], [1], [0], [0], [0, 0, 1, 0], [], []>} : vector<5x64xbf16>, vector<5x64xbf16>, vector<5x5xf32> -> vector<5x5xf32>
    %cst_62 = arith.constant 1.250000e-01 : f32
    %107 = vector.broadcast %cst_62 : f32 to vector<5x5xf32>
    %108 = arith.mulf %106, %107 : vector<5x5xf32>
    %cst_63 = arith.constant dense<0xFF800000> : vector<5xf32>
    %109 = vector.multi_reduction <maximumf>, %108, %cst_63 [1] : vector<5x5xf32> to vector<5xf32>
    %110 = vector.shape_cast %109 : vector<5xf32> to vector<5x1xf32>
    %111 = vector.broadcast %110 : vector<5x1xf32> to vector<5x5xf32>
    %112 = arith.subf %108, %111 : vector<5x5xf32>
    %113 = math.exp %112 : vector<5x5xf32>
    %cst_64 = arith.constant dense<0.000000e+00> : vector<5xf32>
    %114 = vector.multi_reduction <add>, %113, %cst_64 [1] : vector<5x5xf32> to vector<5xf32>
    %115 = vector.shape_cast %114 : vector<5xf32> to vector<5x1xf32>
    %116 = tpu.reciprocal %115 {approx = true} : vector<5x1xf32> -> vector<5x1xf32>
    %117 = vector.broadcast %116 : vector<5x1xf32> to vector<5x5xf32>
    %118 = arith.mulf %113, %117 : vector<5x5xf32>
    %119 = arith.truncf %118 : vector<5x5xf32> to vector<5x5xbf16>
    %cst_65 = arith.constant dense<0.000000e+00> : vector<5x64xf32>
    %120 = tpu.matmul %119, %105, %cst_65 {dimension_numbers = #tpu.dot_dimension_numbers<[1], [0], [0], [1], [0, 0, 1, 1], [], []>} : vector<5x5xbf16>, vector<5x64xbf16>, vector<5x64xf32> -> vector<5x64xf32>
    %121 = arith.truncf %120 : vector<5x64xf32> to vector<5x64xbf16>
    %c0_66 = arith.constant 0 : index
    %c0_67 = arith.constant 0 : index
    %c256_68 = arith.constant 256 : index
    %122 = vector.load %arg2[%c0_66, %c0_67, %c256_68] : memref<1x5x768xbf16, #tpu.memory_space<vmem>>, vector<1x5x64xbf16>
    %123 = vector.shape_cast %122 : vector<1x5x64xbf16> to vector<5x64xbf16>
    %124 = vector.shape_cast %121 : vector<5x64xbf16> to vector<1x5x64xbf16>
    tpu.vector_store %arg2[%c0_66, %c0_67, %c256_68], %124 {strides = array<i32>} : memref<1x5x768xbf16, #tpu.memory_space<vmem>>, vector<1x5x64xbf16>,
    %c0_69 = arith.constant 0 : index
    %c0_70 = arith.constant 0 : index
    %c320 = arith.constant 320 : index
    %125 = vector.load %arg1[%c0_69, %c0_70, %c320] : memref<1x5x2304xbf16, #tpu.memory_space<vmem>>, vector<1x5x64xbf16>
    %126 = vector.shape_cast %125 : vector<1x5x64xbf16> to vector<5x64xbf16>
    %c0_71 = arith.constant 0 : index
    %c0_72 = arith.constant 0 : index
    %c1088 = arith.constant 1088 : index
    %127 = vector.load %arg1[%c0_71, %c0_72, %c1088] : memref<1x5x2304xbf16, #tpu.memory_space<vmem>>, vector<1x5x64xbf16>
    %128 = vector.shape_cast %127 : vector<1x5x64xbf16> to vector<5x64xbf16>
    %c0_73 = arith.constant 0 : index
    %c0_74 = arith.constant 0 : index
    %c1856 = arith.constant 1856 : index
    %129 = vector.load %arg1[%c0_73, %c0_74, %c1856] : memref<1x5x2304xbf16, #tpu.memory_space<vmem>>, vector<1x5x64xbf16>
    %130 = vector.shape_cast %129 : vector<1x5x64xbf16> to vector<5x64xbf16>
    %cst_75 = arith.constant dense<0.000000e+00> : vector<5x5xf32>
    %131 = tpu.matmul %126, %128, %cst_75 {dimension_numbers = #tpu.dot_dimension_numbers<[1], [1], [0], [0], [0, 0, 1, 0], [], []>} : vector<5x64xbf16>, vector<5x64xbf16>, vector<5x5xf32> -> vector<5x5xf32>
    %cst_76 = arith.constant 1.250000e-01 : f32
    %132 = vector.broadcast %cst_76 : f32 to vector<5x5xf32>
    %133 = arith.mulf %131, %132 : vector<5x5xf32>
    %cst_77 = arith.constant dense<0xFF800000> : vector<5xf32>
    %134 = vector.multi_reduction <maximumf>, %133, %cst_77 [1] : vector<5x5xf32> to vector<5xf32>
    %135 = vector.shape_cast %134 : vector<5xf32> to vector<5x1xf32>
    %136 = vector.broadcast %135 : vector<5x1xf32> to vector<5x5xf32>
    %137 = arith.subf %133, %136 : vector<5x5xf32>
    %138 = math.exp %137 : vector<5x5xf32>
    %cst_78 = arith.constant dense<0.000000e+00> : vector<5xf32>
    %139 = vector.multi_reduction <add>, %138, %cst_78 [1] : vector<5x5xf32> to vector<5xf32>
    %140 = vector.shape_cast %139 : vector<5xf32> to vector<5x1xf32>
    %141 = tpu.reciprocal %140 {approx = true} : vector<5x1xf32> -> vector<5x1xf32>
    %142 = vector.broadcast %141 : vector<5x1xf32> to vector<5x5xf32>
    %143 = arith.mulf %138, %142 : vector<5x5xf32>
    %144 = arith.truncf %143 : vector<5x5xf32> to vector<5x5xbf16>
    %cst_79 = arith.constant dense<0.000000e+00> : vector<5x64xf32>
    %145 = tpu.matmul %144, %130, %cst_79 {dimension_numbers = #tpu.dot_dimension_numbers<[1], [0], [0], [1], [0, 0, 1, 1], [], []>} : vector<5x5xbf16>, vector<5x64xbf16>, vector<5x64xf32> -> vector<5x64xf32>
    %146 = arith.truncf %145 : vector<5x64xf32> to vector<5x64xbf16>
    %c0_80 = arith.constant 0 : index
    %c0_81 = arith.constant 0 : index
    %c320_82 = arith.constant 320 : index
    %147 = vector.load %arg2[%c0_80, %c0_81, %c320_82] : memref<1x5x768xbf16, #tpu.memory_space<vmem>>, vector<1x5x64xbf16>
    %148 = vector.shape_cast %147 : vector<1x5x64xbf16> to vector<5x64xbf16>
    %149 = vector.shape_cast %146 : vector<5x64xbf16> to vector<1x5x64xbf16>
    tpu.vector_store %arg2[%c0_80, %c0_81, %c320_82], %149 {strides = array<i32>} : memref<1x5x768xbf16, #tpu.memory_space<vmem>>, vector<1x5x64xbf16>,
    %c0_83 = arith.constant 0 : index
    %c0_84 = arith.constant 0 : index
    %c384 = arith.constant 384 : index
    %150 = vector.load %arg1[%c0_83, %c0_84, %c384] : memref<1x5x2304xbf16, #tpu.memory_space<vmem>>, vector<1x5x64xbf16>
    %151 = vector.shape_cast %150 : vector<1x5x64xbf16> to vector<5x64xbf16>
    %c0_85 = arith.constant 0 : index
    %c0_86 = arith.constant 0 : index
    %c1152 = arith.constant 1152 : index
    %152 = vector.load %arg1[%c0_85, %c0_86, %c1152] : memref<1x5x2304xbf16, #tpu.memory_space<vmem>>, vector<1x5x64xbf16>
    %153 = vector.shape_cast %152 : vector<1x5x64xbf16> to vector<5x64xbf16>
    %c0_87 = arith.constant 0 : index
    %c0_88 = arith.constant 0 : index
    %c1920 = arith.constant 1920 : index
    %154 = vector.load %arg1[%c0_87, %c0_88, %c1920] : memref<1x5x2304xbf16, #tpu.memory_space<vmem>>, vector<1x5x64xbf16>
    %155 = vector.shape_cast %154 : vector<1x5x64xbf16> to vector<5x64xbf16>
    %cst_89 = arith.constant dense<0.000000e+00> : vector<5x5xf32>
    %156 = tpu.matmul %151, %153, %cst_89 {dimension_numbers = #tpu.dot_dimension_numbers<[1], [1], [0], [0], [0, 0, 1, 0], [], []>} : vector<5x64xbf16>, vector<5x64xbf16>, vector<5x5xf32> -> vector<5x5xf32>
    %cst_90 = arith.constant 1.250000e-01 : f32
    %157 = vector.broadcast %cst_90 : f32 to vector<5x5xf32>
    %158 = arith.mulf %156, %157 : vector<5x5xf32>
    %cst_91 = arith.constant dense<0xFF800000> : vector<5xf32>
    %159 = vector.multi_reduction <maximumf>, %158, %cst_91 [1] : vector<5x5xf32> to vector<5xf32>
    %160 = vector.shape_cast %159 : vector<5xf32> to vector<5x1xf32>
    %161 = vector.broadcast %160 : vector<5x1xf32> to vector<5x5xf32>
    %162 = arith.subf %158, %161 : vector<5x5xf32>
    %163 = math.exp %162 : vector<5x5xf32>
    %cst_92 = arith.constant dense<0.000000e+00> : vector<5xf32>
    %164 = vector.multi_reduction <add>, %163, %cst_92 [1] : vector<5x5xf32> to vector<5xf32>
    %165 = vector.shape_cast %164 : vector<5xf32> to vector<5x1xf32>
    %166 = tpu.reciprocal %165 {approx = true} : vector<5x1xf32> -> vector<5x1xf32>
    %167 = vector.broadcast %166 : vector<5x1xf32> to vector<5x5xf32>
    %168 = arith.mulf %163, %167 : vector<5x5xf32>
    %169 = arith.truncf %168 : vector<5x5xf32> to vector<5x5xbf16>
    %cst_93 = arith.constant dense<0.000000e+00> : vector<5x64xf32>
    %170 = tpu.matmul %169, %155, %cst_93 {dimension_numbers = #tpu.dot_dimension_numbers<[1], [0], [0], [1], [0, 0, 1, 1], [], []>} : vector<5x5xbf16>, vector<5x64xbf16>, vector<5x64xf32> -> vector<5x64xf32>
    %171 = arith.truncf %170 : vector<5x64xf32> to vector<5x64xbf16>
    %c0_94 = arith.constant 0 : index
    %c0_95 = arith.constant 0 : index
    %c384_96 = arith.constant 384 : index
    %172 = vector.load %arg2[%c0_94, %c0_95, %c384_96] : memref<1x5x768xbf16, #tpu.memory_space<vmem>>, vector<1x5x64xbf16>
    %173 = vector.shape_cast %172 : vector<1x5x64xbf16> to vector<5x64xbf16>
    %174 = vector.shape_cast %171 : vector<5x64xbf16> to vector<1x5x64xbf16>
    tpu.vector_store %arg2[%c0_94, %c0_95, %c384_96], %174 {strides = array<i32>} : memref<1x5x768xbf16, #tpu.memory_space<vmem>>, vector<1x5x64xbf16>,
    %c0_97 = arith.constant 0 : index
    %c0_98 = arith.constant 0 : index
    %c448 = arith.constant 448 : index
    %175 = vector.load %arg1[%c0_97, %c0_98, %c448] : memref<1x5x2304xbf16, #tpu.memory_space<vmem>>, vector<1x5x64xbf16>
    %176 = vector.shape_cast %175 : vector<1x5x64xbf16> to vector<5x64xbf16>
    %c0_99 = arith.constant 0 : index
    %c0_100 = arith.constant 0 : index
    %c1216 = arith.constant 1216 : index
    %177 = vector.load %arg1[%c0_99, %c0_100, %c1216] : memref<1x5x2304xbf16, #tpu.memory_space<vmem>>, vector<1x5x64xbf16>
    %178 = vector.shape_cast %177 : vector<1x5x64xbf16> to vector<5x64xbf16>
    %c0_101 = arith.constant 0 : index
    %c0_102 = arith.constant 0 : index
    %c1984 = arith.constant 1984 : index
    %179 = vector.load %arg1[%c0_101, %c0_102, %c1984] : memref<1x5x2304xbf16, #tpu.memory_space<vmem>>, vector<1x5x64xbf16>
    %180 = vector.shape_cast %179 : vector<1x5x64xbf16> to vector<5x64xbf16>
    %cst_103 = arith.constant dense<0.000000e+00> : vector<5x5xf32>
    %181 = tpu.matmul %176, %178, %cst_103 {dimension_numbers = #tpu.dot_dimension_numbers<[1], [1], [0], [0], [0, 0, 1, 0], [], []>} : vector<5x64xbf16>, vector<5x64xbf16>, vector<5x5xf32> -> vector<5x5xf32>
    %cst_104 = arith.constant 1.250000e-01 : f32
    %182 = vector.broadcast %cst_104 : f32 to vector<5x5xf32>
    %183 = arith.mulf %181, %182 : vector<5x5xf32>
    %cst_105 = arith.constant dense<0xFF800000> : vector<5xf32>
    %184 = vector.multi_reduction <maximumf>, %183, %cst_105 [1] : vector<5x5xf32> to vector<5xf32>
    %185 = vector.shape_cast %184 : vector<5xf32> to vector<5x1xf32>
    %186 = vector.broadcast %185 : vector<5x1xf32> to vector<5x5xf32>
    %187 = arith.subf %183, %186 : vector<5x5xf32>
    %188 = math.exp %187 : vector<5x5xf32>
    %cst_106 = arith.constant dense<0.000000e+00> : vector<5xf32>
    %189 = vector.multi_reduction <add>, %188, %cst_106 [1] : vector<5x5xf32> to vector<5xf32>
    %190 = vector.shape_cast %189 : vector<5xf32> to vector<5x1xf32>
    %191 = tpu.reciprocal %190 {approx = true} : vector<5x1xf32> -> vector<5x1xf32>
    %192 = vector.broadcast %191 : vector<5x1xf32> to vector<5x5xf32>
    %193 = arith.mulf %188, %192 : vector<5x5xf32>
    %194 = arith.truncf %193 : vector<5x5xf32> to vector<5x5xbf16>
    %cst_107 = arith.constant dense<0.000000e+00> : vector<5x64xf32>
    %195 = tpu.matmul %194, %180, %cst_107 {dimension_numbers = #tpu.dot_dimension_numbers<[1], [0], [0], [1], [0, 0, 1, 1], [], []>} : vector<5x5xbf16>, vector<5x64xbf16>, vector<5x64xf32> -> vector<5x64xf32>
    %196 = arith.truncf %195 : vector<5x64xf32> to vector<5x64xbf16>
    %c0_108 = arith.constant 0 : index
    %c0_109 = arith.constant 0 : index
    %c448_110 = arith.constant 448 : index
    %197 = vector.load %arg2[%c0_108, %c0_109, %c448_110] : memref<1x5x768xbf16, #tpu.memory_space<vmem>>, vector<1x5x64xbf16>
    %198 = vector.shape_cast %197 : vector<1x5x64xbf16> to vector<5x64xbf16>
    %199 = vector.shape_cast %196 : vector<5x64xbf16> to vector<1x5x64xbf16>
    tpu.vector_store %arg2[%c0_108, %c0_109, %c448_110], %199 {strides = array<i32>} : memref<1x5x768xbf16, #tpu.memory_space<vmem>>, vector<1x5x64xbf16>,
    %c0_111 = arith.constant 0 : index
    %c0_112 = arith.constant 0 : index
    %c512 = arith.constant 512 : index
    %200 = vector.load %arg1[%c0_111, %c0_112, %c512] : memref<1x5x2304xbf16, #tpu.memory_space<vmem>>, vector<1x5x64xbf16>
    %201 = vector.shape_cast %200 : vector<1x5x64xbf16> to vector<5x64xbf16>
    %c0_113 = arith.constant 0 : index
    %c0_114 = arith.constant 0 : index
    %c1280 = arith.constant 1280 : index
    %202 = vector.load %arg1[%c0_113, %c0_114, %c1280] : memref<1x5x2304xbf16, #tpu.memory_space<vmem>>, vector<1x5x64xbf16>
    %203 = vector.shape_cast %202 : vector<1x5x64xbf16> to vector<5x64xbf16>
    %c0_115 = arith.constant 0 : index
    %c0_116 = arith.constant 0 : index
    %c2048 = arith.constant 2048 : index
    %204 = vector.load %arg1[%c0_115, %c0_116, %c2048] : memref<1x5x2304xbf16, #tpu.memory_space<vmem>>, vector<1x5x64xbf16>
    %205 = vector.shape_cast %204 : vector<1x5x64xbf16> to vector<5x64xbf16>
    %cst_117 = arith.constant dense<0.000000e+00> : vector<5x5xf32>
    %206 = tpu.matmul %201, %203, %cst_117 {dimension_numbers = #tpu.dot_dimension_numbers<[1], [1], [0], [0], [0, 0, 1, 0], [], []>} : vector<5x64xbf16>, vector<5x64xbf16>, vector<5x5xf32> -> vector<5x5xf32>
    %cst_118 = arith.constant 1.250000e-01 : f32
    %207 = vector.broadcast %cst_118 : f32 to vector<5x5xf32>
    %208 = arith.mulf %206, %207 : vector<5x5xf32>
    %cst_119 = arith.constant dense<0xFF800000> : vector<5xf32>
    %209 = vector.multi_reduction <maximumf>, %208, %cst_119 [1] : vector<5x5xf32> to vector<5xf32>
    %210 = vector.shape_cast %209 : vector<5xf32> to vector<5x1xf32>
    %211 = vector.broadcast %210 : vector<5x1xf32> to vector<5x5xf32>
    %212 = arith.subf %208, %211 : vector<5x5xf32>
    %213 = math.exp %212 : vector<5x5xf32>
    %cst_120 = arith.constant dense<0.000000e+00> : vector<5xf32>
    %214 = vector.multi_reduction <add>, %213, %cst_120 [1] : vector<5x5xf32> to vector<5xf32>
    %215 = vector.shape_cast %214 : vector<5xf32> to vector<5x1xf32>
    %216 = tpu.reciprocal %215 {approx = true} : vector<5x1xf32> -> vector<5x1xf32>
    %217 = vector.broadcast %216 : vector<5x1xf32> to vector<5x5xf32>
    %218 = arith.mulf %213, %217 : vector<5x5xf32>
    %219 = arith.truncf %218 : vector<5x5xf32> to vector<5x5xbf16>
    %cst_121 = arith.constant dense<0.000000e+00> : vector<5x64xf32>
    %220 = tpu.matmul %219, %205, %cst_121 {dimension_numbers = #tpu.dot_dimension_numbers<[1], [0], [0], [1], [0, 0, 1, 1], [], []>} : vector<5x5xbf16>, vector<5x64xbf16>, vector<5x64xf32> -> vector<5x64xf32>
    %221 = arith.truncf %220 : vector<5x64xf32> to vector<5x64xbf16>
    %c0_122 = arith.constant 0 : index
    %c0_123 = arith.constant 0 : index
    %c512_124 = arith.constant 512 : index
    %222 = vector.load %arg2[%c0_122, %c0_123, %c512_124] : memref<1x5x768xbf16, #tpu.memory_space<vmem>>, vector<1x5x64xbf16>
    %223 = vector.shape_cast %222 : vector<1x5x64xbf16> to vector<5x64xbf16>
    %224 = vector.shape_cast %221 : vector<5x64xbf16> to vector<1x5x64xbf16>
    tpu.vector_store %arg2[%c0_122, %c0_123, %c512_124], %224 {strides = array<i32>} : memref<1x5x768xbf16, #tpu.memory_space<vmem>>, vector<1x5x64xbf16>,
    %c0_125 = arith.constant 0 : index
    %c0_126 = arith.constant 0 : index
    %c576 = arith.constant 576 : index
    %225 = vector.load %arg1[%c0_125, %c0_126, %c576] : memref<1x5x2304xbf16, #tpu.memory_space<vmem>>, vector<1x5x64xbf16>
    %226 = vector.shape_cast %225 : vector<1x5x64xbf16> to vector<5x64xbf16>
    %c0_127 = arith.constant 0 : index
    %c0_128 = arith.constant 0 : index
    %c1344 = arith.constant 1344 : index
    %227 = vector.load %arg1[%c0_127, %c0_128, %c1344] : memref<1x5x2304xbf16, #tpu.memory_space<vmem>>, vector<1x5x64xbf16>
    %228 = vector.shape_cast %227 : vector<1x5x64xbf16> to vector<5x64xbf16>
    %c0_129 = arith.constant 0 : index
    %c0_130 = arith.constant 0 : index
    %c2112 = arith.constant 2112 : index
    %229 = vector.load %arg1[%c0_129, %c0_130, %c2112] : memref<1x5x2304xbf16, #tpu.memory_space<vmem>>, vector<1x5x64xbf16>
    %230 = vector.shape_cast %229 : vector<1x5x64xbf16> to vector<5x64xbf16>
    %cst_131 = arith.constant dense<0.000000e+00> : vector<5x5xf32>
    %231 = tpu.matmul %226, %228, %cst_131 {dimension_numbers = #tpu.dot_dimension_numbers<[1], [1], [0], [0], [0, 0, 1, 0], [], []>} : vector<5x64xbf16>, vector<5x64xbf16>, vector<5x5xf32> -> vector<5x5xf32>
    %cst_132 = arith.constant 1.250000e-01 : f32
    %232 = vector.broadcast %cst_132 : f32 to vector<5x5xf32>
    %233 = arith.mulf %231, %232 : vector<5x5xf32>
    %cst_133 = arith.constant dense<0xFF800000> : vector<5xf32>
    %234 = vector.multi_reduction <maximumf>, %233, %cst_133 [1] : vector<5x5xf32> to vector<5xf32>
    %235 = vector.shape_cast %234 : vector<5xf32> to vector<5x1xf32>
    %236 = vector.broadcast %235 : vector<5x1xf32> to vector<5x5xf32>
    %237 = arith.subf %233, %236 : vector<5x5xf32>
    %238 = math.exp %237 : vector<5x5xf32>
    %cst_134 = arith.constant dense<0.000000e+00> : vector<5xf32>
    %239 = vector.multi_reduction <add>, %238, %cst_134 [1] : vector<5x5xf32> to vector<5xf32>
    %240 = vector.shape_cast %239 : vector<5xf32> to vector<5x1xf32>
    %241 = tpu.reciprocal %240 {approx = true} : vector<5x1xf32> -> vector<5x1xf32>
    %242 = vector.broadcast %241 : vector<5x1xf32> to vector<5x5xf32>
    %243 = arith.mulf %238, %242 : vector<5x5xf32>
    %244 = arith.truncf %243 : vector<5x5xf32> to vector<5x5xbf16>
    %cst_135 = arith.constant dense<0.000000e+00> : vector<5x64xf32>
    %245 = tpu.matmul %244, %230, %cst_135 {dimension_numbers = #tpu.dot_dimension_numbers<[1], [0], [0], [1], [0, 0, 1, 1], [], []>} : vector<5x5xbf16>, vector<5x64xbf16>, vector<5x64xf32> -> vector<5x64xf32>
    %246 = arith.truncf %245 : vector<5x64xf32> to vector<5x64xbf16>
    %c0_136 = arith.constant 0 : index
    %c0_137 = arith.constant 0 : index
    %c576_138 = arith.constant 576 : index
    %247 = vector.load %arg2[%c0_136, %c0_137, %c576_138] : memref<1x5x768xbf16, #tpu.memory_space<vmem>>, vector<1x5x64xbf16>
    %248 = vector.shape_cast %247 : vector<1x5x64xbf16> to vector<5x64xbf16>
    %249 = vector.shape_cast %246 : vector<5x64xbf16> to vector<1x5x64xbf16>
    tpu.vector_store %arg2[%c0_136, %c0_137, %c576_138], %249 {strides = array<i32>} : memref<1x5x768xbf16, #tpu.memory_space<vmem>>, vector<1x5x64xbf16>,
    %c0_139 = arith.constant 0 : index
    %c0_140 = arith.constant 0 : index
    %c640 = arith.constant 640 : index
    %250 = vector.load %arg1[%c0_139, %c0_140, %c640] : memref<1x5x2304xbf16, #tpu.memory_space<vmem>>, vector<1x5x64xbf16>
    %251 = vector.shape_cast %250 : vector<1x5x64xbf16> to vector<5x64xbf16>
    %c0_141 = arith.constant 0 : index
    %c0_142 = arith.constant 0 : index
    %c1408 = arith.constant 1408 : index
    %252 = vector.load %arg1[%c0_141, %c0_142, %c1408] : memref<1x5x2304xbf16, #tpu.memory_space<vmem>>, vector<1x5x64xbf16>
    %253 = vector.shape_cast %252 : vector<1x5x64xbf16> to vector<5x64xbf16>
    %c0_143 = arith.constant 0 : index
    %c0_144 = arith.constant 0 : index
    %c2176 = arith.constant 2176 : index
    %254 = vector.load %arg1[%c0_143, %c0_144, %c2176] : memref<1x5x2304xbf16, #tpu.memory_space<vmem>>, vector<1x5x64xbf16>
    %255 = vector.shape_cast %254 : vector<1x5x64xbf16> to vector<5x64xbf16>
    %cst_145 = arith.constant dense<0.000000e+00> : vector<5x5xf32>
    %256 = tpu.matmul %251, %253, %cst_145 {dimension_numbers = #tpu.dot_dimension_numbers<[1], [1], [0], [0], [0, 0, 1, 0], [], []>} : vector<5x64xbf16>, vector<5x64xbf16>, vector<5x5xf32> -> vector<5x5xf32>
    %cst_146 = arith.constant 1.250000e-01 : f32
    %257 = vector.broadcast %cst_146 : f32 to vector<5x5xf32>
    %258 = arith.mulf %256, %257 : vector<5x5xf32>
    %cst_147 = arith.constant dense<0xFF800000> : vector<5xf32>
    %259 = vector.multi_reduction <maximumf>, %258, %cst_147 [1] : vector<5x5xf32> to vector<5xf32>
    %260 = vector.shape_cast %259 : vector<5xf32> to vector<5x1xf32>
    %261 = vector.broadcast %260 : vector<5x1xf32> to vector<5x5xf32>
    %262 = arith.subf %258, %261 : vector<5x5xf32>
    %263 = math.exp %262 : vector<5x5xf32>
    %cst_148 = arith.constant dense<0.000000e+00> : vector<5xf32>
    %264 = vector.multi_reduction <add>, %263, %cst_148 [1] : vector<5x5xf32> to vector<5xf32>
    %265 = vector.shape_cast %264 : vector<5xf32> to vector<5x1xf32>
    %266 = tpu.reciprocal %265 {approx = true} : vector<5x1xf32> -> vector<5x1xf32>
    %267 = vector.broadcast %266 : vector<5x1xf32> to vector<5x5xf32>
    %268 = arith.mulf %263, %267 : vector<5x5xf32>
    %269 = arith.truncf %268 : vector<5x5xf32> to vector<5x5xbf16>
    %cst_149 = arith.constant dense<0.000000e+00> : vector<5x64xf32>
    %270 = tpu.matmul %269, %255, %cst_149 {dimension_numbers = #tpu.dot_dimension_numbers<[1], [0], [0], [1], [0, 0, 1, 1], [], []>} : vector<5x5xbf16>, vector<5x64xbf16>, vector<5x64xf32> -> vector<5x64xf32>
    %271 = arith.truncf %270 : vector<5x64xf32> to vector<5x64xbf16>
    %c0_150 = arith.constant 0 : index
    %c0_151 = arith.constant 0 : index
    %c640_152 = arith.constant 640 : index
    %272 = vector.load %arg2[%c0_150, %c0_151, %c640_152] : memref<1x5x768xbf16, #tpu.memory_space<vmem>>, vector<1x5x64xbf16>
    %273 = vector.shape_cast %272 : vector<1x5x64xbf16> to vector<5x64xbf16>
    %274 = vector.shape_cast %271 : vector<5x64xbf16> to vector<1x5x64xbf16>
    tpu.vector_store %arg2[%c0_150, %c0_151, %c640_152], %274 {strides = array<i32>} : memref<1x5x768xbf16, #tpu.memory_space<vmem>>, vector<1x5x64xbf16>,
    %c0_153 = arith.constant 0 : index
    %c0_154 = arith.constant 0 : index
    %c704 = arith.constant 704 : index
    %275 = vector.load %arg1[%c0_153, %c0_154, %c704] : memref<1x5x2304xbf16, #tpu.memory_space<vmem>>, vector<1x5x64xbf16>
    %276 = vector.shape_cast %275 : vector<1x5x64xbf16> to vector<5x64xbf16>
    %c0_155 = arith.constant 0 : index
    %c0_156 = arith.constant 0 : index
    %c1472 = arith.constant 1472 : index
    %277 = vector.load %arg1[%c0_155, %c0_156, %c1472] : memref<1x5x2304xbf16, #tpu.memory_space<vmem>>, vector<1x5x64xbf16>
    %278 = vector.shape_cast %277 : vector<1x5x64xbf16> to vector<5x64xbf16>
    %c0_157 = arith.constant 0 : index
    %c0_158 = arith.constant 0 : index
    %c2240 = arith.constant 2240 : index
    %279 = vector.load %arg1[%c0_157, %c0_158, %c2240] : memref<1x5x2304xbf16, #tpu.memory_space<vmem>>, vector<1x5x64xbf16>
    %280 = vector.shape_cast %279 : vector<1x5x64xbf16> to vector<5x64xbf16>
    %cst_159 = arith.constant dense<0.000000e+00> : vector<5x5xf32>
    %281 = tpu.matmul %276, %278, %cst_159 {dimension_numbers = #tpu.dot_dimension_numbers<[1], [1], [0], [0], [0, 0, 1, 0], [], []>} : vector<5x64xbf16>, vector<5x64xbf16>, vector<5x5xf32> -> vector<5x5xf32>
    %cst_160 = arith.constant 1.250000e-01 : f32
    %282 = vector.broadcast %cst_160 : f32 to vector<5x5xf32>
    %283 = arith.mulf %281, %282 : vector<5x5xf32>
    %cst_161 = arith.constant dense<0xFF800000> : vector<5xf32>
    %284 = vector.multi_reduction <maximumf>, %283, %cst_161 [1] : vector<5x5xf32> to vector<5xf32>
    %285 = vector.shape_cast %284 : vector<5xf32> to vector<5x1xf32>
    %286 = vector.broadcast %285 : vector<5x1xf32> to vector<5x5xf32>
    %287 = arith.subf %283, %286 : vector<5x5xf32>
    %288 = math.exp %287 : vector<5x5xf32>
    %cst_162 = arith.constant dense<0.000000e+00> : vector<5xf32>
    %289 = vector.multi_reduction <add>, %288, %cst_162 [1] : vector<5x5xf32> to vector<5xf32>
    %290 = vector.shape_cast %289 : vector<5xf32> to vector<5x1xf32>
    %291 = tpu.reciprocal %290 {approx = true} : vector<5x1xf32> -> vector<5x1xf32>
    %292 = vector.broadcast %291 : vector<5x1xf32> to vector<5x5xf32>
    %293 = arith.mulf %288, %292 : vector<5x5xf32>
    %294 = arith.truncf %293 : vector<5x5xf32> to vector<5x5xbf16>
    %cst_163 = arith.constant dense<0.000000e+00> : vector<5x64xf32>
    %295 = tpu.matmul %294, %280, %cst_163 {dimension_numbers = #tpu.dot_dimension_numbers<[1], [0], [0], [1], [0, 0, 1, 1], [], []>} : vector<5x5xbf16>, vector<5x64xbf16>, vector<5x64xf32> -> vector<5x64xf32>
    %296 = arith.truncf %295 : vector<5x64xf32> to vector<5x64xbf16>
    %c0_164 = arith.constant 0 : index
    %c0_165 = arith.constant 0 : index
    %c704_166 = arith.constant 704 : index
    %297 = vector.load %arg2[%c0_164, %c0_165, %c704_166] : memref<1x5x768xbf16, #tpu.memory_space<vmem>>, vector<1x5x64xbf16>
    %298 = vector.shape_cast %297 : vector<1x5x64xbf16> to vector<5x64xbf16>
    %299 = vector.shape_cast %296 : vector<5x64xbf16> to vector<1x5x64xbf16>
    tpu.vector_store %arg2[%c0_164, %c0_165, %c704_166], %299 {strides = array<i32>} : memref<1x5x768xbf16, #tpu.memory_space<vmem>>, vector<1x5x64xbf16>,
    return
  }
  func.func @transform_0(%arg0: i32) -> (i32, i32, i32) {
    %c0_i32 = arith.constant 0 : i32
    %c0_i32_0 = arith.constant 0 : i32
    %c0_i32_1 = arith.constant 0 : i32
    return %arg0, %c0_i32, %c0_i32_0 : i32, i32, i32
  }
  func.func @transform_1(%arg0: i32) -> (i32, i32, i32) {
    %c0_i32 = arith.constant 0 : i32
    %c0_i32_0 = arith.constant 0 : i32
    %c0_i32_1 = arith.constant 0 : i32
    return %arg0, %c0_i32, %c0_i32_0 : i32, i32, i32
  }
}

module attributes {stable_mosaic.version = 11 : i64} {
  func.func @_linear_kernel(%arg0: i32, %arg1: i32, %arg2: memref<10x768xbf16, #tpu.memory_space<vmem>>, %arg3: memref<1x768xf32, #tpu.memory_space<vmem>>, %arg4: memref<1x768xf32, #tpu.memory_space<vmem>>, %arg5: memref<768x256xbf16, #tpu.memory_space<vmem>>, %arg6: memref<1x256xf32, #tpu.memory_space<vmem>>, %arg7: memref<10x256xbf16, #tpu.memory_space<vmem>>) attributes {dimension_semantics = [#tpu.dimension_semantics<parallel>, #tpu.dimension_semantics<parallel>], iteration_bounds = array<i64: 1, 9>, scalar_prefetch = 0 : i64, scratch_operands = 0 : i64, tpu.core_type = #tpu.core_type<tc>, window_params = [{transform_indices = @transform_0, window_bounds = array<i64: 10, 768>}, {pipeline_mode = #tpu.pipeline_mode<synchronous>, transform_indices = @transform_1, window_bounds = array<i64: 1, 768>}, {pipeline_mode = #tpu.pipeline_mode<synchronous>, transform_indices = @transform_2, window_bounds = array<i64: 1, 768>}, {transform_indices = @transform_3, window_bounds = array<i64: 768, 256>}, {transform_indices = @transform_4, window_bounds = array<i64: 1, 256>}, {transform_indices = @transform_5, window_bounds = array<i64: 10, 256>}]} {
    %c0 = arith.constant 0 : index
    %c0_0 = arith.constant 0 : index
    %0 = vector.load %arg2[%c0, %c0_0] : memref<10x768xbf16, #tpu.memory_space<vmem>>, vector<10x768xbf16>
    %1 = arith.extf %0 : vector<10x768xbf16> to vector<10x768xf32>
    %cst = arith.constant dense<0.000000e+00> : vector<10xf32>
    %2 = vector.multi_reduction <add>, %1, %cst [1] : vector<10x768xf32> to vector<10xf32>
    %3 = vector.shape_cast %2 : vector<10xf32> to vector<10x1xf32>
    %cst_1 = arith.constant 7.680000e+02 : f32
    %4 = vector.broadcast %cst_1 : f32 to vector<10x1xf32>
    %5 = arith.divf %3, %4 : vector<10x1xf32>
    %6 = vector.broadcast %5 : vector<10x1xf32> to vector<10x768xf32>
    %7 = arith.subf %1, %6 : vector<10x768xf32>
    %8 = arith.mulf %7, %7 : vector<10x768xf32>
    %cst_2 = arith.constant dense<0.000000e+00> : vector<10xf32>
    %9 = vector.multi_reduction <add>, %8, %cst_2 [1] : vector<10x768xf32> to vector<10xf32>
    %10 = vector.shape_cast %9 : vector<10xf32> to vector<10x1xf32>
    %cst_3 = arith.constant 7.680000e+02 : f32
    %11 = vector.broadcast %cst_3 : f32 to vector<10x1xf32>
    %12 = arith.divf %10, %11 : vector<10x1xf32>
    %cst_4 = arith.constant 9.99999997E-7 : f32
    %13 = vector.broadcast %cst_4 : f32 to vector<10x1xf32>
    %14 = arith.addf %12, %13 : vector<10x1xf32>
    %15 = math.rsqrt %14 : vector<10x1xf32>
    %16 = vector.broadcast %15 : vector<10x1xf32> to vector<10x768xf32>
    %17 = arith.mulf %7, %16 : vector<10x768xf32>
    %c0_5 = arith.constant 0 : index
    %c0_6 = arith.constant 0 : index
    %18 = vector.load %arg3[%c0_5, %c0_6] : memref<1x768xf32, #tpu.memory_space<vmem>>, vector<1x768xf32>
    %19 = vector.broadcast %18 : vector<1x768xf32> to vector<10x768xf32>
    %20 = arith.mulf %17, %19 : vector<10x768xf32>
    %c0_7 = arith.constant 0 : index
    %c0_8 = arith.constant 0 : index
    %21 = vector.load %arg4[%c0_7, %c0_8] : memref<1x768xf32, #tpu.memory_space<vmem>>, vector<1x768xf32>
    %22 = vector.broadcast %21 : vector<1x768xf32> to vector<10x768xf32>
    %23 = arith.addf %20, %22 : vector<10x768xf32>
    %24 = arith.truncf %23 : vector<10x768xf32> to vector<10x768xbf16>
    %c0_9 = arith.constant 0 : index
    %c0_10 = arith.constant 0 : index
    %25 = vector.load %arg5[%c0_9, %c0_10] : memref<768x256xbf16, #tpu.memory_space<vmem>>, vector<768x256xbf16>
    %cst_11 = arith.constant dense<0.000000e+00> : vector<10x256xf32>
    %26 = tpu.matmul %24, %25, %cst_11 {dimension_numbers = #tpu.dot_dimension_numbers<[1], [0], [0], [1], [0, 0, 1, 1], [], []>} : vector<10x768xbf16>, vector<768x256xbf16>, vector<10x256xf32> -> vector<10x256xf32>
    %c0_12 = arith.constant 0 : index
    %c0_13 = arith.constant 0 : index
    %27 = vector.load %arg6[%c0_12, %c0_13] : memref<1x256xf32, #tpu.memory_space<vmem>>, vector<1x256xf32>
    %28 = vector.broadcast %27 : vector<1x256xf32> to vector<10x256xf32>
    %29 = arith.addf %26, %28 : vector<10x256xf32>
    %30 = arith.truncf %29 : vector<10x256xf32> to vector<10x256xbf16>
    %c0_14 = arith.constant 0 : index
    %c0_15 = arith.constant 0 : index
    %31 = vector.load %arg7[%c0_14, %c0_15] : memref<10x256xbf16, #tpu.memory_space<vmem>>, vector<10x256xbf16>
    tpu.vector_store %arg7[%c0_14, %c0_15], %30 {strides = array<i32>} : memref<10x256xbf16, #tpu.memory_space<vmem>>, vector<10x256xbf16>,
    return
  }
  func.func @transform_0(%arg0: i32, %arg1: i32) -> (i32, i32) {
    %c0_i32 = arith.constant 0 : i32
    %c0_i32_0 = arith.constant 0 : i32
    return %arg0, %c0_i32 : i32, i32
  }
  func.func @transform_1(%arg0: i32, %arg1: i32) -> (i32, i32) {
    %c0_i32 = arith.constant 0 : i32
    %c0_i32_0 = arith.constant 0 : i32
    %c0_i32_1 = arith.constant 0 : i32
    return %c0_i32, %c0_i32_0 : i32, i32
  }
  func.func @transform_2(%arg0: i32, %arg1: i32) -> (i32, i32) {
    %c0_i32 = arith.constant 0 : i32
    %c0_i32_0 = arith.constant 0 : i32
    %c0_i32_1 = arith.constant 0 : i32
    return %c0_i32, %c0_i32_0 : i32, i32
  }
  func.func @transform_3(%arg0: i32, %arg1: i32) -> (i32, i32) {
    %c0_i32 = arith.constant 0 : i32
    %c0_i32_0 = arith.constant 0 : i32
    return %c0_i32, %arg1 : i32, i32
  }
  func.func @transform_4(%arg0: i32, %arg1: i32) -> (i32, i32) {
    %c0_i32 = arith.constant 0 : i32
    %c0_i32_0 = arith.constant 0 : i32
    return %c0_i32, %arg1 : i32, i32
  }
  func.func @transform_5(%arg0: i32, %arg1: i32) -> (i32, i32) {
    %c0_i32 = arith.constant 0 : i32
    return %arg0, %arg1 : i32, i32
  }
}

module attributes {stable_mosaic.version = 11 : i64} {
  func.func @_linear_kernel(%arg0: i32, %arg1: i32, %arg2: memref<10x768xbf16, #tpu.memory_space<vmem>>, %arg3: memref<768x256xbf16, #tpu.memory_space<vmem>>, %arg4: memref<1x256xf32, #tpu.memory_space<vmem>>, %arg5: memref<10x256xbf16, #tpu.memory_space<vmem>>, %arg6: memref<10x256xbf16, #tpu.memory_space<vmem>>) attributes {dimension_semantics = [#tpu.dimension_semantics<parallel>, #tpu.dimension_semantics<parallel>], iteration_bounds = array<i64: 1, 3>, scalar_prefetch = 0 : i64, scratch_operands = 0 : i64, tpu.core_type = #tpu.core_type<tc>, window_params = [{transform_indices = @transform_0, window_bounds = array<i64: 10, 768>}, {transform_indices = @transform_1, window_bounds = array<i64: 768, 256>}, {transform_indices = @transform_2, window_bounds = array<i64: 1, 256>}, {transform_indices = @transform_3, window_bounds = array<i64: 10, 256>}, {transform_indices = @transform_4, window_bounds = array<i64: 10, 256>}]} {
    %c0 = arith.constant 0 : index
    %c0_0 = arith.constant 0 : index
    %0 = vector.load %arg2[%c0, %c0_0] : memref<10x768xbf16, #tpu.memory_space<vmem>>, vector<10x768xbf16>
    %c0_1 = arith.constant 0 : index
    %c0_2 = arith.constant 0 : index
    %1 = vector.load %arg3[%c0_1, %c0_2] : memref<768x256xbf16, #tpu.memory_space<vmem>>, vector<768x256xbf16>
    %cst = arith.constant dense<0.000000e+00> : vector<10x256xf32>
    %2 = tpu.matmul %0, %1, %cst {dimension_numbers = #tpu.dot_dimension_numbers<[1], [0], [0], [1], [0, 0, 1, 1], [], []>} : vector<10x768xbf16>, vector<768x256xbf16>, vector<10x256xf32> -> vector<10x256xf32>
    %c0_3 = arith.constant 0 : index
    %c0_4 = arith.constant 0 : index
    %3 = vector.load %arg4[%c0_3, %c0_4] : memref<1x256xf32, #tpu.memory_space<vmem>>, vector<1x256xf32>
    %4 = vector.broadcast %3 : vector<1x256xf32> to vector<10x256xf32>
    %5 = arith.addf %2, %4 : vector<10x256xf32>
    %c0_5 = arith.constant 0 : index
    %c0_6 = arith.constant 0 : index
    %6 = vector.load %arg5[%c0_5, %c0_6] : memref<10x256xbf16, #tpu.memory_space<vmem>>, vector<10x256xbf16>
    %7 = arith.extf %6 : vector<10x256xbf16> to vector<10x256xf32>
    %8 = arith.addf %5, %7 : vector<10x256xf32>
    %9 = arith.truncf %8 : vector<10x256xf32> to vector<10x256xbf16>
    %c0_7 = arith.constant 0 : index
    %c0_8 = arith.constant 0 : index
    %10 = vector.load %arg6[%c0_7, %c0_8] : memref<10x256xbf16, #tpu.memory_space<vmem>>, vector<10x256xbf16>
    tpu.vector_store %arg6[%c0_7, %c0_8], %9 {strides = array<i32>} : memref<10x256xbf16, #tpu.memory_space<vmem>>, vector<10x256xbf16>,
    return
  }
  func.func @transform_0(%arg0: i32, %arg1: i32) -> (i32, i32) {
    %c0_i32 = arith.constant 0 : i32
    %c0_i32_0 = arith.constant 0 : i32
    return %arg0, %c0_i32 : i32, i32
  }
  func.func @transform_1(%arg0: i32, %arg1: i32) -> (i32, i32) {
    %c0_i32 = arith.constant 0 : i32
    %c0_i32_0 = arith.constant 0 : i32
    return %c0_i32, %arg1 : i32, i32
  }
  func.func @transform_2(%arg0: i32, %arg1: i32) -> (i32, i32) {
    %c0_i32 = arith.constant 0 : i32
    %c0_i32_0 = arith.constant 0 : i32
    return %c0_i32, %arg1 : i32, i32
  }
  func.func @transform_3(%arg0: i32, %arg1: i32) -> (i32, i32) {
    %c0_i32 = arith.constant 0 : i32
    return %arg0, %arg1 : i32, i32
  }
  func.func @transform_4(%arg0: i32, %arg1: i32) -> (i32, i32) {
    %c0_i32 = arith.constant 0 : i32
    return %arg0, %arg1 : i32, i32
  }
}

module attributes {stable_mosaic.version = 11 : i64} {
  func.func @_linear_kernel(%arg0: i32, %arg1: i32, %arg2: memref<10x3072xbf16, #tpu.memory_space<vmem>>, %arg3: memref<3072x256xbf16, #tpu.memory_space<vmem>>, %arg4: memref<1x256xf32, #tpu.memory_space<vmem>>, %arg5: memref<10x256xbf16, #tpu.memory_space<vmem>>, %arg6: memref<10x256xbf16, #tpu.memory_space<vmem>>) attributes {dimension_semantics = [#tpu.dimension_semantics<parallel>, #tpu.dimension_semantics<parallel>], iteration_bounds = array<i64: 1, 3>, scalar_prefetch = 0 : i64, scratch_operands = 0 : i64, tpu.core_type = #tpu.core_type<tc>, window_params = [{transform_indices = @transform_0, window_bounds = array<i64: 10, 3072>}, {transform_indices = @transform_1, window_bounds = array<i64: 3072, 256>}, {transform_indices = @transform_2, window_bounds = array<i64: 1, 256>}, {transform_indices = @transform_3, window_bounds = array<i64: 10, 256>}, {transform_indices = @transform_4, window_bounds = array<i64: 10, 256>}]} {
    %c0 = arith.constant 0 : index
    %c0_0 = arith.constant 0 : index
    %0 = vector.load %arg2[%c0, %c0_0] : memref<10x3072xbf16, #tpu.memory_space<vmem>>, vector<10x3072xbf16>
    %c0_1 = arith.constant 0 : index
    %c0_2 = arith.constant 0 : index
    %1 = vector.load %arg3[%c0_1, %c0_2] : memref<3072x256xbf16, #tpu.memory_space<vmem>>, vector<3072x256xbf16>
    %cst = arith.constant dense<0.000000e+00> : vector<10x256xf32>
    %2 = tpu.matmul %0, %1, %cst {dimension_numbers = #tpu.dot_dimension_numbers<[1], [0], [0], [1], [0, 0, 1, 1], [], []>} : vector<10x3072xbf16>, vector<3072x256xbf16>, vector<10x256xf32> -> vector<10x256xf32>
    %c0_3 = arith.constant 0 : index
    %c0_4 = arith.constant 0 : index
    %3 = vector.load %arg4[%c0_3, %c0_4] : memref<1x256xf32, #tpu.memory_space<vmem>>, vector<1x256xf32>
    %4 = vector.broadcast %3 : vector<1x256xf32> to vector<10x256xf32>
    %5 = arith.addf %2, %4 : vector<10x256xf32>
    %c0_5 = arith.constant 0 : index
    %c0_6 = arith.constant 0 : index
    %6 = vector.load %arg5[%c0_5, %c0_6] : memref<10x256xbf16, #tpu.memory_space<vmem>>, vector<10x256xbf16>
    %7 = arith.extf %6 : vector<10x256xbf16> to vector<10x256xf32>
    %8 = arith.addf %5, %7 : vector<10x256xf32>
    %9 = arith.truncf %8 : vector<10x256xf32> to vector<10x256xbf16>
    %c0_7 = arith.constant 0 : index
    %c0_8 = arith.constant 0 : index
    %10 = vector.load %arg6[%c0_7, %c0_8] : memref<10x256xbf16, #tpu.memory_space<vmem>>, vector<10x256xbf16>
    tpu.vector_store %arg6[%c0_7, %c0_8], %9 {strides = array<i32>} : memref<10x256xbf16, #tpu.memory_space<vmem>>, vector<10x256xbf16>,
    return
  }
  func.func @transform_0(%arg0: i32, %arg1: i32) -> (i32, i32) {
    %c0_i32 = arith.constant 0 : i32
    %c0_i32_0 = arith.constant 0 : i32
    return %arg0, %c0_i32 : i32, i32
  }
  func.func @transform_1(%arg0: i32, %arg1: i32) -> (i32, i32) {
    %c0_i32 = arith.constant 0 : i32
    %c0_i32_0 = arith.constant 0 : i32
    return %c0_i32, %arg1 : i32, i32
  }
  func.func @transform_2(%arg0: i32, %arg1: i32) -> (i32, i32) {
    %c0_i32 = arith.constant 0 : i32
    %c0_i32_0 = arith.constant 0 : i32
    return %c0_i32, %arg1 : i32, i32
  }
  func.func @transform_3(%arg0: i32, %arg1: i32) -> (i32, i32) {
    %c0_i32 = arith.constant 0 : i32
    return %arg0, %arg1 : i32, i32
  }
  func.func @transform_4(%arg0: i32, %arg1: i32) -> (i32, i32) {
    %c0_i32 = arith.constant 0 : i32
    return %arg0, %arg1 : i32, i32
  }
}

module attributes {stable_mosaic.version = 11 : i64} {
  func.func @_linear_kernel(%arg0: i32, %arg1: i32, %arg2: memref<10x768xbf16, #tpu.memory_space<vmem>>, %arg3: memref<1x768xf32, #tpu.memory_space<vmem>>, %arg4: memref<1x768xf32, #tpu.memory_space<vmem>>, %arg5: memref<768x256xbf16, #tpu.memory_space<vmem>>, %arg6: memref<1x256xf32, #tpu.memory_space<vmem>>, %arg7: memref<10x256xbf16, #tpu.memory_space<vmem>>) attributes {dimension_semantics = [#tpu.dimension_semantics<parallel>, #tpu.dimension_semantics<parallel>], iteration_bounds = array<i64: 1, 12>, scalar_prefetch = 0 : i64, scratch_operands = 0 : i64, tpu.core_type = #tpu.core_type<tc>, window_params = [{transform_indices = @transform_0, window_bounds = array<i64: 10, 768>}, {pipeline_mode = #tpu.pipeline_mode<synchronous>, transform_indices = @transform_1, window_bounds = array<i64: 1, 768>}, {pipeline_mode = #tpu.pipeline_mode<synchronous>, transform_indices = @transform_2, window_bounds = array<i64: 1, 768>}, {transform_indices = @transform_3, window_bounds = array<i64: 768, 256>}, {transform_indices = @transform_4, window_bounds = array<i64: 1, 256>}, {transform_indices = @transform_5, window_bounds = array<i64: 10, 256>}]} {
    %c0 = arith.constant 0 : index
    %c0_0 = arith.constant 0 : index
    %0 = vector.load %arg2[%c0, %c0_0] : memref<10x768xbf16, #tpu.memory_space<vmem>>, vector<10x768xbf16>
    %1 = arith.extf %0 : vector<10x768xbf16> to vector<10x768xf32>
    %cst = arith.constant dense<0.000000e+00> : vector<10xf32>
    %2 = vector.multi_reduction <add>, %1, %cst [1] : vector<10x768xf32> to vector<10xf32>
    %3 = vector.shape_cast %2 : vector<10xf32> to vector<10x1xf32>
    %cst_1 = arith.constant 7.680000e+02 : f32
    %4 = vector.broadcast %cst_1 : f32 to vector<10x1xf32>
    %5 = arith.divf %3, %4 : vector<10x1xf32>
    %6 = vector.broadcast %5 : vector<10x1xf32> to vector<10x768xf32>
    %7 = arith.subf %1, %6 : vector<10x768xf32>
    %8 = arith.mulf %7, %7 : vector<10x768xf32>
    %cst_2 = arith.constant dense<0.000000e+00> : vector<10xf32>
    %9 = vector.multi_reduction <add>, %8, %cst_2 [1] : vector<10x768xf32> to vector<10xf32>
    %10 = vector.shape_cast %9 : vector<10xf32> to vector<10x1xf32>
    %cst_3 = arith.constant 7.680000e+02 : f32
    %11 = vector.broadcast %cst_3 : f32 to vector<10x1xf32>
    %12 = arith.divf %10, %11 : vector<10x1xf32>
    %cst_4 = arith.constant 9.99999997E-7 : f32
    %13 = vector.broadcast %cst_4 : f32 to vector<10x1xf32>
    %14 = arith.addf %12, %13 : vector<10x1xf32>
    %15 = math.rsqrt %14 : vector<10x1xf32>
    %16 = vector.broadcast %15 : vector<10x1xf32> to vector<10x768xf32>
    %17 = arith.mulf %7, %16 : vector<10x768xf32>
    %c0_5 = arith.constant 0 : index
    %c0_6 = arith.constant 0 : index
    %18 = vector.load %arg3[%c0_5, %c0_6] : memref<1x768xf32, #tpu.memory_space<vmem>>, vector<1x768xf32>
    %19 = vector.broadcast %18 : vector<1x768xf32> to vector<10x768xf32>
    %20 = arith.mulf %17, %19 : vector<10x768xf32>
    %c0_7 = arith.constant 0 : index
    %c0_8 = arith.constant 0 : index
    %21 = vector.load %arg4[%c0_7, %c0_8] : memref<1x768xf32, #tpu.memory_space<vmem>>, vector<1x768xf32>
    %22 = vector.broadcast %21 : vector<1x768xf32> to vector<10x768xf32>
    %23 = arith.addf %20, %22 : vector<10x768xf32>
    %24 = arith.truncf %23 : vector<10x768xf32> to vector<10x768xbf16>
    %c0_9 = arith.constant 0 : index
    %c0_10 = arith.constant 0 : index
    %25 = vector.load %arg5[%c0_9, %c0_10] : memref<768x256xbf16, #tpu.memory_space<vmem>>, vector<768x256xbf16>
    %cst_11 = arith.constant dense<0.000000e+00> : vector<10x256xf32>
    %26 = tpu.matmul %24, %25, %cst_11 {dimension_numbers = #tpu.dot_dimension_numbers<[1], [0], [0], [1], [0, 0, 1, 1], [], []>} : vector<10x768xbf16>, vector<768x256xbf16>, vector<10x256xf32> -> vector<10x256xf32>
    %c0_12 = arith.constant 0 : index
    %c0_13 = arith.constant 0 : index
    %27 = vector.load %arg6[%c0_12, %c0_13] : memref<1x256xf32, #tpu.memory_space<vmem>>, vector<1x256xf32>
    %28 = vector.broadcast %27 : vector<1x256xf32> to vector<10x256xf32>
    %29 = arith.addf %26, %28 : vector<10x256xf32>
    %cst_14 = arith.constant 5.000000e-01 : f32
    %30 = vector.broadcast %cst_14 : f32 to vector<10x256xf32>
    %31 = arith.mulf %30, %29 : vector<10x256xf32>
    %cst_15 = arith.constant 0.707106769 : f32
    %32 = vector.broadcast %cst_15 : f32 to vector<10x256xf32>
    %33 = arith.mulf %29, %32 : vector<10x256xf32>
    %34 = math.erf %33 : vector<10x256xf32>
    %cst_16 = arith.constant 1.000000e+00 : f32
    %35 = vector.broadcast %cst_16 : f32 to vector<10x256xf32>
    %36 = arith.addf %35, %34 : vector<10x256xf32>
    %37 = arith.mulf %31, %36 : vector<10x256xf32>
    %38 = arith.truncf %37 : vector<10x256xf32> to vector<10x256xbf16>
    %c0_17 = arith.constant 0 : index
    %c0_18 = arith.constant 0 : index
    %39 = vector.load %arg7[%c0_17, %c0_18] : memref<10x256xbf16, #tpu.memory_space<vmem>>, vector<10x256xbf16>
    tpu.vector_store %arg7[%c0_17, %c0_18], %38 {strides = array<i32>} : memref<10x256xbf16, #tpu.memory_space<vmem>>, vector<10x256xbf16>,
    return
  }
  func.func @transform_0(%arg0: i32, %arg1: i32) -> (i32, i32) {
    %c0_i32 = arith.constant 0 : i32
    %c0_i32_0 = arith.constant 0 : i32
    return %arg0, %c0_i32 : i32, i32
  }
  func.func @transform_1(%arg0: i32, %arg1: i32) -> (i32, i32) {
    %c0_i32 = arith.constant 0 : i32
    %c0_i32_0 = arith.constant 0 : i32
    %c0_i32_1 = arith.constant 0 : i32
    return %c0_i32, %c0_i32_0 : i32, i32
  }
  func.func @transform_2(%arg0: i32, %arg1: i32) -> (i32, i32) {
    %c0_i32 = arith.constant 0 : i32
    %c0_i32_0 = arith.constant 0 : i32
    %c0_i32_1 = arith.constant 0 : i32
    return %c0_i32, %c0_i32_0 : i32, i32
  }
  func.func @transform_3(%arg0: i32, %arg1: i32) -> (i32, i32) {
    %c0_i32 = arith.constant 0 : i32
    %c0_i32_0 = arith.constant 0 : i32
    return %c0_i32, %arg1 : i32, i32
  }
  func.func @transform_4(%arg0: i32, %arg1: i32) -> (i32, i32) {
    %c0_i32 = arith.constant 0 : i32
    %c0_i32_0 = arith.constant 0 : i32
    return %c0_i32, %arg1 : i32, i32
  }
  func.func @transform_5(%arg0: i32, %arg1: i32) -> (i32, i32) {
    %c0_i32 = arith.constant 0 : i32
    return %arg0, %arg1 : i32, i32
  }
}

module attributes {stable_mosaic.version = 11 : i64} {
  func.func @_linear_kernel(%arg0: i32, %arg1: i32, %arg2: memref<2x768xbf16, #tpu.memory_space<vmem>>, %arg3: memref<1x768xf32, #tpu.memory_space<vmem>>, %arg4: memref<1x768xf32, #tpu.memory_space<vmem>>, %arg5: memref<768x128xbf16, #tpu.memory_space<vmem>>, %arg6: memref<1x128xf32, #tpu.memory_space<vmem>>, %arg7: memref<2x128xf32, #tpu.memory_space<vmem>>) attributes {dimension_semantics = [#tpu.dimension_semantics<parallel>, #tpu.dimension_semantics<parallel>], iteration_bounds = array<i64: 1, 1>, scalar_prefetch = 0 : i64, scratch_operands = 0 : i64, tpu.core_type = #tpu.core_type<tc>, window_params = [{transform_indices = @transform_0, window_bounds = array<i64: 2, 768>}, {pipeline_mode = #tpu.pipeline_mode<synchronous>, transform_indices = @transform_1, window_bounds = array<i64: 1, 768>}, {pipeline_mode = #tpu.pipeline_mode<synchronous>, transform_indices = @transform_2, window_bounds = array<i64: 1, 768>}, {transform_indices = @transform_3, window_bounds = array<i64: 768, 128>}, {transform_indices = @transform_4, window_bounds = array<i64: 1, 128>}, {transform_indices = @transform_5, window_bounds = array<i64: 2, 128>}]} {
    %c0 = arith.constant 0 : index
    %c0_0 = arith.constant 0 : index
    %0 = vector.load %arg2[%c0, %c0_0] : memref<2x768xbf16, #tpu.memory_space<vmem>>, vector<2x768xbf16>
    %1 = arith.extf %0 : vector<2x768xbf16> to vector<2x768xf32>
    %cst = arith.constant dense<0.000000e+00> : vector<2xf32>
    %2 = vector.multi_reduction <add>, %1, %cst [1] : vector<2x768xf32> to vector<2xf32>
    %3 = vector.shape_cast %2 : vector<2xf32> to vector<2x1xf32>
    %cst_1 = arith.constant 7.680000e+02 : f32
    %4 = vector.broadcast %cst_1 : f32 to vector<2x1xf32>
    %5 = arith.divf %3, %4 : vector<2x1xf32>
    %6 = vector.broadcast %5 : vector<2x1xf32> to vector<2x768xf32>
    %7 = arith.subf %1, %6 : vector<2x768xf32>
    %8 = arith.mulf %7, %7 : vector<2x768xf32>
    %cst_2 = arith.constant dense<0.000000e+00> : vector<2xf32>
    %9 = vector.multi_reduction <add>, %8, %cst_2 [1] : vector<2x768xf32> to vector<2xf32>
    %10 = vector.shape_cast %9 : vector<2xf32> to vector<2x1xf32>
    %cst_3 = arith.constant 7.680000e+02 : f32
    %11 = vector.broadcast %cst_3 : f32 to vector<2x1xf32>
    %12 = arith.divf %10, %11 : vector<2x1xf32>
    %cst_4 = arith.constant 9.99999997E-7 : f32
    %13 = vector.broadcast %cst_4 : f32 to vector<2x1xf32>
    %14 = arith.addf %12, %13 : vector<2x1xf32>
    %15 = math.rsqrt %14 : vector<2x1xf32>
    %16 = vector.broadcast %15 : vector<2x1xf32> to vector<2x768xf32>
    %17 = arith.mulf %7, %16 : vector<2x768xf32>
    %c0_5 = arith.constant 0 : index
    %c0_6 = arith.constant 0 : index
    %18 = vector.load %arg3[%c0_5, %c0_6] : memref<1x768xf32, #tpu.memory_space<vmem>>, vector<1x768xf32>
    %19 = vector.broadcast %18 : vector<1x768xf32> to vector<2x768xf32>
    %20 = arith.mulf %17, %19 : vector<2x768xf32>
    %c0_7 = arith.constant 0 : index
    %c0_8 = arith.constant 0 : index
    %21 = vector.load %arg4[%c0_7, %c0_8] : memref<1x768xf32, #tpu.memory_space<vmem>>, vector<1x768xf32>
    %22 = vector.broadcast %21 : vector<1x768xf32> to vector<2x768xf32>
    %23 = arith.addf %20, %22 : vector<2x768xf32>
    %24 = arith.truncf %23 : vector<2x768xf32> to vector<2x768xbf16>
    %c0_9 = arith.constant 0 : index
    %c0_10 = arith.constant 0 : index
    %25 = vector.load %arg5[%c0_9, %c0_10] : memref<768x128xbf16, #tpu.memory_space<vmem>>, vector<768x128xbf16>
    %cst_11 = arith.constant dense<0.000000e+00> : vector<2x128xf32>
    %26 = tpu.matmul %24, %25, %cst_11 {dimension_numbers = #tpu.dot_dimension_numbers<[1], [0], [0], [1], [0, 0, 1, 1], [], []>} : vector<2x768xbf16>, vector<768x128xbf16>, vector<2x128xf32> -> vector<2x128xf32>
    %c0_12 = arith.constant 0 : index
    %c0_13 = arith.constant 0 : index
    %27 = vector.load %arg6[%c0_12, %c0_13] : memref<1x128xf32, #tpu.memory_space<vmem>>, vector<1x128xf32>
    %28 = vector.broadcast %27 : vector<1x128xf32> to vector<2x128xf32>
    %29 = arith.addf %26, %28 : vector<2x128xf32>
    %c0_14 = arith.constant 0 : index
    %c0_15 = arith.constant 0 : index
    %30 = vector.load %arg7[%c0_14, %c0_15] : memref<2x128xf32, #tpu.memory_space<vmem>>, vector<2x128xf32>
    tpu.vector_store %arg7[%c0_14, %c0_15], %29 {strides = array<i32>} : memref<2x128xf32, #tpu.memory_space<vmem>>, vector<2x128xf32>,
    return
  }
  func.func @transform_0(%arg0: i32, %arg1: i32) -> (i32, i32) {
    %c0_i32 = arith.constant 0 : i32
    %c0_i32_0 = arith.constant 0 : i32
    return %arg0, %c0_i32 : i32, i32
  }
  func.func @transform_1(%arg0: i32, %arg1: i32) -> (i32, i32) {
    %c0_i32 = arith.constant 0 : i32
    %c0_i32_0 = arith.constant 0 : i32
    %c0_i32_1 = arith.constant 0 : i32
    return %c0_i32, %c0_i32_0 : i32, i32
  }
  func.func @transform_2(%arg0: i32, %arg1: i32) -> (i32, i32) {
    %c0_i32 = arith.constant 0 : i32
    %c0_i32_0 = arith.constant 0 : i32
    %c0_i32_1 = arith.constant 0 : i32
    return %c0_i32, %c0_i32_0 : i32, i32
  }
  func.func @transform_3(%arg0: i32, %arg1: i32) -> (i32, i32) {
    %c0_i32 = arith.constant 0 : i32
    %c0_i32_0 = arith.constant 0 : i32
    return %c0_i32, %arg1 : i32, i32
  }
  func.func @transform_4(%arg0: i32, %arg1: i32) -> (i32, i32) {
    %c0_i32 = arith.constant 0 : i32
    %c0_i32_0 = arith.constant 0 : i32
    return %c0_i32, %arg1 : i32, i32
  }
  func.func @transform_5(%arg0: i32, %arg1: i32) -> (i32, i32) {
    %c0_i32 = arith.constant 0 : i32
    return %arg0, %arg1 : i32, i32
  }
}

</mosaic_0001>

<bundles_post_ra>
// kernel: aux_vit_forward.2
= control target key start
LH: loop header
LB: loop body
LE: loop exit
PB: predicated region body
PF: predicated region fallthrough
CT: control target
= control target key end

     0   :  { %8 = vsyncpa [#allocation3], 0  ;;  %s1797_s0 = inlined_call_operand.vmem [shape: bf16[8,768], index: 0, kind: input, shape index: {}]   ;;  %s1798_s1 = inlined_call_operand.hbm [shape: bf16[768,768], index: 1, kind: input, shape index: {}]   ;;  %s1799_s2 = inlined_call_operand.vmem [shape: f32[1,768], index: 2, kind: input, shape index: {}]   ;;  %s1800_s3 = inlined_call_operand.vmem [shape: bf16[8,768], index: 3, kind: output, shape index: {}]  }
   0x1   :  { %10 = vsyncpa [#allocation3 + $0x1], 0  ;;  %s1556_s12 = smov 0   ;;  %s1558_s13 = smov 0  }
   0x2   :  { %s1560_s14 = smov 0   ;;  %s1562_s15 = smov 0  }
   0x3   :  { %s1564_s16 = smov 0   ;;  %s1566_s17 = smov 0  }
   0x4 LB: > { %s1114_s18 = sadd.s32 4294967295, %s1530_s17   ;;  %s25_s19 = sadd.s32 1, %s1526_s16  ;;  %s1530_s17 = sphi %s1566_s17, %s16_s17   ;;  %s1526_s16 = sphi %s1564_s16, %s1808_s16   ;;  %s1522_s15 = sphi %s1562_s15, %s1807_s15   ;;  %s1518_s14 = sphi %s1560_s14, %s1806_s14   ;;  %s1514_s13 = sphi %s1558_s13, %s1805_s13   ;;  %s1510_s12 = sphi %s1556_s12, %s1804_s12  }
   0x5   : > { %p26_p0 = scmp.ge.s32.totalorder %s25_s19, 3  ;;  %s61_s20 = sadd.s32 1, %s1518_s14 }
   0x6   : > { %p68_p1 = scmp.ne.s32.totalorder %s1518_s14, %s1514_s13  ;;  %p69_p2 = scmp.eq.s32.totalorder %s1530_s17, 0 }
   0x7   : > { %s1810_s19 = smov (%p26_p0, %s25_s19), 0  ;;  %p74_p4 = scmp.ne.s32.totalorder %s1514_s13, %s1510_s12 }
   0x8   : > { %p70_p3 = por %p69_p2, %p68_p1  ;;  %s58_s21 = ssub.s32 %s1526_s16, %s1810_s19 }
   0x9   : > { %p75_p5 = scmp.eq.s32.totalorder %s1114_s18, 0  ;;  %p59_p6 = scmp.eq.s32.totalorder %s58_s21, 0 }
   0xa   : > { %p1248_p8 = scmp.lt.s32.totalorder %s1530_s17, 3  ;;  %s160_s24 = sand.u32 1, %s1518_s14  }
   0xb   : > { %p1595_p7 = por %p75_p5, %p74_p4  ;;  %s1230_s25 = sshll.u32 %s1526_s16, 7 }
   0xc   : > { %s1601_s23 = scalar_select %p59_p6, %s1518_s14, %s61_s20  }
   0xd   : > { %s1240_s26 = smul.u32 768, %s160_s24  ;;  %s1608_s29 = scalar_lea.hbm %s1798_s1, %s1230_s25 }
   0xe   : > { %p1610_p9 = pnand %p1248_p8, %p70_p3  ;;  %s1617_s6 = scalar_lea.sflag [#allocation3], %s160_s24 }
   0xf   : > { %s164_s4 = scalar_lea.vmem [#allocation2], %s1240_s26  ;;  %s1450_s7 = scalar_lea.hbm %s1608_s29, 12288 }
  0x10   : > { %s171_s5 = sshll.u32 %s164_s4, 4  ;;  %p1451_p11 = scmp.ne.s32.totalorder %s1608_s29, %s1450_s7  ;;  %s1614_s5 = int_to_ptr.vmem [resolvable:$true] %s171_s5 }
  0x11   : > { %p1452_p12 = pneg %p1610_p9  ;;  %s1455_s10 = scalar_lea.hbm %s1798_s1, 36864 }
  0x12   : > { %p1456_p1 = scmp.lt.u32.totalorder %s1608_s29, %s1798_s1  ;;  %p1457_p2 = scmp.lt.u32.totalorder %s1455_s10, %s1450_s7 }
  0x13   : > { %p1453_p13 = pnand %p1452_p12, %p1451_p11  ;;  %p1459_p4 = scmp.lt.u32.totalorder %s1450_s7, %s1608_s29 }
  0x14   : > { %p1458_p3 = por %p1457_p2, %p1456_p1 }
  0x15   : > { %p1454_p0 = pneg %p1453_p13 }
  0x16   : > { %p1460_p5 = por %p1459_p4, %p1458_p3 }
  0x18   : > { %p1461_p6 = pnand %p1460_p5, %p1454_p0 }
  0x1a   : > { %1464 = shalt.err (!%p1461_p6)
}
  0x1b   : > { %s1465_s18 = scalar_lea.vmem %s1614_s5, 12288  ;;  %s1532_s20 = smov [#allocation2]  }
  0x1c   : > { %p1466_p8 = scmp.ne.s32.totalorder %s1614_s5, %s1465_s18  ;;  %s1470_s21 = sshll.u32 %s1532_s20, 4  ;;  %s1471_s21 = int_to_ptr.vmem [resolvable:$false] %s1470_s21 }
  0x1d   : > { %s1472_s24 = scalar_lea.vmem %s1471_s21, 24576  ;;  %p1473_p10 = scmp.lt.s32.totalorder %s1614_s5, %s1471_s21 }
  0x1e   : > { %p1468_p11 = pnand %p1466_p8, %p1452_p12  ;;  %p1474_p1 = scmp.lt.s32.totalorder %s1472_s24, %s1465_s18 }
  0x20   : > { %p1469_p13 = pneg %p1468_p11  ;;  %p1475_p2 = por %p1474_p1, %p1473_p10 }
  0x22   : > { %p1476_p3 = pnand %p1475_p2, %p1469_p13 }
  0x24   : > { %1479 = shalt.err (!%p1476_p3)
}
  0x25   : > { %s1533_s25 = smov 384   ;;  %s1534_s26 = smov 128  }
  0x26   : > { %s1535_s27 = smov 8   ;;  %p187_p12 = scmp.lt.s32.totalorder %s1530_s17, 4 }
  0x27   : > { %1247 = dma.hbm_to_vmem [thread:$0]  (!%p1610_p9), %s1608_s29, 12288, %s1614_s5, %s1617_s6, %s1533_s25, %s1534_s26, %s1535_s27  }
  0x28   : > { %p1803_p0 = scmp.ge.s32.totalorder %s1530_s17, 1 }
  0x2a   : > { %p188_p4 = pnand %p1803_p0, %p187_p12 }
  0x2b   : > { %s193_s28 = sand.u32 (!%p188_p4), 1, %s1514_s13  }
  0x2c   : > { %191 = sbr.rel (%p188_p4) target bundleno = 399 (0x18f), region = 32  ;;  %s194_s7 = scalar_lea.sflag (!%p188_p4), [#allocation3], %s193_s28 }
  0x2d   : > { %s1241_s4 = smul.u32 (!%p188_p4), 768, %s193_s28 }
  0x2f   : > { %s1649_s8 = scalar_lea.vmem (!%p188_p4), [#allocation2], %s1241_s4 }
  0x33   : > { %1505 = dma.done.wait (%p1595_p7), %s194_s7, 12288  }
  0x34   : > { %1507 = vsyncadd (%p1595_p7), %s194_s7, 4294955008  ;;  %v1300_v0 = vld [vmem:[%s1649_s8 + $0x104] ss:$8 sps:$4 sm:$0xff]   ;;  %v1302_v1 = vld [vmem:[%s1649_s8 + $0x100] ss:$8 sps:$4 sm:$0xff]   ;;  %s1122_s10 = sshll.u32 %s1522_s15, 1 }
  0x35   : > { %907 = vmatprep.subr.bf16.mxu0 %v1300_v0  ;;  %v1303_v2 = vld [vmem:[%s1649_s8 + $0x114] ss:$8 sps:$4 sm:$0xff]   ;;  %v1305_v3 = vld [vmem:[%s1649_s8 + $0x110] ss:$8 sps:$4 sm:$0xff]   ;;  %v1306_v4 = vld [vmem:[%s1649_s8 + $0x124] ss:$8 sps:$4 sm:$0xff]  }
  0x36   : > { %908 = vmatpush1.bf16.msra.mxu0 %v1302_v1  ;;  %v1308_v5 = vld [vmem:[%s1649_s8 + $0x120] ss:$8 sps:$4 sm:$0xff]   ;;  %v1309_v6 = vld [vmem:[%s1649_s8 + $0x134] ss:$8 sps:$4 sm:$0xff]   ;;  %v1311_v7 = vld [vmem:[%s1649_s8 + $0x130] ss:$8 sps:$4 sm:$0xff]  }
  0x37   : > { %909 = vmatprep.subr.bf16.mxu0 %v1303_v2  ;;  %v1312_v8 = vld [vmem:[%s1649_s8 + $0x144] ss:$8 sps:$4 sm:$0xff]   ;;  %v1314_v9 = vld [vmem:[%s1649_s8 + $0x140] ss:$8 sps:$4 sm:$0xff]   ;;  %v1315_v10 = vld [vmem:[%s1649_s8 + $0x154] ss:$8 sps:$4 sm:$0xff]  }
  0x38   : > { %v1317_v11 = vld [vmem:[%s1649_s8 + $0x150] ss:$8 sps:$4 sm:$0xff]   ;;  %v1318_v12 = vld [vmem:[%s1649_s8 + $0x164] ss:$8 sps:$4 sm:$0xff]   ;;  %v1347_v14 = vld [vmem:[%s1649_s8] ss:$8 sps:$4 sm:$0xff]  }
  0x39   : > { %v1345_v13 = vld [vmem:[%s1649_s8 + $0x4] ss:$8 sps:$4 sm:$0xff]   ;;  %v1320_v15 = vld [vmem:[%s1649_s8 + $0x160] ss:$8 sps:$4 sm:$0xff]   ;;  %v1321_v16 = vld [vmem:[%s1649_s8 + $0x174] ss:$8 sps:$4 sm:$0xff]  }
  0x3a   : > { %910 = vmatpush1.bf16.msra.mxu0 %v1305_v3  ;;  %866 = vmatprep.subr.bf16.mxu1 %v1345_v13  ;;  %v1351_v17 = vld [vmem:[%s1649_s8 + $0x14] ss:$8 sps:$4 sm:$0xff]   ;;  %v1353_v18 = vld [vmem:[%s1649_s8 + $0x10] ss:$8 sps:$4 sm:$0xff]   ;;  %v1359_v22 = vld [vmem:[%s1649_s8 + $0x24] ss:$8 sps:$4 sm:$0xff]  }
  0x3b   : > { %911 = vmatprep.subr.bf16.mxu0 %v1306_v4  ;;  %867 = vmatpush1.bf16.msra.mxu1 %v1347_v14  ;;  %v1677_v19 = vld [vmem:[%s1797_s0 + $0x8] sm:$0xff]  ;;  %v1361_v23 = vld [vmem:[%s1649_s8 + $0x20] ss:$8 sps:$4 sm:$0xff]   ;;  %v1324_v24 = vld [vmem:[%s1649_s8 + $0x184] ss:$8 sps:$4 sm:$0xff]   ;;  %p240_p7 = scmp.lt.s32.totalorder %s1122_s10, 5 }
  0x3c   : > { %868 = vmatprep.subr.bf16.mxu1 %v1351_v17  ;;  %v1128_v20 = vcombine.high %v1677_v19, %v1677_v19  ;;  %v1323_v21 = vld [vmem:[%s1649_s8 + $0x170] ss:$8 sps:$4 sm:$0xff]   ;;  %v1365_v25 = vld [vmem:[%s1649_s8 + $0x34] ss:$8 sps:$4 sm:$0xff]   ;;  %v1326_v26 = vld [vmem:[%s1649_s8 + $0x180] ss:$8 sps:$4 sm:$0xff]   ;;  %v1127_v58 = vcombine.low %v1677_v19, %v1677_v19 }
  0x3d   : > { %v1327_v27 = vld [vmem:[%s1649_s8 + $0x194] ss:$8 sps:$4 sm:$0xff]   ;;  %v1367_v28 = vld [vmem:[%s1649_s8 + $0x30] ss:$8 sps:$4 sm:$0xff]   ;;  %v1371_v29 = vld [vmem:[%s1649_s8 + $0x44] ss:$8 sps:$4 sm:$0xff]  }
  0x3e   : > { %912 = vmatpush1.bf16.msra.mxu0 %v1308_v5  ;;  %939 = vmatprep.mubr.bf16.mxu0 %v1128_v20  ;;  %v1329_v30 = vld [vmem:[%s1649_s8 + $0x190] ss:$8 sps:$4 sm:$0xff]   ;;  %v1330_v31 = vld [vmem:[%s1649_s8 + $0x1a4] ss:$8 sps:$4 sm:$0xff]   ;;  %v1373_v32 = vld [vmem:[%s1649_s8 + $0x40] ss:$8 sps:$4 sm:$0xff]  }
  0x3f   : > { %913 = vmatprep.subr.bf16.mxu0 %v1309_v6  ;;  %869 = vmatpush1.bf16.msra.mxu1 %v1353_v18  ;;  %v1377_v33 = vld [vmem:[%s1649_s8 + $0x54] ss:$8 sps:$4 sm:$0xff]   ;;  %v1332_v34 = vld [vmem:[%s1649_s8 + $0x1a0] ss:$8 sps:$4 sm:$0xff]   ;;  %v1379_v36 = vld [vmem:[%s1649_s8 + $0x50] ss:$8 sps:$4 sm:$0xff]  }
  0x40   : > { %870 = vmatprep.subr.bf16.mxu1 %v1359_v22  ;;  %v1333_v35 = vld [vmem:[%s1649_s8 + $0x1b4] ss:$8 sps:$4 sm:$0xff]   ;;  %v1383_v37 = vld [vmem:[%s1649_s8 + $0x64] ss:$8 sps:$4 sm:$0xff]   ;;  %v1335_v38 = vld [vmem:[%s1649_s8 + $0x1b0] ss:$8 sps:$4 sm:$0xff]  }
  0x41   : > { %v1336_v39 = vld [vmem:[%s1649_s8 + $0x1c4] ss:$8 sps:$4 sm:$0xff]   ;;  %v1385_v40 = vld [vmem:[%s1649_s8 + $0x60] ss:$8 sps:$4 sm:$0xff]   ;;  %v1389_v41 = vld [vmem:[%s1649_s8 + $0x74] ss:$8 sps:$4 sm:$0xff]  }
  0x42   : > { %914 = vmatpush1.bf16.msra.mxu0 %v1311_v7  ;;  %v1338_v42 = vld [vmem:[%s1649_s8 + $0x1c0] ss:$8 sps:$4 sm:$0xff]   ;;  %v1339_v43 = vld [vmem:[%s1649_s8 + $0x1d4] ss:$8 sps:$4 sm:$0xff]   ;;  %v1391_v44 = vld [vmem:[%s1649_s8 + $0x70] ss:$8 sps:$4 sm:$0xff]  }
  0x43   : > { %915 = vmatprep.subr.bf16.mxu0 %v1312_v8  ;;  %871 = vmatpush1.bf16.msra.mxu1 %v1361_v23  ;;  %v1395_v45 = vld [vmem:[%s1649_s8 + $0x84] ss:$8 sps:$4 sm:$0xff]   ;;  %v1341_v46 = vld [vmem:[%s1649_s8 + $0x1d0] ss:$8 sps:$4 sm:$0xff]   ;;  %v1397_v48 = vld [vmem:[%s1649_s8 + $0x80] ss:$8 sps:$4 sm:$0xff]  }
  0x44   : > { %872 = vmatprep.subr.bf16.mxu1 %v1365_v25  ;;  %v1342_v47 = vld [vmem:[%s1649_s8 + $0x1e4] ss:$8 sps:$4 sm:$0xff]   ;;  %v1401_v49 = vld [vmem:[%s1649_s8 + $0x94] ss:$8 sps:$4 sm:$0xff]   ;;  %v1344_v50 = vld [vmem:[%s1649_s8 + $0x1e0] ss:$8 sps:$4 sm:$0xff]  }
  0x45   : > { %v1348_v51 = vld [vmem:[%s1649_s8 + $0x1f4] ss:$8 sps:$4 sm:$0xff]   ;;  %v1403_v52 = vld [vmem:[%s1649_s8 + $0x90] ss:$8 sps:$4 sm:$0xff]   ;;  %v1407_v53 = vld [vmem:[%s1649_s8 + $0xa4] ss:$8 sps:$4 sm:$0xff]  }
  0x46   : > { %916 = vmatpush1.bf16.msra.mxu0 %v1314_v9  ;;  %v1350_v54 = vld [vmem:[%s1649_s8 + $0x1f0] ss:$8 sps:$4 sm:$0xff]   ;;  %v1358_v55 = vld [vmem:[%s1649_s8 + $0x204] ss:$8 sps:$4 sm:$0xff]   ;;  %v1409_v56 = vld [vmem:[%s1649_s8 + $0xa0] ss:$8 sps:$4 sm:$0xff]  }
  0x47   : > { %917 = vmatprep.subr.bf16.mxu0 %v1315_v10  ;;  %873 = vmatpush1.bf16.msra.mxu1 %v1367_v28  ;;  %v1413_v57 = vld [vmem:[%s1649_s8 + $0xb4] ss:$8 sps:$4 sm:$0xff]   ;;  %v1356_v59 = vld [vmem:[%s1649_s8 + $0x200] ss:$8 sps:$4 sm:$0xff]   ;;  %v1415_v60 = vld [vmem:[%s1649_s8 + $0xb0] ss:$8 sps:$4 sm:$0xff]  }
  0x48   : > { %874 = vmatprep.subr.bf16.mxu1 %v1371_v29  ;;  %v254_v61 = vld [vmem:[%s1797_s0] sm:$0xff]  ;;  %v1419_v63 = vld [vmem:[%s1649_s8 + $0xc4] ss:$8 sps:$4 sm:$0xff]   ;;  %v1421_v4 = vld [vmem:[%s1649_s8 + $0xc0] ss:$8 sps:$4 sm:$0xff]   ;;  %s1812_s10 = smov (!%p240_p7, %s1122_s10), 5 }
  0x49   : > { %v1364_v62 = vld [vmem:[%s1649_s8 + $0x214] ss:$8 sps:$4 sm:$0xff]   ;;  %v1126_v0 = vcombine.high %v254_v61, %v254_v61  ;;  %v1730_v1 = vld [vmem:[%s1797_s0 + $0x10] sm:$0xff]  ;;  %v1362_v3 = vld [vmem:[%s1649_s8 + $0x210] ss:$8 sps:$4 sm:$0xff]   ;;  %v1125_v18 = vcombine.low %v254_v61, %v254_v61  ;;  %s242_s18 = scalar_lea.vmem %s1799_s2, %s1812_s10  ;;  %s1124_s20 = sshll.u32 %s1812_s10, 2 }
  0x4a   : > { %918 = vmatpush1.bf16.msra.mxu0 %v1317_v11  ;;  %v1130_v2 = vcombine.high %v1730_v1, %v1730_v1  ;;  %v1370_v5 = vld [vmem:[%s1649_s8 + $0x224] ss:$8 sps:$4 sm:$0xff]   ;;  %v1425_v6 = vld [vmem:[%s1649_s8 + $0xd4] ss:$8 sps:$4 sm:$0xff]   ;;  %v1368_v7 = vld [vmem:[%s1649_s8 + $0x220] ss:$8 sps:$4 sm:$0xff]   ;;  %s252_s24 = scalar_lea.vmem %s1800_s3, %s1124_s20 }
  0x4b   : > { %919 = vmatprep.subr.bf16.mxu0 %v1318_v12  ;;  %875 = vmatpush1.bf16.msra.mxu1 %v1373_v32  ;;  %v1427_v8 = vld [vmem:[%s1649_s8 + $0xd0] ss:$8 sps:$4 sm:$0xff]   ;;  %v1376_v9 = vld [vmem:[%s1649_s8 + $0x234] ss:$8 sps:$4 sm:$0xff]   ;;  %v1431_v10 = vld [vmem:[%s1649_s8 + $0xe4] ss:$8 sps:$4 sm:$0xff]  }
  0x4c   : > { %876 = vmatprep.subr.bf16.mxu1 %v1377_v33  ;;  %898 = vmatprep.mubr.bf16.mxu1 %v1126_v0  ;;  %v1374_v11 = vld [vmem:[%s1649_s8 + $0x230] ss:$8 sps:$4 sm:$0xff]   ;;  %v1433_v12 = vld [vmem:[%s1649_s8 + $0xe0] ss:$8 sps:$4 sm:$0xff]   ;;  %v1382_v13 = vld [vmem:[%s1649_s8 + $0x244] ss:$8 sps:$4 sm:$0xff]  }
  0x4d   : > { %v1437_v14 = vld [vmem:[%s1649_s8 + $0xf4] ss:$8 sps:$4 sm:$0xff]   ;;  %v1386_v19 = vld [vmem:[%s1649_s8 + $0x250] ss:$8 sps:$4 sm:$0xff]   ;;  %v1394_v20 = vld [vmem:[%s1649_s8 + $0x264] ss:$8 sps:$4 sm:$0xff]  }
  0x4e   : > { %920 = vmatpush1.bf16.msra.mxu0 %v1320_v15  ;;  %v1380_v15 = vld [vmem:[%s1649_s8 + $0x240] ss:$8 sps:$4 sm:$0xff]   ;;  %v1388_v17 = vld [vmem:[%s1649_s8 + $0x254] ss:$8 sps:$4 sm:$0xff]   ;;  %v1398_v23 = vld [vmem:[%s1649_s8 + $0x270] ss:$8 sps:$4 sm:$0xff]  }
  0x4f   : > { %921 = vmatprep.subr.bf16.mxu0 %v1321_v16  ;;  %877 = vmatpush1.bf16.msra.mxu1 %v1379_v36  ;;  %v1439_v16 = vld [vmem:[%s1649_s8 + $0xf0] ss:$8 sps:$4 sm:$0xff]   ;;  %v1400_v22 = vld [vmem:[%s1649_s8 + $0x274] ss:$8 sps:$4 sm:$0xff]   ;;  %v1404_v25 = vld [vmem:[%s1649_s8 + $0x280] ss:$8 sps:$4 sm:$0xff]  }
  0x50   : > { %878 = vmatprep.subr.bf16.mxu1 %v1383_v37  ;;  %v1418_v28 = vld [vmem:[%s1649_s8 + $0x2a4] ss:$8 sps:$4 sm:$0xff]   ;;  %v1416_v29 = vld [vmem:[%s1649_s8 + $0x2a0] ss:$8 sps:$4 sm:$0xff]  }
  0x51   : > { %v1430_v32 = vld [vmem:[%s1649_s8 + $0x2c4] ss:$8 sps:$4 sm:$0xff]   ;;  %v1428_v33 = vld [vmem:[%s1649_s8 + $0x2c0] ss:$8 sps:$4 sm:$0xff]  }
  0x52   : > { %922 = vmatpush1.bf16.msra.mxu0 %v1323_v21  ;;  %v1392_v21 = vld [vmem:[%s1649_s8 + $0x260] ss:$8 sps:$4 sm:$0xff]   ;;  %v1442_v36 = vld [vmem:[%s1649_s8 + $0x2e4] ss:$8 sps:$4 sm:$0xff]  }
  0x53   : > { %923 = vmatprep.subr.bf16.mxu0 %v1324_v24  ;;  %879 = vmatpush1.bf16.msra.mxu1 %v1385_v40  ;;  %v1406_v24 = vld [vmem:[%s1649_s8 + $0x284] ss:$8 sps:$4 sm:$0xff]   ;;  %v1440_v37 = vld [vmem:[%s1649_s8 + $0x2e0] ss:$8 sps:$4 sm:$0xff]   ;;  %v1129_v40 = vcombine.low %v1730_v1, %v1730_v1 }
  0x54   : > { %880 = vmatprep.subr.bf16.mxu1 %v1389_v41 }
  0x56   : > { %924 = vmatpush1.bf16.msra.mxu0 %v1326_v26  ;;  %v1412_v26 = vld [vmem:[%s1649_s8 + $0x294] ss:$8 sps:$4 sm:$0xff]  }
  0x57   : > { %925 = vmatprep.subr.bf16.mxu0 %v1327_v27  ;;  %881 = vmatpush1.bf16.msra.mxu1 %v1391_v44  ;;  %v1410_v27 = vld [vmem:[%s1649_s8 + $0x290] ss:$8 sps:$4 sm:$0xff]  }
  0x58   : > { %882 = vmatprep.subr.bf16.mxu1 %v1395_v45  ;;  %v355_v45 = vlaneseq }
  0x5a   : > { %926 = vmatpush1.bf16.msra.mxu0 %v1329_v30  ;;  %v1424_v30 = vld [vmem:[%s1649_s8 + $0x2b4] ss:$8 sps:$4 sm:$0xff]  }
  0x5b   : > { %927 = vmatprep.subr.bf16.mxu0 %v1330_v31  ;;  %883 = vmatpush1.bf16.msra.mxu1 %v1397_v48  ;;  %v1422_v31 = vld [vmem:[%s1649_s8 + $0x2b0] ss:$8 sps:$4 sm:$0xff]  }
  0x5c   : > { %884 = vmatprep.subr.bf16.mxu1 %v1401_v49  ;;  %v353_v48 = vld [vmem:[%s242_s18] sm:$0x3] }
  0x5e   : > { %928 = vmatpush1.bf16.msra.mxu0 %v1332_v34  ;;  %v1436_v34 = vld [vmem:[%s1649_s8 + $0x2d4] ss:$8 sps:$4 sm:$0xff]  }
  0x5f   : > { %929 = vmatprep.subr.bf16.mxu0 %v1333_v35  ;;  %885 = vmatpush1.bf16.msra.mxu1 %v1403_v52  ;;  %v1434_v35 = vld [vmem:[%s1649_s8 + $0x2d0] ss:$8 sps:$4 sm:$0xff]  }
  0x60   : > { %886 = vmatprep.subr.bf16.mxu1 %v1407_v53 }
  0x62   : > { %930 = vmatpush1.bf16.msra.mxu0 %v1335_v38  ;;  %v1447_v38 = vld [vmem:[%s1649_s8 + $0x2f4] ss:$8 sps:$4 sm:$0xff]  }
  0x63   : > { %931 = vmatprep.subr.bf16.mxu0 %v1336_v39  ;;  %887 = vmatpush1.bf16.msra.mxu1 %v1409_v56  ;;  %v1445_v39 = vld [vmem:[%s1649_s8 + $0x2f0] ss:$8 sps:$4 sm:$0xff]  }
  0x64   : > { %888 = vmatprep.subr.bf16.mxu1 %v1413_v57 }
  0x66   : > { %932 = vmatpush1.bf16.msra.mxu0 %v1338_v42 }
  0x67   : > { %933 = vmatprep.subr.bf16.mxu0 %v1339_v43  ;;  %889 = vmatpush1.bf16.msra.mxu1 %v1415_v60 }
  0x68   : > { %890 = vmatprep.subr.bf16.mxu1 %v1419_v63 }
  0x6a   : > { %934 = vmatpush1.bf16.msra.mxu0 %v1341_v46  ;;  %v356_v46 = vshrl.u32 %v355_v45, 7 }
  0x6b   : > { %935 = vmatprep.subr.bf16.mxu0 %v1342_v47  ;;  %891 = vmatpush1.bf16.msra.mxu1 %v1421_v4 }
  0x6c   : > { %892 = vmatprep.subr.bf16.mxu1 %v1425_v6  ;;  %v357_v47 = vsub.s32 0, %v356_v46  ;;  %v361_v49 = vsub.s32 1, %v356_v46 }
  0x6e   : > { %936 = vmatpush1.bf16.msra.mxu0 %v1344_v50  ;;  %v358_v50 = vrot.slane %v353_v48, %v357_v47 }
  0x6f   : > { %937 = vmatprep.subr.bf16.mxu0 %v1348_v51  ;;  %893 = vmatpush1.bf16.msra.mxu1 %v1427_v8  ;;  %v362_v51 = vrot.slane %v353_v48, %v361_v49 }
  0x70   : > { %894 = vmatprep.subr.bf16.mxu1 %v1431_v10 }
  0x72   : > { %938 = vmatpush1.bf16.msra.mxu0 %v1350_v54 }
  0x73   : > { %948 = vmatprep.subr.bf16.mxu0 %v1358_v55  ;;  %895 = vmatpush1.bf16.msra.mxu1 %v1433_v12 }
  0x74   : > { %896 = vmatprep.subr.bf16.mxu1 %v1437_v14 }
  0x75   : > { %940 = vmatmul.mubr.bf16.vlgmr.msra.gmra.mrb[0].mxu0 %v1127_v58 }
  0x76   : > { %949 = vmatpush1.bf16.msra.mxu0 %v1356_v59  ;;  %980 = vmatprep.mubr.bf16.mxu0 %v1130_v2 }
  0x77   : > { %950 = vmatprep.subr.bf16.mxu0 %v1364_v62  ;;  %897 = vmatpush1.bf16.msra.mxu1 %v1439_v16 }
  0x7a   : > { %951 = vmatpush1.bf16.msra.mxu0 %v1362_v3  ;;  %899 = vmatmul.mubr.bf16.vlgmr.msra.gmra.mrb[0].mxu1 %v1125_v18 }
  0x7b   : > { %952 = vmatprep.subr.bf16.mxu0 %v1370_v5 }
  0x7e   : > { %953 = vmatpush1.bf16.msra.mxu0 %v1368_v7 }
  0x7f   : > { %954 = vmatprep.subr.bf16.mxu0 %v1376_v9 }
  0x82   : > { %955 = vmatpush1.bf16.msra.mxu0 %v1374_v11 }
  0x83   : > { %956 = vmatprep.subr.bf16.mxu0 %v1382_v13 }
  0x86   : > { %957 = vmatpush1.bf16.msra.mxu0 %v1380_v15 }
  0x87   : > { %958 = vmatprep.subr.bf16.mxu0 %v1388_v17 }
  0x8a   : > { %959 = vmatpush1.bf16.msra.mxu0 %v1386_v19 }
  0x8b   : > { %960 = vmatprep.subr.bf16.mxu0 %v1394_v20 }
  0x8e   : > { %961 = vmatpush1.bf16.msra.mxu0 %v1392_v21 }
  0x8f   : > { %962 = vmatprep.subr.bf16.mxu0 %v1400_v22 }
  0x92   : > { %963 = vmatpush1.bf16.msra.mxu0 %v1398_v23 }
  0x93   : > { %964 = vmatprep.subr.bf16.mxu0 %v1406_v24 }
  0x96   : > { %965 = vmatpush1.bf16.msra.mxu0 %v1404_v25 }
  0x97   : > { %966 = vmatprep.subr.bf16.mxu0 %v1412_v26 }
  0x9a   : > { %967 = vmatpush1.bf16.msra.mxu0 %v1410_v27 }
  0x9b   : > { %968 = vmatprep.subr.bf16.mxu0 %v1418_v28 }
  0x9e   : > { %969 = vmatpush1.bf16.msra.mxu0 %v1416_v29 }
  0x9f   : > { %970 = vmatprep.subr.bf16.mxu0 %v1424_v30 }
  0xa2   : > { %971 = vmatpush1.bf16.msra.mxu0 %v1422_v31 }
  0xa3   : > { %972 = vmatprep.subr.bf16.mxu0 %v1430_v32 }
  0xa6   : > { %973 = vmatpush1.bf16.msra.mxu0 %v1428_v33 }
  0xa7   : > { %974 = vmatprep.subr.bf16.mxu0 %v1436_v34 }
  0xaa   : > { %975 = vmatpush1.bf16.msra.mxu0 %v1434_v35 }
  0xab   : > { %976 = vmatprep.subr.bf16.mxu0 %v1442_v36 }
  0xae   : > { %977 = vmatpush1.bf16.msra.mxu0 %v1440_v37 }
  0xaf   : > { %978 = vmatprep.subr.bf16.mxu0 %v1447_v38 }
  0xb2   : > { %979 = vmatpush1.bf16.msra.mxu0 %v1445_v39 }
  0xb5   : > { %981 = vmatmul.mubr.bf16.vlgmr.msra.gmra.mrb[0].mxu0 %v1129_v40 }
 0x14d   : > { %v900_v41 = vpop.f32.mrb[0].mxu1 }
 0x14e   : > { %v902_v42 = vpop.f32.mrb[1].mxu1  ;;  %v901_v52 = vadd.f32 %v900_v41, %v358_v50 }
 0x14f   : > { %v904_v43 = vpop.f32.mrb[2].mxu1  ;;  %v903_v53 = vadd.f32 %v902_v42, %v362_v51 }
 0x150   : > { %v905_v44 = vpop.f32.mrb[3].mxu1 }
 0x188   : > { %v982_v54 = vpop.f32.mrb[0].mxu0 }
 0x189   : > { %v1233_v55 = vadd.f32 %v982_v54, %v901_v52  ;;  %v984_v56 = vpop.f32.mrb[1].mxu0 }
 0x18a   : > { %v1235_v57 = vadd.f32 %v984_v56, %v903_v53  ;;  %v986_v58 = vpop.f32.mrb[2].mxu0 }
 0x18b   : > { %v987_v59 = vpop.f32.mrb[3].mxu0 }
 0x18c   : > { %v1231_v60 = vpack.c.bf16 %v1235_v57, %v1233_v55 }
 0x18e   : > { %997 = vst [vmem:[%s252_s24] sm:$0xff] %v1231_v60 }
 0x18f PF: > { %s16_s17 = sadd.s32 1, %s1530_s17   ;;  %s1804_s12 = smov %s1514_s13 }
 0x190   : > { %p13_p9 = scmp.ge.s32.totalorder %s16_s17, 5   ;;  %s1805_s13 = smov %s1518_s14 }
 0x191   : > { %s1806_s14 = smov %s1601_s23  ;;  %s1807_s15 = smov %s1526_s16 }
 0x192   : > { %s1808_s16 = smov %s1810_s19  ;;  %15 = sbr.rel (!%p13_p9) target bundleno = 4 (0x4), region = 78 }
 0x199   :  { %1028 = vsyncpa [#allocation3], 1 }
 0x19a   :  { %1030 = vsyncpa [#allocation3 + $0x1], 1 }

// kernel: closed_call.17
= control target key start
LH: loop header
LB: loop body
LE: loop exit
PB: predicated region body
PF: predicated region fallthrough
CT: control target
= control target key end

     0   :  { %s2012_s6 = smov 0   ;;  %s2389_s0 = inlined_call_operand.vmem [shape: bf16[2,5,2304], index: 0, kind: input, shape index: {}]   ;;  %s2390_s1 = inlined_call_operand.vmem [shape: bf16[2,5,768], index: 1, kind: output, shape index: {}]  }
   0x1 LB: > { %s1655_s7 = sadd.s32 4294967295, %s1996_s6   ;;  %p1659_p0 = scmp.ge.s32.totalorder %s1996_s6, 1  ;;  %s1996_s6 = sphi %s2012_s6, %s11_s6  }
   0x2   : > { %p87_p1 = scmp.lt.s32.totalorder %s1996_s6, 3 }
   0x4   : > { %p88_p2 = pnand %p1659_p0, %p87_p1 }
   0x5   : > { %p107_p3 = scmp.lt.s32.totalorder (!%p88_p2), %s1655_s7, 1  ;;  %v1998_v0 = vmov (!%p88_p2), 0.0   ;;  %vm1999_vm0 = vmmov (!%p88_p2), 0   ;;  %vm121_vm1 = vcmask (!%p88_p2), 523264   ;;  %vm169_vm2 = vcmask (!%p88_p2), 36864   ;;  %s2000_s12 = smov (!%p88_p2), 64  }
   0x6   : > { %91 = sbr.rel (%p88_p2) target bundleno = 1550 (0x60e), region = 24  ;;  %1766 = vmatprep.subr.bf16.mxu0 (!%p88_p2), %v1998_v0  ;;  %1768 = vmatprep.mubr.msk.bf16.mxu0 (!%p88_p2), %vm1999_vm0, %v1998_v0  ;;  %vm186_vm3 = vcmask (!%p88_p2), 1041408   ;;  %vm187_vm4 = vcmask (!%p88_p2), 1042432   ;;  %v2001_v25 = vmov (!%p88_p2), 65535   ;;  %vm182_vm5 = vcmask (!%p88_p2), 39936  }
   0x7   : > { %1772 = vmatprep.subr.bf16.mxu1 (!%p88_p2), %v1998_v0  ;;  %1774 = vmatprep.mubr.msk.bf16.mxu1 (!%p88_p2), %vm1999_vm0, %v1998_v0  ;;  %v188_v26 = vsel (!%p88_p2), %vm186_vm3, 4294967295, %v2001_v25  ;;  %vm234_vm6 = vcmask (!%p88_p2), 518144   ;;  %vm235_vm7 = vsmask.f32 (!%p88_p2), 2304  ;;  %vm370_vm9 = vcmask (!%p88_p2), 1042944  }
   0x8   : > { %v2062_v27 = vsel (!%p88_p2), %vm187_vm4, %v188_v26, 0  ;;  %vm2144_vm8 = vmand (!%p88_p2), %vm234_vm6, %vm235_vm7 }
   0x9   : > { %vm2353_vm10 = vmand (!%p88_p2), %vm370_vm9, %vm235_vm7 }
   0xd   : > { %s2396_s7 = smov (!%p107_p3, %s1655_s7), 1 }
   0xe   : > { %s1910_s8 = smul.u32 72, %s2396_s7 }
   0xf   : > { %s1911_s13 = smul.u32 24, %s2396_s7 }
  0x10   : > { %s2032_s11 = scalar_lea.vmem %s2389_s0, %s1910_s8 }
  0x11   : > { %v119_v1 = vld [vmem:[%s2032_s11 + $0x18] sm:$0x7]  ;;  %v118_v3 = vld [vmem:[%s2032_s11] sm:$0x7]  ;;  %v120_v24 = vld [vmem:[%s2032_s11 + $0x30] sm:$0x7]  ;;  %s2141_s16 = scalar_lea.vmem %s2390_s1, %s1911_s13 }
  0x12   : > { %v126_v2 = vsel %vm121_vm1, %v119_v1, 0  ;;  %v1924_v10 = vld [vmem:[%s2032_s11 + $0x18] ss:$0 sps:$4 sm:$0x77]   ;;  %v191_v28 = vand.u32 %v2062_v27, %v120_v24  ;;  %v376_v38 = vld [vmem:[%s2032_s11 + $0x1c] sm:$0x7] }
  0x13   : > { %1767 = vmatpush3.bf16.xpose.msra.mxu0 %v126_v2  ;;  %251 = vrot.lane.b32.xlu1 %v1924_v10, %s2000_s12  ;;  %v1925_v11 = vld [vmem:[%s2032_s11] ss:$0 sps:$4 sm:$0x77]   ;;  %v1927_v12 = vld [vmem:[%s2032_s11 + $0x4] ss:$0 sps:$4 sm:$0x77]  }
  0x14   : > { %1784 = vmatprep.subr.bf16.mxu0 %v1998_v0  ;;  %v1928_v13 = vld [vmem:[%s2032_s11 + $0x20] ss:$0 sps:$4 sm:$0x77]   ;;  %v1929_v14 = vld [vmem:[%s2032_s11 + $0x8] ss:$0 sps:$4 sm:$0x77]   ;;  %1773 = vmatpush3.bf16.msra.mxu1 %v191_v28 }
  0x15   : > { %v1930_v15 = vld [vmem:[%s2032_s11 + $0x24] ss:$0 sps:$4 sm:$0x77]   ;;  %v1931_v16 = vld [vmem:[%s2032_s11 + $0xc] ss:$0 sps:$4 sm:$0x77]   ;;  %1778 = vmatprep.subr.bf16.mxu1 %v1998_v0 }
  0x16   : > { %v1932_v17 = vld [vmem:[%s2032_s11 + $0x28] ss:$0 sps:$4 sm:$0x77]   ;;  %v1934_v18 = vld [vmem:[%s2032_s11 + $0x2c] ss:$0 sps:$4 sm:$0x77]  }
  0x17   : > { %246 = vrot.lane.b32.xlu1 %v1925_v11, %s2000_s12  ;;  %v1926_v29 = vld [vmem:[%s2032_s11 + $0x1c] ss:$0 sps:$4 sm:$0x77]   ;;  %v1933_v30 = vld [vmem:[%s2032_s11 + $0x10] ss:$0 sps:$4 sm:$0x77]  }
  0x18   : > { %v1935_v31 = vld [vmem:[%s2032_s11 + $0x14] ss:$0 sps:$4 sm:$0x77]   ;;  %v382_v40 = vsel %vm121_vm1, %v376_v38, 0  ;;  %v375_v42 = vld [vmem:[%s2032_s11 + $0x4] sm:$0x7] }
  0x19   : > { %v621_v44 = vld [vmem:[%s2032_s11 + $0x20] sm:$0x7]  ;;  %v620_v48 = vld [vmem:[%s2032_s11 + $0x8] sm:$0x7]  ;;  %v866_v50 = vld [vmem:[%s2032_s11 + $0x24] sm:$0x7] }
  0x1a   : > { %1769 = vmatmul.mubr.msk.bf16.vlgmr.msra.gmra.mrb[0].mxu0 %vm121_vm1, %v118_v3  ;;  %v627_v46 = vsel %vm121_vm1, %v621_v44, 0  ;;  %v872_v52 = vsel %vm121_vm1, %v866_v50, 0  ;;  %v865_v54 = vld [vmem:[%s2032_s11 + $0xc] sm:$0x7]  ;;  %v1111_v56 = vld [vmem:[%s2032_s11 + $0x28] sm:$0x7] }
  0x1b   : > { %1786 = vmatprep.mubr.msk.bf16.mxu0 %vm1999_vm0, %v1998_v0  ;;  %493 = vrot.lane.b32.xlu1 %v1927_v12, %s2000_s12  ;;  %v1117_v58 = vsel %vm121_vm1, %v1111_v56, 0  ;;  %v1110_v60 = vld [vmem:[%s2032_s11 + $0x10] sm:$0x7]  ;;  %v1356_v62 = vld [vmem:[%s2032_s11 + $0x2c] sm:$0x7] }
  0x1c   : > { %v1362_v1 = vsel %vm121_vm1, %v1356_v62, 0  ;;  %v1355_v3 = vld [vmem:[%s2032_s11 + $0x14] sm:$0x7] }
  0x1f   : > { %743 = vrot.lane.b32.xlu1 %v1928_v13, %s2000_s12 }
  0x23   : > { %738 = vrot.lane.b32.xlu1 %v1929_v14, %s2000_s12 }
  0x27   : > { %988 = vrot.lane.b32.xlu1 %v1930_v15, %s2000_s12 }
  0x2b   : > { %983 = vrot.lane.b32.xlu1 %v1931_v16, %s2000_s12 }
  0x2f   : > { %1233 = vrot.lane.b32.xlu1 %v1932_v17, %s2000_s12 }
  0x33   : > { %1478 = vrot.lane.b32.xlu1 %v1934_v18, %s2000_s12 }
  0x85   : > { %v252_v34 = vpop.permute.xlu1 %251 }
  0x86   : > { %v257_v36 = vsel %vm121_vm1, %v252_v34, 0 }
  0x89   : > { %v247_v39 = vpop.permute.xlu1 %246 }
  0x8d   : > { %v494_v45 = vpop.permute.xlu1 %493 }
  0x91   : > { %v744_v47 = vpop.permute.xlu1 %743 }
  0x92   : > { %v749_v49 = vsel %vm121_vm1, %v744_v47, 0 }
  0x95   : > { %v739_v51 = vpop.permute.xlu1 %738 }
  0x99   : > { %v989_v53 = vpop.permute.xlu1 %988 }
  0x9a   : > { %v994_v55 = vsel %vm121_vm1, %v989_v53, 0 }
  0x9d   : > { %v984_v57 = vpop.permute.xlu1 %983 }
  0xa1   : > { %v1234_v59 = vpop.permute.xlu1 %1233 }
  0xa2   : > { %v1239_v61 = vsel %vm121_vm1, %v1234_v59, 0 }
  0xa5   : > { %v1479_v2 = vpop.permute.xlu1 %1478 }
  0xed   : > { %v162_v4 = vpop.f32.mrb[0].mxu0 }
  0xee   : > { %v168_v5 = vmul.f32 0.125, %v162_v4  ;;  %v1770_v6 = vpop.f32.mrb[1].mxu0  ;;  %v1484_v4 = vsel %vm121_vm1, %v1479_v2, 0 }
  0xef   : > { %v165_v7 = vpop.f32.mrb[2].mxu0 }
  0xf0   : > { %v1771_v8 = vpop.f32.mrb[3].mxu0  ;;  %v170_v9 = vsel %vm169_vm2, %v168_v5, -inf }
  0xf1   : > { %171 = vmax.xlane.f32.xlu0 %v170_v9  ;;  %v237_v8 = vld [vmem:[%s2141_s16] sm:$0x7] }
 0x17e   : > { %v172_v19 = vpop.xlane.xlu0 %171 }
 0x17f   : > { %v173_v20 = vsub.f32 %v168_v5, %v172_v19 }
 0x181   : > { %v174_v21 = vmul.f32 1.442695, %v173_v20 }
 0x183   : > { %1942 = vpow2.f32 %v174_v21 }
 0x18d   : > { %v1943_v22 = vpop.eup %1942 }
 0x18e   : > { %v176_v23 = vsel %vm169_vm2, %v1943_v22, 0.0 }
 0x18f   : > { %177 = vadd.xlane.f32.xlu0 %v176_v23 }
 0x1a5   : > { %498 = vrot.lane.b32.xlu0 %v1926_v29, %s2000_s12 }
 0x1a9   : > { %1228 = vrot.lane.b32.xlu0 %v1933_v30, %s2000_s12 }
 0x1ad   : > { %1473 = vrot.lane.b32.xlu0 %v1935_v31, %s2000_s12 }
 0x21c   : > { %v178_v32 = vpop.xlane.xlu0 %177 }
 0x21d   : > { %1944 = vrcp.f32 %v178_v32 }
 0x220   : > { %v499_v41 = vpop.permute.xlu0 %498 }
 0x221   : > { %v504_v43 = vsel %vm121_vm1, %v499_v41, 0 }
 0x224   : > { %v1229_v63 = vpop.permute.xlu0 %1228 }
 0x227   : > { %v1945_v33 = vpop.eup %1944 }
 0x228   : > { %v180_v35 = vmul.f32 %v1945_v33, %v1943_v22  ;;  %v1474_v5 = vpop.permute.xlu0 %1473 }
 0x22a   : > { %v181_v37 = vpack.c.bf16 %v180_v35, %v180_v35 }
 0x22c   : > { %1775 = vmatmul.mubr.msk.bf16.vlgmr.msra.gmra.mrb[0].mxu1 %vm182_vm5, %v181_v37 }
 0x22d   : > { %1779 = vmatpush3.bf16.xpose.msra.mxu1 %v257_v36  ;;  %1780 = vmatprep.mubr.msk.bf16.mxu1 %vm1999_vm0, %v1998_v0 }
 0x22e   : > { %1790 = vmatprep.subr.bf16.mxu1 %v1998_v0 }
 0x234   : > { %1781 = vmatmul.mubr.msk.bf16.vlgmr.msra.gmra.mrb[4].mxu1 %vm121_vm1, %v247_v39 }
 0x235   : > { %1791 = vmatpush3.bf16.xpose.msra.mxu1 %v382_v40  ;;  %1792 = vmatprep.mubr.msk.bf16.mxu1 %vm1999_vm0, %v1998_v0 }
 0x236   : > { %1802 = vmatprep.subr.bf16.mxu1 %v1998_v0 }
 0x23c   : > { %1793 = vmatmul.mubr.msk.bf16.vlgmr.msra.gmra.mrb[8].mxu1 %vm121_vm1, %v375_v42 }
 0x23d   : > { %1803 = vmatpush3.bf16.xpose.msra.mxu1 %v504_v43  ;;  %1804 = vmatprep.mubr.msk.bf16.mxu1 %vm1999_vm0, %v1998_v0 }
 0x23e   : > { %1814 = vmatprep.subr.bf16.mxu1 %v1998_v0 }
 0x244   : > { %1805 = vmatmul.mubr.msk.bf16.vlgmr.msra.gmra.mrb[12].mxu1 %vm121_vm1, %v494_v45 }
 0x245   : > { %1815 = vmatpush3.bf16.xpose.msra.mxu1 %v627_v46  ;;  %1816 = vmatprep.mubr.msk.bf16.mxu1 %vm1999_vm0, %v1998_v0 }
 0x246   : > { %1826 = vmatprep.subr.bf16.mxu1 %v1998_v0 }
 0x24c   : > { %1817 = vmatmul.mubr.msk.bf16.vlgmr.msra.gmra.mrb[16].mxu1 %vm121_vm1, %v620_v48 }
 0x24d   : > { %1827 = vmatpush3.bf16.xpose.msra.mxu1 %v749_v49  ;;  %1828 = vmatprep.mubr.msk.bf16.mxu1 %vm1999_vm0, %v1998_v0 }
 0x24e   : > { %1838 = vmatprep.subr.bf16.mxu1 %v1998_v0 }
 0x254   : > { %1829 = vmatmul.mubr.msk.bf16.vlgmr.msra.gmra.mrb[20].mxu1 %vm121_vm1, %v739_v51 }
 0x255   : > { %1839 = vmatpush3.bf16.xpose.msra.mxu1 %v872_v52  ;;  %1840 = vmatprep.mubr.msk.bf16.mxu1 %vm1999_vm0, %v1998_v0 }
 0x256   : > { %1850 = vmatprep.subr.bf16.mxu1 %v1998_v0 }
 0x25c   : > { %1841 = vmatmul.mubr.msk.bf16.vlgmr.msra.gmra.mrb[24].mxu1 %vm121_vm1, %v865_v54 }
 0x25d   : > { %1851 = vmatpush3.bf16.xpose.msra.mxu1 %v994_v55  ;;  %1852 = vmatprep.mubr.msk.bf16.mxu1 %vm1999_vm0, %v1998_v0 }
 0x25e   : > { %1862 = vmatprep.subr.bf16.mxu1 %v1998_v0 }
 0x264   : > { %1853 = vmatmul.mubr.msk.bf16.vlgmr.msra.gmra.mrb[28].mxu1 %vm121_vm1, %v984_v57 }
 0x265   : > { %1863 = vmatpush3.bf16.xpose.msra.mxu1 %v1117_v58  ;;  %1864 = vmatprep.mubr.msk.bf16.mxu1 %vm1999_vm0, %v1998_v0 }
 0x266   : > { %1874 = vmatprep.subr.bf16.mxu1 %v1998_v0 }
 0x26c   : > { %1865 = vmatmul.mubr.msk.bf16.vlgmr.msra.gmra.mrb[32].mxu1 %vm121_vm1, %v1110_v60 }
 0x26d   : > { %1875 = vmatpush3.bf16.xpose.msra.mxu1 %v1239_v61  ;;  %1876 = vmatprep.mubr.msk.bf16.mxu1 %vm1999_vm0, %v1998_v0 }
 0x26e   : > { %1886 = vmatprep.subr.bf16.mxu1 %v1998_v0 }
 0x274   : > { %1877 = vmatmul.mubr.msk.bf16.vlgmr.msra.gmra.mrb[36].mxu1 %vm121_vm1, %v1229_v63 }
 0x275   : > { %1887 = vmatpush3.bf16.xpose.msra.mxu1 %v1362_v1  ;;  %1888 = vmatprep.mubr.msk.bf16.mxu1 %vm1999_vm0, %v1998_v0 }
 0x276   : > { %1898 = vmatprep.subr.bf16.mxu1 %v1998_v0 }
 0x27c   : > { %1889 = vmatmul.mubr.msk.bf16.vlgmr.msra.gmra.mrb[40].mxu1 %vm121_vm1, %v1355_v3 }
 0x27d   : > { %1899 = vmatpush3.bf16.xpose.msra.mxu1 %v1484_v4  ;;  %1900 = vmatprep.mubr.msk.bf16.mxu1 %vm1999_vm0, %v1998_v0 }
 0x284   : > { %1901 = vmatmul.mubr.msk.bf16.vlgmr.msra.gmra.mrb[44].mxu1 %vm121_vm1, %v1474_v5 }
 0x2ff   : > { %v227_v6 = vpop.f32.mrb[0].mxu1 }
 0x300   : > { %v233_v9 = vpack.c.bf16 %v227_v6, %v227_v6  ;;  %v1776_v10 = vpop.f32.mrb[1].mxu1 }
 0x301   : > { %v230_v11 = vpop.f32.mrb[2].mxu1 }
 0x302   : > { %v238_v12 = vsel %vm2144_vm8, %v233_v9, %v237_v8  ;;  %v1777_v13 = vpop.f32.mrb[3].mxu1 }
 0x303   : > { %239 = vst [vmem:[%s2141_s16] sm:$0x7] %v238_v12 }
 0x307   : > { %v293_v14 = vpop.f32.mrb[4].mxu1 }
 0x308   : > { %v2152_v15 = vmul.f32 0.125, %v293_v14  ;;  %v1782_v16 = vpop.f32.mrb[5].mxu1 }
 0x309   : > { %v296_v17 = vpop.f32.mrb[6].mxu1 }
 0x30a   : > { %v1783_v18 = vpop.f32.mrb[7].mxu1  ;;  %v300_v19 = vsel %vm169_vm2, %v2152_v15, -inf }
 0x30b   : > { %301 = vmax.xlane.f32.xlu1 %v300_v19 }
 0x30f   : > { %v418_v20 = vpop.f32.mrb[8].mxu1 }
 0x310   : > { %v2156_v21 = vmul.f32 0.125, %v418_v20  ;;  %v1794_v22 = vpop.f32.mrb[9].mxu1  ;;  %v1936_v20 = vld [vmem:[%s2032_s11 + $0x34] ss:$0 sps:$4 sm:$0x77]  }
 0x311   : > { %v421_v23 = vpop.f32.mrb[10].mxu1  ;;  %v1937_v22 = vld [vmem:[%s2032_s11 + $0x30] ss:$0 sps:$4 sm:$0x77]  }
 0x312   : > { %v1795_v24 = vpop.f32.mrb[11].mxu1  ;;  %v425_v25 = vsel %vm169_vm2, %v2156_v21, -inf }
 0x313   : > { %426 = vmax.xlane.f32.xlu0 %v425_v25 }
 0x317   : > { %v540_v26 = vpop.f32.mrb[12].mxu1 }
 0x318   : > { %v2160_v28 = vmul.f32 0.125, %v540_v26  ;;  %v1806_v29 = vpop.f32.mrb[13].mxu1 }
 0x319   : > { %v543_v30 = vpop.f32.mrb[14].mxu1 }
 0x31a   : > { %v1807_v31 = vpop.f32.mrb[15].mxu1  ;;  %v547_v32 = vsel %vm169_vm2, %v2160_v28, -inf }
 0x31b   : > { %548 = vmax.xlane.f32.xlu0 %v547_v32 }
 0x31f   : > { %v663_v33 = vpop.f32.mrb[16].mxu1 }
 0x320   : > { %v2164_v34 = vmul.f32 0.125, %v663_v33  ;;  %v1818_v35 = vpop.f32.mrb[17].mxu1 }
 0x321   : > { %v666_v36 = vpop.f32.mrb[18].mxu1 }
 0x322   : > { %v1819_v37 = vpop.f32.mrb[19].mxu1  ;;  %v670_v38 = vsel %vm169_vm2, %v2164_v34, -inf }
 0x323   : > { %671 = vmax.xlane.f32.xlu1 %v670_v38 }
 0x327   : > { %v785_v39 = vpop.f32.mrb[20].mxu1 }
 0x328   : > { %v2168_v40 = vmul.f32 0.125, %v785_v39  ;;  %v1830_v41 = vpop.f32.mrb[21].mxu1 }
 0x329   : > { %v788_v42 = vpop.f32.mrb[22].mxu1 }
 0x32a   : > { %v1831_v43 = vpop.f32.mrb[23].mxu1  ;;  %v792_v44 = vsel %vm169_vm2, %v2168_v40, -inf }
 0x32b   : > { %793 = vmax.xlane.f32.xlu0 %v792_v44 }
 0x32f   : > { %v908_v45 = vpop.f32.mrb[24].mxu1 }
 0x330   : > { %v2172_v46 = vmul.f32 0.125, %v908_v45  ;;  %v1842_v47 = vpop.f32.mrb[25].mxu1 }
 0x331   : > { %v911_v48 = vpop.f32.mrb[26].mxu1 }
 0x332   : > { %v1843_v49 = vpop.f32.mrb[27].mxu1  ;;  %v915_v50 = vsel %vm169_vm2, %v2172_v46, -inf }
 0x333   : > { %916 = vmax.xlane.f32.xlu1 %v915_v50 }
 0x337   : > { %v1030_v51 = vpop.f32.mrb[28].mxu1 }
 0x338   : > { %v2176_v52 = vmul.f32 0.125, %v1030_v51  ;;  %v1854_v53 = vpop.f32.mrb[29].mxu1 }
 0x339   : > { %v1033_v54 = vpop.f32.mrb[30].mxu1 }
 0x33a   : > { %v1855_v55 = vpop.f32.mrb[31].mxu1  ;;  %v1037_v56 = vsel %vm169_vm2, %v2176_v52, -inf }
 0x33b   : > { %1038 = vmax.xlane.f32.xlu0 %v1037_v56 }
 0x33f   : > { %v1153_v57 = vpop.f32.mrb[32].mxu1 }
 0x340   : > { %v2180_v58 = vmul.f32 0.125, %v1153_v57  ;;  %v1866_v59 = vpop.f32.mrb[33].mxu1 }
 0x341   : > { %v1156_v60 = vpop.f32.mrb[34].mxu1 }
 0x342   : > { %v1867_v61 = vpop.f32.mrb[35].mxu1  ;;  %v1160_v62 = vsel %vm169_vm2, %v2180_v58, -inf }
 0x343   : > { %1161 = vmax.xlane.f32.xlu1 %v1160_v62 }
 0x347   : > { %v1275_v63 = vpop.f32.mrb[36].mxu1 }
 0x348   : > { %v2184_v1 = vmul.f32 0.125, %v1275_v63  ;;  %v1878_v2 = vpop.f32.mrb[37].mxu1  ;;  %v1938_v63 = vld [vmem:[%s2032_s11 + $0x38] ss:$0 sps:$4 sm:$0x77]  }
 0x349   : > { %v1278_v3 = vpop.f32.mrb[38].mxu1 }
 0x34a   : > { %v1282_v4 = vsel %vm169_vm2, %v2184_v1, -inf  ;;  %v1879_v5 = vpop.f32.mrb[39].mxu1 }
 0x34b   : > { %1283 = vmax.xlane.f32.xlu0 %v1282_v4 }
 0x34f   : > { %v1398_v6 = vpop.f32.mrb[40].mxu1 }
 0x350   : > { %v2188_v8 = vmul.f32 0.125, %v1398_v6  ;;  %v1890_v9 = vpop.f32.mrb[41].mxu1  ;;  %v1939_v6 = vld [vmem:[%s2032_s11 + $0x3c] ss:$0 sps:$4 sm:$0x77]  }
 0x351   : > { %v1401_v10 = vpop.f32.mrb[42].mxu1 }
 0x352   : > { %v1405_v11 = vsel %vm169_vm2, %v2188_v8, -inf  ;;  %v1891_v12 = vpop.f32.mrb[43].mxu1 }
 0x353   : > { %1406 = vmax.xlane.f32.xlu1 %v1405_v11 }
 0x357   : > { %v1520_v13 = vpop.f32.mrb[44].mxu1 }
 0x358   : > { %v2192_v14 = vmul.f32 0.125, %v1520_v13  ;;  %v1902_v16 = vpop.f32.mrb[45].mxu1 }
 0x359   : > { %v1523_v17 = vpop.f32.mrb[46].mxu1 }
 0x35a   : > { %v1527_v18 = vsel %vm169_vm2, %v2192_v14, -inf  ;;  %v1903_v19 = vpop.f32.mrb[47].mxu1 }
 0x35b   : > { %1528 = vmax.xlane.f32.xlu0 %v1527_v18 }
 0x364   : > { %562 = vrot.lane.b32.xlu1 %v1936_v20, %s2000_s12  ;;  %v1940_v20 = vld [vmem:[%s2032_s11 + $0x40] ss:$0 sps:$4 sm:$0x77]  }
 0x371   : > { %315 = vrot.lane.b32.xlu0 %v1937_v22, %s2000_s12  ;;  %v1941_v22 = vld [vmem:[%s2032_s11 + $0x44] ss:$0 sps:$4 sm:$0x77]  }
 0x398   : > { %v302_v23 = vpop.xlane.xlu1 %301 }
 0x399   : > { %v303_v24 = vsub.f32 %v2152_v15, %v302_v23 }
 0x39b   : > { %v304_v25 = vmul.f32 1.442695, %v303_v24 }
 0x39d   : > { %1946 = vpow2.f32 %v304_v25 }
 0x3a0   : > { %v427_v26 = vpop.xlane.xlu0 %426 }
 0x3a1   : > { %v428_v29 = vsub.f32 %v2156_v21, %v427_v26  ;;  %v377_v26 = vld [vmem:[%s2032_s11 + $0x34] sm:$0x7] }
 0x3a3   : > { %v429_v30 = vmul.f32 1.442695, %v428_v29 }
 0x3a5   : > { %1948 = vpow2.f32 %v429_v30 }
 0x3a7   : > { %v2202_v31 = vpop.eup %1946 }
 0x3a8   : > { %v549_v32 = vpop.xlane.xlu0 %548  ;;  %v306_v33 = vsel %vm169_vm2, %v2202_v31, 0.0 }
 0x3a9   : > { %v550_v35 = vsub.f32 %v2160_v28, %v549_v32  ;;  %307 = vadd.xlane.f32.xlu1 %v306_v33  ;;  %v441_v32 = vand.u32 %v377_v26, %v2062_v27 }
 0x3ab   : > { %v551_v36 = vmul.f32 1.442695, %v550_v35 }
 0x3ad   : > { %1950 = vpow2.f32 %v551_v36 }
 0x3af   : > { %v2207_v37 = vpop.eup %1948 }
 0x3b0   : > { %v672_v15 = vpop.xlane.xlu1 %671  ;;  %v431_v38 = vsel %vm169_vm2, %v2207_v37, 0.0 }
 0x3b1   : > { %v673_v21 = vsub.f32 %v2164_v34, %v672_v15  ;;  %432 = vadd.xlane.f32.xlu0 %v431_v38 }
 0x3b3   : > { %v674_v39 = vmul.f32 1.442695, %v673_v21 }
 0x3b5   : > { %1952 = vpow2.f32 %v674_v39  ;;  %v622_v39 = vld [vmem:[%s2032_s11 + $0x38] sm:$0x7] }
 0x3b7   : > { %v2212_v41 = vpop.eup %1950 }
 0x3b8   : > { %v794_v42 = vpop.xlane.xlu0 %793  ;;  %v553_v28 = vsel %vm169_vm2, %v2212_v41, 0.0 }
 0x3b9   : > { %v795_v43 = vsub.f32 %v2168_v40, %v794_v42  ;;  %554 = vadd.xlane.f32.xlu1 %v553_v28 }
 0x3bb   : > { %v796_v44 = vmul.f32 1.442695, %v795_v43  ;;  %v686_v43 = vand.u32 %v622_v39, %v2062_v27 }
 0x3bd   : > { %1954 = vpow2.f32 %v796_v44 }
 0x3bf   : > { %v2217_v45 = vpop.eup %1952 }
 0x3c0   : > { %v917_v47 = vpop.xlane.xlu1 %916  ;;  %v676_v34 = vsel %vm169_vm2, %v2217_v45, 0.0 }
 0x3c1   : > { %v918_v48 = vsub.f32 %v2172_v46, %v917_v47  ;;  %677 = vadd.xlane.f32.xlu1 %v676_v34 }
 0x3c3   : > { %v919_v49 = vmul.f32 1.442695, %v918_v48 }
 0x3c5   : > { %1956 = vpow2.f32 %v919_v49 }
 0x3c7   : > { %v2222_v50 = vpop.eup %1954 }
 0x3c8   : > { %v1039_v51 = vpop.xlane.xlu0 %1038  ;;  %v798_v40 = vsel %vm169_vm2, %v2222_v50, 0.0 }
 0x3c9   : > { %v1040_v53 = vsub.f32 %v2176_v52, %v1039_v51  ;;  %799 = vadd.xlane.f32.xlu1 %v798_v40 }
 0x3cb   : > { %v1041_v54 = vmul.f32 1.442695, %v1040_v53  ;;  %v867_v53 = vld [vmem:[%s2032_s11 + $0x3c] sm:$0x7] }
 0x3cd   : > { %1958 = vpow2.f32 %v1041_v54 }
 0x3cf   : > { %v2227_v55 = vpop.eup %1956 }
 0x3d0   : > { %v1162_v56 = vpop.xlane.xlu1 %1161  ;;  %v921_v46 = vsel %vm169_vm2, %v2227_v55, 0.0 }
 0x3d1   : > { %v1163_v57 = vsub.f32 %v2180_v58, %v1162_v56  ;;  %922 = vadd.xlane.f32.xlu0 %v921_v46  ;;  %v931_v56 = vand.u32 %v867_v53, %v2062_v27 }
 0x3d3   : > { %v1164_v59 = vmul.f32 1.442695, %v1163_v57 }
 0x3d5   : > { %1960 = vpow2.f32 %v1164_v59 }
 0x3d7   : > { %v2232_v60 = vpop.eup %1958 }
 0x3d8   : > { %v1043_v52 = vsel %vm169_vm2, %v2232_v60, 0.0  ;;  %v1284_v2 = vpop.xlane.xlu0 %1283 }
 0x3d9   : > { %1044 = vadd.xlane.f32.xlu1 %v1043_v52  ;;  %v1285_v11 = vsub.f32 %v2184_v1, %v1284_v2 }
 0x3db   : > { %v1286_v13 = vmul.f32 1.442695, %v1285_v11 }
 0x3df   : > { %v2236_v61 = vpop.eup %1960 }
 0x3e0   : > { %v1166_v62 = vsel %vm169_vm2, %v2236_v61, 0.0  ;;  %v1407_v4 = vpop.xlane.xlu1 %1406 }
 0x3e1   : > { %1167 = vadd.xlane.f32.xlu1 %v1166_v62  ;;  %v1408_v9 = vsub.f32 %v2188_v8, %v1407_v4 }
 0x3e3   : > { %v1409_v10 = vmul.f32 1.442695, %v1408_v9 }
 0x3e4   : > { %v563_v23 = vpop.permute.xlu1 %562 }
 0x3e5   : > { %1962 = vpow2.f32 %v1409_v10 }
 0x3e6   : > { %1964 = vpow2.f32 %v1286_v13 }
 0x3e7   : > { %807 = vrot.lane.b32.xlu0 %v1938_v63, %s2000_s12 }
 0x3e8   : > { %v1529_v58 = vpop.xlane.xlu0 %1528 }
 0x3e9   : > { %v1530_v16 = vsub.f32 %v2192_v14, %v1529_v58  ;;  %v1112_v58 = vld [vmem:[%s2032_s11 + $0x40] sm:$0x7] }
 0x3eb   : > { %v1531_v8 = vmul.f32 1.442695, %v1530_v16 }
 0x3ec   : > { %v316_v3 = vpop.permute.xlu0 %315 }
 0x3ed   : > { %v321_v5 = vand.u32 %v316_v3, %v2062_v27  ;;  %1966 = vpow2.f32 %v1531_v8 }
 0x3ef   : > { %1785 = vmatpush3.bf16.msra.mxu0 %v321_v5  ;;  %v2248_v12 = vpop.eup %1962 }
 0x3f0   : > { %1796 = vmatprep.subr.bf16.mxu0 %v1998_v0  ;;  %v1411_v17 = vsel %vm169_vm2, %v2248_v12, 0.0  ;;  %v2253_v18 = vpop.eup %1964 }
 0x3f1   : > { %v1288_v19 = vsel %vm169_vm2, %v2253_v18, 0.0 }
 0x3f2   : > { %1052 = vrot.lane.b32.xlu1 %v1939_v6, %s2000_s12 }
 0x3f7   : > { %v2257_v1 = vpop.eup %1966 }
 0x3f8   : > { %v1533_v14 = vsel %vm169_vm2, %v2257_v1, 0.0 }
 0x406   : > { %1412 = vadd.xlane.f32.xlu0 %v1411_v17 }
 0x416   : > { %1289 = vadd.xlane.f32.xlu1 %v1288_v19 }
 0x41a   : > { %1534 = vadd.xlane.f32.xlu1 %v1533_v14 }
 0x41c   : > { %1297 = vrot.lane.b32.xlu0 %v1940_v20, %s2000_s12 }
 0x42b   : > { %1542 = vrot.lane.b32.xlu1 %v1941_v22, %s2000_s12 }
 0x436   : > { %v308_v24 = vpop.xlane.xlu1 %307 }
 0x437   : > { %1968 = vrcp.f32 %v308_v24 }
 0x43e   : > { %v433_v25 = vpop.xlane.xlu0 %432 }
 0x43f   : > { %1970 = vrcp.f32 %v433_v25 }
 0x441   : > { %v1969_v29 = vpop.eup %1968 }
 0x442   : > { %v310_v30 = vmul.f32 %v1969_v29, %v2202_v31  ;;  %v568_v31 = vand.u32 %v563_v23, %v2062_v27 }
 0x444   : > { %v311_v33 = vpack.c.bf16 %v310_v30, %v310_v30 }
 0x446   : > { %v555_v35 = vpop.xlane.xlu1 %554  ;;  %1787 = vmatmul.mubr.msk.bf16.vlgmr.msra.gmra.mrb[4].mxu0 %vm182_vm5, %v311_v33 }
 0x447   : > { %1972 = vrcp.f32 %v555_v35  ;;  %1797 = vmatpush3.bf16.msra.mxu0 %v441_v32  ;;  %1798 = vmatprep.mubr.msk.bf16.mxu0 %vm1999_vm0, %v1998_v0 }
 0x448   : > { %1808 = vmatprep.subr.bf16.mxu0 %v1998_v0 }
 0x449   : > { %v1971_v36 = vpop.eup %1970 }
 0x44a   : > { %v435_v15 = vmul.f32 %v1971_v36, %v2207_v37  ;;  %v484_v36 = vld [vmem:[%s2141_s16 + $0x4] sm:$0x7] }
 0x44c   : > { %v436_v38 = vpack.c.bf16 %v435_v15, %v435_v15 }
 0x44e   : > { %v678_v21 = vpop.xlane.xlu1 %677  ;;  %1799 = vmatmul.mubr.msk.bf16.vlgmr.msra.gmra.mrb[8].mxu0 %vm182_vm5, %v436_v38 }
 0x44f   : > { %1974 = vrcp.f32 %v678_v21  ;;  %1809 = vmatpush3.bf16.msra.mxu0 %v568_v31  ;;  %1810 = vmatprep.mubr.msk.bf16.mxu0 %vm1999_vm0, %v1998_v0 }
 0x450   : > { %1820 = vmatprep.subr.bf16.mxu0 %v1998_v0 }
 0x451   : > { %v1973_v42 = vpop.eup %1972 }
 0x452   : > { %v557_v28 = vmul.f32 %v1973_v42, %v2212_v41 }
 0x454   : > { %v558_v37 = vpack.c.bf16 %v557_v28, %v557_v28 }
 0x456   : > { %v800_v44 = vpop.xlane.xlu1 %799  ;;  %1811 = vmatmul.mubr.msk.bf16.vlgmr.msra.gmra.mrb[12].mxu0 %vm182_vm5, %v558_v37 }
 0x457   : > { %1976 = vrcp.f32 %v800_v44  ;;  %1821 = vmatpush3.bf16.msra.mxu0 %v686_v43  ;;  %1822 = vmatprep.mubr.msk.bf16.mxu0 %vm1999_vm0, %v1998_v0  ;;  %v729_v44 = vld [vmem:[%s2141_s16 + $0x8] sm:$0x7] }
 0x458   : > { %1832 = vmatprep.subr.bf16.mxu0 %v1998_v0 }
 0x459   : > { %v1975_v47 = vpop.eup %1974 }
 0x45a   : > { %v680_v34 = vmul.f32 %v1975_v47, %v2217_v45 }
 0x45c   : > { %v681_v48 = vpack.c.bf16 %v680_v34, %v680_v34 }
 0x45e   : > { %1823 = vmatmul.mubr.msk.bf16.vlgmr.msra.gmra.mrb[16].mxu0 %vm182_vm5, %v681_v48  ;;  %v923_v41 = vpop.xlane.xlu0 %922 }
 0x45f   : > { %1978 = vrcp.f32 %v923_v41  ;;  %1834 = vmatprep.mubr.msk.bf16.mxu0 %vm1999_vm0, %v1998_v0 }
 0x461   : > { %v1977_v49 = vpop.eup %1976 }
 0x462   : > { %v802_v51 = vmul.f32 %v1977_v49, %v2222_v50  ;;  %v808_v40 = vpop.permute.xlu0 %807 }
 0x463   : > { %v813_v54 = vand.u32 %v808_v40, %v2062_v27 }
 0x464   : > { %v803_v45 = vpack.c.bf16 %v802_v51, %v802_v51 }
 0x465   : > { %1833 = vmatpush3.bf16.msra.mxu0 %v813_v54 }
 0x466   : > { %v1045_v46 = vpop.xlane.xlu1 %1044  ;;  %1844 = vmatprep.subr.bf16.mxu0 %v1998_v0 }
 0x467   : > { %1980 = vrcp.f32 %v1045_v46 }
 0x468   : > { %1835 = vmatmul.mubr.msk.bf16.vlgmr.msra.gmra.mrb[20].mxu0 %vm182_vm5, %v803_v45  ;;  %v974_v45 = vld [vmem:[%s2141_s16 + $0xc] sm:$0x7] }
 0x469   : > { %v1979_v57 = vpop.eup %1978  ;;  %1845 = vmatpush3.bf16.msra.mxu0 %v931_v56  ;;  %1846 = vmatprep.mubr.msk.bf16.mxu0 %vm1999_vm0, %v1998_v0 }
 0x46a   : > { %v925_v50 = vmul.f32 %v1979_v57, %v2227_v55  ;;  %1856 = vmatprep.subr.bf16.mxu0 %v1998_v0  ;;  %v1176_v55 = vand.u32 %v1112_v58, %v2062_v27 }
 0x46c   : > { %v926_v52 = vpack.c.bf16 %v925_v50, %v925_v50 }
 0x46e   : > { %v1168_v59 = vpop.xlane.xlu1 %1167 }
 0x46f   : > { %1982 = vrcp.f32 %v1168_v59 }
 0x470   : > { %1847 = vmatmul.mubr.msk.bf16.vlgmr.msra.gmra.mrb[24].mxu0 %vm182_vm5, %v926_v52 }
 0x471   : > { %v1981_v62 = vpop.eup %1980  ;;  %1858 = vmatprep.mubr.msk.bf16.mxu0 %vm1999_vm0, %v1998_v0 }
 0x472   : > { %v1047_v63 = vmul.f32 %v1981_v62, %v2232_v60  ;;  %v1053_v2 = vpop.permute.xlu1 %1052 }
 0x473   : > { %v1058_v3 = vand.u32 %v1053_v2, %v2062_v27 }
 0x474   : > { %v1048_v4 = vpack.c.bf16 %v1047_v63, %v1047_v63 }
 0x475   : > { %1857 = vmatpush3.bf16.msra.mxu0 %v1058_v3 }
 0x476   : > { %1868 = vmatprep.subr.bf16.mxu0 %v1998_v0 }
 0x478   : > { %1859 = vmatmul.mubr.msk.bf16.vlgmr.msra.gmra.mrb[28].mxu0 %vm182_vm5, %v1048_v4 }
 0x479   : > { %v1983_v5 = vpop.eup %1982  ;;  %1869 = vmatpush3.bf16.msra.mxu0 %v1176_v55  ;;  %1870 = vmatprep.mubr.msk.bf16.mxu0 %vm1999_vm0, %v1998_v0 }
 0x47a   : > { %v1170_v60 = vmul.f32 %v1983_v5, %v2236_v61  ;;  %1880 = vmatprep.subr.bf16.mxu0 %v1998_v0  ;;  %v1357_v61 = vld [vmem:[%s2032_s11 + $0x44] sm:$0x7]  ;;  %v1219_v5 = vld [vmem:[%s2141_s16 + $0x10] sm:$0x7] }
 0x47b   : > { %v1421_v19 = vand.u32 %v1357_v61, %v2062_v27 }
 0x47c   : > { %v1171_v6 = vpack.c.bf16 %v1170_v60, %v1170_v60 }
 0x480   : > { %1871 = vmatmul.mubr.msk.bf16.vlgmr.msra.gmra.mrb[32].mxu0 %vm182_vm5, %v1171_v6 }
 0x481   : > { %1882 = vmatprep.mubr.msk.bf16.mxu0 %vm1999_vm0, %v1998_v0 }
 0x493   : > { %v1413_v9 = vpop.xlane.xlu0 %1412 }
 0x497   : > { %v1298_v10 = vpop.permute.xlu0 %1297 }
 0x498   : > { %v1303_v11 = vand.u32 %v1298_v10, %v2062_v27 }
 0x49a   : > { %1881 = vmatpush3.bf16.msra.mxu0 %v1303_v11 }
 0x49b   : > { %1892 = vmatprep.subr.bf16.mxu0 %v1998_v0 }
 0x4a3   : > { %v1290_v13 = vpop.xlane.xlu1 %1289 }
 0x4a4   : > { %1984 = vrcp.f32 %v1290_v13 }
 0x4a5   : > { %1986 = vrcp.f32 %v1413_v9 }
 0x4a7   : > { %v1535_v16 = vpop.xlane.xlu1 %1534 }
 0x4a8   : > { %1988 = vrcp.f32 %v1535_v16 }
 0x4ab   : > { %v1543_v23 = vpop.permute.xlu1 %1542 }
 0x4ac   : > { %v1548_v24 = vand.u32 %v1543_v23, %v2062_v27  ;;  %v1464_v23 = vld [vmem:[%s2141_s16 + $0x14] sm:$0x7] }
 0x4ae   : > { %v1985_v17 = vpop.eup %1984 }
 0x4af   : > { %v1292_v8 = vmul.f32 %v1985_v17, %v2253_v18  ;;  %v1987_v14 = vpop.eup %1986 }
 0x4b0   : > { %v1415_v22 = vmul.f32 %v1987_v14, %v2248_v12 }
 0x4b1   : > { %v1293_v20 = vpack.c.bf16 %v1292_v8, %v1292_v8 }
 0x4b2   : > { %v1416_v18 = vpack.c.bf16 %v1415_v22, %v1415_v22  ;;  %v1989_v25 = vpop.eup %1988 }
 0x4b3   : > { %1883 = vmatmul.mubr.msk.bf16.vlgmr.msra.gmra.mrb[36].mxu0 %vm182_vm5, %v1293_v20  ;;  %v1537_v26 = vmul.f32 %v1989_v25, %v2257_v1  ;;  %v372_v20 = vld [vmem:[%s2141_s16] sm:$0x7] }
 0x4b4   : > { %1893 = vmatpush3.bf16.msra.mxu0 %v1421_v19  ;;  %1894 = vmatprep.mubr.msk.bf16.mxu0 %vm1999_vm0, %v1998_v0 }
 0x4b5   : > { %1904 = vmatprep.subr.bf16.mxu0 %v1998_v0  ;;  %v1538_v29 = vpack.c.bf16 %v1537_v26, %v1537_v26 }
 0x4bb   : > { %1895 = vmatmul.mubr.msk.bf16.vlgmr.msra.gmra.mrb[40].mxu0 %vm182_vm5, %v1416_v18 }
 0x4bc   : > { %1905 = vmatpush3.bf16.msra.mxu0 %v1548_v24  ;;  %1906 = vmatprep.mubr.msk.bf16.mxu0 %vm1999_vm0, %v1998_v0 }
 0x4c3   : > { %1907 = vmatmul.mubr.msk.bf16.vlgmr.msra.gmra.mrb[44].mxu0 %vm182_vm5, %v1538_v29 }
 0x519   : > { %v357_v12 = vpop.f32.mrb[4].mxu0 }
 0x51a   : > { %v1712_v30 = vpack.c.bf16 %v357_v12, %v357_v12  ;;  %v1788_v32 = vpop.f32.mrb[5].mxu0 }
 0x51b   : > { %v360_v33 = vpop.f32.mrb[6].mxu0 }
 0x51c   : > { %367 = vrot.lane.b32.xlu0 %v1712_v30, %s2000_s12  ;;  %v1789_v27 = vpop.f32.mrb[7].mxu0 }
 0x521   : > { %v477_v35 = vpop.f32.mrb[8].mxu0 }
 0x522   : > { %v483_v15 = vpack.c.bf16 %v477_v35, %v477_v35  ;;  %v1800_v38 = vpop.f32.mrb[9].mxu0 }
 0x523   : > { %v480_v31 = vpop.f32.mrb[10].mxu0 }
 0x524   : > { %v485_v0 = vsel %vm2144_vm8, %v483_v15, %v484_v36  ;;  %v1801_v1 = vpop.f32.mrb[11].mxu0 }
 0x525   : > { %486 = vst [vmem:[%s2141_s16 + $0x4] sm:$0x7] %v485_v0 }
 0x529   : > { %v604_v21 = vpop.f32.mrb[12].mxu0 }
 0x52a   : > { %v1713_v39 = vpack.c.bf16 %v604_v21, %v604_v21  ;;  %v1812_v42 = vpop.f32.mrb[13].mxu0 }
 0x52b   : > { %v607_v28 = vpop.f32.mrb[14].mxu0 }
 0x52c   : > { %614 = vrot.lane.b32.xlu0 %v1713_v39, %s2000_s12  ;;  %v1813_v43 = vpop.f32.mrb[15].mxu0  ;;  %v617_v36 = vld [vmem:[%s2141_s16 + $0x4] sm:$0x7] }
 0x531   : > { %v722_v37 = vpop.f32.mrb[16].mxu0 }
 0x532   : > { %v728_v47 = vpack.c.bf16 %v722_v37, %v722_v37  ;;  %v1824_v34 = vpop.f32.mrb[17].mxu0 }
 0x533   : > { %v725_v48 = vpop.f32.mrb[18].mxu0 }
 0x534   : > { %v730_v41 = vsel %vm2144_vm8, %v728_v47, %v729_v44  ;;  %v1825_v49 = vpop.f32.mrb[19].mxu0 }
 0x535   : > { %731 = vst [vmem:[%s2141_s16 + $0x8] sm:$0x7] %v730_v41 }
 0x53b   : > { %v849_v51 = vpop.f32.mrb[20].mxu0 }
 0x53c   : > { %v1714_v40 = vpack.c.bf16 %v849_v51, %v849_v51  ;;  %v1836_v53 = vpop.f32.mrb[21].mxu0  ;;  %v862_v38 = vld [vmem:[%s2141_s16 + $0x8] sm:$0x7] }
 0x53d   : > { %v852_v54 = vpop.f32.mrb[22].mxu0 }
 0x53e   : > { %859 = vrot.lane.b32.xlu0 %v1714_v40, %s2000_s12  ;;  %v1837_v56 = vpop.f32.mrb[23].mxu0 }
 0x543   : > { %v967_v46 = vpop.f32.mrb[24].mxu0 }
 0x544   : > { %v973_v57 = vpack.c.bf16 %v967_v46, %v967_v46  ;;  %v1848_v50 = vpop.f32.mrb[25].mxu0 }
 0x545   : > { %v970_v59 = vpop.f32.mrb[26].mxu0 }
 0x546   : > { %v975_v52 = vsel %vm2144_vm8, %v973_v57, %v974_v45  ;;  %v1849_v62 = vpop.f32.mrb[27].mxu0 }
 0x547   : > { %976 = vst [vmem:[%s2141_s16 + $0xc] sm:$0x7] %v975_v52 }
 0x54b   : > { %v1094_v63 = vpop.f32.mrb[28].mxu0 }
 0x54c   : > { %v1715_v2 = vpack.c.bf16 %v1094_v63, %v1094_v63  ;;  %v1860_v58 = vpop.f32.mrb[29].mxu0 }
 0x54d   : > { %v1097_v3 = vpop.f32.mrb[30].mxu0 }
 0x54e   : > { %1104 = vrot.lane.b32.xlu0 %v1715_v2, %s2000_s12  ;;  %v1861_v55 = vpop.f32.mrb[31].mxu0  ;;  %v1107_v1 = vld [vmem:[%s2141_s16 + $0xc] sm:$0x7] }
 0x553   : > { %v1212_v4 = vpop.f32.mrb[32].mxu0 }
 0x554   : > { %v1218_v60 = vpack.c.bf16 %v1212_v4, %v1212_v4  ;;  %v1872_v6 = vpop.f32.mrb[33].mxu0 }
 0x555   : > { %v1215_v9 = vpop.f32.mrb[34].mxu0 }
 0x556   : > { %v1220_v10 = vsel %vm2144_vm8, %v1218_v60, %v1219_v5  ;;  %v1873_v11 = vpop.f32.mrb[35].mxu0 }
 0x557   : > { %1221 = vst [vmem:[%s2141_s16 + $0x10] sm:$0x7] %v1220_v10 }
 0x55e   : > { %v1352_v42 = vld [vmem:[%s2141_s16 + $0x10] sm:$0x7] }
 0x586   : > { %v1339_v13 = vpop.f32.mrb[36].mxu0 }
 0x587   : > { %v1716_v16 = vpack.c.bf16 %v1339_v13, %v1339_v13  ;;  %v1884_v61 = vpop.f32.mrb[37].mxu0 }
 0x588   : > { %v1342_v17 = vpop.f32.mrb[38].mxu0 }
 0x589   : > { %1349 = vrot.lane.b32.xlu1 %v1716_v16, %s2000_s12  ;;  %v1885_v8 = vpop.f32.mrb[39].mxu0 }
 0x58e   : > { %v368_v14 = vpop.permute.xlu0 %367  ;;  %v1457_v22 = vpop.f32.mrb[40].mxu0 }
 0x58f   : > { %v373_v24 = vsel %vm2353_vm10, %v368_v14, %v372_v20  ;;  %v1463_v18 = vpack.c.bf16 %v1457_v22, %v1457_v22  ;;  %v1896_v25 = vpop.f32.mrb[41].mxu0 }
 0x590   : > { %374 = vst [vmem:[%s2141_s16] sm:$0x7] %v373_v24  ;;  %v1460_v26 = vpop.f32.mrb[42].mxu0 }
 0x591   : > { %v1465_v29 = vsel %vm2144_vm8, %v1463_v18, %v1464_v23  ;;  %v1897_v12 = vpop.f32.mrb[43].mxu0 }
 0x592   : > { %1466 = vst [vmem:[%s2141_s16 + $0x14] sm:$0x7] %v1465_v29 }
 0x596   : > { %v1584_v30 = vpop.f32.mrb[44].mxu0 }
 0x597   : > { %v1717_v32 = vpack.c.bf16 %v1584_v30, %v1584_v30  ;;  %v1908_v33 = vpop.f32.mrb[45].mxu0 }
 0x598   : > { %v1587_v27 = vpop.f32.mrb[46].mxu0 }
 0x599   : > { %1594 = vrot.lane.b32.xlu0 %v1717_v32, %s2000_s12  ;;  %v1909_v35 = vpop.f32.mrb[47].mxu0  ;;  %v1597_v37 = vld [vmem:[%s2141_s16 + $0x14] sm:$0x7] }
 0x59e   : > { %v615_v15 = vpop.permute.xlu0 %614 }
 0x59f   : > { %v618_v7 = vsel %vm2353_vm10, %v615_v15, %v617_v36 }
 0x5a0   : > { %619 = vst [vmem:[%s2141_s16 + $0x4] sm:$0x7] %v618_v7 }
 0x5b0   : > { %v860_v31 = vpop.permute.xlu0 %859 }
 0x5b1   : > { %v863_v0 = vsel %vm2353_vm10, %v860_v31, %v862_v38 }
 0x5b2   : > { %864 = vst [vmem:[%s2141_s16 + $0x8] sm:$0x7] %v863_v0 }
 0x5c0   : > { %v1105_v21 = vpop.permute.xlu0 %1104 }
 0x5c1   : > { %v1108_v39 = vsel %vm2353_vm10, %v1105_v21, %v1107_v1 }
 0x5c2   : > { %1109 = vst [vmem:[%s2141_s16 + $0xc] sm:$0x7] %v1108_v39 }
 0x5fb   : > { %v1350_v28 = vpop.permute.xlu1 %1349 }
 0x5fc   : > { %v1353_v43 = vsel %vm2353_vm10, %v1350_v28, %v1352_v42 }
 0x5fd   : > { %1354 = vst [vmem:[%s2141_s16 + $0x10] sm:$0x7] %v1353_v43 }
 0x60b   : > { %v1595_v44 = vpop.permute.xlu0 %1594 }
 0x60c   : > { %v1598_v47 = vsel %vm2353_vm10, %v1595_v44, %v1597_v37 }
 0x60d   : > { %1599 = vst [vmem:[%s2141_s16 + $0x14] sm:$0x7] %v1598_v47 }
 0x60e PF: > { %s11_s6 = sadd.s32 1, %s1996_s6  }
 0x60f   : > { %p8_p4 = scmp.ge.s32.totalorder %s11_s6, 4  }
 0x611   :  { %10 = sbr.rel (!%p8_p4) target bundleno = 1 (0x1), region = 54 }

// kernel: closed_call.16
= control target key start
LH: loop header
LB: loop body
LE: loop exit
PB: predicated region body
PF: predicated region fallthrough
CT: control target
= control target key end

     0   :  { %s2154_s18 = smov 0   ;;  %s2156_s19 = smov 0   ;;  %s2728_s0 = inlined_call_operand.vmem [shape: bf16[10,768], index: 0, kind: input, shape index: {}]   ;;  %s2729_s1 = inlined_call_operand.vmem [shape: f32[1,768], index: 1, kind: input, shape index: {}]   ;;  %s2730_s2 = inlined_call_operand.vmem [shape: f32[1,768], index: 2, kind: input, shape index: {}]   ;;  %s2731_s3 = inlined_call_operand.vmem [shape: bf16[768,2304], index: 3, kind: input, shape index: {}]   ;;  %s2732_s4 = inlined_call_operand.vmem [shape: f32[1,2304], index: 4, kind: input, shape index: {}]   ;;  %s2733_s5 = inlined_call_operand.vmem [shape: bf16[10,2304], index: 5, kind: output, shape index: {}]  }
   0x1   :  { %s2158_s20 = smov 0   ;;  %s2160_s21 = smov 0  }
   0x2   :  { %s2162_s22 = smov 0  }
   0x3 LB: > { %s24_s23 = sadd.s32 1, %s2118_s21  ;;  %s1765_s24 = sadd.s32 4294967295, %s2122_s22   ;;  %s2122_s22 = sphi %s2162_s22, %s15_s22   ;;  %s2118_s21 = sphi %s2160_s21, %s2738_s21   ;;  %s2114_s20 = sphi %s2158_s20, %s2737_s20   ;;  %s2110_s19 = sphi %s2156_s19, %s2736_s19   ;;  %s2106_s18 = sphi %s2154_s18, %s2735_s18  }
   0x4   : > { %p25_p0 = scmp.ge.s32.totalorder %s24_s23, 9  ;;  %p109_p1 = scmp.ne.s32.totalorder %s2110_s19, %s2106_s18 }
   0x5   : > { %p110_p2 = scmp.eq.s32.totalorder %s2122_s22, 0  ;;  %p167_p4 = scmp.eq.s32.totalorder %s1765_s24, 8 }
   0x6   : > { %s2740_s23 = smov (%p25_p0, %s24_s23), 0  ;;  %s102_s26 = sadd.s32 1, %s2110_s19 }
   0x7   : > { %p111_p3 = por %p110_p2, %p109_p1  ;;  %s99_s25 = ssub.s32 %s2118_s21, %s2740_s23 }
   0x8   : > { %p100_p5 = scmp.eq.s32.totalorder %s99_s25, 0  ;;  %p2189_p6 = por %p167_p4, %p109_p1 }
   0x9   : > { %p1769_p7 = scmp.ge.s32.totalorder %s2122_s22, 9 }
   0xa   : > { %s2194_s28 = scalar_select %p100_p5, %s2110_s19, %s102_s26  }
   0xb   : > { %205 = sbr.rel (%p1769_p7) target bundleno = 71 (0x47), region = 28 }
  0x12   : > { %208 = sbr.rel (!%p111_p3) target bundleno = 71 (0x47), region = 32  ;;  %s210_s29 = sand.u32 (%p111_p3), 1, %s2110_s19  }
  0x13   : > { %s1878_s30 = sshll.u32 (%p111_p3), %s2118_s21, 3  ;;  %s1894_s6 = smul.u32 (%p111_p3), 768, %s210_s29 }
  0x14   : > { %s2202_s9 = scalar_lea.vmem (%p111_p3), %s2731_s3, %s1878_s30 }
  0x15   : > { %v433_v0 = vld [vmem:[%s2202_s9] sm:$0xff] (%p111_p3)  ;;  %v435_v1 = vld [vmem:[%s2202_s9 + $0x48] sm:$0xff] (%p111_p3)  ;;  %v437_v2 = vld [vmem:[%s2202_s9 + $0x90] sm:$0xff] (%p111_p3)  ;;  %s2210_s10 = scalar_lea.vmem (%p111_p3), [#allocation2], %s1894_s6 }
  0x16   : > { %v439_v3 = vld [vmem:[%s2202_s9 + $0xd8] sm:$0xff] (%p111_p3)  ;;  %v441_v4 = vld [vmem:[%s2202_s9 + $0x120] sm:$0xff] (%p111_p3)  ;;  %v443_v5 = vld [vmem:[%s2202_s9 + $0x168] sm:$0xff] (%p111_p3)  ;;  %434 = vst [vmem:[%s2210_s10] sm:$0xff] (%p111_p3), %v433_v0 }
  0x17   : > { %436 = vst [vmem:[%s2210_s10 + $0x8] sm:$0xff] (%p111_p3), %v435_v1  ;;  %438 = vst [vmem:[%s2210_s10 + $0x10] sm:$0xff] (%p111_p3), %v437_v2  ;;  %v445_v6 = vld [vmem:[%s2202_s9 + $0x1b0] sm:$0xff] (%p111_p3)  ;;  %v447_v7 = vld [vmem:[%s2202_s9 + $0x1f8] sm:$0xff] (%p111_p3) }
  0x18   : > { %440 = vst [vmem:[%s2210_s10 + $0x18] sm:$0xff] (%p111_p3), %v439_v3  ;;  %442 = vst [vmem:[%s2210_s10 + $0x20] sm:$0xff] (%p111_p3), %v441_v4  ;;  %v449_v8 = vld [vmem:[%s2202_s9 + $0x240] sm:$0xff] (%p111_p3)  ;;  %v451_v9 = vld [vmem:[%s2202_s9 + $0x288] sm:$0xff] (%p111_p3) }
  0x19   : > { %444 = vst [vmem:[%s2210_s10 + $0x28] sm:$0xff] %v443_v5  ;;  %446 = vst [vmem:[%s2210_s10 + $0x30] sm:$0xff] %v445_v6  ;;  %v453_v10 = vld [vmem:[%s2202_s9 + $0x2d0] sm:$0xff]  ;;  %v455_v11 = vld [vmem:[%s2202_s9 + $0x318] sm:$0xff] }
  0x1a   : > { %448 = vst [vmem:[%s2210_s10 + $0x38] sm:$0xff] %v447_v7  ;;  %450 = vst [vmem:[%s2210_s10 + $0x40] sm:$0xff] %v449_v8  ;;  %v457_v12 = vld [vmem:[%s2202_s9 + $0x360] sm:$0xff]  ;;  %v459_v13 = vld [vmem:[%s2202_s9 + $0x3a8] sm:$0xff] }
  0x1b   : > { %452 = vst [vmem:[%s2210_s10 + $0x48] sm:$0xff] %v451_v9  ;;  %454 = vst [vmem:[%s2210_s10 + $0x50] sm:$0xff] %v453_v10  ;;  %v461_v14 = vld [vmem:[%s2202_s9 + $0x3f0] sm:$0xff]  ;;  %v463_v15 = vld [vmem:[%s2202_s9 + $0x438] sm:$0xff] }
  0x1c   : > { %456 = vst [vmem:[%s2210_s10 + $0x58] sm:$0xff] %v455_v11  ;;  %458 = vst [vmem:[%s2210_s10 + $0x60] sm:$0xff] %v457_v12  ;;  %v465_v16 = vld [vmem:[%s2202_s9 + $0x480] sm:$0xff]  ;;  %v467_v17 = vld [vmem:[%s2202_s9 + $0x4c8] sm:$0xff] }
  0x1d   : > { %460 = vst [vmem:[%s2210_s10 + $0x68] sm:$0xff] %v459_v13  ;;  %462 = vst [vmem:[%s2210_s10 + $0x70] sm:$0xff] %v461_v14  ;;  %v469_v18 = vld [vmem:[%s2202_s9 + $0x510] sm:$0xff]  ;;  %v471_v19 = vld [vmem:[%s2202_s9 + $0x558] sm:$0xff] }
  0x1e   : > { %464 = vst [vmem:[%s2210_s10 + $0x78] sm:$0xff] %v463_v15  ;;  %466 = vst [vmem:[%s2210_s10 + $0x80] sm:$0xff] %v465_v16  ;;  %v473_v20 = vld [vmem:[%s2202_s9 + $0x5a0] sm:$0xff]  ;;  %v475_v21 = vld [vmem:[%s2202_s9 + $0x5e8] sm:$0xff] }
  0x1f   : > { %468 = vst [vmem:[%s2210_s10 + $0x88] sm:$0xff] %v467_v17  ;;  %470 = vst [vmem:[%s2210_s10 + $0x90] sm:$0xff] %v469_v18  ;;  %v477_v22 = vld [vmem:[%s2202_s9 + $0x630] sm:$0xff]  ;;  %v479_v23 = vld [vmem:[%s2202_s9 + $0x678] sm:$0xff] }
  0x20   : > { %472 = vst [vmem:[%s2210_s10 + $0x98] sm:$0xff] %v471_v19  ;;  %474 = vst [vmem:[%s2210_s10 + $0xa0] sm:$0xff] %v473_v20  ;;  %v481_v24 = vld [vmem:[%s2202_s9 + $0x6c0] sm:$0xff]  ;;  %v483_v25 = vld [vmem:[%s2202_s9 + $0x708] sm:$0xff] }
  0x21   : > { %476 = vst [vmem:[%s2210_s10 + $0xa8] sm:$0xff] %v475_v21  ;;  %478 = vst [vmem:[%s2210_s10 + $0xb0] sm:$0xff] %v477_v22  ;;  %v485_v26 = vld [vmem:[%s2202_s9 + $0x750] sm:$0xff]  ;;  %v487_v27 = vld [vmem:[%s2202_s9 + $0x798] sm:$0xff] }
  0x22   : > { %480 = vst [vmem:[%s2210_s10 + $0xb8] sm:$0xff] %v479_v23  ;;  %482 = vst [vmem:[%s2210_s10 + $0xc0] sm:$0xff] %v481_v24  ;;  %v489_v28 = vld [vmem:[%s2202_s9 + $0x7e0] sm:$0xff]  ;;  %v491_v29 = vld [vmem:[%s2202_s9 + $0x828] sm:$0xff] }
  0x23   : > { %484 = vst [vmem:[%s2210_s10 + $0xc8] sm:$0xff] %v483_v25  ;;  %486 = vst [vmem:[%s2210_s10 + $0xd0] sm:$0xff] %v485_v26  ;;  %v493_v30 = vld [vmem:[%s2202_s9 + $0x870] sm:$0xff]  ;;  %v495_v31 = vld [vmem:[%s2202_s9 + $0x8b8] sm:$0xff] }
  0x24   : > { %488 = vst [vmem:[%s2210_s10 + $0xd8] sm:$0xff] %v487_v27  ;;  %490 = vst [vmem:[%s2210_s10 + $0xe0] sm:$0xff] %v489_v28  ;;  %v497_v32 = vld [vmem:[%s2202_s9 + $0x900] sm:$0xff]  ;;  %v499_v33 = vld [vmem:[%s2202_s9 + $0x948] sm:$0xff] }
  0x25   : > { %492 = vst [vmem:[%s2210_s10 + $0xe8] sm:$0xff] %v491_v29  ;;  %494 = vst [vmem:[%s2210_s10 + $0xf0] sm:$0xff] %v493_v30  ;;  %v501_v34 = vld [vmem:[%s2202_s9 + $0x990] sm:$0xff]  ;;  %v503_v35 = vld [vmem:[%s2202_s9 + $0x9d8] sm:$0xff] }
  0x26   : > { %496 = vst [vmem:[%s2210_s10 + $0xf8] sm:$0xff] %v495_v31  ;;  %498 = vst [vmem:[%s2210_s10 + $0x100] sm:$0xff] %v497_v32  ;;  %v505_v36 = vld [vmem:[%s2202_s9 + $0xa20] sm:$0xff]  ;;  %v507_v37 = vld [vmem:[%s2202_s9 + $0xa68] sm:$0xff] }
  0x27   : > { %500 = vst [vmem:[%s2210_s10 + $0x108] sm:$0xff] %v499_v33  ;;  %502 = vst [vmem:[%s2210_s10 + $0x110] sm:$0xff] %v501_v34  ;;  %v509_v38 = vld [vmem:[%s2202_s9 + $0xab0] sm:$0xff]  ;;  %v511_v39 = vld [vmem:[%s2202_s9 + $0xaf8] sm:$0xff] }
  0x28   : > { %504 = vst [vmem:[%s2210_s10 + $0x118] sm:$0xff] %v503_v35  ;;  %506 = vst [vmem:[%s2210_s10 + $0x120] sm:$0xff] %v505_v36  ;;  %v513_v40 = vld [vmem:[%s2202_s9 + $0xb40] sm:$0xff]  ;;  %v515_v41 = vld [vmem:[%s2202_s9 + $0xb88] sm:$0xff] }
  0x29   : > { %508 = vst [vmem:[%s2210_s10 + $0x128] sm:$0xff] %v507_v37  ;;  %510 = vst [vmem:[%s2210_s10 + $0x130] sm:$0xff] %v509_v38  ;;  %v517_v42 = vld [vmem:[%s2202_s9 + $0xbd0] sm:$0xff]  ;;  %v519_v43 = vld [vmem:[%s2202_s9 + $0xc18] sm:$0xff] }
  0x2a   : > { %512 = vst [vmem:[%s2210_s10 + $0x138] sm:$0xff] %v511_v39  ;;  %514 = vst [vmem:[%s2210_s10 + $0x140] sm:$0xff] %v513_v40  ;;  %v521_v44 = vld [vmem:[%s2202_s9 + $0xc60] sm:$0xff]  ;;  %v523_v45 = vld [vmem:[%s2202_s9 + $0xca8] sm:$0xff] }
  0x2b   : > { %516 = vst [vmem:[%s2210_s10 + $0x148] sm:$0xff] %v515_v41  ;;  %518 = vst [vmem:[%s2210_s10 + $0x150] sm:$0xff] %v517_v42  ;;  %v525_v46 = vld [vmem:[%s2202_s9 + $0xcf0] sm:$0xff]  ;;  %v527_v47 = vld [vmem:[%s2202_s9 + $0xd38] sm:$0xff] }
  0x2c   : > { %520 = vst [vmem:[%s2210_s10 + $0x158] sm:$0xff] %v519_v43  ;;  %522 = vst [vmem:[%s2210_s10 + $0x160] sm:$0xff] %v521_v44  ;;  %v529_v48 = vld [vmem:[%s2202_s9 + $0xd80] sm:$0xff]  ;;  %v531_v49 = vld [vmem:[%s2202_s9 + $0xdc8] sm:$0xff] }
  0x2d   : > { %524 = vst [vmem:[%s2210_s10 + $0x168] sm:$0xff] %v523_v45  ;;  %526 = vst [vmem:[%s2210_s10 + $0x170] sm:$0xff] %v525_v46  ;;  %v533_v50 = vld [vmem:[%s2202_s9 + $0xe10] sm:$0xff]  ;;  %v535_v51 = vld [vmem:[%s2202_s9 + $0xe58] sm:$0xff] }
  0x2e   : > { %528 = vst [vmem:[%s2210_s10 + $0x178] sm:$0xff] %v527_v47  ;;  %530 = vst [vmem:[%s2210_s10 + $0x180] sm:$0xff] %v529_v48  ;;  %v537_v52 = vld [vmem:[%s2202_s9 + $0xea0] sm:$0xff]  ;;  %v539_v53 = vld [vmem:[%s2202_s9 + $0xee8] sm:$0xff] }
  0x2f   : > { %532 = vst [vmem:[%s2210_s10 + $0x188] sm:$0xff] %v531_v49  ;;  %534 = vst [vmem:[%s2210_s10 + $0x190] sm:$0xff] %v533_v50  ;;  %v541_v54 = vld [vmem:[%s2202_s9 + $0xf30] sm:$0xff]  ;;  %v543_v55 = vld [vmem:[%s2202_s9 + $0xf78] sm:$0xff] }
  0x30   : > { %536 = vst [vmem:[%s2210_s10 + $0x198] sm:$0xff] %v535_v51  ;;  %538 = vst [vmem:[%s2210_s10 + $0x1a0] sm:$0xff] %v537_v52  ;;  %v545_v56 = vld [vmem:[%s2202_s9 + $0xfc0] sm:$0xff]  ;;  %v547_v57 = vld [vmem:[%s2202_s9 + $0x1008] sm:$0xff] }
  0x31   : > { %540 = vst [vmem:[%s2210_s10 + $0x1a8] sm:$0xff] %v539_v53  ;;  %542 = vst [vmem:[%s2210_s10 + $0x1b0] sm:$0xff] %v541_v54  ;;  %v549_v58 = vld [vmem:[%s2202_s9 + $0x1050] sm:$0xff]  ;;  %v551_v59 = vld [vmem:[%s2202_s9 + $0x1098] sm:$0xff] }
  0x32   : > { %544 = vst [vmem:[%s2210_s10 + $0x1b8] sm:$0xff] %v543_v55  ;;  %546 = vst [vmem:[%s2210_s10 + $0x1c0] sm:$0xff] %v545_v56  ;;  %v553_v60 = vld [vmem:[%s2202_s9 + $0x10e0] sm:$0xff]  ;;  %v555_v61 = vld [vmem:[%s2202_s9 + $0x1128] sm:$0xff] }
  0x33   : > { %548 = vst [vmem:[%s2210_s10 + $0x1c8] sm:$0xff] %v547_v57  ;;  %550 = vst [vmem:[%s2210_s10 + $0x1d0] sm:$0xff] %v549_v58  ;;  %v557_v62 = vld [vmem:[%s2202_s9 + $0x1170] sm:$0xff]  ;;  %v559_v63 = vld [vmem:[%s2202_s9 + $0x11b8] sm:$0xff] }
  0x34   : > { %552 = vst [vmem:[%s2210_s10 + $0x1d8] sm:$0xff] %v551_v59  ;;  %554 = vst [vmem:[%s2210_s10 + $0x1e0] sm:$0xff] %v553_v60  ;;  %v561_v0 = vld [vmem:[%s2202_s9 + $0x1200] sm:$0xff]  ;;  %v563_v1 = vld [vmem:[%s2202_s9 + $0x1248] sm:$0xff] }
  0x35   : > { %556 = vst [vmem:[%s2210_s10 + $0x1e8] sm:$0xff] %v555_v61  ;;  %558 = vst [vmem:[%s2210_s10 + $0x1f0] sm:$0xff] %v557_v62  ;;  %v565_v2 = vld [vmem:[%s2202_s9 + $0x1290] sm:$0xff]  ;;  %v567_v3 = vld [vmem:[%s2202_s9 + $0x12d8] sm:$0xff] }
  0x36   : > { %560 = vst [vmem:[%s2210_s10 + $0x1f8] sm:$0xff] %v559_v63  ;;  %562 = vst [vmem:[%s2210_s10 + $0x200] sm:$0xff] %v561_v0  ;;  %v569_v4 = vld [vmem:[%s2202_s9 + $0x1320] sm:$0xff]  ;;  %v571_v5 = vld [vmem:[%s2202_s9 + $0x1368] sm:$0xff] }
  0x37   : > { %564 = vst [vmem:[%s2210_s10 + $0x208] sm:$0xff] %v563_v1  ;;  %566 = vst [vmem:[%s2210_s10 + $0x210] sm:$0xff] %v565_v2  ;;  %v573_v6 = vld [vmem:[%s2202_s9 + $0x13b0] sm:$0xff]  ;;  %v575_v7 = vld [vmem:[%s2202_s9 + $0x13f8] sm:$0xff] }
  0x38   : > { %568 = vst [vmem:[%s2210_s10 + $0x218] sm:$0xff] %v567_v3  ;;  %570 = vst [vmem:[%s2210_s10 + $0x220] sm:$0xff] %v569_v4  ;;  %v577_v8 = vld [vmem:[%s2202_s9 + $0x1440] sm:$0xff]  ;;  %v579_v9 = vld [vmem:[%s2202_s9 + $0x1488] sm:$0xff] }
  0x39   : > { %572 = vst [vmem:[%s2210_s10 + $0x228] sm:$0xff] %v571_v5  ;;  %574 = vst [vmem:[%s2210_s10 + $0x230] sm:$0xff] %v573_v6  ;;  %v581_v10 = vld [vmem:[%s2202_s9 + $0x14d0] sm:$0xff]  ;;  %v583_v11 = vld [vmem:[%s2202_s9 + $0x1518] sm:$0xff] }
  0x3a   : > { %576 = vst [vmem:[%s2210_s10 + $0x238] sm:$0xff] %v575_v7  ;;  %578 = vst [vmem:[%s2210_s10 + $0x240] sm:$0xff] %v577_v8  ;;  %v585_v12 = vld [vmem:[%s2202_s9 + $0x1560] sm:$0xff]  ;;  %v587_v13 = vld [vmem:[%s2202_s9 + $0x15a8] sm:$0xff] }
  0x3b   : > { %580 = vst [vmem:[%s2210_s10 + $0x248] sm:$0xff] %v579_v9  ;;  %582 = vst [vmem:[%s2210_s10 + $0x250] sm:$0xff] %v581_v10  ;;  %v589_v14 = vld [vmem:[%s2202_s9 + $0x15f0] sm:$0xff]  ;;  %v591_v15 = vld [vmem:[%s2202_s9 + $0x1638] sm:$0xff] }
  0x3c   : > { %584 = vst [vmem:[%s2210_s10 + $0x258] sm:$0xff] %v583_v11  ;;  %586 = vst [vmem:[%s2210_s10 + $0x260] sm:$0xff] %v585_v12  ;;  %v593_v16 = vld [vmem:[%s2202_s9 + $0x1680] sm:$0xff]  ;;  %v595_v17 = vld [vmem:[%s2202_s9 + $0x16c8] sm:$0xff] }
  0x3d   : > { %588 = vst [vmem:[%s2210_s10 + $0x268] sm:$0xff] %v587_v13  ;;  %590 = vst [vmem:[%s2210_s10 + $0x270] sm:$0xff] %v589_v14  ;;  %v597_v18 = vld [vmem:[%s2202_s9 + $0x1710] sm:$0xff]  ;;  %v599_v19 = vld [vmem:[%s2202_s9 + $0x1758] sm:$0xff] }
  0x3e   : > { %592 = vst [vmem:[%s2210_s10 + $0x278] sm:$0xff] %v591_v15  ;;  %594 = vst [vmem:[%s2210_s10 + $0x280] sm:$0xff] %v593_v16  ;;  %v601_v20 = vld [vmem:[%s2202_s9 + $0x17a0] sm:$0xff]  ;;  %v603_v21 = vld [vmem:[%s2202_s9 + $0x17e8] sm:$0xff] }
  0x3f   : > { %596 = vst [vmem:[%s2210_s10 + $0x288] sm:$0xff] %v595_v17  ;;  %598 = vst [vmem:[%s2210_s10 + $0x290] sm:$0xff] %v597_v18  ;;  %v605_v22 = vld [vmem:[%s2202_s9 + $0x1830] sm:$0xff]  ;;  %v607_v23 = vld [vmem:[%s2202_s9 + $0x1878] sm:$0xff] }
  0x40   : > { %600 = vst [vmem:[%s2210_s10 + $0x298] sm:$0xff] %v599_v19  ;;  %602 = vst [vmem:[%s2210_s10 + $0x2a0] sm:$0xff] %v601_v20  ;;  %v609_v24 = vld [vmem:[%s2202_s9 + $0x18c0] sm:$0xff]  ;;  %v611_v25 = vld [vmem:[%s2202_s9 + $0x1908] sm:$0xff] }
  0x41   : > { %604 = vst [vmem:[%s2210_s10 + $0x2a8] sm:$0xff] %v603_v21  ;;  %606 = vst [vmem:[%s2210_s10 + $0x2b0] sm:$0xff] %v605_v22  ;;  %v613_v26 = vld [vmem:[%s2202_s9 + $0x1950] sm:$0xff]  ;;  %v615_v27 = vld [vmem:[%s2202_s9 + $0x1998] sm:$0xff] }
  0x42   : > { %608 = vst [vmem:[%s2210_s10 + $0x2b8] sm:$0xff] %v607_v23  ;;  %610 = vst [vmem:[%s2210_s10 + $0x2c0] sm:$0xff] %v609_v24  ;;  %v617_v28 = vld [vmem:[%s2202_s9 + $0x19e0] sm:$0xff]  ;;  %v619_v29 = vld [vmem:[%s2202_s9 + $0x1a28] sm:$0xff] }
  0x43   : > { %612 = vst [vmem:[%s2210_s10 + $0x2c8] sm:$0xff] %v611_v25  ;;  %614 = vst [vmem:[%s2210_s10 + $0x2d0] sm:$0xff] %v613_v26  ;;  %v621_v30 = vld [vmem:[%s2202_s9 + $0x1a70] sm:$0xff]  ;;  %v623_v31 = vld [vmem:[%s2202_s9 + $0x1ab8] sm:$0xff] }
  0x44   : > { %616 = vst [vmem:[%s2210_s10 + $0x2d8] sm:$0xff] %v615_v27  ;;  %618 = vst [vmem:[%s2210_s10 + $0x2e0] sm:$0xff] %v617_v28 }
  0x45   : > { %620 = vst [vmem:[%s2210_s10 + $0x2e8] sm:$0xff] %v619_v29  ;;  %622 = vst [vmem:[%s2210_s10 + $0x2f0] sm:$0xff] %v621_v30 }
  0x46   : > { %624 = vst [vmem:[%s2210_s10 + $0x2f8] sm:$0xff] %v623_v31 }
  0x47 PF: > { %p1772_p8 = scmp.ge.s32.totalorder %s2122_s22, 1  ;;  %p637_p9 = scmp.lt.s32.totalorder %s2122_s22, 10 }
  0x49   : > { %p638_p10 = pnand %p1772_p8, %p637_p9 }
  0x4a   : > { %v2403_v32 = vld [vmem:[%s2728_s0 + $0x18] sm:$0x11] (!%p638_p10)  ;;  %v2408_v33 = vld [vmem:[%s2728_s0 + $0x20] sm:$0x11] (!%p638_p10)  ;;  %v2413_v34 = vld [vmem:[%s2728_s0 + $0x28] sm:$0x11] (!%p638_p10) }
  0x4b   : > { %641 = sbr.rel (%p638_p10) target bundleno = 712 (0x2c8), region = 74  ;;  %v707_v35 = vunpack.c.l.bf16 (!%p638_p10), %v2403_v32  ;;  %v708_v36 = vunpack.c.h.bf16 (!%p638_p10), %v2403_v32  ;;  %v709_v37 = vunpack.c.l.bf16 (!%p638_p10), %v2408_v33  ;;  %v710_v38 = vunpack.c.h.bf16 (!%p638_p10), %v2408_v33  ;;  %v2422_v39 = vld [vmem:[%s2728_s0] sm:$0xff] (!%p638_p10)  ;;  %v2427_v40 = vld [vmem:[%s2728_s0 + $0x8] sm:$0xff] (!%p638_p10)  ;;  %v2448_v50 = vld [vmem:[%s2728_s0 + $0x10] sm:$0xff] (!%p638_p10)  ;;  %s644_s6 = sand.u32 (!%p638_p10), 1, %s2106_s18  }
  0x4c   : > { %vm720_vm0 = vcmask (!%p638_p10), 1041408   ;;  %v701_v41 = vunpack.c.l.bf16 (!%p638_p10), %v2422_v39  ;;  %v711_v42 = vunpack.c.l.bf16 (!%p638_p10), %v2413_v34  ;;  %v702_v47 = vunpack.c.h.bf16 (!%p638_p10), %v2422_v39  ;;  %s1895_s7 = smul.u32 (!%p638_p10), 768, %s644_s6  ;;  %s1774_s13 = sshll.u32 (!%p638_p10), %s2114_s20, 1 }
  0x4d   : > { %v721_v43 = vsel (!%p638_p10), %vm720_vm0, %v707_v35, 0.0  ;;  %v722_v44 = vsel (!%p638_p10), %vm720_vm0, %v708_v36, 0.0  ;;  %v724_v45 = vsel (!%p638_p10), %vm720_vm0, %v709_v37, 0.0  ;;  %v712_v48 = vunpack.c.h.bf16 (!%p638_p10), %v2413_v34  ;;  %p689_p11 = scmp.lt.s32.totalorder (!%p638_p10), %s1774_s13, 17  ;;  %s1773_s17 = sshll.u32 (!%p638_p10), %s644_s6, 4 }
  0x4e   : > { %v723_v46 = vadd.f32 (!%p638_p10), %v722_v44, %v721_v43  ;;  %v726_v49 = vsel (!%p638_p10), %vm720_vm0, %v710_v38, 0.0  ;;  %v703_v51 = vunpack.c.l.bf16 (!%p638_p10), %v2427_v40  ;;  %v704_v53 = vunpack.c.h.bf16 (!%p638_p10), %v2427_v40  ;;  %s2475_s8 = scalar_lea.vmem (!%p638_p10), [#allocation2], %s1895_s7  ;;  %s679_s24 = scalar_lea.vmem (!%p638_p10), [#allocation3], %s1773_s17 }
  0x4f   : > { %v713_v54 = vadd.f32 (!%p638_p10), %v702_v47, %v701_v41  ;;  %v728_v55 = vsel (!%p638_p10), %vm720_vm0, %v711_v42, 0.0  ;;  %v705_v57 = vunpack.c.l.bf16 (!%p638_p10), %v2448_v50  ;;  %v730_v59 = vsel (!%p638_p10), %vm720_vm0, %v712_v48, 0.0  ;;  %v1936_v2 = vld [vmem:[%s2475_s8 + $0x104] ss:$8 sps:$4 sm:$0xff] (!%p638_p10)   ;;  %v1940_v4 = vld [vmem:[%s2475_s8 + $0x100] ss:$8 sps:$4 sm:$0xff] (!%p638_p10)  }
  0x50   : > { %v725_v52 = vadd.f32 (!%p638_p10), %v724_v45, %v723_v46  ;;  %v706_v61 = vunpack.c.h.bf16 (!%p638_p10), %v2448_v50  ;;  %v1938_v3 = vld [vmem:[%s2475_s8 + $0x4] ss:$8 sps:$4 sm:$0xff] (!%p638_p10)   ;;  %1524 = vmatprep.subr.bf16.mxu0 (!%p638_p10), %v1936_v2  ;;  %v1941_v5 = vld [vmem:[%s2475_s8] ss:$8 sps:$4 sm:$0xff] (!%p638_p10)   ;;  %v1942_v6 = vld [vmem:[%s2475_s8 + $0x114] ss:$8 sps:$4 sm:$0xff] (!%p638_p10)  }
  0x51   : > { %v714_v58 = vadd.f32 (!%p638_p10), %v713_v54, %v703_v51  ;;  %1481 = vmatprep.subr.bf16.mxu1 (!%p638_p10), %v1938_v3  ;;  %1525 = vmatpush1.bf16.msra.mxu0 (!%p638_p10), %v1940_v4  ;;  %v1944_v7 = vld [vmem:[%s2475_s8 + $0x14] ss:$8 sps:$4 sm:$0xff] (!%p638_p10)   ;;  %v1946_v8 = vld [vmem:[%s2475_s8 + $0x110] ss:$8 sps:$4 sm:$0xff] (!%p638_p10)   ;;  %v1948_v10 = vld [vmem:[%s2475_s8 + $0x124] ss:$8 sps:$4 sm:$0xff] (!%p638_p10)  }
  0x52   : > { %v727_v56 = vadd.f32 %v726_v49, %v725_v52  ;;  %1482 = vmatpush1.bf16.msra.mxu1 %v1941_v5  ;;  %1526 = vmatprep.subr.bf16.mxu0 %v1942_v6  ;;  %v1947_v9 = vld [vmem:[%s2475_s8 + $0x10] ss:$8 sps:$4 sm:$0xff]   ;;  %v1950_v11 = vld [vmem:[%s2475_s8 + $0x24] ss:$8 sps:$4 sm:$0xff]   ;;  %v1952_v12 = vld [vmem:[%s2475_s8 + $0x120] ss:$8 sps:$4 sm:$0xff]  }
  0x53   : > { %v715_v62 = vadd.f32 %v714_v58, %v704_v53  ;;  %1483 = vmatprep.subr.bf16.mxu1 %v1944_v7  ;;  %v1953_v13 = vld [vmem:[%s2475_s8 + $0x20] ss:$8 sps:$4 sm:$0xff]   ;;  %v1954_v14 = vld [vmem:[%s2475_s8 + $0x134] ss:$8 sps:$4 sm:$0xff]   ;;  %v1958_v16 = vld [vmem:[%s2475_s8 + $0x130] ss:$8 sps:$4 sm:$0xff]  }
  0x54   : > { %v729_v60 = vadd.f32 %v728_v55, %v727_v56  ;;  %v1956_v15 = vld [vmem:[%s2475_s8 + $0x34] ss:$8 sps:$4 sm:$0xff]   ;;  %v1959_v17 = vld [vmem:[%s2475_s8 + $0x30] ss:$8 sps:$4 sm:$0xff]   ;;  %v1960_v18 = vld [vmem:[%s2475_s8 + $0x144] ss:$8 sps:$4 sm:$0xff]  }
  0x55   : > { %v716_v0 = vadd.f32 %v715_v62, %v705_v57  ;;  %1527 = vmatpush1.bf16.msra.mxu0 %v1946_v8  ;;  %v1962_v19 = vld [vmem:[%s2475_s8 + $0x44] ss:$8 sps:$4 sm:$0xff]   ;;  %v1964_v20 = vld [vmem:[%s2475_s8 + $0x140] ss:$8 sps:$4 sm:$0xff]   ;;  %v1966_v22 = vld [vmem:[%s2475_s8 + $0x154] ss:$8 sps:$4 sm:$0xff]  }
  0x56   : > { %v731_v63 = vadd.f32 %v730_v59, %v729_v60  ;;  %1484 = vmatpush1.bf16.msra.mxu1 %v1947_v9  ;;  %1528 = vmatprep.subr.bf16.mxu0 %v1948_v10  ;;  %v1965_v21 = vld [vmem:[%s2475_s8 + $0x40] ss:$8 sps:$4 sm:$0xff]   ;;  %v1968_v23 = vld [vmem:[%s2475_s8 + $0x54] ss:$8 sps:$4 sm:$0xff]   ;;  %v1970_v24 = vld [vmem:[%s2475_s8 + $0x150] ss:$8 sps:$4 sm:$0xff]  }
  0x57   : > { %v717_v1 = vadd.f32 %v716_v0, %v706_v61  ;;  %1485 = vmatprep.subr.bf16.mxu1 %v1950_v11  ;;  %v1971_v25 = vld [vmem:[%s2475_s8 + $0x50] ss:$8 sps:$4 sm:$0xff]   ;;  %v1972_v26 = vld [vmem:[%s2475_s8 + $0x164] ss:$8 sps:$4 sm:$0xff]   ;;  %v1976_v28 = vld [vmem:[%s2475_s8 + $0x160] ss:$8 sps:$4 sm:$0xff]  }
  0x58   : > { %732 = vadd.xlane.f32.xlu0 %v731_v63  ;;  %v1974_v27 = vld [vmem:[%s2475_s8 + $0x64] ss:$8 sps:$4 sm:$0xff]   ;;  %v1977_v29 = vld [vmem:[%s2475_s8 + $0x60] ss:$8 sps:$4 sm:$0xff]   ;;  %v1978_v30 = vld [vmem:[%s2475_s8 + $0x174] ss:$8 sps:$4 sm:$0xff]  }
  0x59   : > { %1529 = vmatpush1.bf16.msra.mxu0 %v1952_v12  ;;  %v1980_v31 = vld [vmem:[%s2475_s8 + $0x74] ss:$8 sps:$4 sm:$0xff]   ;;  %v1982_v43 = vld [vmem:[%s2475_s8 + $0x170] ss:$8 sps:$4 sm:$0xff]   ;;  %v1984_v45 = vld [vmem:[%s2475_s8 + $0x184] ss:$8 sps:$4 sm:$0xff]  }
  0x5a   : > { %1486 = vmatpush1.bf16.msra.mxu1 %v1953_v13  ;;  %1530 = vmatprep.subr.bf16.mxu0 %v1954_v14  ;;  %v1983_v44 = vld [vmem:[%s2475_s8 + $0x70] ss:$8 sps:$4 sm:$0xff]   ;;  %v1986_v46 = vld [vmem:[%s2475_s8 + $0x84] ss:$8 sps:$4 sm:$0xff]   ;;  %v1988_v49 = vld [vmem:[%s2475_s8 + $0x180] ss:$8 sps:$4 sm:$0xff]  }
  0x5b   : > { %1487 = vmatprep.subr.bf16.mxu1 %v1956_v15  ;;  %v1989_v52 = vld [vmem:[%s2475_s8 + $0x80] ss:$8 sps:$4 sm:$0xff]   ;;  %s2742_s13 = smov (!%p689_p11, %s1774_s13), 17  ;;  %s1881_s18 = sshll.u32 (%p2189_p6), %s2114_s20, 3 }
  0x5c   : > { %718 = vadd.xlane.f32.xlu0 %v717_v1  ;;  %s691_s16 = scalar_lea.vmem %s2732_s4, %s2742_s13  ;;  %s1636_s29 = scalar_lea.vmem (%p2189_p6), %s2733_s5, %s1881_s18 }
  0x5d   : > { %1531 = vmatpush1.bf16.msra.mxu0 %v1958_v16 }
  0x5e   : > { %1488 = vmatpush1.bf16.msra.mxu1 %v1959_v17  ;;  %1532 = vmatprep.subr.bf16.mxu0 %v1960_v18  ;;  %v1990_v18 = vld [vmem:[%s2475_s8 + $0x194] ss:$8 sps:$4 sm:$0xff]  }
  0x5f   : > { %1489 = vmatprep.subr.bf16.mxu1 %v1962_v19  ;;  %v1992_v19 = vld [vmem:[%s2475_s8 + $0x94] ss:$8 sps:$4 sm:$0xff]  }
  0x61   : > { %1533 = vmatpush1.bf16.msra.mxu0 %v1964_v20  ;;  %v1994_v20 = vld [vmem:[%s2475_s8 + $0x190] ss:$8 sps:$4 sm:$0xff]  }
  0x62   : > { %1490 = vmatpush1.bf16.msra.mxu1 %v1965_v21  ;;  %1534 = vmatprep.subr.bf16.mxu0 %v1966_v22  ;;  %v1995_v21 = vld [vmem:[%s2475_s8 + $0x90] ss:$8 sps:$4 sm:$0xff]   ;;  %v1996_v22 = vld [vmem:[%s2475_s8 + $0x1a4] ss:$8 sps:$4 sm:$0xff]  }
  0x63   : > { %1491 = vmatprep.subr.bf16.mxu1 %v1968_v23  ;;  %v1998_v23 = vld [vmem:[%s2475_s8 + $0xa4] ss:$8 sps:$4 sm:$0xff]  }
  0x65   : > { %1535 = vmatpush1.bf16.msra.mxu0 %v1970_v24  ;;  %v2000_v24 = vld [vmem:[%s2475_s8 + $0x1a0] ss:$8 sps:$4 sm:$0xff]  }
  0x66   : > { %1492 = vmatpush1.bf16.msra.mxu1 %v1971_v25  ;;  %1536 = vmatprep.subr.bf16.mxu0 %v1972_v26  ;;  %v2001_v25 = vld [vmem:[%s2475_s8 + $0xa0] ss:$8 sps:$4 sm:$0xff]   ;;  %v2002_v26 = vld [vmem:[%s2475_s8 + $0x1b4] ss:$8 sps:$4 sm:$0xff]  }
  0x67   : > { %1493 = vmatprep.subr.bf16.mxu1 %v1974_v27  ;;  %v2004_v27 = vld [vmem:[%s2475_s8 + $0xb4] ss:$8 sps:$4 sm:$0xff]  }
  0x69   : > { %1537 = vmatpush1.bf16.msra.mxu0 %v1976_v28  ;;  %v2006_v28 = vld [vmem:[%s2475_s8 + $0x1b0] ss:$8 sps:$4 sm:$0xff]  }
  0x6a   : > { %1494 = vmatpush1.bf16.msra.mxu1 %v1977_v29  ;;  %1538 = vmatprep.subr.bf16.mxu0 %v1978_v30  ;;  %v2007_v29 = vld [vmem:[%s2475_s8 + $0xb0] ss:$8 sps:$4 sm:$0xff]   ;;  %v2008_v30 = vld [vmem:[%s2475_s8 + $0x1c4] ss:$8 sps:$4 sm:$0xff]  }
  0x6b   : > { %1495 = vmatprep.subr.bf16.mxu1 %v1980_v31  ;;  %v2010_v31 = vld [vmem:[%s2475_s8 + $0xc4] ss:$8 sps:$4 sm:$0xff]  }
  0x6d   : > { %1539 = vmatpush1.bf16.msra.mxu0 %v1982_v43  ;;  %v2012_v43 = vld [vmem:[%s2475_s8 + $0x1c0] ss:$8 sps:$4 sm:$0xff]  }
  0x6e   : > { %1496 = vmatpush1.bf16.msra.mxu1 %v1983_v44  ;;  %1540 = vmatprep.subr.bf16.mxu0 %v1984_v45  ;;  %v2013_v44 = vld [vmem:[%s2475_s8 + $0xc0] ss:$8 sps:$4 sm:$0xff]   ;;  %v2014_v45 = vld [vmem:[%s2475_s8 + $0x1d4] ss:$8 sps:$4 sm:$0xff]  }
  0x6f   : > { %1497 = vmatprep.subr.bf16.mxu1 %v1986_v46  ;;  %v801_v46 = vlaneseq }
  0x71   : > { %1541 = vmatpush1.bf16.msra.mxu0 %v1988_v49  ;;  %v2016_v49 = vld [vmem:[%s2475_s8 + $0xd4] ss:$8 sps:$4 sm:$0xff]  }
  0x72   : > { %1498 = vmatpush1.bf16.msra.mxu1 %v1989_v52  ;;  %1542 = vmatprep.subr.bf16.mxu0 %v1990_v18  ;;  %v2609_v52 = vshrl.u32 %v801_v46, 7 }
  0x73   : > { %1499 = vmatprep.subr.bf16.mxu1 %v1992_v19 }
  0x75   : > { %1543 = vmatpush1.bf16.msra.mxu0 %v1994_v20 }
  0x76   : > { %1500 = vmatpush1.bf16.msra.mxu1 %v1995_v21  ;;  %1544 = vmatprep.subr.bf16.mxu0 %v1996_v22 }
  0x77   : > { %1501 = vmatprep.subr.bf16.mxu1 %v1998_v23 }
  0x79   : > { %1545 = vmatpush1.bf16.msra.mxu0 %v2000_v24 }
  0x7a   : > { %1502 = vmatpush1.bf16.msra.mxu1 %v2001_v25  ;;  %1546 = vmatprep.subr.bf16.mxu0 %v2002_v26 }
  0x7b   : > { %1503 = vmatprep.subr.bf16.mxu1 %v2004_v27 }
  0x7d   : > { %1547 = vmatpush1.bf16.msra.mxu0 %v2006_v28 }
  0x7e   : > { %1504 = vmatpush1.bf16.msra.mxu1 %v2007_v29  ;;  %1548 = vmatprep.subr.bf16.mxu0 %v2008_v30 }
  0x7f   : > { %1505 = vmatprep.subr.bf16.mxu1 %v2010_v31 }
  0x81   : > { %1549 = vmatpush1.bf16.msra.mxu0 %v2012_v43 }
  0x82   : > { %1506 = vmatpush1.bf16.msra.mxu1 %v2013_v44  ;;  %1550 = vmatprep.subr.bf16.mxu0 %v2014_v45 }
  0x83   : > { %1507 = vmatprep.subr.bf16.mxu1 %v2016_v49 }
  0xe5   : > { %v733_v54 = vpop.xlane.xlu0 %732 }
  0xe6   : > { %v736_v55 = vmul.f32 0.0013020834, %v733_v54  ;;  %v2018_v54 = vld [vmem:[%s2475_s8 + $0x1d0] ss:$8 sps:$4 sm:$0xff]  }
  0xe7   : > { %1551 = vmatpush1.bf16.msra.mxu0 %v2018_v54 }
  0xe8   : > { %v2515_v56 = vsub.f32 %v707_v35, %v736_v55  ;;  %v2519_v58 = vsub.f32 %v708_v36, %v736_v55  ;;  %v2523_v59 = vsub.f32 %v709_v37, %v736_v55  ;;  %v2531_v35 = vsub.f32 %v710_v38, %v736_v55 }
  0xe9   : > { %v719_v60 = vpop.xlane.xlu0 %718  ;;  %v2578_v9 = vsub.f32 %v712_v48, %v736_v55 }
  0xea   : > { %v735_v62 = vmul.f32 0.0013020834, %v719_v60  ;;  %v755_v63 = vmul.f32 %v2515_v56, %v2515_v56  ;;  %v756_v0 = vmul.f32 %v2519_v58, %v2519_v58  ;;  %v757_v1 = vmul.f32 %v2523_v59, %v2523_v59  ;;  %v2020_v60 = vld [vmem:[%s2475_s8 + $0x1e4] ss:$8 sps:$4 sm:$0xff]  }
  0xeb   : > { %v760_v48 = vmul.f32 %v2578_v9, %v2578_v9  ;;  %1552 = vmatprep.subr.bf16.mxu0 %v2020_v60 }
  0xec   : > { %v2535_v32 = vsub.f32 %v701_v41, %v735_v62  ;;  %v2539_v36 = vsub.f32 %v702_v47, %v735_v62  ;;  %v2543_v37 = vsub.f32 %v703_v51, %v735_v62  ;;  %v768_v2 = vsel %vm720_vm0, %v755_v63, 0.0  ;;  %v799_v63 = vld [vmem:[%s2729_s1] sm:$0x3f] }
  0xed   : > { %v769_v33 = vsel %vm720_vm0, %v756_v0, 0.0  ;;  %v2551_v38 = vsub.f32 %v704_v53, %v735_v62  ;;  %v2559_v47 = vsub.f32 %v711_v42, %v736_v55  ;;  %v758_v51 = vmul.f32 %v2531_v35, %v2531_v35  ;;  %v2019_v55 = vld [vmem:[%s2475_s8 + $0xd0] ss:$8 sps:$4 sm:$0xff]  }
  0xee   : > { %v749_v39 = vmul.f32 %v2535_v32, %v2535_v32  ;;  %v750_v41 = vmul.f32 %v2539_v36, %v2539_v36  ;;  %v770_v3 = vadd.f32 %v769_v33, %v768_v2  ;;  %v2565_v4 = vsub.f32 %v705_v57, %v735_v62  ;;  %v843_v2 = vld [vmem:[%s2730_s2] sm:$0x3f]  ;;  %1508 = vmatpush1.bf16.msra.mxu1 %v2019_v55 }
  0xef   : > { %v751_v40 = vmul.f32 %v2543_v37, %v2543_v37  ;;  %v771_v5 = vsel %vm720_vm0, %v757_v1, 0.0  ;;  %v2572_v7 = vsub.f32 %v706_v61, %v735_v62  ;;  %v752_v42 = vmul.f32 %v2551_v38, %v2551_v38  ;;  %v2022_v62 = vld [vmem:[%s2475_s8 + $0xe4] ss:$8 sps:$4 sm:$0xff]   ;;  %v2024_v1 = vld [vmem:[%s2475_s8 + $0x1e0] ss:$8 sps:$4 sm:$0xff]  }
  0xf0   : > { %v761_v53 = vadd.f32 %v750_v41, %v749_v39  ;;  %v772_v6 = vadd.f32 %v771_v5, %v770_v3  ;;  %v759_v57 = vmul.f32 %v2559_v47, %v2559_v47  ;;  %v773_v10 = vsel %vm720_vm0, %v758_v51, 0.0  ;;  %v2025_v39 = vld [vmem:[%s2475_s8 + $0xe0] ss:$8 sps:$4 sm:$0xff]   ;;  %v2026_v41 = vld [vmem:[%s2475_s8 + $0x1f4] ss:$8 sps:$4 sm:$0xff]   ;;  %1509 = vmatprep.subr.bf16.mxu1 %v2022_v62  ;;  %1553 = vmatpush1.bf16.msra.mxu0 %v2024_v1 }
  0xf1   : > { %v753_v50 = vmul.f32 %v2565_v4, %v2565_v4  ;;  %v754_v12 = vmul.f32 %v2572_v7, %v2572_v7  ;;  %v777_v16 = vsel %vm720_vm0, %v760_v48, 0.0  ;;  %v819_v0 = vsub.s32 4, %v2609_v52  ;;  %v2028_v51 = vld [vmem:[%s2475_s8 + $0xf4] ss:$8 sps:$4 sm:$0xff]   ;;  %1554 = vmatprep.subr.bf16.mxu0 %v2026_v41  ;;  %v2034_v5 = vld [vmem:[%s2475_s8 + $0x204] ss:$8 sps:$4 sm:$0xff]  }
  0xf2   : > { %v762_v8 = vadd.f32 %v761_v53, %v751_v40  ;;  %v774_v11 = vadd.f32 %v773_v10, %v772_v6  ;;  %v775_v13 = vsel %vm720_vm0, %v759_v57, 0.0  ;;  %v2030_v40 = vld [vmem:[%s2475_s8 + $0x1f0] ss:$8 sps:$4 sm:$0xff]   ;;  %1510 = vmatpush1.bf16.msra.mxu1 %v2025_v39  ;;  %v823_v48 = vsub.s32 5, %v2609_v52 }
  0xf3   : > { %v2623_v33 = vrot.slane %v799_v63, %v819_v0  ;;  %v2628_v3 = vrot.slane %v843_v2, %v819_v0  ;;  %v2031_v53 = vld [vmem:[%s2475_s8 + $0xf0] ss:$8 sps:$4 sm:$0xff]   ;;  %1511 = vmatprep.subr.bf16.mxu1 %v2028_v51 }
  0xf4   : > { %v763_v61 = vadd.f32 %v762_v8, %v752_v42  ;;  %v776_v15 = vadd.f32 %v775_v13, %v774_v11  ;;  %1555 = vmatpush1.bf16.msra.mxu0 %v2030_v40  ;;  %v815_v11 = vsub.s32 3, %v2609_v52  ;;  %v824_v24 = vrot.slane %v799_v63, %v823_v48 }
  0xf5   : > { %1567 = vmatprep.subr.bf16.mxu0 %v2034_v5  ;;  %v868_v31 = vrot.slane %v843_v2, %v823_v48  ;;  %v2046_v48 = vld [vmem:[%s2475_s8 + $0x244] ss:$8 sps:$4 sm:$0xff]  }
  0xf6   : > { %v764_v34 = vadd.f32 %v763_v61, %v753_v50  ;;  %v778_v17 = vadd.f32 %v777_v16, %v776_v15  ;;  %1512 = vmatpush1.bf16.msra.mxu1 %v2031_v53  ;;  %v2634_v61 = vsub.s32 1, %v2609_v52  ;;  %v860_v28 = vrot.slane %v843_v2, %v815_v11 }
  0xf8   : > { %v765_v14 = vadd.f32 %v764_v34, %v754_v12  ;;  %v2638_v12 = vsub.s32 0, %v2609_v52  ;;  %v811_v34 = vsub.s32 2, %v2609_v52  ;;  %v808_v13 = vrot.slane %v799_v63, %v2634_v61 }
  0xf9   : > { %v852_v22 = vrot.slane %v843_v2, %v2634_v61 }
  0xfa   : > { %766 = vadd.xlane.f32.xlu1 %v765_v14  ;;  %v816_v14 = vrot.slane %v799_v63, %v815_v11  ;;  %v804_v16 = vrot.slane %v799_v63, %v2638_v12  ;;  %v848_v30 = vrot.slane %v843_v2, %v2638_v12  ;;  %v2043_v11 = vld [vmem:[%s2475_s8 + $0x234] ss:$8 sps:$4 sm:$0xff]  }
  0xfe   : > { %779 = vadd.xlane.f32.xlu1 %v778_v17  ;;  %v812_v17 = vrot.slane %v799_v63, %v811_v34 }
 0x187   : > { %v767_v6 = vpop.xlane.xlu1 %766 }
 0x188   : > { %v781_v42 = vmul.f32 0.0013020834, %v767_v6 }
 0x18a   : > { %v783_v8 = vadd.f32 1e-06, %v781_v42  ;;  %v2037_v42 = vld [vmem:[%s2475_s8 + $0x214] ss:$8 sps:$4 sm:$0xff]  }
 0x18b   : > { %v780_v57 = vpop.xlane.xlu1 %779 }
 0x18c   : > { %2080 = vrsqrt.f32 %v783_v8  ;;  %v782_v10 = vmul.f32 0.0013020834, %v780_v57 }
 0x18e   : > { %v784_v50 = vadd.f32 1e-06, %v782_v10  ;;  %v2035_v10 = vld [vmem:[%s2475_s8 + $0x210] ss:$8 sps:$4 sm:$0xff]  }
 0x190   : > { %2082 = vrsqrt.f32 %v784_v50  ;;  %v2040_v50 = vld [vmem:[%s2475_s8 + $0x224] ss:$8 sps:$4 sm:$0xff]  }
 0x196   : > { %v2081_v15 = vpop.eup %2080 }
 0x197   : > { %v788_v18 = vmul.f32 %v2081_v15, %v2539_v36  ;;  %v790_v19 = vmul.f32 %v2081_v15, %v2551_v38  ;;  %v787_v20 = vmul.f32 %v2081_v15, %v2535_v32  ;;  %v789_v21 = vmul.f32 %v2081_v15, %v2543_v37 }
 0x198   : > { %v792_v23 = vmul.f32 %v2081_v15, %v2572_v7  ;;  %v791_v25 = vmul.f32 %v2081_v15, %v2565_v4  ;;  %v856_v36 = vrot.slane %v843_v2, %v811_v34  ;;  %v2041_v34 = vld [vmem:[%s2475_s8 + $0x230] ss:$8 sps:$4 sm:$0xff]  }
 0x199   : > { %v832_v26 = vmul.f32 %v808_v13, %v788_v18  ;;  %v834_v27 = vmul.f32 %v816_v14, %v790_v19  ;;  %v831_v43 = vmul.f32 %v804_v16, %v787_v20  ;;  %v833_v44 = vmul.f32 %v812_v17, %v789_v21  ;;  %v2047_v15 = vld [vmem:[%s2475_s8 + $0x250] ss:$8 sps:$4 sm:$0xff]   ;;  %v2055_v18 = vld [vmem:[%s2475_s8 + $0x274] ss:$8 sps:$4 sm:$0xff]   ;;  %v2058_v20 = vld [vmem:[%s2475_s8 + $0x284] ss:$8 sps:$4 sm:$0xff]  }
 0x19a   : > { %v2083_v29 = vpop.eup %2082  ;;  %v835_v38 = vmul.f32 %v2623_v33, %v791_v25  ;;  %v836_v46 = vmul.f32 %v824_v24, %v792_v23  ;;  %v2053_v19 = vld [vmem:[%s2475_s8 + $0x270] ss:$8 sps:$4 sm:$0xff]   ;;  %v2056_v21 = vld [vmem:[%s2475_s8 + $0x280] ss:$8 sps:$4 sm:$0xff]  }
 0x19b   : > { %v794_v32 = vmul.f32 %v2083_v29, %v2519_v58  ;;  %v796_v37 = vmul.f32 %v2083_v29, %v2531_v35  ;;  %v876_v7 = vadd.f32 %v852_v22, %v832_v26  ;;  %v793_v45 = vmul.f32 %v2083_v29, %v2515_v56  ;;  %v2059_v23 = vld [vmem:[%s2475_s8 + $0x290] ss:$8 sps:$4 sm:$0xff]   ;;  %v2062_v25 = vld [vmem:[%s2475_s8 + $0x2a0] ss:$8 sps:$4 sm:$0xff]   ;;  %v2067_v26 = vld [vmem:[%s2475_s8 + $0x2b4] ss:$8 sps:$4 sm:$0xff]  }
 0x19c   : > { %v795_v4 = vmul.f32 %v2083_v29, %v2523_v59  ;;  %v878_v54 = vadd.f32 %v860_v28, %v834_v27  ;;  %v798_v55 = vmul.f32 %v2083_v29, %v2578_v9  ;;  %v797_v58 = vmul.f32 %v2083_v29, %v2559_v47  ;;  %v2032_v9 = vld [vmem:[%s2475_s8 + $0x200] ss:$8 sps:$4 sm:$0xff]   ;;  %v2065_v27 = vld [vmem:[%s2475_s8 + $0x2b0] ss:$8 sps:$4 sm:$0xff]  }
 0x19d   : > { %v838_v49 = vmul.f32 %v808_v13, %v794_v32  ;;  %v840_v52 = vmul.f32 %v816_v14, %v796_v37  ;;  %v837_v60 = vmul.f32 %v804_v16, %v793_v45  ;;  %v2660_v35 = vadd.f32 %v2628_v3, %v835_v38  ;;  %v2044_v13 = vld [vmem:[%s2475_s8 + $0x240] ss:$8 sps:$4 sm:$0xff]   ;;  %v2049_v14 = vld [vmem:[%s2475_s8 + $0x254] ss:$8 sps:$4 sm:$0xff]   ;;  %v2052_v16 = vld [vmem:[%s2475_s8 + $0x264] ss:$8 sps:$4 sm:$0xff]  }
 0x19e   : > { %v839_v62 = vmul.f32 %v812_v17, %v795_v4  ;;  %v875_v56 = vadd.f32 %v848_v30, %v831_v43  ;;  %v842_v1 = vmul.f32 %v824_v24, %v798_v55  ;;  %v877_v2 = vadd.f32 %v856_v36, %v833_v44  ;;  %v2050_v17 = vld [vmem:[%s2475_s8 + $0x260] ss:$8 sps:$4 sm:$0xff]   ;;  %v2064_v24 = vld [vmem:[%s2475_s8 + $0x2a4] ss:$8 sps:$4 sm:$0xff]   ;;  %v2079_v32 = vld [vmem:[%s2475_s8 + $0x2f4] ss:$8 sps:$4 sm:$0xff]  }
 0x19f   : > { %v882_v63 = vadd.f32 %v852_v22, %v838_v49  ;;  %v884_v0 = vadd.f32 %v860_v28, %v840_v52  ;;  %v881_v59 = vadd.f32 %v848_v30, %v837_v60  ;;  %v841_v41 = vmul.f32 %v2623_v33, %v797_v58  ;;  %v2061_v22 = vld [vmem:[%s2475_s8 + $0x294] ss:$8 sps:$4 sm:$0xff]   ;;  %v2070_v28 = vld [vmem:[%s2475_s8 + $0x2c4] ss:$8 sps:$4 sm:$0xff]   ;;  %v2068_v29 = vld [vmem:[%s2475_s8 + $0x2c0] ss:$8 sps:$4 sm:$0xff]  }
 0x1a0   : > { %v883_v39 = vadd.f32 %v856_v36, %v839_v62  ;;  %v880_v53 = vadd.f32 %v868_v31, %v836_v46  ;;  %v886_v47 = vadd.f32 %v868_v31, %v842_v1  ;;  %v2073_v30 = vld [vmem:[%s2475_s8 + $0x2d4] ss:$8 sps:$4 sm:$0xff]   ;;  %v2071_v36 = vld [vmem:[%s2475_s8 + $0x2d0] ss:$8 sps:$4 sm:$0xff]   ;;  %v2076_v31 = vld [vmem:[%s2475_s8 + $0x2e4] ss:$8 sps:$4 sm:$0xff]  }
 0x1a1   : > { %v888_v51 = vpack.c.bf16 %v882_v63, %v876_v7  ;;  %v890_v40 = vpack.c.bf16 %v884_v0, %v878_v54  ;;  %v887_v5 = vpack.c.bf16 %v881_v59, %v875_v56  ;;  %v2666_v8 = vadd.f32 %v2628_v3, %v841_v41  ;;  %v2038_v3 = vld [vmem:[%s2475_s8 + $0x220] ss:$8 sps:$4 sm:$0xff]   ;;  %v2077_v37 = vld [vmem:[%s2475_s8 + $0x2f0] ss:$8 sps:$4 sm:$0xff]  }
 0x1a2   : > { %v889_v6 = vpack.c.bf16 %v883_v39, %v877_v2  ;;  %v892_v57 = vpack.c.bf16 %v886_v47, %v880_v53  ;;  %v2074_v38 = vld [vmem:[%s2475_s8 + $0x2e0] ss:$8 sps:$4 sm:$0xff]   ;;  %v989_v4 = vld [vmem:[%s691_s16] sm:$0x3] }
 0x1a3   : > { %1513 = vmatprep.mubr.bf16.mxu1 %v888_v51  ;;  %1556 = vmatprep.mubr.bf16.mxu0 %v890_v40  ;;  %v891_v33 = vpack.c.bf16 %v2666_v8, %v2660_v35  ;;  %v994_v46 = vrot.slane %v989_v4, %v2638_v12  ;;  %v998_v49 = vrot.slane %v989_v4, %v2634_v61 }
 0x1a4   : > { %1514 = vmatmul.mubr.bf16.vlgmr.msra.gmra.mrb[0].mxu1 %v887_v5  ;;  %1557 = vmatmul.mubr.bf16.vlgmr.msra.gmra.mrb[0].mxu0 %v889_v6 }
 0x1a5   : > { %1568 = vmatpush1.bf16.msra.mxu0 %v2032_v9  ;;  %1599 = vmatprep.mubr.bf16.mxu0 %v892_v57 }
 0x1a6   : > { %1569 = vmatprep.subr.bf16.mxu0 %v2037_v42 }
 0x1a9   : > { %1570 = vmatpush1.bf16.msra.mxu0 %v2035_v10 }
 0x1aa   : > { %1571 = vmatprep.subr.bf16.mxu0 %v2040_v50 }
 0x1ad   : > { %1572 = vmatpush1.bf16.msra.mxu0 %v2038_v3 }
 0x1ae   : > { %1573 = vmatprep.subr.bf16.mxu0 %v2043_v11 }
 0x1b1   : > { %1574 = vmatpush1.bf16.msra.mxu0 %v2041_v34 }
 0x1b2   : > { %1575 = vmatprep.subr.bf16.mxu0 %v2046_v48 }
 0x1b5   : > { %1576 = vmatpush1.bf16.msra.mxu0 %v2044_v13 }
 0x1b6   : > { %1577 = vmatprep.subr.bf16.mxu0 %v2049_v14 }
 0x1b9   : > { %1578 = vmatpush1.bf16.msra.mxu0 %v2047_v15 }
 0x1ba   : > { %1579 = vmatprep.subr.bf16.mxu0 %v2052_v16 }
 0x1bd   : > { %1580 = vmatpush1.bf16.msra.mxu0 %v2050_v17 }
 0x1be   : > { %1581 = vmatprep.subr.bf16.mxu0 %v2055_v18 }
 0x1c1   : > { %1582 = vmatpush1.bf16.msra.mxu0 %v2053_v19 }
 0x1c2   : > { %1583 = vmatprep.subr.bf16.mxu0 %v2058_v20 }
 0x1c5   : > { %1584 = vmatpush1.bf16.msra.mxu0 %v2056_v21 }
 0x1c6   : > { %1585 = vmatprep.subr.bf16.mxu0 %v2061_v22 }
 0x1c9   : > { %1586 = vmatpush1.bf16.msra.mxu0 %v2059_v23 }
 0x1ca   : > { %1587 = vmatprep.subr.bf16.mxu0 %v2064_v24 }
 0x1cd   : > { %1588 = vmatpush1.bf16.msra.mxu0 %v2062_v25 }
 0x1ce   : > { %1589 = vmatprep.subr.bf16.mxu0 %v2067_v26 }
 0x1d1   : > { %1590 = vmatpush1.bf16.msra.mxu0 %v2065_v27 }
 0x1d2   : > { %1591 = vmatprep.subr.bf16.mxu0 %v2070_v28 }
 0x1d5   : > { %1592 = vmatpush1.bf16.msra.mxu0 %v2068_v29 }
 0x1d6   : > { %1593 = vmatprep.subr.bf16.mxu0 %v2073_v30 }
 0x1d9   : > { %1594 = vmatpush1.bf16.msra.mxu0 %v2071_v36 }
 0x1da   : > { %1595 = vmatprep.subr.bf16.mxu0 %v2076_v31 }
 0x1dd   : > { %1596 = vmatpush1.bf16.msra.mxu0 %v2074_v38 }
 0x1de   : > { %1597 = vmatprep.subr.bf16.mxu0 %v2079_v32 }
 0x1e1   : > { %1598 = vmatpush1.bf16.msra.mxu0 %v2077_v37 }
 0x1e4   : > { %1600 = vmatmul.mubr.bf16.vlgmr.msra.gmra.mrb[0].mxu0 %v891_v33 }
 0x277   : > { %v1515_v43 = vpop.f32.mrb[0].mxu1 }
 0x278   : > { %v1517_v44 = vpop.f32.mrb[1].mxu1  ;;  %v1516_v52 = vadd.f32 %v1515_v43, %v994_v46 }
 0x279   : > { %v1519_v7 = vpop.f32.mrb[2].mxu1  ;;  %v1518_v54 = vadd.f32 %v1517_v44, %v998_v49 }
 0x27a   : > { %v1521_v45 = vpop.f32.mrb[3].mxu1  ;;  %v1520_v60 = vadd.f32 %v1519_v7, %v994_v46 }
 0x27b   : > { %v1522_v35 = vadd.f32 %v1521_v45, %v998_v49 }
 0x2b7   : > { %v1601_v55 = vpop.f32.mrb[0].mxu0 }
 0x2b8   : > { %v1883_v62 = vadd.f32 %v1601_v55, %v1516_v52  ;;  %v1603_v58 = vpop.f32.mrb[1].mxu0 }
 0x2b9   : > { %v1885_v63 = vadd.f32 %v1603_v58, %v1518_v54  ;;  %v1605_v0 = vpop.f32.mrb[2].mxu0  ;;  %1630 = sbr.rel (!%p2189_p6) target bundleno = 712 (0x2c8), region = 82 }
 0x2ba   : > { %v1887_v56 = vadd.f32 %v1605_v0, %v1520_v60  ;;  %v1607_v1 = vpop.f32.mrb[3].mxu0 }
 0x2bb   : > { %v1879_v59 = vpack.c.bf16 %v1885_v63, %v1883_v62  ;;  %v1889_v2 = vadd.f32 %v1607_v1, %v1522_v35 }
 0x2bd   : > { %1622 = vst [vmem:[%s679_s24] sm:$0xff] %v1879_v59  ;;  %v1880_v12 = vpack.c.bf16 %v1889_v2, %v1887_v56 }
 0x2bf   : > { %1623 = vst [vmem:[%s679_s24 + $0x8] sm:$0x11] %v1880_v12 }
 0x2c4   : > { %v1666_v61 = vld [vmem:[%s679_s24] sm:$0xff] }
 0x2c5   : > { %1667 = vst [vmem:[%s1636_s29] sm:$0xff] %v1666_v61 }
 0x2c6   : > { %v1668_v39 = vld [vmem:[%s679_s24 + $0x8] sm:$0xff] }
 0x2c7   : > { %1669 = vst [vmem:[%s1636_s29 + $0x48] sm:$0xff] %v1668_v39 }
 0x2c8 PF: > { %s15_s22 = sadd.s32 1, %s2122_s22   ;;  %s2735_s18 = smov %s2110_s19 }
 0x2c9   : > { %p12_p12 = scmp.ge.s32.totalorder %s15_s22, 11   ;;  %s2736_s19 = smov %s2194_s28 }
 0x2ca   : > { %s2737_s20 = smov %s2118_s21  ;;  %s2738_s21 = smov %s2740_s23 }
 0x2cb   :  { %14 = sbr.rel (!%p12_p12) target bundleno = 3 (0x3), region = 157 }

// kernel: closed_call.18
= control target key start
LH: loop header
LB: loop body
LE: loop exit
PB: predicated region body
PF: predicated region fallthrough
CT: control target
= control target key end

     0   :  { %s2073_s15 = smov 0   ;;  %s2075_s16 = smov 0   ;;  %s2478_s0 = inlined_call_operand.vmem [shape: bf16[10,768], index: 0, kind: input, shape index: {}]   ;;  %s2479_s1 = inlined_call_operand.vmem [shape: bf16[768,768], index: 1, kind: input, shape index: {}]   ;;  %s2480_s2 = inlined_call_operand.vmem [shape: f32[1,768], index: 2, kind: input, shape index: {}]   ;;  %s2481_s3 = inlined_call_operand.vmem [shape: bf16[10,768], index: 3, kind: input, shape index: {}, may-alias: {3,4}]   ;;  %s2482_s4 = inlined_call_operand.vmem [shape: bf16[10,768], index: 4, kind: output, shape index: {}, may-alias: {3,4}]  }
   0x1   :  { %s2077_s17 = smov 0   ;;  %s2079_s18 = smov 0  }
   0x2   :  { %s2081_s19 = smov 0  }
   0x3 LB: > { %s23_s20 = sadd.s32 1, %s2042_s18  ;;  %s1673_s21 = sadd.s32 4294967295, %s2046_s19   ;;  %s2046_s19 = sphi %s2081_s19, %s14_s19   ;;  %s2042_s18 = sphi %s2079_s18, %s2488_s18   ;;  %s2038_s17 = sphi %s2077_s17, %s2487_s17   ;;  %s2034_s16 = sphi %s2075_s16, %s2486_s16   ;;  %s2030_s15 = sphi %s2073_s15, %s2485_s15  }
   0x4   : > { %p24_p0 = scmp.ge.s32.totalorder %s23_s20, 3  ;;  %p66_p1 = scmp.ne.s32.totalorder %s2034_s16, %s2030_s15 }
   0x5   : > { %p67_p2 = scmp.eq.s32.totalorder %s2046_s19, 0  ;;  %p152_p4 = scmp.eq.s32.totalorder %s1673_s21, 2 }
   0x6   : > { %s2490_s20 = smov (%p24_p0, %s23_s20), 0  ;;  %s59_s24 = sadd.s32 1, %s2034_s16 }
   0x7   : > { %p2105_p3 = por %p67_p2, %p66_p1  ;;  %s56_s23 = ssub.s32 %s2042_s18, %s2490_s20 }
   0x8   : > { %p57_p5 = scmp.eq.s32.totalorder %s56_s23, 0  ;;  %p2112_p6 = por %p152_p4, %p66_p1 }
   0x9   : > { %p1677_p7 = scmp.ge.s32.totalorder %s2046_s19, 3 }
   0xa   : > { %s2117_s26 = scalar_select %p57_p5, %s2034_s16, %s59_s24  }
   0xb   : > { %184 = sbr.rel (%p1677_p7) target bundleno = 78 (0x4e), region = 20 }
  0x12   : > { %187 = sbr.rel (!%p2105_p3) target bundleno = 71 (0x47), region = 24  ;;  %s189_s27 = sand.u32 (%p2105_p3), 1, %s2034_s16  }
  0x13   : > { %s1796_s28 = sshll.u32 (%p2105_p3), %s2042_s18, 3  ;;  %s1813_s29 = smul.u32 (%p2105_p3), 768, %s189_s27 }
  0x14   : > { %s2127_s6 = scalar_lea.vmem (%p2105_p3), %s2479_s1, %s1796_s28 }
  0x15   : > { %v412_v0 = vld [vmem:[%s2127_s6] sm:$0xff] (%p2105_p3)  ;;  %v414_v1 = vld [vmem:[%s2127_s6 + $0x18] sm:$0xff] (%p2105_p3)  ;;  %v416_v2 = vld [vmem:[%s2127_s6 + $0x30] sm:$0xff] (%p2105_p3)  ;;  %s2135_s7 = scalar_lea.vmem (%p2105_p3), [#allocation2], %s1813_s29 }
  0x16   : > { %v418_v3 = vld [vmem:[%s2127_s6 + $0x48] sm:$0xff] (%p2105_p3)  ;;  %v420_v4 = vld [vmem:[%s2127_s6 + $0x60] sm:$0xff] (%p2105_p3)  ;;  %v422_v5 = vld [vmem:[%s2127_s6 + $0x78] sm:$0xff] (%p2105_p3)  ;;  %413 = vst [vmem:[%s2135_s7] sm:$0xff] (%p2105_p3), %v412_v0 }
  0x17   : > { %415 = vst [vmem:[%s2135_s7 + $0x8] sm:$0xff] (%p2105_p3), %v414_v1  ;;  %417 = vst [vmem:[%s2135_s7 + $0x10] sm:$0xff] (%p2105_p3), %v416_v2  ;;  %v424_v6 = vld [vmem:[%s2127_s6 + $0x90] sm:$0xff] (%p2105_p3)  ;;  %v426_v7 = vld [vmem:[%s2127_s6 + $0xa8] sm:$0xff] (%p2105_p3) }
  0x18   : > { %419 = vst [vmem:[%s2135_s7 + $0x18] sm:$0xff] (%p2105_p3), %v418_v3  ;;  %421 = vst [vmem:[%s2135_s7 + $0x20] sm:$0xff] (%p2105_p3), %v420_v4  ;;  %v428_v8 = vld [vmem:[%s2127_s6 + $0xc0] sm:$0xff] (%p2105_p3)  ;;  %v430_v9 = vld [vmem:[%s2127_s6 + $0xd8] sm:$0xff] (%p2105_p3) }
  0x19   : > { %423 = vst [vmem:[%s2135_s7 + $0x28] sm:$0xff] %v422_v5  ;;  %425 = vst [vmem:[%s2135_s7 + $0x30] sm:$0xff] %v424_v6  ;;  %v432_v10 = vld [vmem:[%s2127_s6 + $0xf0] sm:$0xff]  ;;  %v434_v11 = vld [vmem:[%s2127_s6 + $0x108] sm:$0xff] }
  0x1a   : > { %427 = vst [vmem:[%s2135_s7 + $0x38] sm:$0xff] %v426_v7  ;;  %429 = vst [vmem:[%s2135_s7 + $0x40] sm:$0xff] %v428_v8  ;;  %v436_v12 = vld [vmem:[%s2127_s6 + $0x120] sm:$0xff]  ;;  %v438_v13 = vld [vmem:[%s2127_s6 + $0x138] sm:$0xff] }
  0x1b   : > { %431 = vst [vmem:[%s2135_s7 + $0x48] sm:$0xff] %v430_v9  ;;  %433 = vst [vmem:[%s2135_s7 + $0x50] sm:$0xff] %v432_v10  ;;  %v440_v14 = vld [vmem:[%s2127_s6 + $0x150] sm:$0xff]  ;;  %v442_v15 = vld [vmem:[%s2127_s6 + $0x168] sm:$0xff] }
  0x1c   : > { %435 = vst [vmem:[%s2135_s7 + $0x58] sm:$0xff] %v434_v11  ;;  %437 = vst [vmem:[%s2135_s7 + $0x60] sm:$0xff] %v436_v12  ;;  %v444_v16 = vld [vmem:[%s2127_s6 + $0x180] sm:$0xff]  ;;  %v446_v17 = vld [vmem:[%s2127_s6 + $0x198] sm:$0xff] }
  0x1d   : > { %439 = vst [vmem:[%s2135_s7 + $0x68] sm:$0xff] %v438_v13  ;;  %441 = vst [vmem:[%s2135_s7 + $0x70] sm:$0xff] %v440_v14  ;;  %v448_v18 = vld [vmem:[%s2127_s6 + $0x1b0] sm:$0xff]  ;;  %v450_v19 = vld [vmem:[%s2127_s6 + $0x1c8] sm:$0xff] }
  0x1e   : > { %443 = vst [vmem:[%s2135_s7 + $0x78] sm:$0xff] %v442_v15  ;;  %445 = vst [vmem:[%s2135_s7 + $0x80] sm:$0xff] %v444_v16  ;;  %v452_v20 = vld [vmem:[%s2127_s6 + $0x1e0] sm:$0xff]  ;;  %v454_v21 = vld [vmem:[%s2127_s6 + $0x1f8] sm:$0xff] }
  0x1f   : > { %447 = vst [vmem:[%s2135_s7 + $0x88] sm:$0xff] %v446_v17  ;;  %449 = vst [vmem:[%s2135_s7 + $0x90] sm:$0xff] %v448_v18  ;;  %v456_v22 = vld [vmem:[%s2127_s6 + $0x210] sm:$0xff]  ;;  %v458_v23 = vld [vmem:[%s2127_s6 + $0x228] sm:$0xff] }
  0x20   : > { %451 = vst [vmem:[%s2135_s7 + $0x98] sm:$0xff] %v450_v19  ;;  %453 = vst [vmem:[%s2135_s7 + $0xa0] sm:$0xff] %v452_v20  ;;  %v460_v24 = vld [vmem:[%s2127_s6 + $0x240] sm:$0xff]  ;;  %v462_v25 = vld [vmem:[%s2127_s6 + $0x258] sm:$0xff] }
  0x21   : > { %455 = vst [vmem:[%s2135_s7 + $0xa8] sm:$0xff] %v454_v21  ;;  %457 = vst [vmem:[%s2135_s7 + $0xb0] sm:$0xff] %v456_v22  ;;  %v464_v26 = vld [vmem:[%s2127_s6 + $0x270] sm:$0xff]  ;;  %v466_v27 = vld [vmem:[%s2127_s6 + $0x288] sm:$0xff] }
  0x22   : > { %459 = vst [vmem:[%s2135_s7 + $0xb8] sm:$0xff] %v458_v23  ;;  %461 = vst [vmem:[%s2135_s7 + $0xc0] sm:$0xff] %v460_v24  ;;  %v468_v28 = vld [vmem:[%s2127_s6 + $0x2a0] sm:$0xff]  ;;  %v470_v29 = vld [vmem:[%s2127_s6 + $0x2b8] sm:$0xff] }
  0x23   : > { %463 = vst [vmem:[%s2135_s7 + $0xc8] sm:$0xff] %v462_v25  ;;  %465 = vst [vmem:[%s2135_s7 + $0xd0] sm:$0xff] %v464_v26  ;;  %v472_v30 = vld [vmem:[%s2127_s6 + $0x2d0] sm:$0xff]  ;;  %v474_v31 = vld [vmem:[%s2127_s6 + $0x2e8] sm:$0xff] }
  0x24   : > { %467 = vst [vmem:[%s2135_s7 + $0xd8] sm:$0xff] %v466_v27  ;;  %469 = vst [vmem:[%s2135_s7 + $0xe0] sm:$0xff] %v468_v28  ;;  %v476_v32 = vld [vmem:[%s2127_s6 + $0x300] sm:$0xff]  ;;  %v478_v33 = vld [vmem:[%s2127_s6 + $0x318] sm:$0xff] }
  0x25   : > { %471 = vst [vmem:[%s2135_s7 + $0xe8] sm:$0xff] %v470_v29  ;;  %473 = vst [vmem:[%s2135_s7 + $0xf0] sm:$0xff] %v472_v30  ;;  %v480_v34 = vld [vmem:[%s2127_s6 + $0x330] sm:$0xff]  ;;  %v482_v35 = vld [vmem:[%s2127_s6 + $0x348] sm:$0xff] }
  0x26   : > { %475 = vst [vmem:[%s2135_s7 + $0xf8] sm:$0xff] %v474_v31  ;;  %477 = vst [vmem:[%s2135_s7 + $0x100] sm:$0xff] %v476_v32  ;;  %v484_v36 = vld [vmem:[%s2127_s6 + $0x360] sm:$0xff]  ;;  %v486_v37 = vld [vmem:[%s2127_s6 + $0x378] sm:$0xff] }
  0x27   : > { %479 = vst [vmem:[%s2135_s7 + $0x108] sm:$0xff] %v478_v33  ;;  %481 = vst [vmem:[%s2135_s7 + $0x110] sm:$0xff] %v480_v34  ;;  %v488_v38 = vld [vmem:[%s2127_s6 + $0x390] sm:$0xff]  ;;  %v490_v39 = vld [vmem:[%s2127_s6 + $0x3a8] sm:$0xff] }
  0x28   : > { %483 = vst [vmem:[%s2135_s7 + $0x118] sm:$0xff] %v482_v35  ;;  %485 = vst [vmem:[%s2135_s7 + $0x120] sm:$0xff] %v484_v36  ;;  %v492_v40 = vld [vmem:[%s2127_s6 + $0x3c0] sm:$0xff]  ;;  %v494_v41 = vld [vmem:[%s2127_s6 + $0x3d8] sm:$0xff] }
  0x29   : > { %487 = vst [vmem:[%s2135_s7 + $0x128] sm:$0xff] %v486_v37  ;;  %489 = vst [vmem:[%s2135_s7 + $0x130] sm:$0xff] %v488_v38  ;;  %v496_v42 = vld [vmem:[%s2127_s6 + $0x3f0] sm:$0xff]  ;;  %v498_v43 = vld [vmem:[%s2127_s6 + $0x408] sm:$0xff] }
  0x2a   : > { %491 = vst [vmem:[%s2135_s7 + $0x138] sm:$0xff] %v490_v39  ;;  %493 = vst [vmem:[%s2135_s7 + $0x140] sm:$0xff] %v492_v40  ;;  %v500_v44 = vld [vmem:[%s2127_s6 + $0x420] sm:$0xff]  ;;  %v502_v45 = vld [vmem:[%s2127_s6 + $0x438] sm:$0xff] }
  0x2b   : > { %495 = vst [vmem:[%s2135_s7 + $0x148] sm:$0xff] %v494_v41  ;;  %497 = vst [vmem:[%s2135_s7 + $0x150] sm:$0xff] %v496_v42  ;;  %v504_v46 = vld [vmem:[%s2127_s6 + $0x450] sm:$0xff]  ;;  %v506_v47 = vld [vmem:[%s2127_s6 + $0x468] sm:$0xff] }
  0x2c   : > { %499 = vst [vmem:[%s2135_s7 + $0x158] sm:$0xff] %v498_v43  ;;  %501 = vst [vmem:[%s2135_s7 + $0x160] sm:$0xff] %v500_v44  ;;  %v508_v48 = vld [vmem:[%s2127_s6 + $0x480] sm:$0xff]  ;;  %v510_v49 = vld [vmem:[%s2127_s6 + $0x498] sm:$0xff] }
  0x2d   : > { %503 = vst [vmem:[%s2135_s7 + $0x168] sm:$0xff] %v502_v45  ;;  %505 = vst [vmem:[%s2135_s7 + $0x170] sm:$0xff] %v504_v46  ;;  %v512_v50 = vld [vmem:[%s2127_s6 + $0x4b0] sm:$0xff]  ;;  %v514_v51 = vld [vmem:[%s2127_s6 + $0x4c8] sm:$0xff] }
  0x2e   : > { %507 = vst [vmem:[%s2135_s7 + $0x178] sm:$0xff] %v506_v47  ;;  %509 = vst [vmem:[%s2135_s7 + $0x180] sm:$0xff] %v508_v48  ;;  %v516_v52 = vld [vmem:[%s2127_s6 + $0x4e0] sm:$0xff]  ;;  %v518_v53 = vld [vmem:[%s2127_s6 + $0x4f8] sm:$0xff] }
  0x2f   : > { %511 = vst [vmem:[%s2135_s7 + $0x188] sm:$0xff] %v510_v49  ;;  %513 = vst [vmem:[%s2135_s7 + $0x190] sm:$0xff] %v512_v50  ;;  %v520_v54 = vld [vmem:[%s2127_s6 + $0x510] sm:$0xff]  ;;  %v522_v55 = vld [vmem:[%s2127_s6 + $0x528] sm:$0xff] }
  0x30   : > { %515 = vst [vmem:[%s2135_s7 + $0x198] sm:$0xff] %v514_v51  ;;  %517 = vst [vmem:[%s2135_s7 + $0x1a0] sm:$0xff] %v516_v52  ;;  %v524_v56 = vld [vmem:[%s2127_s6 + $0x540] sm:$0xff]  ;;  %v526_v57 = vld [vmem:[%s2127_s6 + $0x558] sm:$0xff] }
  0x31   : > { %519 = vst [vmem:[%s2135_s7 + $0x1a8] sm:$0xff] %v518_v53  ;;  %521 = vst [vmem:[%s2135_s7 + $0x1b0] sm:$0xff] %v520_v54  ;;  %v528_v58 = vld [vmem:[%s2127_s6 + $0x570] sm:$0xff]  ;;  %v530_v59 = vld [vmem:[%s2127_s6 + $0x588] sm:$0xff] }
  0x32   : > { %523 = vst [vmem:[%s2135_s7 + $0x1b8] sm:$0xff] %v522_v55  ;;  %525 = vst [vmem:[%s2135_s7 + $0x1c0] sm:$0xff] %v524_v56  ;;  %v532_v60 = vld [vmem:[%s2127_s6 + $0x5a0] sm:$0xff]  ;;  %v534_v61 = vld [vmem:[%s2127_s6 + $0x5b8] sm:$0xff] }
  0x33   : > { %527 = vst [vmem:[%s2135_s7 + $0x1c8] sm:$0xff] %v526_v57  ;;  %529 = vst [vmem:[%s2135_s7 + $0x1d0] sm:$0xff] %v528_v58  ;;  %v536_v62 = vld [vmem:[%s2127_s6 + $0x5d0] sm:$0xff]  ;;  %v538_v63 = vld [vmem:[%s2127_s6 + $0x5e8] sm:$0xff] }
  0x34   : > { %531 = vst [vmem:[%s2135_s7 + $0x1d8] sm:$0xff] %v530_v59  ;;  %533 = vst [vmem:[%s2135_s7 + $0x1e0] sm:$0xff] %v532_v60  ;;  %v540_v0 = vld [vmem:[%s2127_s6 + $0x600] sm:$0xff]  ;;  %v542_v1 = vld [vmem:[%s2127_s6 + $0x618] sm:$0xff] }
  0x35   : > { %535 = vst [vmem:[%s2135_s7 + $0x1e8] sm:$0xff] %v534_v61  ;;  %537 = vst [vmem:[%s2135_s7 + $0x1f0] sm:$0xff] %v536_v62  ;;  %v544_v2 = vld [vmem:[%s2127_s6 + $0x630] sm:$0xff]  ;;  %v546_v3 = vld [vmem:[%s2127_s6 + $0x648] sm:$0xff] }
  0x36   : > { %539 = vst [vmem:[%s2135_s7 + $0x1f8] sm:$0xff] %v538_v63  ;;  %541 = vst [vmem:[%s2135_s7 + $0x200] sm:$0xff] %v540_v0  ;;  %v548_v4 = vld [vmem:[%s2127_s6 + $0x660] sm:$0xff]  ;;  %v550_v5 = vld [vmem:[%s2127_s6 + $0x678] sm:$0xff] }
  0x37   : > { %543 = vst [vmem:[%s2135_s7 + $0x208] sm:$0xff] %v542_v1  ;;  %545 = vst [vmem:[%s2135_s7 + $0x210] sm:$0xff] %v544_v2  ;;  %v552_v6 = vld [vmem:[%s2127_s6 + $0x690] sm:$0xff]  ;;  %v554_v7 = vld [vmem:[%s2127_s6 + $0x6a8] sm:$0xff] }
  0x38   : > { %547 = vst [vmem:[%s2135_s7 + $0x218] sm:$0xff] %v546_v3  ;;  %549 = vst [vmem:[%s2135_s7 + $0x220] sm:$0xff] %v548_v4  ;;  %v556_v8 = vld [vmem:[%s2127_s6 + $0x6c0] sm:$0xff]  ;;  %v558_v9 = vld [vmem:[%s2127_s6 + $0x6d8] sm:$0xff] }
  0x39   : > { %551 = vst [vmem:[%s2135_s7 + $0x228] sm:$0xff] %v550_v5  ;;  %553 = vst [vmem:[%s2135_s7 + $0x230] sm:$0xff] %v552_v6  ;;  %v560_v10 = vld [vmem:[%s2127_s6 + $0x6f0] sm:$0xff]  ;;  %v562_v11 = vld [vmem:[%s2127_s6 + $0x708] sm:$0xff] }
  0x3a   : > { %555 = vst [vmem:[%s2135_s7 + $0x238] sm:$0xff] %v554_v7  ;;  %557 = vst [vmem:[%s2135_s7 + $0x240] sm:$0xff] %v556_v8  ;;  %v564_v12 = vld [vmem:[%s2127_s6 + $0x720] sm:$0xff]  ;;  %v566_v13 = vld [vmem:[%s2127_s6 + $0x738] sm:$0xff] }
  0x3b   : > { %559 = vst [vmem:[%s2135_s7 + $0x248] sm:$0xff] %v558_v9  ;;  %561 = vst [vmem:[%s2135_s7 + $0x250] sm:$0xff] %v560_v10  ;;  %v568_v14 = vld [vmem:[%s2127_s6 + $0x750] sm:$0xff]  ;;  %v570_v15 = vld [vmem:[%s2127_s6 + $0x768] sm:$0xff] }
  0x3c   : > { %563 = vst [vmem:[%s2135_s7 + $0x258] sm:$0xff] %v562_v11  ;;  %565 = vst [vmem:[%s2135_s7 + $0x260] sm:$0xff] %v564_v12  ;;  %v572_v16 = vld [vmem:[%s2127_s6 + $0x780] sm:$0xff]  ;;  %v574_v17 = vld [vmem:[%s2127_s6 + $0x798] sm:$0xff] }
  0x3d   : > { %567 = vst [vmem:[%s2135_s7 + $0x268] sm:$0xff] %v566_v13  ;;  %569 = vst [vmem:[%s2135_s7 + $0x270] sm:$0xff] %v568_v14  ;;  %v576_v18 = vld [vmem:[%s2127_s6 + $0x7b0] sm:$0xff]  ;;  %v578_v19 = vld [vmem:[%s2127_s6 + $0x7c8] sm:$0xff] }
  0x3e   : > { %571 = vst [vmem:[%s2135_s7 + $0x278] sm:$0xff] %v570_v15  ;;  %573 = vst [vmem:[%s2135_s7 + $0x280] sm:$0xff] %v572_v16  ;;  %v580_v20 = vld [vmem:[%s2127_s6 + $0x7e0] sm:$0xff]  ;;  %v582_v21 = vld [vmem:[%s2127_s6 + $0x7f8] sm:$0xff] }
  0x3f   : > { %575 = vst [vmem:[%s2135_s7 + $0x288] sm:$0xff] %v574_v17  ;;  %577 = vst [vmem:[%s2135_s7 + $0x290] sm:$0xff] %v576_v18  ;;  %v584_v22 = vld [vmem:[%s2127_s6 + $0x810] sm:$0xff]  ;;  %v586_v23 = vld [vmem:[%s2127_s6 + $0x828] sm:$0xff] }
  0x40   : > { %579 = vst [vmem:[%s2135_s7 + $0x298] sm:$0xff] %v578_v19  ;;  %581 = vst [vmem:[%s2135_s7 + $0x2a0] sm:$0xff] %v580_v20  ;;  %v588_v24 = vld [vmem:[%s2127_s6 + $0x840] sm:$0xff]  ;;  %v590_v25 = vld [vmem:[%s2127_s6 + $0x858] sm:$0xff] }
  0x41   : > { %583 = vst [vmem:[%s2135_s7 + $0x2a8] sm:$0xff] %v582_v21  ;;  %585 = vst [vmem:[%s2135_s7 + $0x2b0] sm:$0xff] %v584_v22  ;;  %v592_v26 = vld [vmem:[%s2127_s6 + $0x870] sm:$0xff]  ;;  %v594_v27 = vld [vmem:[%s2127_s6 + $0x888] sm:$0xff] }
  0x42   : > { %587 = vst [vmem:[%s2135_s7 + $0x2b8] sm:$0xff] %v586_v23  ;;  %589 = vst [vmem:[%s2135_s7 + $0x2c0] sm:$0xff] %v588_v24  ;;  %v596_v28 = vld [vmem:[%s2127_s6 + $0x8a0] sm:$0xff]  ;;  %v598_v29 = vld [vmem:[%s2127_s6 + $0x8b8] sm:$0xff] }
  0x43   : > { %591 = vst [vmem:[%s2135_s7 + $0x2c8] sm:$0xff] %v590_v25  ;;  %593 = vst [vmem:[%s2135_s7 + $0x2d0] sm:$0xff] %v592_v26  ;;  %v600_v30 = vld [vmem:[%s2127_s6 + $0x8d0] sm:$0xff]  ;;  %v602_v31 = vld [vmem:[%s2127_s6 + $0x8e8] sm:$0xff] }
  0x44   : > { %595 = vst [vmem:[%s2135_s7 + $0x2d8] sm:$0xff] %v594_v27  ;;  %597 = vst [vmem:[%s2135_s7 + $0x2e0] sm:$0xff] %v596_v28 }
  0x45   : > { %599 = vst [vmem:[%s2135_s7 + $0x2e8] sm:$0xff] %v598_v29  ;;  %601 = vst [vmem:[%s2135_s7 + $0x2f0] sm:$0xff] %v600_v30 }
  0x46   : > { %603 = vst [vmem:[%s2135_s7 + $0x2f8] sm:$0xff] %v602_v31 }
  0x47 PF: > { %617 = sbr.rel (!%p2105_p3) target bundleno = 78 (0x4e), region = 66  ;;  %s619_s8 = sand.u32 (%p2105_p3), 1, %s2034_s16  }
  0x48   : > { %s1797_s9 = sshll.u32 (%p2105_p3), %s2042_s18, 3  ;;  %s1680_s10 = sshll.u32 (%p2105_p3), %s619_s8, 4 }
  0x49   : > { %s627_s13 = scalar_lea.vmem (%p2105_p3), %s2481_s3, %s1797_s9  ;;  %s621_s14 = scalar_lea.vmem (%p2105_p3), [#allocation3], %s1680_s10 }
  0x4a   : > { %v657_v32 = vld [vmem:[%s627_s13] sm:$0xff] (%p2105_p3)  ;;  %v659_v33 = vld [vmem:[%s627_s13 + $0x18] sm:$0xff] (%p2105_p3) }
  0x4b   : > { %658 = vst [vmem:[%s621_s14] sm:$0xff] (%p2105_p3), %v657_v32  ;;  %660 = vst [vmem:[%s621_s14 + $0x8] sm:$0xff] (%p2105_p3), %v659_v33 }
  0x4e PF: > { %p1683_p8 = scmp.ge.s32.totalorder %s2046_s19, 1  ;;  %p665_p9 = scmp.lt.s32.totalorder %s2046_s19, 4 }
  0x50   : > { %p666_p10 = pnand %p1683_p8, %p665_p9 }
  0x51   : > { %s672_s21 = sand.u32 (!%p666_p10), 1, %s2030_s15   ;;  %v1911_v34 = vld [vmem:[%s2478_s0 + $0xc] ss:$24 sps:$4 sm:$0x1f] (!%p666_p10)   ;;  %s1686_s12 = sshll.u32 (!%p666_p10), %s2038_s17, 1 }
  0x52   : > { %669 = sbr.rel (%p666_p10) target bundleno = 445 (0x1bd), region = 104  ;;  %v2001_v35 = vld [vmem:[%s2478_s0 + $0x4] ss:$24 sps:$4 sm:$0x1f] (!%p666_p10)   ;;  %1433 = vmatprep.mubr.bf16.mxu0 (!%p666_p10), %v1911_v34  ;;  %p726_p11 = scmp.lt.s32.totalorder (!%p666_p10), %s1686_s12, 5 }
  0x53   : > { %s1814_s22 = smul.u32 (!%p666_p10), 768, %s672_s21  ;;  %1390 = vmatprep.mubr.bf16.mxu1 (!%p666_p10), %v2001_v35  ;;  %v1909_v28 = vld [vmem:[%s2478_s0 + $0x8] ss:$24 sps:$4 sm:$0x1f] (!%p666_p10)   ;;  %s1684_s23 = sshll.u32 (!%p666_p10), %s672_s21, 4 }
  0x54   : > { %v2007_v33 = vld [vmem:[%s2478_s0 + $0x14] ss:$24 sps:$4 sm:$0x1f] (!%p666_p10)   ;;  %s681_s24 = scalar_lea.vmem (!%p666_p10), [#allocation3], %s1684_s23  ;;  %s716_s15 = scalar_lea.vmem (!%p666_p10), [#allocation4], %s1684_s23 }
  0x55   : > { %s2341_s29 = scalar_lea.vmem (!%p666_p10), [#allocation2], %s1814_s22 }
  0x56   : > { %v1855_v36 = vld [vmem:[%s2341_s29 + $0x104] ss:$8 sps:$4 sm:$0xff] (!%p666_p10)   ;;  %v1857_v37 = vld [vmem:[%s2341_s29 + $0x100] ss:$8 sps:$4 sm:$0xff] (!%p666_p10)   ;;  %v1858_v38 = vld [vmem:[%s2341_s29 + $0x114] ss:$8 sps:$4 sm:$0xff] (!%p666_p10)  }
  0x57   : > { %1401 = vmatprep.subr.bf16.mxu0 (!%p666_p10), %v1855_v36  ;;  %v1860_v39 = vld [vmem:[%s2341_s29 + $0x110] ss:$8 sps:$4 sm:$0xff] (!%p666_p10)   ;;  %v1861_v40 = vld [vmem:[%s2341_s29 + $0x124] ss:$8 sps:$4 sm:$0xff] (!%p666_p10)   ;;  %v1863_v41 = vld [vmem:[%s2341_s29 + $0x120] ss:$8 sps:$4 sm:$0xff] (!%p666_p10)  }
  0x58   : > { %1402 = vmatpush1.bf16.msra.mxu0 (!%p666_p10), %v1857_v37  ;;  %v1864_v42 = vld [vmem:[%s2341_s29 + $0x134] ss:$8 sps:$4 sm:$0xff] (!%p666_p10)   ;;  %v1866_v43 = vld [vmem:[%s2341_s29 + $0x130] ss:$8 sps:$4 sm:$0xff] (!%p666_p10)   ;;  %v1867_v44 = vld [vmem:[%s2341_s29 + $0x144] ss:$8 sps:$4 sm:$0xff] (!%p666_p10)  }
  0x59   : > { %1403 = vmatprep.subr.bf16.mxu0 %v1858_v38  ;;  %v1869_v45 = vld [vmem:[%s2341_s29 + $0x140] ss:$8 sps:$4 sm:$0xff]   ;;  %v1870_v46 = vld [vmem:[%s2341_s29 + $0x154] ss:$8 sps:$4 sm:$0xff]   ;;  %v1872_v47 = vld [vmem:[%s2341_s29 + $0x150] ss:$8 sps:$4 sm:$0xff]  }
  0x5a   : > { %v1873_v48 = vld [vmem:[%s2341_s29 + $0x164] ss:$8 sps:$4 sm:$0xff]   ;;  %v1902_v50 = vld [vmem:[%s2341_s29] ss:$8 sps:$4 sm:$0xff]   ;;  %v1906_v52 = vld [vmem:[%s2341_s29 + $0x14] ss:$8 sps:$4 sm:$0xff]  }
  0x5b   : > { %v1900_v49 = vld [vmem:[%s2341_s29 + $0x4] ss:$8 sps:$4 sm:$0xff]   ;;  %v1875_v51 = vld [vmem:[%s2341_s29 + $0x160] ss:$8 sps:$4 sm:$0xff]   ;;  %v1908_v53 = vld [vmem:[%s2341_s29 + $0x10] ss:$8 sps:$4 sm:$0xff]  }
  0x5c   : > { %1404 = vmatpush1.bf16.msra.mxu0 %v1860_v39  ;;  %1358 = vmatprep.subr.bf16.mxu1 %v1900_v49  ;;  %v1876_v54 = vld [vmem:[%s2341_s29 + $0x174] ss:$8 sps:$4 sm:$0xff]   ;;  %v1878_v55 = vld [vmem:[%s2341_s29 + $0x170] ss:$8 sps:$4 sm:$0xff]   ;;  %v1915_v56 = vld [vmem:[%s2341_s29 + $0x24] ss:$8 sps:$4 sm:$0xff]  }
  0x5d   : > { %1405 = vmatprep.subr.bf16.mxu0 %v1861_v40  ;;  %1359 = vmatpush1.bf16.msra.mxu1 %v1902_v50  ;;  %v1879_v57 = vld [vmem:[%s2341_s29 + $0x184] ss:$8 sps:$4 sm:$0xff]   ;;  %v1917_v58 = vld [vmem:[%s2341_s29 + $0x20] ss:$8 sps:$4 sm:$0xff]   ;;  %v1921_v59 = vld [vmem:[%s2341_s29 + $0x34] ss:$8 sps:$4 sm:$0xff]  }
  0x5e   : > { %1360 = vmatprep.subr.bf16.mxu1 %v1906_v52  ;;  %v1881_v60 = vld [vmem:[%s2341_s29 + $0x180] ss:$8 sps:$4 sm:$0xff]   ;;  %v1882_v61 = vld [vmem:[%s2341_s29 + $0x194] ss:$8 sps:$4 sm:$0xff]   ;;  %v1923_v62 = vld [vmem:[%s2341_s29 + $0x30] ss:$8 sps:$4 sm:$0xff]  }
  0x5f   : > { %v1927_v63 = vld [vmem:[%s2341_s29 + $0x44] ss:$8 sps:$4 sm:$0xff]   ;;  %v1884_v0 = vld [vmem:[%s2341_s29 + $0x190] ss:$8 sps:$4 sm:$0xff]   ;;  %v1929_v2 = vld [vmem:[%s2341_s29 + $0x40] ss:$8 sps:$4 sm:$0xff]  }
  0x60   : > { %1406 = vmatpush1.bf16.msra.mxu0 %v1863_v41  ;;  %v1885_v1 = vld [vmem:[%s2341_s29 + $0x1a4] ss:$8 sps:$4 sm:$0xff]   ;;  %v1933_v3 = vld [vmem:[%s2341_s29 + $0x54] ss:$8 sps:$4 sm:$0xff]   ;;  %v1887_v4 = vld [vmem:[%s2341_s29 + $0x1a0] ss:$8 sps:$4 sm:$0xff]  }
  0x61   : > { %1407 = vmatprep.subr.bf16.mxu0 %v1864_v42  ;;  %1361 = vmatpush1.bf16.msra.mxu1 %v1908_v53  ;;  %v1888_v5 = vld [vmem:[%s2341_s29 + $0x1b4] ss:$8 sps:$4 sm:$0xff]   ;;  %v1935_v6 = vld [vmem:[%s2341_s29 + $0x50] ss:$8 sps:$4 sm:$0xff]   ;;  %v1939_v7 = vld [vmem:[%s2341_s29 + $0x64] ss:$8 sps:$4 sm:$0xff]  }
  0x62   : > { %1362 = vmatprep.subr.bf16.mxu1 %v1915_v56  ;;  %v1890_v8 = vld [vmem:[%s2341_s29 + $0x1b0] ss:$8 sps:$4 sm:$0xff]   ;;  %v1891_v9 = vld [vmem:[%s2341_s29 + $0x1c4] ss:$8 sps:$4 sm:$0xff]   ;;  %v1941_v10 = vld [vmem:[%s2341_s29 + $0x60] ss:$8 sps:$4 sm:$0xff]  }
  0x63   : > { %v1945_v11 = vld [vmem:[%s2341_s29 + $0x74] ss:$8 sps:$4 sm:$0xff]   ;;  %v1893_v12 = vld [vmem:[%s2341_s29 + $0x1c0] ss:$8 sps:$4 sm:$0xff]   ;;  %v1947_v14 = vld [vmem:[%s2341_s29 + $0x70] ss:$8 sps:$4 sm:$0xff]  }
  0x64   : > { %1408 = vmatpush1.bf16.msra.mxu0 %v1866_v43  ;;  %v1894_v13 = vld [vmem:[%s2341_s29 + $0x1d4] ss:$8 sps:$4 sm:$0xff]   ;;  %v1951_v15 = vld [vmem:[%s2341_s29 + $0x84] ss:$8 sps:$4 sm:$0xff]   ;;  %v1896_v16 = vld [vmem:[%s2341_s29 + $0x1d0] ss:$8 sps:$4 sm:$0xff]  }
  0x65   : > { %1409 = vmatprep.subr.bf16.mxu0 %v1867_v44  ;;  %1363 = vmatpush1.bf16.msra.mxu1 %v1917_v58  ;;  %v1897_v17 = vld [vmem:[%s2341_s29 + $0x1e4] ss:$8 sps:$4 sm:$0xff]   ;;  %v1953_v18 = vld [vmem:[%s2341_s29 + $0x80] ss:$8 sps:$4 sm:$0xff]   ;;  %v1957_v19 = vld [vmem:[%s2341_s29 + $0x94] ss:$8 sps:$4 sm:$0xff]  }
  0x66   : > { %1364 = vmatprep.subr.bf16.mxu1 %v1921_v59  ;;  %v1899_v20 = vld [vmem:[%s2341_s29 + $0x1e0] ss:$8 sps:$4 sm:$0xff]   ;;  %v1903_v21 = vld [vmem:[%s2341_s29 + $0x1f4] ss:$8 sps:$4 sm:$0xff]   ;;  %v1959_v22 = vld [vmem:[%s2341_s29 + $0x90] ss:$8 sps:$4 sm:$0xff]  }
  0x67   : > { %v1963_v23 = vld [vmem:[%s2341_s29 + $0xa4] ss:$8 sps:$4 sm:$0xff]   ;;  %v1905_v24 = vld [vmem:[%s2341_s29 + $0x1f0] ss:$8 sps:$4 sm:$0xff]   ;;  %v1965_v26 = vld [vmem:[%s2341_s29 + $0xa0] ss:$8 sps:$4 sm:$0xff]  }
  0x68   : > { %1410 = vmatpush1.bf16.msra.mxu0 %v1869_v45  ;;  %v1914_v25 = vld [vmem:[%s2341_s29 + $0x204] ss:$8 sps:$4 sm:$0xff]   ;;  %v1969_v27 = vld [vmem:[%s2341_s29 + $0xb4] ss:$8 sps:$4 sm:$0xff]   ;;  %v1912_v29 = vld [vmem:[%s2341_s29 + $0x200] ss:$8 sps:$4 sm:$0xff]  }
  0x69   : > { %1411 = vmatprep.subr.bf16.mxu0 %v1870_v46  ;;  %1365 = vmatpush1.bf16.msra.mxu1 %v1923_v62  ;;  %v1971_v30 = vld [vmem:[%s2341_s29 + $0xb0] ss:$8 sps:$4 sm:$0xff]   ;;  %v1920_v31 = vld [vmem:[%s2341_s29 + $0x214] ss:$8 sps:$4 sm:$0xff]   ;;  %v1975_v32 = vld [vmem:[%s2341_s29 + $0xc4] ss:$8 sps:$4 sm:$0xff]  }
  0x6a   : > { %1366 = vmatprep.subr.bf16.mxu1 %v1927_v63  ;;  %v1918_v34 = vld [vmem:[%s2341_s29 + $0x210] ss:$8 sps:$4 sm:$0xff]   ;;  %v1977_v35 = vld [vmem:[%s2341_s29 + $0xc0] ss:$8 sps:$4 sm:$0xff]   ;;  %v1926_v36 = vld [vmem:[%s2341_s29 + $0x224] ss:$8 sps:$4 sm:$0xff]  }
  0x6b   : > { %v1981_v37 = vld [vmem:[%s2341_s29 + $0xd4] ss:$8 sps:$4 sm:$0xff]   ;;  %v1924_v38 = vld [vmem:[%s2341_s29 + $0x220] ss:$8 sps:$4 sm:$0xff]   ;;  %v1983_v39 = vld [vmem:[%s2341_s29 + $0xd0] ss:$8 sps:$4 sm:$0xff]  }
  0x6c   : > { %1412 = vmatpush1.bf16.msra.mxu0 %v1872_v47  ;;  %v1932_v40 = vld [vmem:[%s2341_s29 + $0x234] ss:$8 sps:$4 sm:$0xff]   ;;  %v1987_v41 = vld [vmem:[%s2341_s29 + $0xe4] ss:$8 sps:$4 sm:$0xff]   ;;  %v1930_v42 = vld [vmem:[%s2341_s29 + $0x230] ss:$8 sps:$4 sm:$0xff]  }
  0x6d   : > { %1413 = vmatprep.subr.bf16.mxu0 %v1873_v48  ;;  %1367 = vmatpush1.bf16.msra.mxu1 %v1929_v2  ;;  %v1989_v43 = vld [vmem:[%s2341_s29 + $0xe0] ss:$8 sps:$4 sm:$0xff]   ;;  %v1938_v44 = vld [vmem:[%s2341_s29 + $0x244] ss:$8 sps:$4 sm:$0xff]   ;;  %v1993_v45 = vld [vmem:[%s2341_s29 + $0xf4] ss:$8 sps:$4 sm:$0xff]  }
  0x6e   : > { %1368 = vmatprep.subr.bf16.mxu1 %v1933_v3  ;;  %v1936_v46 = vld [vmem:[%s2341_s29 + $0x240] ss:$8 sps:$4 sm:$0xff]   ;;  %v1995_v47 = vld [vmem:[%s2341_s29 + $0xf0] ss:$8 sps:$4 sm:$0xff]   ;;  %v1944_v48 = vld [vmem:[%s2341_s29 + $0x254] ss:$8 sps:$4 sm:$0xff]  }
  0x6f   : > { %v1999_v49 = vld [vmem:[%s2478_s0] ss:$24 sps:$4 sm:$0x1f]   ;;  %v1956_v53 = vld [vmem:[%s2341_s29 + $0x274] ss:$8 sps:$4 sm:$0xff]   ;;  %s2492_s12 = smov (!%p726_p11, %s1686_s12), 5 }
  0x70   : > { %1414 = vmatpush1.bf16.msra.mxu0 %v1875_v51  ;;  %v1942_v50 = vld [vmem:[%s2341_s29 + $0x250] ss:$8 sps:$4 sm:$0xff]   ;;  %v1950_v51 = vld [vmem:[%s2341_s29 + $0x264] ss:$8 sps:$4 sm:$0xff]   ;;  %v1948_v52 = vld [vmem:[%s2341_s29 + $0x260] ss:$8 sps:$4 sm:$0xff]   ;;  %s728_s22 = scalar_lea.vmem %s2480_s2, %s2492_s12 }
  0x71   : > { %1415 = vmatprep.subr.bf16.mxu0 %v1876_v54  ;;  %1369 = vmatpush1.bf16.msra.mxu1 %v1935_v6  ;;  %v1954_v54 = vld [vmem:[%s2341_s29 + $0x270] ss:$8 sps:$4 sm:$0xff]   ;;  %v1960_v56 = vld [vmem:[%s2341_s29 + $0x280] ss:$8 sps:$4 sm:$0xff]   ;;  %v1974_v59 = vld [vmem:[%s2341_s29 + $0x2a4] ss:$8 sps:$4 sm:$0xff]  }
  0x72   : > { %1370 = vmatprep.subr.bf16.mxu1 %v1939_v7  ;;  %v1966_v58 = vld [vmem:[%s2341_s29 + $0x290] ss:$8 sps:$4 sm:$0xff]   ;;  %v1986_v63 = vld [vmem:[%s2341_s29 + $0x2c4] ss:$8 sps:$4 sm:$0xff]   ;;  %s1800_s21 = sshll.u32 (%p2112_p6), %s2038_s17, 3 }
  0x73   : > { %v1978_v62 = vld [vmem:[%s2341_s29 + $0x2b0] ss:$8 sps:$4 sm:$0xff]   ;;  %v1998_v3 = vld [vmem:[%s2341_s29 + $0x2e4] ss:$8 sps:$4 sm:$0xff]  }
  0x74   : > { %1416 = vmatpush1.bf16.msra.mxu0 %v1878_v55  ;;  %v1962_v55 = vld [vmem:[%s2341_s29 + $0x284] ss:$8 sps:$4 sm:$0xff]   ;;  %v1990_v2 = vld [vmem:[%s2341_s29 + $0x2d0] ss:$8 sps:$4 sm:$0xff]  }
  0x75   : > { %1417 = vmatprep.subr.bf16.mxu0 %v1879_v57  ;;  %1371 = vmatpush1.bf16.msra.mxu1 %v1941_v10  ;;  %v1968_v57 = vld [vmem:[%s2341_s29 + $0x294] ss:$8 sps:$4 sm:$0xff]   ;;  %v2002_v6 = vld [vmem:[%s2341_s29 + $0x2f0] ss:$8 sps:$4 sm:$0xff]  }
  0x76   : > { %1372 = vmatprep.subr.bf16.mxu1 %v1945_v11  ;;  %v2005_v7 = vld [vmem:[%s2478_s0 + $0x10] ss:$24 sps:$4 sm:$0x1f]  }
  0x78   : > { %1418 = vmatpush1.bf16.msra.mxu0 %v1881_v60  ;;  %v1972_v60 = vld [vmem:[%s2341_s29 + $0x2a0] ss:$8 sps:$4 sm:$0xff]  }
  0x79   : > { %1419 = vmatprep.subr.bf16.mxu0 %v1882_v61  ;;  %1373 = vmatpush1.bf16.msra.mxu1 %v1947_v14  ;;  %v1980_v61 = vld [vmem:[%s2341_s29 + $0x2b4] ss:$8 sps:$4 sm:$0xff]  }
  0x7a   : > { %1374 = vmatprep.subr.bf16.mxu1 %v1951_v15  ;;  %v836_v15 = vld [vmem:[%s728_s22] sm:$0x3] }
  0x7c   : > { %1420 = vmatpush1.bf16.msra.mxu0 %v1884_v0  ;;  %v1984_v0 = vld [vmem:[%s2341_s29 + $0x2c0] ss:$8 sps:$4 sm:$0xff]  }
  0x7d   : > { %1421 = vmatprep.subr.bf16.mxu0 %v1885_v1  ;;  %1375 = vmatpush1.bf16.msra.mxu1 %v1953_v18  ;;  %v1992_v1 = vld [vmem:[%s2341_s29 + $0x2d4] ss:$8 sps:$4 sm:$0xff]  }
  0x7e   : > { %1376 = vmatprep.subr.bf16.mxu1 %v1957_v19  ;;  %v1487_v19 = vld [vmem:[%s681_s24] sm:$0xff] }
  0x80   : > { %1422 = vmatpush1.bf16.msra.mxu0 %v1887_v4  ;;  %v1996_v4 = vld [vmem:[%s2341_s29 + $0x2e0] ss:$8 sps:$4 sm:$0xff]  }
  0x81   : > { %1423 = vmatprep.subr.bf16.mxu0 %v1888_v5  ;;  %1377 = vmatpush1.bf16.msra.mxu1 %v1959_v22  ;;  %v2004_v5 = vld [vmem:[%s2341_s29 + $0x2f4] ss:$8 sps:$4 sm:$0xff]   ;;  %s1523_s29 = scalar_lea.vmem (%p2112_p6), %s2482_s4, %s1800_s21 }
  0x82   : > { %1378 = vmatprep.subr.bf16.mxu1 %v1963_v23  ;;  %v1488_v22 = vld [vmem:[%s681_s24 + $0x8] sm:$0x11]  ;;  %v1489_v23 = vunpack.c.l.bf16 %v1487_v19 }
  0x84   : > { %1424 = vmatpush1.bf16.msra.mxu0 %v1890_v8 }
  0x85   : > { %1425 = vmatprep.subr.bf16.mxu0 %v1891_v9  ;;  %1379 = vmatpush1.bf16.msra.mxu1 %v1965_v26 }
  0x86   : > { %1380 = vmatprep.subr.bf16.mxu1 %v1969_v27 }
  0x88   : > { %1426 = vmatpush1.bf16.msra.mxu0 %v1893_v12  ;;  %v838_v12 = vlaneseq }
  0x89   : > { %1427 = vmatprep.subr.bf16.mxu0 %v1894_v13  ;;  %1381 = vmatpush1.bf16.msra.mxu1 %v1971_v30 }
  0x8a   : > { %1382 = vmatprep.subr.bf16.mxu1 %v1975_v32  ;;  %v839_v13 = vshrl.u32 %v838_v12, 7 }
  0x8c   : > { %1428 = vmatpush1.bf16.msra.mxu0 %v1896_v16  ;;  %v840_v14 = vsub.s32 0, %v839_v13  ;;  %v844_v16 = vsub.s32 1, %v839_v13 }
  0x8d   : > { %1429 = vmatprep.subr.bf16.mxu0 %v1897_v17  ;;  %1383 = vmatpush1.bf16.msra.mxu1 %v1977_v35 }
  0x8e   : > { %1384 = vmatprep.subr.bf16.mxu1 %v1981_v37  ;;  %v841_v17 = vrot.slane %v836_v15, %v840_v14  ;;  %v845_v18 = vrot.slane %v836_v15, %v844_v16 }
  0x90   : > { %1430 = vmatpush1.bf16.msra.mxu0 %v1899_v20 }
  0x91   : > { %1431 = vmatprep.subr.bf16.mxu0 %v1903_v21  ;;  %1385 = vmatpush1.bf16.msra.mxu1 %v1983_v39 }
  0x92   : > { %1386 = vmatprep.subr.bf16.mxu1 %v1987_v41 }
  0x94   : > { %1432 = vmatpush1.bf16.msra.mxu0 %v1905_v24 }
  0x95   : > { %1444 = vmatprep.subr.bf16.mxu0 %v1914_v25  ;;  %1387 = vmatpush1.bf16.msra.mxu1 %v1989_v43  ;;  %v1490_v25 = vunpack.c.h.bf16 %v1487_v19 }
  0x96   : > { %1388 = vmatprep.subr.bf16.mxu1 %v1993_v45 }
  0x97   : > { %1434 = vmatmul.mubr.bf16.vlgmr.msra.gmra.mrb[0].mxu0 %v1909_v28 }
  0x98   : > { %1445 = vmatpush1.bf16.msra.mxu0 %v1912_v29  ;;  %1476 = vmatprep.mubr.bf16.mxu0 %v2007_v33  ;;  %v1491_v29 = vunpack.c.l.bf16 %v1488_v22  ;;  %v1492_v33 = vunpack.c.h.bf16 %v1488_v22 }
  0x99   : > { %1446 = vmatprep.subr.bf16.mxu0 %v1920_v31  ;;  %1389 = vmatpush1.bf16.msra.mxu1 %v1995_v47 }
  0x9c   : > { %1447 = vmatpush1.bf16.msra.mxu0 %v1918_v34  ;;  %1391 = vmatmul.mubr.bf16.vlgmr.msra.gmra.mrb[0].mxu1 %v1999_v49 }
  0x9d   : > { %1448 = vmatprep.subr.bf16.mxu0 %v1926_v36 }
  0xa0   : > { %1449 = vmatpush1.bf16.msra.mxu0 %v1924_v38 }
  0xa1   : > { %1450 = vmatprep.subr.bf16.mxu0 %v1932_v40 }
  0xa4   : > { %1451 = vmatpush1.bf16.msra.mxu0 %v1930_v42 }
  0xa5   : > { %1452 = vmatprep.subr.bf16.mxu0 %v1938_v44 }
  0xa8   : > { %1453 = vmatpush1.bf16.msra.mxu0 %v1936_v46 }
  0xa9   : > { %1454 = vmatprep.subr.bf16.mxu0 %v1944_v48 }
  0xac   : > { %1455 = vmatpush1.bf16.msra.mxu0 %v1942_v50 }
  0xad   : > { %1456 = vmatprep.subr.bf16.mxu0 %v1950_v51 }
  0xb0   : > { %1457 = vmatpush1.bf16.msra.mxu0 %v1948_v52 }
  0xb1   : > { %1458 = vmatprep.subr.bf16.mxu0 %v1956_v53 }
  0xb4   : > { %1459 = vmatpush1.bf16.msra.mxu0 %v1954_v54 }
  0xb5   : > { %1460 = vmatprep.subr.bf16.mxu0 %v1962_v55 }
  0xb8   : > { %1461 = vmatpush1.bf16.msra.mxu0 %v1960_v56 }
  0xb9   : > { %1462 = vmatprep.subr.bf16.mxu0 %v1968_v57 }
  0xbc   : > { %1463 = vmatpush1.bf16.msra.mxu0 %v1966_v58 }
  0xbd   : > { %1464 = vmatprep.subr.bf16.mxu0 %v1974_v59 }
  0xc0   : > { %1465 = vmatpush1.bf16.msra.mxu0 %v1972_v60 }
  0xc1   : > { %1466 = vmatprep.subr.bf16.mxu0 %v1980_v61 }
  0xc4   : > { %1467 = vmatpush1.bf16.msra.mxu0 %v1978_v62 }
  0xc5   : > { %1468 = vmatprep.subr.bf16.mxu0 %v1986_v63 }
  0xc8   : > { %1469 = vmatpush1.bf16.msra.mxu0 %v1984_v0 }
  0xc9   : > { %1470 = vmatprep.subr.bf16.mxu0 %v1992_v1 }
  0xcc   : > { %1471 = vmatpush1.bf16.msra.mxu0 %v1990_v2 }
  0xcd   : > { %1472 = vmatprep.subr.bf16.mxu0 %v1998_v3 }
  0xd0   : > { %1473 = vmatpush1.bf16.msra.mxu0 %v1996_v4 }
  0xd1   : > { %1474 = vmatprep.subr.bf16.mxu0 %v2004_v5 }
  0xd4   : > { %1475 = vmatpush1.bf16.msra.mxu0 %v2002_v6 }
  0xd7   : > { %1477 = vmatmul.mubr.bf16.vlgmr.msra.gmra.mrb[0].mxu0 %v2005_v7 }
 0x16f   : > { %v1392_v8 = vpop.f32.mrb[0].mxu1 }
 0x170   : > { %v1394_v9 = vpop.f32.mrb[1].mxu1  ;;  %v1393_v20 = vadd.f32 %v1392_v8, %v841_v17 }
 0x171   : > { %v1396_v10 = vpop.f32.mrb[2].mxu1  ;;  %v1395_v21 = vadd.f32 %v1394_v9, %v845_v18 }
 0x172   : > { %v1398_v11 = vpop.f32.mrb[3].mxu1  ;;  %v1397_v26 = vadd.f32 %v1396_v10, %v841_v17 }
 0x173   : > { %v1399_v30 = vadd.f32 %v1398_v11, %v845_v18 }
 0x1aa   : > { %v1478_v24 = vpop.f32.mrb[0].mxu0 }
 0x1ab   : > { %v1802_v27 = vadd.f32 %v1478_v24, %v1393_v20  ;;  %v1480_v28 = vpop.f32.mrb[1].mxu0 }
 0x1ac   : > { %v1804_v31 = vadd.f32 %v1480_v28, %v1395_v21  ;;  %v1482_v32 = vpop.f32.mrb[2].mxu0 }
 0x1ad   : > { %v1493_v34 = vadd.f32 %v1802_v27, %v1489_v23  ;;  %v1806_v35 = vadd.f32 %v1482_v32, %v1397_v26  ;;  %v1484_v36 = vpop.f32.mrb[3].mxu0 }
 0x1ae   : > { %v1494_v37 = vadd.f32 %v1804_v31, %v1490_v25  ;;  %v1808_v38 = vadd.f32 %v1484_v36, %v1399_v30  ;;  %1517 = sbr.rel (!%p2112_p6) target bundleno = 445 (0x1bd), region = 116 }
 0x1af   : > { %v1495_v39 = vadd.f32 %v1806_v35, %v1491_v29 }
 0x1b0   : > { %v1798_v40 = vpack.c.bf16 %v1494_v37, %v1493_v34  ;;  %v1496_v41 = vadd.f32 %v1808_v38, %v1492_v33 }
 0x1b2   : > { %1509 = vst [vmem:[%s716_s15] sm:$0xff] %v1798_v40  ;;  %v1799_v42 = vpack.c.bf16 %v1496_v41, %v1495_v39 }
 0x1b4   : > { %1510 = vst [vmem:[%s716_s15 + $0x8] sm:$0x11] %v1799_v42 }
 0x1b9   : > { %v1553_v43 = vld [vmem:[%s716_s15] sm:$0xff] }
 0x1ba   : > { %1554 = vst [vmem:[%s1523_s29] sm:$0xff] %v1553_v43 }
 0x1bb   : > { %v1555_v44 = vld [vmem:[%s716_s15 + $0x8] sm:$0xff] }
 0x1bc   : > { %1556 = vst [vmem:[%s1523_s29 + $0x18] sm:$0xff] %v1555_v44 }
 0x1bd PF: > { %s14_s19 = sadd.s32 1, %s2046_s19   ;;  %s2485_s15 = smov %s2034_s16 }
 0x1be   : > { %p11_p12 = scmp.ge.s32.totalorder %s14_s19, 5   ;;  %s2486_s16 = smov %s2117_s26 }
 0x1bf   : > { %s2487_s17 = smov %s2042_s18  ;;  %s2488_s18 = smov %s2490_s20 }
 0x1c0   :  { %13 = sbr.rel (!%p11_p12) target bundleno = 3 (0x3), region = 199 }

// kernel: closed_call.19
= control target key start
LH: loop header
LB: loop body
LE: loop exit
PB: predicated region body
PF: predicated region fallthrough
CT: control target
= control target key end

     0   :  { %s2182_s18 = smov 0   ;;  %s2184_s19 = smov 0   ;;  %s2756_s0 = inlined_call_operand.vmem [shape: bf16[10,768], index: 0, kind: input, shape index: {}]   ;;  %s2757_s1 = inlined_call_operand.vmem [shape: f32[1,768], index: 1, kind: input, shape index: {}]   ;;  %s2758_s2 = inlined_call_operand.vmem [shape: f32[1,768], index: 2, kind: input, shape index: {}]   ;;  %s2759_s3 = inlined_call_operand.vmem [shape: bf16[768,3072], index: 3, kind: input, shape index: {}]   ;;  %s2760_s4 = inlined_call_operand.vmem [shape: f32[1,3072], index: 4, kind: input, shape index: {}]   ;;  %s2761_s5 = inlined_call_operand.vmem [shape: bf16[10,3072], index: 5, kind: output, shape index: {}]  }
   0x1   :  { %s2186_s20 = smov 0   ;;  %s2188_s21 = smov 0  }
   0x2   :  { %s2190_s22 = smov 0  }
   0x3 LB: > { %s24_s23 = sadd.s32 1, %s2146_s21  ;;  %s1785_s24 = sadd.s32 4294967295, %s2150_s22   ;;  %s2150_s22 = sphi %s2190_s22, %s15_s22   ;;  %s2146_s21 = sphi %s2188_s21, %s2766_s21   ;;  %s2142_s20 = sphi %s2186_s20, %s2765_s20   ;;  %s2138_s19 = sphi %s2184_s19, %s2764_s19   ;;  %s2134_s18 = sphi %s2182_s18, %s2763_s18  }
   0x4   : > { %p25_p0 = scmp.ge.s32.totalorder %s24_s23, 12  ;;  %p109_p1 = scmp.ne.s32.totalorder %s2138_s19, %s2134_s18 }
   0x5   : > { %p110_p2 = scmp.eq.s32.totalorder %s2150_s22, 0  ;;  %p167_p4 = scmp.eq.s32.totalorder %s1785_s24, 11 }
   0x6   : > { %s2768_s23 = smov (%p25_p0, %s24_s23), 0  ;;  %s102_s26 = sadd.s32 1, %s2138_s19 }
   0x7   : > { %p111_p3 = por %p110_p2, %p109_p1  ;;  %s99_s25 = ssub.s32 %s2146_s21, %s2768_s23 }
   0x8   : > { %p100_p5 = scmp.eq.s32.totalorder %s99_s25, 0  ;;  %p2217_p6 = por %p167_p4, %p109_p1 }
   0x9   : > { %p1789_p7 = scmp.ge.s32.totalorder %s2150_s22, 12 }
   0xa   : > { %s2222_s28 = scalar_select %p100_p5, %s2138_s19, %s102_s26  }
   0xb   : > { %205 = sbr.rel (%p1789_p7) target bundleno = 118 (0x76), region = 28 }
  0x12   : > { %208 = sbr.rel (!%p111_p3) target bundleno = 118 (0x76), region = 32  ;;  %s210_s29 = sand.u32 (%p111_p3), 1, %s2138_s19  }
  0x13   : > { %s1898_s30 = sshll.u32 (%p111_p3), %s2146_s21, 3  ;;  %s1914_s6 = smul.u32 (%p111_p3), 768, %s210_s29 }
  0x14   : > { %s2230_s9 = scalar_lea.vmem (%p111_p3), %s2759_s3, %s1898_s30 }
  0x15   : > { %v433_v0 = vld [vmem:[%s2230_s9] sm:$0xff] (%p111_p3)  ;;  %s2238_s10 = scalar_lea.vmem (%p111_p3), [#allocation2], %s1914_s6 }
  0x16   : > { %v435_v1 = vld [vmem:[%s2230_s9 + $0x60] sm:$0xff] (%p111_p3)  ;;  %434 = vst [vmem:[%s2238_s10] sm:$0xff] (%p111_p3), %v433_v0 }
  0x17   : > { %v437_v2 = vld [vmem:[%s2230_s9 + $0xc0] sm:$0xff] (%p111_p3)  ;;  %436 = vst [vmem:[%s2238_s10 + $0x8] sm:$0xff] (%p111_p3), %v435_v1 }
  0x18   : > { %v439_v3 = vld [vmem:[%s2230_s9 + $0x120] sm:$0xff] (%p111_p3)  ;;  %438 = vst [vmem:[%s2238_s10 + $0x10] sm:$0xff] (%p111_p3), %v437_v2 }
  0x19   : > { %v441_v4 = vld [vmem:[%s2230_s9 + $0x180] sm:$0xff]  ;;  %440 = vst [vmem:[%s2238_s10 + $0x18] sm:$0xff] %v439_v3 }
  0x1a   : > { %v443_v5 = vld [vmem:[%s2230_s9 + $0x1e0] sm:$0xff]  ;;  %442 = vst [vmem:[%s2238_s10 + $0x20] sm:$0xff] %v441_v4 }
  0x1b   : > { %444 = vst [vmem:[%s2238_s10 + $0x28] sm:$0xff] %v443_v5  ;;  %v445_v6 = vld [vmem:[%s2230_s9 + $0x240] sm:$0xff] }
  0x1c   : > { %v447_v7 = vld [vmem:[%s2230_s9 + $0x2a0] sm:$0xff]  ;;  %446 = vst [vmem:[%s2238_s10 + $0x30] sm:$0xff] %v445_v6 }
  0x1d   : > { %v449_v8 = vld [vmem:[%s2230_s9 + $0x300] sm:$0xff]  ;;  %448 = vst [vmem:[%s2238_s10 + $0x38] sm:$0xff] %v447_v7 }
  0x1e   : > { %450 = vst [vmem:[%s2238_s10 + $0x40] sm:$0xff] %v449_v8  ;;  %v451_v9 = vld [vmem:[%s2230_s9 + $0x360] sm:$0xff] }
  0x1f   : > { %v453_v10 = vld [vmem:[%s2230_s9 + $0x3c0] sm:$0xff]  ;;  %452 = vst [vmem:[%s2238_s10 + $0x48] sm:$0xff] %v451_v9 }
  0x20   : > { %v455_v11 = vld [vmem:[%s2230_s9 + $0x420] sm:$0xff]  ;;  %454 = vst [vmem:[%s2238_s10 + $0x50] sm:$0xff] %v453_v10 }
  0x21   : > { %456 = vst [vmem:[%s2238_s10 + $0x58] sm:$0xff] %v455_v11  ;;  %v457_v12 = vld [vmem:[%s2230_s9 + $0x480] sm:$0xff] }
  0x22   : > { %v459_v13 = vld [vmem:[%s2230_s9 + $0x4e0] sm:$0xff]  ;;  %458 = vst [vmem:[%s2238_s10 + $0x60] sm:$0xff] %v457_v12 }
  0x23   : > { %v461_v14 = vld [vmem:[%s2230_s9 + $0x540] sm:$0xff]  ;;  %460 = vst [vmem:[%s2238_s10 + $0x68] sm:$0xff] %v459_v13 }
  0x24   : > { %462 = vst [vmem:[%s2238_s10 + $0x70] sm:$0xff] %v461_v14  ;;  %v463_v15 = vld [vmem:[%s2230_s9 + $0x5a0] sm:$0xff] }
  0x25   : > { %v465_v16 = vld [vmem:[%s2230_s9 + $0x600] sm:$0xff]  ;;  %464 = vst [vmem:[%s2238_s10 + $0x78] sm:$0xff] %v463_v15 }
  0x26   : > { %v467_v17 = vld [vmem:[%s2230_s9 + $0x660] sm:$0xff]  ;;  %466 = vst [vmem:[%s2238_s10 + $0x80] sm:$0xff] %v465_v16 }
  0x27   : > { %468 = vst [vmem:[%s2238_s10 + $0x88] sm:$0xff] %v467_v17  ;;  %v469_v18 = vld [vmem:[%s2230_s9 + $0x6c0] sm:$0xff] }
  0x28   : > { %v471_v19 = vld [vmem:[%s2230_s9 + $0x720] sm:$0xff]  ;;  %470 = vst [vmem:[%s2238_s10 + $0x90] sm:$0xff] %v469_v18 }
  0x29   : > { %v473_v20 = vld [vmem:[%s2230_s9 + $0x780] sm:$0xff]  ;;  %472 = vst [vmem:[%s2238_s10 + $0x98] sm:$0xff] %v471_v19 }
  0x2a   : > { %474 = vst [vmem:[%s2238_s10 + $0xa0] sm:$0xff] %v473_v20  ;;  %v475_v21 = vld [vmem:[%s2230_s9 + $0x7e0] sm:$0xff] }
  0x2b   : > { %v477_v22 = vld [vmem:[%s2230_s9 + $0x840] sm:$0xff]  ;;  %476 = vst [vmem:[%s2238_s10 + $0xa8] sm:$0xff] %v475_v21 }
  0x2c   : > { %v479_v23 = vld [vmem:[%s2230_s9 + $0x8a0] sm:$0xff]  ;;  %478 = vst [vmem:[%s2238_s10 + $0xb0] sm:$0xff] %v477_v22 }
  0x2d   : > { %480 = vst [vmem:[%s2238_s10 + $0xb8] sm:$0xff] %v479_v23  ;;  %v481_v24 = vld [vmem:[%s2230_s9 + $0x900] sm:$0xff] }
  0x2e   : > { %v483_v25 = vld [vmem:[%s2230_s9 + $0x960] sm:$0xff]  ;;  %482 = vst [vmem:[%s2238_s10 + $0xc0] sm:$0xff] %v481_v24 }
  0x2f   : > { %v485_v26 = vld [vmem:[%s2230_s9 + $0x9c0] sm:$0xff]  ;;  %484 = vst [vmem:[%s2238_s10 + $0xc8] sm:$0xff] %v483_v25 }
  0x30   : > { %486 = vst [vmem:[%s2238_s10 + $0xd0] sm:$0xff] %v485_v26  ;;  %v487_v27 = vld [vmem:[%s2230_s9 + $0xa20] sm:$0xff] }
  0x31   : > { %v489_v28 = vld [vmem:[%s2230_s9 + $0xa80] sm:$0xff]  ;;  %488 = vst [vmem:[%s2238_s10 + $0xd8] sm:$0xff] %v487_v27 }
  0x32   : > { %v491_v29 = vld [vmem:[%s2230_s9 + $0xae0] sm:$0xff]  ;;  %490 = vst [vmem:[%s2238_s10 + $0xe0] sm:$0xff] %v489_v28 }
  0x33   : > { %492 = vst [vmem:[%s2238_s10 + $0xe8] sm:$0xff] %v491_v29  ;;  %v493_v30 = vld [vmem:[%s2230_s9 + $0xb40] sm:$0xff] }
  0x34   : > { %v495_v31 = vld [vmem:[%s2230_s9 + $0xba0] sm:$0xff]  ;;  %494 = vst [vmem:[%s2238_s10 + $0xf0] sm:$0xff] %v493_v30 }
  0x35   : > { %v497_v32 = vld [vmem:[%s2230_s9 + $0xc00] sm:$0xff]  ;;  %496 = vst [vmem:[%s2238_s10 + $0xf8] sm:$0xff] %v495_v31 }
  0x36   : > { %498 = vst [vmem:[%s2238_s10 + $0x100] sm:$0xff] %v497_v32  ;;  %v499_v33 = vld [vmem:[%s2230_s9 + $0xc60] sm:$0xff] }
  0x37   : > { %v501_v34 = vld [vmem:[%s2230_s9 + $0xcc0] sm:$0xff]  ;;  %500 = vst [vmem:[%s2238_s10 + $0x108] sm:$0xff] %v499_v33 }
  0x38   : > { %v503_v35 = vld [vmem:[%s2230_s9 + $0xd20] sm:$0xff]  ;;  %502 = vst [vmem:[%s2238_s10 + $0x110] sm:$0xff] %v501_v34 }
  0x39   : > { %504 = vst [vmem:[%s2238_s10 + $0x118] sm:$0xff] %v503_v35  ;;  %v505_v36 = vld [vmem:[%s2230_s9 + $0xd80] sm:$0xff] }
  0x3a   : > { %v507_v37 = vld [vmem:[%s2230_s9 + $0xde0] sm:$0xff]  ;;  %506 = vst [vmem:[%s2238_s10 + $0x120] sm:$0xff] %v505_v36 }
  0x3b   : > { %v509_v38 = vld [vmem:[%s2230_s9 + $0xe40] sm:$0xff]  ;;  %508 = vst [vmem:[%s2238_s10 + $0x128] sm:$0xff] %v507_v37 }
  0x3c   : > { %510 = vst [vmem:[%s2238_s10 + $0x130] sm:$0xff] %v509_v38  ;;  %v511_v39 = vld [vmem:[%s2230_s9 + $0xea0] sm:$0xff] }
  0x3d   : > { %v513_v40 = vld [vmem:[%s2230_s9 + $0xf00] sm:$0xff]  ;;  %512 = vst [vmem:[%s2238_s10 + $0x138] sm:$0xff] %v511_v39 }
  0x3e   : > { %v515_v41 = vld [vmem:[%s2230_s9 + $0xf60] sm:$0xff]  ;;  %514 = vst [vmem:[%s2238_s10 + $0x140] sm:$0xff] %v513_v40 }
  0x3f   : > { %516 = vst [vmem:[%s2238_s10 + $0x148] sm:$0xff] %v515_v41  ;;  %v517_v42 = vld [vmem:[%s2230_s9 + $0xfc0] sm:$0xff] }
  0x40   : > { %v519_v43 = vld [vmem:[%s2230_s9 + $0x1020] sm:$0xff]  ;;  %518 = vst [vmem:[%s2238_s10 + $0x150] sm:$0xff] %v517_v42 }
  0x41   : > { %v521_v44 = vld [vmem:[%s2230_s9 + $0x1080] sm:$0xff]  ;;  %520 = vst [vmem:[%s2238_s10 + $0x158] sm:$0xff] %v519_v43 }
  0x42   : > { %522 = vst [vmem:[%s2238_s10 + $0x160] sm:$0xff] %v521_v44  ;;  %v523_v45 = vld [vmem:[%s2230_s9 + $0x10e0] sm:$0xff] }
  0x43   : > { %v525_v46 = vld [vmem:[%s2230_s9 + $0x1140] sm:$0xff]  ;;  %524 = vst [vmem:[%s2238_s10 + $0x168] sm:$0xff] %v523_v45 }
  0x44   : > { %v527_v47 = vld [vmem:[%s2230_s9 + $0x11a0] sm:$0xff]  ;;  %526 = vst [vmem:[%s2238_s10 + $0x170] sm:$0xff] %v525_v46 }
  0x45   : > { %528 = vst [vmem:[%s2238_s10 + $0x178] sm:$0xff] %v527_v47  ;;  %v529_v48 = vld [vmem:[%s2230_s9 + $0x1200] sm:$0xff] }
  0x46   : > { %v531_v49 = vld [vmem:[%s2230_s9 + $0x1260] sm:$0xff]  ;;  %530 = vst [vmem:[%s2238_s10 + $0x180] sm:$0xff] %v529_v48 }
  0x47   : > { %v533_v50 = vld [vmem:[%s2230_s9 + $0x12c0] sm:$0xff]  ;;  %532 = vst [vmem:[%s2238_s10 + $0x188] sm:$0xff] %v531_v49 }
  0x48   : > { %534 = vst [vmem:[%s2238_s10 + $0x190] sm:$0xff] %v533_v50  ;;  %v535_v51 = vld [vmem:[%s2230_s9 + $0x1320] sm:$0xff] }
  0x49   : > { %v537_v52 = vld [vmem:[%s2230_s9 + $0x1380] sm:$0xff]  ;;  %536 = vst [vmem:[%s2238_s10 + $0x198] sm:$0xff] %v535_v51 }
  0x4a   : > { %v539_v53 = vld [vmem:[%s2230_s9 + $0x13e0] sm:$0xff]  ;;  %538 = vst [vmem:[%s2238_s10 + $0x1a0] sm:$0xff] %v537_v52 }
  0x4b   : > { %540 = vst [vmem:[%s2238_s10 + $0x1a8] sm:$0xff] %v539_v53  ;;  %v541_v54 = vld [vmem:[%s2230_s9 + $0x1440] sm:$0xff] }
  0x4c   : > { %v543_v55 = vld [vmem:[%s2230_s9 + $0x14a0] sm:$0xff]  ;;  %542 = vst [vmem:[%s2238_s10 + $0x1b0] sm:$0xff] %v541_v54 }
  0x4d   : > { %v545_v56 = vld [vmem:[%s2230_s9 + $0x1500] sm:$0xff]  ;;  %544 = vst [vmem:[%s2238_s10 + $0x1b8] sm:$0xff] %v543_v55 }
  0x4e   : > { %546 = vst [vmem:[%s2238_s10 + $0x1c0] sm:$0xff] %v545_v56  ;;  %v547_v57 = vld [vmem:[%s2230_s9 + $0x1560] sm:$0xff] }
  0x4f   : > { %v549_v58 = vld [vmem:[%s2230_s9 + $0x15c0] sm:$0xff]  ;;  %548 = vst [vmem:[%s2238_s10 + $0x1c8] sm:$0xff] %v547_v57 }
  0x50   : > { %v551_v59 = vld [vmem:[%s2230_s9 + $0x1620] sm:$0xff]  ;;  %550 = vst [vmem:[%s2238_s10 + $0x1d0] sm:$0xff] %v549_v58 }
  0x51   : > { %552 = vst [vmem:[%s2238_s10 + $0x1d8] sm:$0xff] %v551_v59  ;;  %v553_v60 = vld [vmem:[%s2230_s9 + $0x1680] sm:$0xff] }
  0x52   : > { %v555_v61 = vld [vmem:[%s2230_s9 + $0x16e0] sm:$0xff]  ;;  %554 = vst [vmem:[%s2238_s10 + $0x1e0] sm:$0xff] %v553_v60 }
  0x53   : > { %v557_v62 = vld [vmem:[%s2230_s9 + $0x1740] sm:$0xff]  ;;  %556 = vst [vmem:[%s2238_s10 + $0x1e8] sm:$0xff] %v555_v61 }
  0x54   : > { %558 = vst [vmem:[%s2238_s10 + $0x1f0] sm:$0xff] %v557_v62  ;;  %v559_v63 = vld [vmem:[%s2230_s9 + $0x17a0] sm:$0xff] }
  0x55   : > { %v561_v0 = vld [vmem:[%s2230_s9 + $0x1800] sm:$0xff]  ;;  %560 = vst [vmem:[%s2238_s10 + $0x1f8] sm:$0xff] %v559_v63 }
  0x56   : > { %v563_v1 = vld [vmem:[%s2230_s9 + $0x1860] sm:$0xff]  ;;  %562 = vst [vmem:[%s2238_s10 + $0x200] sm:$0xff] %v561_v0 }
  0x57   : > { %564 = vst [vmem:[%s2238_s10 + $0x208] sm:$0xff] %v563_v1  ;;  %v565_v2 = vld [vmem:[%s2230_s9 + $0x18c0] sm:$0xff] }
  0x58   : > { %v567_v3 = vld [vmem:[%s2230_s9 + $0x1920] sm:$0xff]  ;;  %566 = vst [vmem:[%s2238_s10 + $0x210] sm:$0xff] %v565_v2 }
  0x59   : > { %v569_v4 = vld [vmem:[%s2230_s9 + $0x1980] sm:$0xff]  ;;  %568 = vst [vmem:[%s2238_s10 + $0x218] sm:$0xff] %v567_v3 }
  0x5a   : > { %570 = vst [vmem:[%s2238_s10 + $0x220] sm:$0xff] %v569_v4  ;;  %v571_v5 = vld [vmem:[%s2230_s9 + $0x19e0] sm:$0xff] }
  0x5b   : > { %v573_v6 = vld [vmem:[%s2230_s9 + $0x1a40] sm:$0xff]  ;;  %572 = vst [vmem:[%s2238_s10 + $0x228] sm:$0xff] %v571_v5 }
  0x5c   : > { %v575_v7 = vld [vmem:[%s2230_s9 + $0x1aa0] sm:$0xff]  ;;  %574 = vst [vmem:[%s2238_s10 + $0x230] sm:$0xff] %v573_v6 }
  0x5d   : > { %576 = vst [vmem:[%s2238_s10 + $0x238] sm:$0xff] %v575_v7  ;;  %v577_v8 = vld [vmem:[%s2230_s9 + $0x1b00] sm:$0xff] }
  0x5e   : > { %v579_v9 = vld [vmem:[%s2230_s9 + $0x1b60] sm:$0xff]  ;;  %578 = vst [vmem:[%s2238_s10 + $0x240] sm:$0xff] %v577_v8 }
  0x5f   : > { %v581_v10 = vld [vmem:[%s2230_s9 + $0x1bc0] sm:$0xff]  ;;  %580 = vst [vmem:[%s2238_s10 + $0x248] sm:$0xff] %v579_v9 }
  0x60   : > { %582 = vst [vmem:[%s2238_s10 + $0x250] sm:$0xff] %v581_v10  ;;  %v583_v11 = vld [vmem:[%s2230_s9 + $0x1c20] sm:$0xff] }
  0x61   : > { %v585_v12 = vld [vmem:[%s2230_s9 + $0x1c80] sm:$0xff]  ;;  %584 = vst [vmem:[%s2238_s10 + $0x258] sm:$0xff] %v583_v11 }
  0x62   : > { %v587_v13 = vld [vmem:[%s2230_s9 + $0x1ce0] sm:$0xff]  ;;  %586 = vst [vmem:[%s2238_s10 + $0x260] sm:$0xff] %v585_v12 }
  0x63   : > { %588 = vst [vmem:[%s2238_s10 + $0x268] sm:$0xff] %v587_v13  ;;  %v589_v14 = vld [vmem:[%s2230_s9 + $0x1d40] sm:$0xff] }
  0x64   : > { %v591_v15 = vld [vmem:[%s2230_s9 + $0x1da0] sm:$0xff]  ;;  %590 = vst [vmem:[%s2238_s10 + $0x270] sm:$0xff] %v589_v14 }
  0x65   : > { %v593_v16 = vld [vmem:[%s2230_s9 + $0x1e00] sm:$0xff]  ;;  %592 = vst [vmem:[%s2238_s10 + $0x278] sm:$0xff] %v591_v15 }
  0x66   : > { %594 = vst [vmem:[%s2238_s10 + $0x280] sm:$0xff] %v593_v16  ;;  %v595_v17 = vld [vmem:[%s2230_s9 + $0x1e60] sm:$0xff] }
  0x67   : > { %v597_v18 = vld [vmem:[%s2230_s9 + $0x1ec0] sm:$0xff]  ;;  %596 = vst [vmem:[%s2238_s10 + $0x288] sm:$0xff] %v595_v17 }
  0x68   : > { %v599_v19 = vld [vmem:[%s2230_s9 + $0x1f20] sm:$0xff]  ;;  %598 = vst [vmem:[%s2238_s10 + $0x290] sm:$0xff] %v597_v18 }
  0x69   : > { %600 = vst [vmem:[%s2238_s10 + $0x298] sm:$0xff] %v599_v19  ;;  %v601_v20 = vld [vmem:[%s2230_s9 + $0x1f80] sm:$0xff] }
  0x6a   : > { %v603_v21 = vld [vmem:[%s2230_s9 + $0x1fe0] sm:$0xff]  ;;  %602 = vst [vmem:[%s2238_s10 + $0x2a0] sm:$0xff] %v601_v20 }
  0x6b   : > { %v605_v22 = vld [vmem:[%s2230_s9 + $0x2040] sm:$0xff]  ;;  %604 = vst [vmem:[%s2238_s10 + $0x2a8] sm:$0xff] %v603_v21 }
  0x6c   : > { %606 = vst [vmem:[%s2238_s10 + $0x2b0] sm:$0xff] %v605_v22  ;;  %v607_v23 = vld [vmem:[%s2230_s9 + $0x20a0] sm:$0xff] }
  0x6d   : > { %v609_v24 = vld [vmem:[%s2230_s9 + $0x2100] sm:$0xff]  ;;  %608 = vst [vmem:[%s2238_s10 + $0x2b8] sm:$0xff] %v607_v23 }
  0x6e   : > { %v611_v25 = vld [vmem:[%s2230_s9 + $0x2160] sm:$0xff]  ;;  %610 = vst [vmem:[%s2238_s10 + $0x2c0] sm:$0xff] %v609_v24 }
  0x6f   : > { %612 = vst [vmem:[%s2238_s10 + $0x2c8] sm:$0xff] %v611_v25  ;;  %v613_v26 = vld [vmem:[%s2230_s9 + $0x21c0] sm:$0xff] }
  0x70   : > { %v615_v27 = vld [vmem:[%s2230_s9 + $0x2220] sm:$0xff]  ;;  %614 = vst [vmem:[%s2238_s10 + $0x2d0] sm:$0xff] %v613_v26 }
  0x71   : > { %v617_v28 = vld [vmem:[%s2230_s9 + $0x2280] sm:$0xff]  ;;  %616 = vst [vmem:[%s2238_s10 + $0x2d8] sm:$0xff] %v615_v27 }
  0x72   : > { %618 = vst [vmem:[%s2238_s10 + $0x2e0] sm:$0xff] %v617_v28  ;;  %v619_v29 = vld [vmem:[%s2230_s9 + $0x22e0] sm:$0xff] }
  0x73   : > { %v621_v30 = vld [vmem:[%s2230_s9 + $0x2340] sm:$0xff]  ;;  %620 = vst [vmem:[%s2238_s10 + $0x2e8] sm:$0xff] %v619_v29 }
  0x74   : > { %v623_v31 = vld [vmem:[%s2230_s9 + $0x23a0] sm:$0xff]  ;;  %622 = vst [vmem:[%s2238_s10 + $0x2f0] sm:$0xff] %v621_v30 }
  0x75   : > { %624 = vst [vmem:[%s2238_s10 + $0x2f8] sm:$0xff] %v623_v31 }
  0x76 PF: > { %p1792_p8 = scmp.ge.s32.totalorder %s2150_s22, 1  ;;  %p637_p9 = scmp.lt.s32.totalorder %s2150_s22, 13 }
  0x78   : > { %p638_p10 = pnand %p1792_p8, %p637_p9 }
  0x79   : > { %v2431_v32 = vld [vmem:[%s2756_s0 + $0x18] sm:$0x11] (!%p638_p10)  ;;  %v2436_v33 = vld [vmem:[%s2756_s0 + $0x20] sm:$0x11] (!%p638_p10)  ;;  %v2441_v34 = vld [vmem:[%s2756_s0 + $0x28] sm:$0x11] (!%p638_p10) }
  0x7a   : > { %641 = sbr.rel (%p638_p10) target bundleno = 776 (0x308), region = 74  ;;  %v707_v35 = vunpack.c.l.bf16 (!%p638_p10), %v2431_v32  ;;  %v708_v36 = vunpack.c.h.bf16 (!%p638_p10), %v2431_v32  ;;  %v709_v37 = vunpack.c.l.bf16 (!%p638_p10), %v2436_v33  ;;  %v710_v38 = vunpack.c.h.bf16 (!%p638_p10), %v2436_v33  ;;  %v2450_v39 = vld [vmem:[%s2756_s0] sm:$0xff] (!%p638_p10)  ;;  %v2455_v40 = vld [vmem:[%s2756_s0 + $0x8] sm:$0xff] (!%p638_p10)  ;;  %v2476_v50 = vld [vmem:[%s2756_s0 + $0x10] sm:$0xff] (!%p638_p10)  ;;  %s644_s6 = sand.u32 (!%p638_p10), 1, %s2134_s18  }
  0x7b   : > { %vm720_vm0 = vcmask (!%p638_p10), 1041408   ;;  %v701_v41 = vunpack.c.l.bf16 (!%p638_p10), %v2450_v39  ;;  %v711_v42 = vunpack.c.l.bf16 (!%p638_p10), %v2441_v34  ;;  %v702_v47 = vunpack.c.h.bf16 (!%p638_p10), %v2450_v39  ;;  %s1915_s7 = smul.u32 (!%p638_p10), 768, %s644_s6  ;;  %s1794_s13 = sshll.u32 (!%p638_p10), %s2142_s20, 1 }
  0x7c   : > { %v721_v43 = vsel (!%p638_p10), %vm720_vm0, %v707_v35, 0.0  ;;  %v722_v44 = vsel (!%p638_p10), %vm720_vm0, %v708_v36, 0.0  ;;  %v724_v45 = vsel (!%p638_p10), %vm720_vm0, %v709_v37, 0.0  ;;  %v712_v48 = vunpack.c.h.bf16 (!%p638_p10), %v2441_v34  ;;  %p689_p11 = scmp.lt.s32.totalorder (!%p638_p10), %s1794_s13, 23  ;;  %s1793_s17 = sshll.u32 (!%p638_p10), %s644_s6, 4 }
  0x7d   : > { %v723_v46 = vadd.f32 (!%p638_p10), %v722_v44, %v721_v43  ;;  %v726_v49 = vsel (!%p638_p10), %vm720_vm0, %v710_v38, 0.0  ;;  %v703_v51 = vunpack.c.l.bf16 (!%p638_p10), %v2455_v40  ;;  %v704_v53 = vunpack.c.h.bf16 (!%p638_p10), %v2455_v40  ;;  %s2503_s8 = scalar_lea.vmem (!%p638_p10), [#allocation2], %s1915_s7  ;;  %s679_s24 = scalar_lea.vmem (!%p638_p10), [#allocation3], %s1793_s17 }
  0x7e   : > { %v713_v54 = vadd.f32 (!%p638_p10), %v702_v47, %v701_v41  ;;  %v728_v55 = vsel (!%p638_p10), %vm720_vm0, %v711_v42, 0.0  ;;  %v705_v57 = vunpack.c.l.bf16 (!%p638_p10), %v2476_v50  ;;  %v730_v59 = vsel (!%p638_p10), %vm720_vm0, %v712_v48, 0.0  ;;  %v1956_v2 = vld [vmem:[%s2503_s8 + $0x104] ss:$8 sps:$4 sm:$0xff] (!%p638_p10)   ;;  %v1960_v4 = vld [vmem:[%s2503_s8 + $0x100] ss:$8 sps:$4 sm:$0xff] (!%p638_p10)  }
  0x7f   : > { %v725_v52 = vadd.f32 (!%p638_p10), %v724_v45, %v723_v46  ;;  %v706_v61 = vunpack.c.h.bf16 (!%p638_p10), %v2476_v50  ;;  %v1958_v3 = vld [vmem:[%s2503_s8 + $0x4] ss:$8 sps:$4 sm:$0xff] (!%p638_p10)   ;;  %1524 = vmatprep.subr.bf16.mxu0 (!%p638_p10), %v1956_v2  ;;  %v1961_v5 = vld [vmem:[%s2503_s8] ss:$8 sps:$4 sm:$0xff] (!%p638_p10)   ;;  %v1962_v6 = vld [vmem:[%s2503_s8 + $0x114] ss:$8 sps:$4 sm:$0xff] (!%p638_p10)  }
  0x80   : > { %v714_v58 = vadd.f32 (!%p638_p10), %v713_v54, %v703_v51  ;;  %1481 = vmatprep.subr.bf16.mxu1 (!%p638_p10), %v1958_v3  ;;  %1525 = vmatpush1.bf16.msra.mxu0 (!%p638_p10), %v1960_v4  ;;  %v1964_v7 = vld [vmem:[%s2503_s8 + $0x14] ss:$8 sps:$4 sm:$0xff] (!%p638_p10)   ;;  %v1966_v8 = vld [vmem:[%s2503_s8 + $0x110] ss:$8 sps:$4 sm:$0xff] (!%p638_p10)   ;;  %v1968_v10 = vld [vmem:[%s2503_s8 + $0x124] ss:$8 sps:$4 sm:$0xff] (!%p638_p10)  }
  0x81   : > { %v727_v56 = vadd.f32 %v726_v49, %v725_v52  ;;  %1482 = vmatpush1.bf16.msra.mxu1 %v1961_v5  ;;  %1526 = vmatprep.subr.bf16.mxu0 %v1962_v6  ;;  %v1967_v9 = vld [vmem:[%s2503_s8 + $0x10] ss:$8 sps:$4 sm:$0xff]   ;;  %v1970_v11 = vld [vmem:[%s2503_s8 + $0x24] ss:$8 sps:$4 sm:$0xff]   ;;  %v1972_v12 = vld [vmem:[%s2503_s8 + $0x120] ss:$8 sps:$4 sm:$0xff]  }
  0x82   : > { %v715_v62 = vadd.f32 %v714_v58, %v704_v53  ;;  %1483 = vmatprep.subr.bf16.mxu1 %v1964_v7  ;;  %v1973_v13 = vld [vmem:[%s2503_s8 + $0x20] ss:$8 sps:$4 sm:$0xff]   ;;  %v1974_v14 = vld [vmem:[%s2503_s8 + $0x134] ss:$8 sps:$4 sm:$0xff]   ;;  %v1978_v16 = vld [vmem:[%s2503_s8 + $0x130] ss:$8 sps:$4 sm:$0xff]  }
  0x83   : > { %v729_v60 = vadd.f32 %v728_v55, %v727_v56  ;;  %v1976_v15 = vld [vmem:[%s2503_s8 + $0x34] ss:$8 sps:$4 sm:$0xff]   ;;  %v1979_v17 = vld [vmem:[%s2503_s8 + $0x30] ss:$8 sps:$4 sm:$0xff]   ;;  %v1980_v18 = vld [vmem:[%s2503_s8 + $0x144] ss:$8 sps:$4 sm:$0xff]  }
  0x84   : > { %v716_v0 = vadd.f32 %v715_v62, %v705_v57  ;;  %1527 = vmatpush1.bf16.msra.mxu0 %v1966_v8  ;;  %v1982_v19 = vld [vmem:[%s2503_s8 + $0x44] ss:$8 sps:$4 sm:$0xff]   ;;  %v1984_v20 = vld [vmem:[%s2503_s8 + $0x140] ss:$8 sps:$4 sm:$0xff]   ;;  %v1986_v22 = vld [vmem:[%s2503_s8 + $0x154] ss:$8 sps:$4 sm:$0xff]  }
  0x85   : > { %v731_v63 = vadd.f32 %v730_v59, %v729_v60  ;;  %1484 = vmatpush1.bf16.msra.mxu1 %v1967_v9  ;;  %1528 = vmatprep.subr.bf16.mxu0 %v1968_v10  ;;  %v1985_v21 = vld [vmem:[%s2503_s8 + $0x40] ss:$8 sps:$4 sm:$0xff]   ;;  %v1988_v23 = vld [vmem:[%s2503_s8 + $0x54] ss:$8 sps:$4 sm:$0xff]   ;;  %v1990_v24 = vld [vmem:[%s2503_s8 + $0x150] ss:$8 sps:$4 sm:$0xff]  }
  0x86   : > { %v717_v1 = vadd.f32 %v716_v0, %v706_v61  ;;  %1485 = vmatprep.subr.bf16.mxu1 %v1970_v11  ;;  %v1991_v25 = vld [vmem:[%s2503_s8 + $0x50] ss:$8 sps:$4 sm:$0xff]   ;;  %v1992_v26 = vld [vmem:[%s2503_s8 + $0x164] ss:$8 sps:$4 sm:$0xff]   ;;  %v1996_v28 = vld [vmem:[%s2503_s8 + $0x160] ss:$8 sps:$4 sm:$0xff]  }
  0x87   : > { %732 = vadd.xlane.f32.xlu0 %v731_v63  ;;  %v1994_v27 = vld [vmem:[%s2503_s8 + $0x64] ss:$8 sps:$4 sm:$0xff]   ;;  %v1997_v29 = vld [vmem:[%s2503_s8 + $0x60] ss:$8 sps:$4 sm:$0xff]   ;;  %v1998_v30 = vld [vmem:[%s2503_s8 + $0x174] ss:$8 sps:$4 sm:$0xff]  }
  0x88   : > { %1529 = vmatpush1.bf16.msra.mxu0 %v1972_v12  ;;  %v2000_v31 = vld [vmem:[%s2503_s8 + $0x74] ss:$8 sps:$4 sm:$0xff]   ;;  %v2002_v43 = vld [vmem:[%s2503_s8 + $0x170] ss:$8 sps:$4 sm:$0xff]   ;;  %v2004_v45 = vld [vmem:[%s2503_s8 + $0x184] ss:$8 sps:$4 sm:$0xff]  }
  0x89   : > { %1486 = vmatpush1.bf16.msra.mxu1 %v1973_v13  ;;  %1530 = vmatprep.subr.bf16.mxu0 %v1974_v14  ;;  %v2003_v44 = vld [vmem:[%s2503_s8 + $0x70] ss:$8 sps:$4 sm:$0xff]   ;;  %v2006_v46 = vld [vmem:[%s2503_s8 + $0x84] ss:$8 sps:$4 sm:$0xff]   ;;  %v2008_v49 = vld [vmem:[%s2503_s8 + $0x180] ss:$8 sps:$4 sm:$0xff]  }
  0x8a   : > { %1487 = vmatprep.subr.bf16.mxu1 %v1976_v15  ;;  %v2009_v52 = vld [vmem:[%s2503_s8 + $0x80] ss:$8 sps:$4 sm:$0xff]   ;;  %s2770_s13 = smov (!%p689_p11, %s1794_s13), 23  ;;  %s1901_s18 = sshll.u32 (%p2217_p6), %s2142_s20, 3 }
  0x8b   : > { %718 = vadd.xlane.f32.xlu0 %v717_v1  ;;  %s691_s16 = scalar_lea.vmem %s2760_s4, %s2770_s13  ;;  %s1656_s29 = scalar_lea.vmem (%p2217_p6), %s2761_s5, %s1901_s18 }
  0x8c   : > { %1531 = vmatpush1.bf16.msra.mxu0 %v1978_v16 }
  0x8d   : > { %1488 = vmatpush1.bf16.msra.mxu1 %v1979_v17  ;;  %1532 = vmatprep.subr.bf16.mxu0 %v1980_v18  ;;  %v2010_v18 = vld [vmem:[%s2503_s8 + $0x194] ss:$8 sps:$4 sm:$0xff]  }
  0x8e   : > { %1489 = vmatprep.subr.bf16.mxu1 %v1982_v19  ;;  %v2012_v19 = vld [vmem:[%s2503_s8 + $0x94] ss:$8 sps:$4 sm:$0xff]  }
  0x90   : > { %1533 = vmatpush1.bf16.msra.mxu0 %v1984_v20  ;;  %v2014_v20 = vld [vmem:[%s2503_s8 + $0x190] ss:$8 sps:$4 sm:$0xff]  }
  0x91   : > { %1490 = vmatpush1.bf16.msra.mxu1 %v1985_v21  ;;  %1534 = vmatprep.subr.bf16.mxu0 %v1986_v22  ;;  %v2015_v21 = vld [vmem:[%s2503_s8 + $0x90] ss:$8 sps:$4 sm:$0xff]   ;;  %v2016_v22 = vld [vmem:[%s2503_s8 + $0x1a4] ss:$8 sps:$4 sm:$0xff]  }
  0x92   : > { %1491 = vmatprep.subr.bf16.mxu1 %v1988_v23  ;;  %v2018_v23 = vld [vmem:[%s2503_s8 + $0xa4] ss:$8 sps:$4 sm:$0xff]  }
  0x94   : > { %1535 = vmatpush1.bf16.msra.mxu0 %v1990_v24  ;;  %v2020_v24 = vld [vmem:[%s2503_s8 + $0x1a0] ss:$8 sps:$4 sm:$0xff]  }
  0x95   : > { %1492 = vmatpush1.bf16.msra.mxu1 %v1991_v25  ;;  %1536 = vmatprep.subr.bf16.mxu0 %v1992_v26  ;;  %v2021_v25 = vld [vmem:[%s2503_s8 + $0xa0] ss:$8 sps:$4 sm:$0xff]   ;;  %v2022_v26 = vld [vmem:[%s2503_s8 + $0x1b4] ss:$8 sps:$4 sm:$0xff]  }
  0x96   : > { %1493 = vmatprep.subr.bf16.mxu1 %v1994_v27  ;;  %v2024_v27 = vld [vmem:[%s2503_s8 + $0xb4] ss:$8 sps:$4 sm:$0xff]  }
  0x98   : > { %1537 = vmatpush1.bf16.msra.mxu0 %v1996_v28  ;;  %v2026_v28 = vld [vmem:[%s2503_s8 + $0x1b0] ss:$8 sps:$4 sm:$0xff]  }
  0x99   : > { %1494 = vmatpush1.bf16.msra.mxu1 %v1997_v29  ;;  %1538 = vmatprep.subr.bf16.mxu0 %v1998_v30  ;;  %v2027_v29 = vld [vmem:[%s2503_s8 + $0xb0] ss:$8 sps:$4 sm:$0xff]   ;;  %v2028_v30 = vld [vmem:[%s2503_s8 + $0x1c4] ss:$8 sps:$4 sm:$0xff]  }
  0x9a   : > { %1495 = vmatprep.subr.bf16.mxu1 %v2000_v31  ;;  %v2030_v31 = vld [vmem:[%s2503_s8 + $0xc4] ss:$8 sps:$4 sm:$0xff]  }
  0x9c   : > { %1539 = vmatpush1.bf16.msra.mxu0 %v2002_v43  ;;  %v2032_v43 = vld [vmem:[%s2503_s8 + $0x1c0] ss:$8 sps:$4 sm:$0xff]  }
  0x9d   : > { %1496 = vmatpush1.bf16.msra.mxu1 %v2003_v44  ;;  %1540 = vmatprep.subr.bf16.mxu0 %v2004_v45  ;;  %v2033_v44 = vld [vmem:[%s2503_s8 + $0xc0] ss:$8 sps:$4 sm:$0xff]   ;;  %v2034_v45 = vld [vmem:[%s2503_s8 + $0x1d4] ss:$8 sps:$4 sm:$0xff]  }
  0x9e   : > { %1497 = vmatprep.subr.bf16.mxu1 %v2006_v46  ;;  %v801_v46 = vlaneseq }
  0xa0   : > { %1541 = vmatpush1.bf16.msra.mxu0 %v2008_v49  ;;  %v2036_v49 = vld [vmem:[%s2503_s8 + $0xd4] ss:$8 sps:$4 sm:$0xff]  }
  0xa1   : > { %1498 = vmatpush1.bf16.msra.mxu1 %v2009_v52  ;;  %1542 = vmatprep.subr.bf16.mxu0 %v2010_v18  ;;  %v2637_v52 = vshrl.u32 %v801_v46, 7 }
  0xa2   : > { %1499 = vmatprep.subr.bf16.mxu1 %v2012_v19 }
  0xa4   : > { %1543 = vmatpush1.bf16.msra.mxu0 %v2014_v20 }
  0xa5   : > { %1500 = vmatpush1.bf16.msra.mxu1 %v2015_v21  ;;  %1544 = vmatprep.subr.bf16.mxu0 %v2016_v22 }
  0xa6   : > { %1501 = vmatprep.subr.bf16.mxu1 %v2018_v23 }
  0xa8   : > { %1545 = vmatpush1.bf16.msra.mxu0 %v2020_v24 }
  0xa9   : > { %1502 = vmatpush1.bf16.msra.mxu1 %v2021_v25  ;;  %1546 = vmatprep.subr.bf16.mxu0 %v2022_v26 }
  0xaa   : > { %1503 = vmatprep.subr.bf16.mxu1 %v2024_v27 }
  0xac   : > { %1547 = vmatpush1.bf16.msra.mxu0 %v2026_v28 }
  0xad   : > { %1504 = vmatpush1.bf16.msra.mxu1 %v2027_v29  ;;  %1548 = vmatprep.subr.bf16.mxu0 %v2028_v30 }
  0xae   : > { %1505 = vmatprep.subr.bf16.mxu1 %v2030_v31 }
  0xb0   : > { %1549 = vmatpush1.bf16.msra.mxu0 %v2032_v43 }
  0xb1   : > { %1506 = vmatpush1.bf16.msra.mxu1 %v2033_v44  ;;  %1550 = vmatprep.subr.bf16.mxu0 %v2034_v45 }
  0xb2   : > { %1507 = vmatprep.subr.bf16.mxu1 %v2036_v49 }
 0x114   : > { %v733_v54 = vpop.xlane.xlu0 %732 }
 0x115   : > { %v736_v55 = vmul.f32 0.0013020834, %v733_v54  ;;  %v2038_v54 = vld [vmem:[%s2503_s8 + $0x1d0] ss:$8 sps:$4 sm:$0xff]  }
 0x116   : > { %1551 = vmatpush1.bf16.msra.mxu0 %v2038_v54 }
 0x117   : > { %v2543_v56 = vsub.f32 %v707_v35, %v736_v55  ;;  %v2547_v58 = vsub.f32 %v708_v36, %v736_v55  ;;  %v2551_v59 = vsub.f32 %v709_v37, %v736_v55  ;;  %v2559_v35 = vsub.f32 %v710_v38, %v736_v55 }
 0x118   : > { %v719_v60 = vpop.xlane.xlu0 %718  ;;  %v2606_v9 = vsub.f32 %v712_v48, %v736_v55 }
 0x119   : > { %v735_v62 = vmul.f32 0.0013020834, %v719_v60  ;;  %v755_v63 = vmul.f32 %v2543_v56, %v2543_v56  ;;  %v756_v0 = vmul.f32 %v2547_v58, %v2547_v58  ;;  %v757_v1 = vmul.f32 %v2551_v59, %v2551_v59  ;;  %v2040_v60 = vld [vmem:[%s2503_s8 + $0x1e4] ss:$8 sps:$4 sm:$0xff]  }
 0x11a   : > { %v760_v48 = vmul.f32 %v2606_v9, %v2606_v9  ;;  %1552 = vmatprep.subr.bf16.mxu0 %v2040_v60 }
 0x11b   : > { %v2563_v32 = vsub.f32 %v701_v41, %v735_v62  ;;  %v2567_v36 = vsub.f32 %v702_v47, %v735_v62  ;;  %v2571_v37 = vsub.f32 %v703_v51, %v735_v62  ;;  %v768_v2 = vsel %vm720_vm0, %v755_v63, 0.0  ;;  %v799_v63 = vld [vmem:[%s2757_s1] sm:$0x3f] }
 0x11c   : > { %v769_v33 = vsel %vm720_vm0, %v756_v0, 0.0  ;;  %v2579_v38 = vsub.f32 %v704_v53, %v735_v62  ;;  %v2587_v47 = vsub.f32 %v711_v42, %v736_v55  ;;  %v758_v51 = vmul.f32 %v2559_v35, %v2559_v35  ;;  %v2039_v55 = vld [vmem:[%s2503_s8 + $0xd0] ss:$8 sps:$4 sm:$0xff]  }
 0x11d   : > { %v749_v39 = vmul.f32 %v2563_v32, %v2563_v32  ;;  %v750_v41 = vmul.f32 %v2567_v36, %v2567_v36  ;;  %v770_v3 = vadd.f32 %v769_v33, %v768_v2  ;;  %v2593_v4 = vsub.f32 %v705_v57, %v735_v62  ;;  %v843_v2 = vld [vmem:[%s2758_s2] sm:$0x3f]  ;;  %1508 = vmatpush1.bf16.msra.mxu1 %v2039_v55 }
 0x11e   : > { %v751_v40 = vmul.f32 %v2571_v37, %v2571_v37  ;;  %v771_v5 = vsel %vm720_vm0, %v757_v1, 0.0  ;;  %v2600_v7 = vsub.f32 %v706_v61, %v735_v62  ;;  %v752_v42 = vmul.f32 %v2579_v38, %v2579_v38  ;;  %v2042_v62 = vld [vmem:[%s2503_s8 + $0xe4] ss:$8 sps:$4 sm:$0xff]   ;;  %v2044_v1 = vld [vmem:[%s2503_s8 + $0x1e0] ss:$8 sps:$4 sm:$0xff]  }
 0x11f   : > { %v761_v53 = vadd.f32 %v750_v41, %v749_v39  ;;  %v772_v6 = vadd.f32 %v771_v5, %v770_v3  ;;  %v759_v57 = vmul.f32 %v2587_v47, %v2587_v47  ;;  %v773_v10 = vsel %vm720_vm0, %v758_v51, 0.0  ;;  %v2045_v39 = vld [vmem:[%s2503_s8 + $0xe0] ss:$8 sps:$4 sm:$0xff]   ;;  %v2046_v41 = vld [vmem:[%s2503_s8 + $0x1f4] ss:$8 sps:$4 sm:$0xff]   ;;  %1509 = vmatprep.subr.bf16.mxu1 %v2042_v62  ;;  %1553 = vmatpush1.bf16.msra.mxu0 %v2044_v1 }
 0x120   : > { %v753_v50 = vmul.f32 %v2593_v4, %v2593_v4  ;;  %v754_v12 = vmul.f32 %v2600_v7, %v2600_v7  ;;  %v777_v16 = vsel %vm720_vm0, %v760_v48, 0.0  ;;  %v819_v0 = vsub.s32 4, %v2637_v52  ;;  %v2048_v51 = vld [vmem:[%s2503_s8 + $0xf4] ss:$8 sps:$4 sm:$0xff]   ;;  %1554 = vmatprep.subr.bf16.mxu0 %v2046_v41  ;;  %v2054_v5 = vld [vmem:[%s2503_s8 + $0x204] ss:$8 sps:$4 sm:$0xff]  }
 0x121   : > { %v762_v8 = vadd.f32 %v761_v53, %v751_v40  ;;  %v774_v11 = vadd.f32 %v773_v10, %v772_v6  ;;  %v775_v13 = vsel %vm720_vm0, %v759_v57, 0.0  ;;  %v2050_v40 = vld [vmem:[%s2503_s8 + $0x1f0] ss:$8 sps:$4 sm:$0xff]   ;;  %1510 = vmatpush1.bf16.msra.mxu1 %v2045_v39  ;;  %v823_v48 = vsub.s32 5, %v2637_v52 }
 0x122   : > { %v2651_v33 = vrot.slane %v799_v63, %v819_v0  ;;  %v2656_v3 = vrot.slane %v843_v2, %v819_v0  ;;  %v2051_v53 = vld [vmem:[%s2503_s8 + $0xf0] ss:$8 sps:$4 sm:$0xff]   ;;  %1511 = vmatprep.subr.bf16.mxu1 %v2048_v51 }
 0x123   : > { %v763_v61 = vadd.f32 %v762_v8, %v752_v42  ;;  %v776_v15 = vadd.f32 %v775_v13, %v774_v11  ;;  %1555 = vmatpush1.bf16.msra.mxu0 %v2050_v40  ;;  %v815_v11 = vsub.s32 3, %v2637_v52  ;;  %v824_v24 = vrot.slane %v799_v63, %v823_v48 }
 0x124   : > { %1567 = vmatprep.subr.bf16.mxu0 %v2054_v5  ;;  %v868_v31 = vrot.slane %v843_v2, %v823_v48  ;;  %v2066_v48 = vld [vmem:[%s2503_s8 + $0x244] ss:$8 sps:$4 sm:$0xff]  }
 0x125   : > { %v764_v34 = vadd.f32 %v763_v61, %v753_v50  ;;  %v778_v17 = vadd.f32 %v777_v16, %v776_v15  ;;  %1512 = vmatpush1.bf16.msra.mxu1 %v2051_v53  ;;  %v2662_v61 = vsub.s32 1, %v2637_v52  ;;  %v860_v28 = vrot.slane %v843_v2, %v815_v11 }
 0x127   : > { %v765_v14 = vadd.f32 %v764_v34, %v754_v12  ;;  %v2666_v12 = vsub.s32 0, %v2637_v52  ;;  %v811_v34 = vsub.s32 2, %v2637_v52  ;;  %v808_v13 = vrot.slane %v799_v63, %v2662_v61 }
 0x128   : > { %v852_v22 = vrot.slane %v843_v2, %v2662_v61 }
 0x129   : > { %766 = vadd.xlane.f32.xlu1 %v765_v14  ;;  %v816_v14 = vrot.slane %v799_v63, %v815_v11  ;;  %v804_v16 = vrot.slane %v799_v63, %v2666_v12  ;;  %v848_v30 = vrot.slane %v843_v2, %v2666_v12  ;;  %v2063_v11 = vld [vmem:[%s2503_s8 + $0x234] ss:$8 sps:$4 sm:$0xff]  }
 0x12d   : > { %779 = vadd.xlane.f32.xlu1 %v778_v17  ;;  %v812_v17 = vrot.slane %v799_v63, %v811_v34 }
 0x1b6   : > { %v767_v6 = vpop.xlane.xlu1 %766 }
 0x1b7   : > { %v781_v42 = vmul.f32 0.0013020834, %v767_v6 }
 0x1b9   : > { %v783_v8 = vadd.f32 1e-06, %v781_v42  ;;  %v2057_v42 = vld [vmem:[%s2503_s8 + $0x214] ss:$8 sps:$4 sm:$0xff]  }
 0x1ba   : > { %v780_v57 = vpop.xlane.xlu1 %779 }
 0x1bb   : > { %2100 = vrsqrt.f32 %v783_v8  ;;  %v782_v10 = vmul.f32 0.0013020834, %v780_v57 }
 0x1bd   : > { %v784_v50 = vadd.f32 1e-06, %v782_v10  ;;  %v2055_v10 = vld [vmem:[%s2503_s8 + $0x210] ss:$8 sps:$4 sm:$0xff]  }
 0x1bf   : > { %2102 = vrsqrt.f32 %v784_v50  ;;  %v2060_v50 = vld [vmem:[%s2503_s8 + $0x224] ss:$8 sps:$4 sm:$0xff]  }
 0x1c5   : > { %v2101_v15 = vpop.eup %2100 }
 0x1c6   : > { %v788_v18 = vmul.f32 %v2101_v15, %v2567_v36  ;;  %v790_v19 = vmul.f32 %v2101_v15, %v2579_v38  ;;  %v787_v20 = vmul.f32 %v2101_v15, %v2563_v32  ;;  %v789_v21 = vmul.f32 %v2101_v15, %v2571_v37 }
 0x1c7   : > { %v792_v23 = vmul.f32 %v2101_v15, %v2600_v7  ;;  %v791_v25 = vmul.f32 %v2101_v15, %v2593_v4  ;;  %v856_v36 = vrot.slane %v843_v2, %v811_v34  ;;  %v2061_v34 = vld [vmem:[%s2503_s8 + $0x230] ss:$8 sps:$4 sm:$0xff]  }
 0x1c8   : > { %v832_v26 = vmul.f32 %v808_v13, %v788_v18  ;;  %v834_v27 = vmul.f32 %v816_v14, %v790_v19  ;;  %v831_v43 = vmul.f32 %v804_v16, %v787_v20  ;;  %v833_v44 = vmul.f32 %v812_v17, %v789_v21  ;;  %v2067_v15 = vld [vmem:[%s2503_s8 + $0x250] ss:$8 sps:$4 sm:$0xff]   ;;  %v2075_v18 = vld [vmem:[%s2503_s8 + $0x274] ss:$8 sps:$4 sm:$0xff]   ;;  %v2078_v20 = vld [vmem:[%s2503_s8 + $0x284] ss:$8 sps:$4 sm:$0xff]  }
 0x1c9   : > { %v2103_v29 = vpop.eup %2102  ;;  %v835_v38 = vmul.f32 %v2651_v33, %v791_v25  ;;  %v836_v46 = vmul.f32 %v824_v24, %v792_v23  ;;  %v2073_v19 = vld [vmem:[%s2503_s8 + $0x270] ss:$8 sps:$4 sm:$0xff]   ;;  %v2076_v21 = vld [vmem:[%s2503_s8 + $0x280] ss:$8 sps:$4 sm:$0xff]  }
 0x1ca   : > { %v794_v32 = vmul.f32 %v2103_v29, %v2547_v58  ;;  %v796_v37 = vmul.f32 %v2103_v29, %v2559_v35  ;;  %v876_v7 = vadd.f32 %v852_v22, %v832_v26  ;;  %v793_v45 = vmul.f32 %v2103_v29, %v2543_v56  ;;  %v2079_v23 = vld [vmem:[%s2503_s8 + $0x290] ss:$8 sps:$4 sm:$0xff]   ;;  %v2082_v25 = vld [vmem:[%s2503_s8 + $0x2a0] ss:$8 sps:$4 sm:$0xff]   ;;  %v2087_v26 = vld [vmem:[%s2503_s8 + $0x2b4] ss:$8 sps:$4 sm:$0xff]  }
 0x1cb   : > { %v795_v4 = vmul.f32 %v2103_v29, %v2551_v59  ;;  %v878_v54 = vadd.f32 %v860_v28, %v834_v27  ;;  %v798_v55 = vmul.f32 %v2103_v29, %v2606_v9  ;;  %v797_v58 = vmul.f32 %v2103_v29, %v2587_v47  ;;  %v2052_v9 = vld [vmem:[%s2503_s8 + $0x200] ss:$8 sps:$4 sm:$0xff]   ;;  %v2085_v27 = vld [vmem:[%s2503_s8 + $0x2b0] ss:$8 sps:$4 sm:$0xff]  }
 0x1cc   : > { %v838_v49 = vmul.f32 %v808_v13, %v794_v32  ;;  %v840_v52 = vmul.f32 %v816_v14, %v796_v37  ;;  %v837_v60 = vmul.f32 %v804_v16, %v793_v45  ;;  %v2688_v35 = vadd.f32 %v2656_v3, %v835_v38  ;;  %v2064_v13 = vld [vmem:[%s2503_s8 + $0x240] ss:$8 sps:$4 sm:$0xff]   ;;  %v2069_v14 = vld [vmem:[%s2503_s8 + $0x254] ss:$8 sps:$4 sm:$0xff]   ;;  %v2072_v16 = vld [vmem:[%s2503_s8 + $0x264] ss:$8 sps:$4 sm:$0xff]  }
 0x1cd   : > { %v839_v62 = vmul.f32 %v812_v17, %v795_v4  ;;  %v875_v56 = vadd.f32 %v848_v30, %v831_v43  ;;  %v842_v1 = vmul.f32 %v824_v24, %v798_v55  ;;  %v877_v2 = vadd.f32 %v856_v36, %v833_v44  ;;  %v2070_v17 = vld [vmem:[%s2503_s8 + $0x260] ss:$8 sps:$4 sm:$0xff]   ;;  %v2084_v24 = vld [vmem:[%s2503_s8 + $0x2a4] ss:$8 sps:$4 sm:$0xff]   ;;  %v2099_v32 = vld [vmem:[%s2503_s8 + $0x2f4] ss:$8 sps:$4 sm:$0xff]  }
 0x1ce   : > { %v882_v63 = vadd.f32 %v852_v22, %v838_v49  ;;  %v884_v0 = vadd.f32 %v860_v28, %v840_v52  ;;  %v881_v59 = vadd.f32 %v848_v30, %v837_v60  ;;  %v841_v41 = vmul.f32 %v2651_v33, %v797_v58  ;;  %v2081_v22 = vld [vmem:[%s2503_s8 + $0x294] ss:$8 sps:$4 sm:$0xff]   ;;  %v2090_v28 = vld [vmem:[%s2503_s8 + $0x2c4] ss:$8 sps:$4 sm:$0xff]   ;;  %v2088_v29 = vld [vmem:[%s2503_s8 + $0x2c0] ss:$8 sps:$4 sm:$0xff]  }
 0x1cf   : > { %v883_v39 = vadd.f32 %v856_v36, %v839_v62  ;;  %v880_v53 = vadd.f32 %v868_v31, %v836_v46  ;;  %v886_v47 = vadd.f32 %v868_v31, %v842_v1  ;;  %v2093_v30 = vld [vmem:[%s2503_s8 + $0x2d4] ss:$8 sps:$4 sm:$0xff]   ;;  %v2091_v36 = vld [vmem:[%s2503_s8 + $0x2d0] ss:$8 sps:$4 sm:$0xff]   ;;  %v2096_v31 = vld [vmem:[%s2503_s8 + $0x2e4] ss:$8 sps:$4 sm:$0xff]  }
 0x1d0   : > { %v888_v51 = vpack.c.bf16 %v882_v63, %v876_v7  ;;  %v890_v40 = vpack.c.bf16 %v884_v0, %v878_v54  ;;  %v887_v5 = vpack.c.bf16 %v881_v59, %v875_v56  ;;  %v2694_v8 = vadd.f32 %v2656_v3, %v841_v41  ;;  %v2058_v3 = vld [vmem:[%s2503_s8 + $0x220] ss:$8 sps:$4 sm:$0xff]   ;;  %v2097_v37 = vld [vmem:[%s2503_s8 + $0x2f0] ss:$8 sps:$4 sm:$0xff]  }
 0x1d1   : > { %v889_v6 = vpack.c.bf16 %v883_v39, %v877_v2  ;;  %v892_v57 = vpack.c.bf16 %v886_v47, %v880_v53  ;;  %v2094_v38 = vld [vmem:[%s2503_s8 + $0x2e0] ss:$8 sps:$4 sm:$0xff]   ;;  %v989_v4 = vld [vmem:[%s691_s16] sm:$0x3] }
 0x1d2   : > { %1513 = vmatprep.mubr.bf16.mxu1 %v888_v51  ;;  %1556 = vmatprep.mubr.bf16.mxu0 %v890_v40  ;;  %v891_v33 = vpack.c.bf16 %v2694_v8, %v2688_v35  ;;  %v994_v46 = vrot.slane %v989_v4, %v2666_v12  ;;  %v998_v49 = vrot.slane %v989_v4, %v2662_v61 }
 0x1d3   : > { %1514 = vmatmul.mubr.bf16.vlgmr.msra.gmra.mrb[0].mxu1 %v887_v5  ;;  %1557 = vmatmul.mubr.bf16.vlgmr.msra.gmra.mrb[0].mxu0 %v889_v6 }
 0x1d4   : > { %1568 = vmatpush1.bf16.msra.mxu0 %v2052_v9  ;;  %1599 = vmatprep.mubr.bf16.mxu0 %v892_v57 }
 0x1d5   : > { %1569 = vmatprep.subr.bf16.mxu0 %v2057_v42 }
 0x1d8   : > { %1570 = vmatpush1.bf16.msra.mxu0 %v2055_v10 }
 0x1d9   : > { %1571 = vmatprep.subr.bf16.mxu0 %v2060_v50 }
 0x1dc   : > { %1572 = vmatpush1.bf16.msra.mxu0 %v2058_v3 }
 0x1dd   : > { %1573 = vmatprep.subr.bf16.mxu0 %v2063_v11 }
 0x1e0   : > { %1574 = vmatpush1.bf16.msra.mxu0 %v2061_v34 }
 0x1e1   : > { %1575 = vmatprep.subr.bf16.mxu0 %v2066_v48 }
 0x1e4   : > { %1576 = vmatpush1.bf16.msra.mxu0 %v2064_v13 }
 0x1e5   : > { %1577 = vmatprep.subr.bf16.mxu0 %v2069_v14 }
 0x1e8   : > { %1578 = vmatpush1.bf16.msra.mxu0 %v2067_v15 }
 0x1e9   : > { %1579 = vmatprep.subr.bf16.mxu0 %v2072_v16 }
 0x1ec   : > { %1580 = vmatpush1.bf16.msra.mxu0 %v2070_v17 }
 0x1ed   : > { %1581 = vmatprep.subr.bf16.mxu0 %v2075_v18 }
 0x1f0   : > { %1582 = vmatpush1.bf16.msra.mxu0 %v2073_v19 }
 0x1f1   : > { %1583 = vmatprep.subr.bf16.mxu0 %v2078_v20 }
 0x1f4   : > { %1584 = vmatpush1.bf16.msra.mxu0 %v2076_v21 }
 0x1f5   : > { %1585 = vmatprep.subr.bf16.mxu0 %v2081_v22 }
 0x1f8   : > { %1586 = vmatpush1.bf16.msra.mxu0 %v2079_v23 }
 0x1f9   : > { %1587 = vmatprep.subr.bf16.mxu0 %v2084_v24 }
 0x1fc   : > { %1588 = vmatpush1.bf16.msra.mxu0 %v2082_v25 }
 0x1fd   : > { %1589 = vmatprep.subr.bf16.mxu0 %v2087_v26 }
 0x200   : > { %1590 = vmatpush1.bf16.msra.mxu0 %v2085_v27 }
 0x201   : > { %1591 = vmatprep.subr.bf16.mxu0 %v2090_v28 }
 0x204   : > { %1592 = vmatpush1.bf16.msra.mxu0 %v2088_v29 }
 0x205   : > { %1593 = vmatprep.subr.bf16.mxu0 %v2093_v30 }
 0x208   : > { %1594 = vmatpush1.bf16.msra.mxu0 %v2091_v36 }
 0x209   : > { %1595 = vmatprep.subr.bf16.mxu0 %v2096_v31 }
 0x20c   : > { %1596 = vmatpush1.bf16.msra.mxu0 %v2094_v38 }
 0x20d   : > { %1597 = vmatprep.subr.bf16.mxu0 %v2099_v32 }
 0x210   : > { %1598 = vmatpush1.bf16.msra.mxu0 %v2097_v37 }
 0x213   : > { %1600 = vmatmul.mubr.bf16.vlgmr.msra.gmra.mrb[0].mxu0 %v891_v33 }
 0x2a6   : > { %v1515_v43 = vpop.f32.mrb[0].mxu1 }
 0x2a7   : > { %v1517_v44 = vpop.f32.mrb[1].mxu1  ;;  %v1516_v52 = vadd.f32 %v1515_v43, %v994_v46 }
 0x2a8   : > { %v1519_v7 = vpop.f32.mrb[2].mxu1  ;;  %v1518_v54 = vadd.f32 %v1517_v44, %v998_v49 }
 0x2a9   : > { %v1521_v45 = vpop.f32.mrb[3].mxu1  ;;  %v1520_v60 = vadd.f32 %v1519_v7, %v994_v46 }
 0x2aa   : > { %v1522_v35 = vadd.f32 %v1521_v45, %v998_v49 }
 0x2e6   : > { %v1601_v55 = vpop.f32.mrb[0].mxu0 }
 0x2e7   : > { %v1903_v62 = vadd.f32 %v1601_v55, %v1516_v52  ;;  %v1603_v58 = vpop.f32.mrb[1].mxu0 }
 0x2e8   : > { %v1905_v63 = vadd.f32 %v1603_v58, %v1518_v54  ;;  %v1605_v0 = vpop.f32.mrb[2].mxu0 }
 0x2e9   : > { %v1614_v56 = vmul.f32 0.70710677, %v1903_v62  ;;  %v1907_v1 = vadd.f32 %v1605_v0, %v1520_v60  ;;  %v1607_v59 = vpop.f32.mrb[3].mxu0  ;;  %v1610_v40 = vmul.f32 0.5, %v1903_v62 }
 0x2ea   : > { %v1615_v2 = vmul.f32 0.70710677, %v1905_v63  ;;  %v1909_v39 = vadd.f32 %v1607_v59, %v1522_v35  ;;  %v1611_v47 = vmul.f32 0.5, %v1905_v63 }
 0x2eb   : > { %2104 = verf.f32 %v1614_v56  ;;  %v1616_v41 = vmul.f32 0.70710677, %v1907_v1  ;;  %v1612_v8 = vmul.f32 0.5, %v1907_v1 }
 0x2ec   : > { %2106 = verf.f32 %v1615_v2  ;;  %v1617_v12 = vmul.f32 0.70710677, %v1909_v39  ;;  %v1613_v10 = vmul.f32 0.5, %v1909_v39 }
 0x2ed   : > { %2108 = verf.f32 %v1616_v41 }
 0x2ee   : > { %2110 = verf.f32 %v1617_v12 }
 0x2f5   : > { %v2105_v61 = vpop.eup %2104 }
 0x2f6   : > { %v2107_v51 = vpop.eup %2106  ;;  %v1622_v9 = vadd.f32 1.0, %v2105_v61 }
 0x2f7   : > { %v2109_v53 = vpop.eup %2108  ;;  %v1623_v5 = vadd.f32 1.0, %v2107_v51 }
 0x2f8   : > { %v2111_v6 = vpop.eup %2110  ;;  %v1626_v42 = vmul.f32 %v1622_v9, %v1610_v40  ;;  %v1624_v57 = vadd.f32 1.0, %v2109_v53 }
 0x2f9   : > { %v1627_v33 = vmul.f32 %v1623_v5, %v1611_v47  ;;  %v1625_v50 = vadd.f32 1.0, %v2111_v6  ;;  %1650 = sbr.rel (!%p2217_p6) target bundleno = 776 (0x308), region = 82 }
 0x2fa   : > { %v1628_v3 = vmul.f32 %v1624_v57, %v1612_v8 }
 0x2fb   : > { %v1899_v11 = vpack.c.bf16 %v1627_v33, %v1626_v42  ;;  %v1629_v34 = vmul.f32 %v1625_v50, %v1613_v10 }
 0x2fd   : > { %1642 = vst [vmem:[%s679_s24] sm:$0xff] %v1899_v11  ;;  %v1900_v48 = vpack.c.bf16 %v1629_v34, %v1628_v3 }
 0x2ff   : > { %1643 = vst [vmem:[%s679_s24 + $0x8] sm:$0x11] %v1900_v48 }
 0x304   : > { %v1686_v13 = vld [vmem:[%s679_s24] sm:$0xff] }
 0x305   : > { %1687 = vst [vmem:[%s1656_s29] sm:$0xff] %v1686_v13 }
 0x306   : > { %v1688_v14 = vld [vmem:[%s679_s24 + $0x8] sm:$0xff] }
 0x307   : > { %1689 = vst [vmem:[%s1656_s29 + $0x60] sm:$0xff] %v1688_v14 }
 0x308 PF: > { %s15_s22 = sadd.s32 1, %s2150_s22   ;;  %s2763_s18 = smov %s2138_s19 }
 0x309   : > { %p12_p12 = scmp.ge.s32.totalorder %s15_s22, 14   ;;  %s2764_s19 = smov %s2222_s28 }
 0x30a   : > { %s2765_s20 = smov %s2146_s21  ;;  %s2766_s21 = smov %s2768_s23 }
 0x30b   :  { %14 = sbr.rel (!%p12_p12) target bundleno = 3 (0x3), region = 157 }

// kernel: closed_call.20
= control target key start
LH: loop header
LB: loop body
LE: loop exit
PB: predicated region body
PF: predicated region fallthrough
CT: control target
= control target key end

     0   :  { %s6213_s15 = smov 0   ;;  %s6215_s16 = smov 0   ;;  %s7642_s0 = inlined_call_operand.vmem [shape: bf16[10,3072], index: 0, kind: input, shape index: {}]   ;;  %s7643_s1 = inlined_call_operand.vmem [shape: bf16[3072,768], index: 1, kind: input, shape index: {}]   ;;  %s7644_s2 = inlined_call_operand.vmem [shape: f32[1,768], index: 2, kind: input, shape index: {}]   ;;  %s7645_s3 = inlined_call_operand.vmem [shape: bf16[10,768], index: 3, kind: input, shape index: {}, may-alias: {3,4}]   ;;  %s7646_s4 = inlined_call_operand.vmem [shape: bf16[10,768], index: 4, kind: output, shape index: {}, may-alias: {3,4}]  }
   0x1   :  { %s6217_s17 = smov 0   ;;  %s6219_s18 = smov 0  }
   0x2   :  { %s6221_s19 = smov 0  }
   0x3 LB: > { %s23_s20 = sadd.s32 1, %s6182_s18  ;;  %s5048_s21 = sadd.s32 4294967295, %s6186_s19   ;;  %s6186_s19 = sphi %s6221_s19, %s14_s19   ;;  %s6182_s18 = sphi %s6219_s18, %s7652_s18   ;;  %s6178_s17 = sphi %s6217_s17, %s7651_s17   ;;  %s6174_s16 = sphi %s6215_s16, %s7650_s16   ;;  %s6170_s15 = sphi %s6213_s15, %s7649_s15  }
   0x4   : > { %p24_p0 = scmp.ge.s32.totalorder %s23_s20, 3  ;;  %p66_p1 = scmp.ne.s32.totalorder %s6174_s16, %s6170_s15 }
   0x5   : > { %p67_p2 = scmp.eq.s32.totalorder %s6186_s19, 0  ;;  %p152_p4 = scmp.eq.s32.totalorder %s5048_s21, 2 }
   0x6   : > { %s7654_s20 = smov (%p24_p0, %s23_s20), 0  ;;  %s59_s24 = sadd.s32 1, %s6174_s16 }
   0x7   : > { %p6245_p3 = por %p67_p2, %p66_p1  ;;  %s56_s23 = ssub.s32 %s6182_s18, %s7654_s20 }
   0x8   : > { %p57_p5 = scmp.eq.s32.totalorder %s56_s23, 0  ;;  %p6252_p6 = por %p152_p4, %p66_p1 }
   0x9   : > { %p5052_p7 = scmp.ge.s32.totalorder %s6186_s19, 3 }
   0xa   : > { %s6257_s26 = scalar_select %p57_p5, %s6174_s16, %s59_s24  }
   0xb   : > { %184 = sbr.rel (%p5052_p7) target bundleno = 222 (0xde), region = 20 }
  0x12   : > { %187 = sbr.rel (!%p6245_p3) target bundleno = 215 (0xd7), region = 24  ;;  %s189_s27 = sand.u32 (%p6245_p3), 1, %s6174_s16  }
  0x13   : > { %s5477_s28 = sshll.u32 (%p6245_p3), %s6182_s18, 3  ;;  %s5530_s29 = smul.u32 (%p6245_p3), 3072, %s189_s27 }
  0x14   : > { %s6267_s6 = scalar_lea.vmem (%p6245_p3), %s7643_s1, %s5477_s28 }
  0x15   : > { %v988_v0 = vld [vmem:[%s6267_s6] sm:$0xff] (%p6245_p3)  ;;  %v990_v1 = vld [vmem:[%s6267_s6 + $0x18] sm:$0xff] (%p6245_p3)  ;;  %v992_v2 = vld [vmem:[%s6267_s6 + $0x30] sm:$0xff] (%p6245_p3)  ;;  %s6275_s7 = scalar_lea.vmem (%p6245_p3), [#allocation2], %s5530_s29 }
  0x16   : > { %v994_v3 = vld [vmem:[%s6267_s6 + $0x48] sm:$0xff] (%p6245_p3)  ;;  %v996_v4 = vld [vmem:[%s6267_s6 + $0x60] sm:$0xff] (%p6245_p3)  ;;  %v998_v5 = vld [vmem:[%s6267_s6 + $0x78] sm:$0xff] (%p6245_p3)  ;;  %989 = vst [vmem:[%s6275_s7] sm:$0xff] (%p6245_p3), %v988_v0 }
  0x17   : > { %991 = vst [vmem:[%s6275_s7 + $0x8] sm:$0xff] (%p6245_p3), %v990_v1  ;;  %993 = vst [vmem:[%s6275_s7 + $0x10] sm:$0xff] (%p6245_p3), %v992_v2  ;;  %v1000_v6 = vld [vmem:[%s6267_s6 + $0x90] sm:$0xff] (%p6245_p3)  ;;  %v1002_v7 = vld [vmem:[%s6267_s6 + $0xa8] sm:$0xff] (%p6245_p3) }
  0x18   : > { %995 = vst [vmem:[%s6275_s7 + $0x18] sm:$0xff] (%p6245_p3), %v994_v3  ;;  %997 = vst [vmem:[%s6275_s7 + $0x20] sm:$0xff] (%p6245_p3), %v996_v4  ;;  %v1004_v8 = vld [vmem:[%s6267_s6 + $0xc0] sm:$0xff] (%p6245_p3)  ;;  %v1006_v9 = vld [vmem:[%s6267_s6 + $0xd8] sm:$0xff] (%p6245_p3) }
  0x19   : > { %999 = vst [vmem:[%s6275_s7 + $0x28] sm:$0xff] %v998_v5  ;;  %1001 = vst [vmem:[%s6275_s7 + $0x30] sm:$0xff] %v1000_v6  ;;  %v1008_v10 = vld [vmem:[%s6267_s6 + $0xf0] sm:$0xff]  ;;  %v1010_v11 = vld [vmem:[%s6267_s6 + $0x108] sm:$0xff] }
  0x1a   : > { %1003 = vst [vmem:[%s6275_s7 + $0x38] sm:$0xff] %v1002_v7  ;;  %1005 = vst [vmem:[%s6275_s7 + $0x40] sm:$0xff] %v1004_v8  ;;  %v1012_v12 = vld [vmem:[%s6267_s6 + $0x120] sm:$0xff]  ;;  %v1014_v13 = vld [vmem:[%s6267_s6 + $0x138] sm:$0xff] }
  0x1b   : > { %1007 = vst [vmem:[%s6275_s7 + $0x48] sm:$0xff] %v1006_v9  ;;  %1009 = vst [vmem:[%s6275_s7 + $0x50] sm:$0xff] %v1008_v10  ;;  %v1016_v14 = vld [vmem:[%s6267_s6 + $0x150] sm:$0xff]  ;;  %v1018_v15 = vld [vmem:[%s6267_s6 + $0x168] sm:$0xff] }
  0x1c   : > { %1011 = vst [vmem:[%s6275_s7 + $0x58] sm:$0xff] %v1010_v11  ;;  %1013 = vst [vmem:[%s6275_s7 + $0x60] sm:$0xff] %v1012_v12  ;;  %v1020_v16 = vld [vmem:[%s6267_s6 + $0x180] sm:$0xff]  ;;  %v1022_v17 = vld [vmem:[%s6267_s6 + $0x198] sm:$0xff] }
  0x1d   : > { %1015 = vst [vmem:[%s6275_s7 + $0x68] sm:$0xff] %v1014_v13  ;;  %1017 = vst [vmem:[%s6275_s7 + $0x70] sm:$0xff] %v1016_v14  ;;  %v1024_v18 = vld [vmem:[%s6267_s6 + $0x1b0] sm:$0xff]  ;;  %v1026_v19 = vld [vmem:[%s6267_s6 + $0x1c8] sm:$0xff] }
  0x1e   : > { %1019 = vst [vmem:[%s6275_s7 + $0x78] sm:$0xff] %v1018_v15  ;;  %1021 = vst [vmem:[%s6275_s7 + $0x80] sm:$0xff] %v1020_v16  ;;  %v1028_v20 = vld [vmem:[%s6267_s6 + $0x1e0] sm:$0xff]  ;;  %v1030_v21 = vld [vmem:[%s6267_s6 + $0x1f8] sm:$0xff] }
  0x1f   : > { %1023 = vst [vmem:[%s6275_s7 + $0x88] sm:$0xff] %v1022_v17  ;;  %1025 = vst [vmem:[%s6275_s7 + $0x90] sm:$0xff] %v1024_v18  ;;  %v1032_v22 = vld [vmem:[%s6267_s6 + $0x210] sm:$0xff]  ;;  %v1034_v23 = vld [vmem:[%s6267_s6 + $0x228] sm:$0xff] }
  0x20   : > { %1027 = vst [vmem:[%s6275_s7 + $0x98] sm:$0xff] %v1026_v19  ;;  %1029 = vst [vmem:[%s6275_s7 + $0xa0] sm:$0xff] %v1028_v20  ;;  %v1036_v24 = vld [vmem:[%s6267_s6 + $0x240] sm:$0xff]  ;;  %v1038_v25 = vld [vmem:[%s6267_s6 + $0x258] sm:$0xff] }
  0x21   : > { %1031 = vst [vmem:[%s6275_s7 + $0xa8] sm:$0xff] %v1030_v21  ;;  %1033 = vst [vmem:[%s6275_s7 + $0xb0] sm:$0xff] %v1032_v22  ;;  %v1040_v26 = vld [vmem:[%s6267_s6 + $0x270] sm:$0xff]  ;;  %v1042_v27 = vld [vmem:[%s6267_s6 + $0x288] sm:$0xff] }
  0x22   : > { %1035 = vst [vmem:[%s6275_s7 + $0xb8] sm:$0xff] %v1034_v23  ;;  %1037 = vst [vmem:[%s6275_s7 + $0xc0] sm:$0xff] %v1036_v24  ;;  %v1044_v28 = vld [vmem:[%s6267_s6 + $0x2a0] sm:$0xff]  ;;  %v1046_v29 = vld [vmem:[%s6267_s6 + $0x2b8] sm:$0xff] }
  0x23   : > { %1039 = vst [vmem:[%s6275_s7 + $0xc8] sm:$0xff] %v1038_v25  ;;  %1041 = vst [vmem:[%s6275_s7 + $0xd0] sm:$0xff] %v1040_v26  ;;  %v1048_v30 = vld [vmem:[%s6267_s6 + $0x2d0] sm:$0xff]  ;;  %v1050_v31 = vld [vmem:[%s6267_s6 + $0x2e8] sm:$0xff] }
  0x24   : > { %1043 = vst [vmem:[%s6275_s7 + $0xd8] sm:$0xff] %v1042_v27  ;;  %1045 = vst [vmem:[%s6275_s7 + $0xe0] sm:$0xff] %v1044_v28  ;;  %v1052_v32 = vld [vmem:[%s6267_s6 + $0x300] sm:$0xff]  ;;  %v1054_v33 = vld [vmem:[%s6267_s6 + $0x318] sm:$0xff] }
  0x25   : > { %1047 = vst [vmem:[%s6275_s7 + $0xe8] sm:$0xff] %v1046_v29  ;;  %1049 = vst [vmem:[%s6275_s7 + $0xf0] sm:$0xff] %v1048_v30  ;;  %v1056_v34 = vld [vmem:[%s6267_s6 + $0x330] sm:$0xff]  ;;  %v1058_v35 = vld [vmem:[%s6267_s6 + $0x348] sm:$0xff] }
  0x26   : > { %1051 = vst [vmem:[%s6275_s7 + $0xf8] sm:$0xff] %v1050_v31  ;;  %1053 = vst [vmem:[%s6275_s7 + $0x100] sm:$0xff] %v1052_v32  ;;  %v1060_v36 = vld [vmem:[%s6267_s6 + $0x360] sm:$0xff]  ;;  %v1062_v37 = vld [vmem:[%s6267_s6 + $0x378] sm:$0xff] }
  0x27   : > { %1055 = vst [vmem:[%s6275_s7 + $0x108] sm:$0xff] %v1054_v33  ;;  %1057 = vst [vmem:[%s6275_s7 + $0x110] sm:$0xff] %v1056_v34  ;;  %v1064_v38 = vld [vmem:[%s6267_s6 + $0x390] sm:$0xff]  ;;  %v1066_v39 = vld [vmem:[%s6267_s6 + $0x3a8] sm:$0xff] }
  0x28   : > { %1059 = vst [vmem:[%s6275_s7 + $0x118] sm:$0xff] %v1058_v35  ;;  %1061 = vst [vmem:[%s6275_s7 + $0x120] sm:$0xff] %v1060_v36  ;;  %v1068_v40 = vld [vmem:[%s6267_s6 + $0x3c0] sm:$0xff]  ;;  %v1070_v41 = vld [vmem:[%s6267_s6 + $0x3d8] sm:$0xff] }
  0x29   : > { %1063 = vst [vmem:[%s6275_s7 + $0x128] sm:$0xff] %v1062_v37  ;;  %1065 = vst [vmem:[%s6275_s7 + $0x130] sm:$0xff] %v1064_v38  ;;  %v1072_v42 = vld [vmem:[%s6267_s6 + $0x3f0] sm:$0xff]  ;;  %v1074_v43 = vld [vmem:[%s6267_s6 + $0x408] sm:$0xff] }
  0x2a   : > { %1067 = vst [vmem:[%s6275_s7 + $0x138] sm:$0xff] %v1066_v39  ;;  %1069 = vst [vmem:[%s6275_s7 + $0x140] sm:$0xff] %v1068_v40  ;;  %v1076_v44 = vld [vmem:[%s6267_s6 + $0x420] sm:$0xff]  ;;  %v1078_v45 = vld [vmem:[%s6267_s6 + $0x438] sm:$0xff] }
  0x2b   : > { %1071 = vst [vmem:[%s6275_s7 + $0x148] sm:$0xff] %v1070_v41  ;;  %1073 = vst [vmem:[%s6275_s7 + $0x150] sm:$0xff] %v1072_v42  ;;  %v1080_v46 = vld [vmem:[%s6267_s6 + $0x450] sm:$0xff]  ;;  %v1082_v47 = vld [vmem:[%s6267_s6 + $0x468] sm:$0xff] }
  0x2c   : > { %1075 = vst [vmem:[%s6275_s7 + $0x158] sm:$0xff] %v1074_v43  ;;  %1077 = vst [vmem:[%s6275_s7 + $0x160] sm:$0xff] %v1076_v44  ;;  %v1084_v48 = vld [vmem:[%s6267_s6 + $0x480] sm:$0xff]  ;;  %v1086_v49 = vld [vmem:[%s6267_s6 + $0x498] sm:$0xff] }
  0x2d   : > { %1079 = vst [vmem:[%s6275_s7 + $0x168] sm:$0xff] %v1078_v45  ;;  %1081 = vst [vmem:[%s6275_s7 + $0x170] sm:$0xff] %v1080_v46  ;;  %v1088_v50 = vld [vmem:[%s6267_s6 + $0x4b0] sm:$0xff]  ;;  %v1090_v51 = vld [vmem:[%s6267_s6 + $0x4c8] sm:$0xff] }
  0x2e   : > { %1083 = vst [vmem:[%s6275_s7 + $0x178] sm:$0xff] %v1082_v47  ;;  %1085 = vst [vmem:[%s6275_s7 + $0x180] sm:$0xff] %v1084_v48  ;;  %v1092_v52 = vld [vmem:[%s6267_s6 + $0x4e0] sm:$0xff]  ;;  %v1094_v53 = vld [vmem:[%s6267_s6 + $0x4f8] sm:$0xff] }
  0x2f   : > { %1087 = vst [vmem:[%s6275_s7 + $0x188] sm:$0xff] %v1086_v49  ;;  %1089 = vst [vmem:[%s6275_s7 + $0x190] sm:$0xff] %v1088_v50  ;;  %v1096_v54 = vld [vmem:[%s6267_s6 + $0x510] sm:$0xff]  ;;  %v1098_v55 = vld [vmem:[%s6267_s6 + $0x528] sm:$0xff] }
  0x30   : > { %1091 = vst [vmem:[%s6275_s7 + $0x198] sm:$0xff] %v1090_v51  ;;  %1093 = vst [vmem:[%s6275_s7 + $0x1a0] sm:$0xff] %v1092_v52  ;;  %v1100_v56 = vld [vmem:[%s6267_s6 + $0x540] sm:$0xff]  ;;  %v1102_v57 = vld [vmem:[%s6267_s6 + $0x558] sm:$0xff] }
  0x31   : > { %1095 = vst [vmem:[%s6275_s7 + $0x1a8] sm:$0xff] %v1094_v53  ;;  %1097 = vst [vmem:[%s6275_s7 + $0x1b0] sm:$0xff] %v1096_v54  ;;  %v1104_v58 = vld [vmem:[%s6267_s6 + $0x570] sm:$0xff]  ;;  %v1106_v59 = vld [vmem:[%s6267_s6 + $0x588] sm:$0xff] }
  0x32   : > { %1099 = vst [vmem:[%s6275_s7 + $0x1b8] sm:$0xff] %v1098_v55  ;;  %1101 = vst [vmem:[%s6275_s7 + $0x1c0] sm:$0xff] %v1100_v56  ;;  %v1108_v60 = vld [vmem:[%s6267_s6 + $0x5a0] sm:$0xff]  ;;  %v1110_v61 = vld [vmem:[%s6267_s6 + $0x5b8] sm:$0xff] }
  0x33   : > { %1103 = vst [vmem:[%s6275_s7 + $0x1c8] sm:$0xff] %v1102_v57  ;;  %1105 = vst [vmem:[%s6275_s7 + $0x1d0] sm:$0xff] %v1104_v58  ;;  %v1112_v62 = vld [vmem:[%s6267_s6 + $0x5d0] sm:$0xff]  ;;  %v1114_v63 = vld [vmem:[%s6267_s6 + $0x5e8] sm:$0xff] }
  0x34   : > { %1107 = vst [vmem:[%s6275_s7 + $0x1d8] sm:$0xff] %v1106_v59  ;;  %1109 = vst [vmem:[%s6275_s7 + $0x1e0] sm:$0xff] %v1108_v60  ;;  %v1116_v0 = vld [vmem:[%s6267_s6 + $0x600] sm:$0xff]  ;;  %v1118_v1 = vld [vmem:[%s6267_s6 + $0x618] sm:$0xff] }
  0x35   : > { %1111 = vst [vmem:[%s6275_s7 + $0x1e8] sm:$0xff] %v1110_v61  ;;  %1113 = vst [vmem:[%s6275_s7 + $0x1f0] sm:$0xff] %v1112_v62  ;;  %v1120_v2 = vld [vmem:[%s6267_s6 + $0x630] sm:$0xff]  ;;  %v1122_v3 = vld [vmem:[%s6267_s6 + $0x648] sm:$0xff] }
  0x36   : > { %1115 = vst [vmem:[%s6275_s7 + $0x1f8] sm:$0xff] %v1114_v63  ;;  %1117 = vst [vmem:[%s6275_s7 + $0x200] sm:$0xff] %v1116_v0  ;;  %v1124_v4 = vld [vmem:[%s6267_s6 + $0x660] sm:$0xff]  ;;  %v1126_v5 = vld [vmem:[%s6267_s6 + $0x678] sm:$0xff] }
  0x37   : > { %1119 = vst [vmem:[%s6275_s7 + $0x208] sm:$0xff] %v1118_v1  ;;  %1121 = vst [vmem:[%s6275_s7 + $0x210] sm:$0xff] %v1120_v2  ;;  %v1128_v6 = vld [vmem:[%s6267_s6 + $0x690] sm:$0xff]  ;;  %v1130_v7 = vld [vmem:[%s6267_s6 + $0x6a8] sm:$0xff] }
  0x38   : > { %1123 = vst [vmem:[%s6275_s7 + $0x218] sm:$0xff] %v1122_v3  ;;  %1125 = vst [vmem:[%s6275_s7 + $0x220] sm:$0xff] %v1124_v4  ;;  %v1132_v8 = vld [vmem:[%s6267_s6 + $0x6c0] sm:$0xff]  ;;  %v1134_v9 = vld [vmem:[%s6267_s6 + $0x6d8] sm:$0xff] }
  0x39   : > { %1127 = vst [vmem:[%s6275_s7 + $0x228] sm:$0xff] %v1126_v5  ;;  %1129 = vst [vmem:[%s6275_s7 + $0x230] sm:$0xff] %v1128_v6  ;;  %v1136_v10 = vld [vmem:[%s6267_s6 + $0x6f0] sm:$0xff]  ;;  %v1138_v11 = vld [vmem:[%s6267_s6 + $0x708] sm:$0xff] }
  0x3a   : > { %1131 = vst [vmem:[%s6275_s7 + $0x238] sm:$0xff] %v1130_v7  ;;  %1133 = vst [vmem:[%s6275_s7 + $0x240] sm:$0xff] %v1132_v8  ;;  %v1140_v12 = vld [vmem:[%s6267_s6 + $0x720] sm:$0xff]  ;;  %v1142_v13 = vld [vmem:[%s6267_s6 + $0x738] sm:$0xff] }
  0x3b   : > { %1135 = vst [vmem:[%s6275_s7 + $0x248] sm:$0xff] %v1134_v9  ;;  %1137 = vst [vmem:[%s6275_s7 + $0x250] sm:$0xff] %v1136_v10  ;;  %v1144_v14 = vld [vmem:[%s6267_s6 + $0x750] sm:$0xff]  ;;  %v1146_v15 = vld [vmem:[%s6267_s6 + $0x768] sm:$0xff] }
  0x3c   : > { %1139 = vst [vmem:[%s6275_s7 + $0x258] sm:$0xff] %v1138_v11  ;;  %1141 = vst [vmem:[%s6275_s7 + $0x260] sm:$0xff] %v1140_v12  ;;  %v1148_v16 = vld [vmem:[%s6267_s6 + $0x780] sm:$0xff]  ;;  %v1150_v17 = vld [vmem:[%s6267_s6 + $0x798] sm:$0xff] }
  0x3d   : > { %1143 = vst [vmem:[%s6275_s7 + $0x268] sm:$0xff] %v1142_v13  ;;  %1145 = vst [vmem:[%s6275_s7 + $0x270] sm:$0xff] %v1144_v14  ;;  %v1152_v18 = vld [vmem:[%s6267_s6 + $0x7b0] sm:$0xff]  ;;  %v1154_v19 = vld [vmem:[%s6267_s6 + $0x7c8] sm:$0xff] }
  0x3e   : > { %1147 = vst [vmem:[%s6275_s7 + $0x278] sm:$0xff] %v1146_v15  ;;  %1149 = vst [vmem:[%s6275_s7 + $0x280] sm:$0xff] %v1148_v16  ;;  %v1156_v20 = vld [vmem:[%s6267_s6 + $0x7e0] sm:$0xff]  ;;  %v1158_v21 = vld [vmem:[%s6267_s6 + $0x7f8] sm:$0xff] }
  0x3f   : > { %1151 = vst [vmem:[%s6275_s7 + $0x288] sm:$0xff] %v1150_v17  ;;  %1153 = vst [vmem:[%s6275_s7 + $0x290] sm:$0xff] %v1152_v18  ;;  %v1160_v22 = vld [vmem:[%s6267_s6 + $0x810] sm:$0xff]  ;;  %v1162_v23 = vld [vmem:[%s6267_s6 + $0x828] sm:$0xff] }
  0x40   : > { %1155 = vst [vmem:[%s6275_s7 + $0x298] sm:$0xff] %v1154_v19  ;;  %1157 = vst [vmem:[%s6275_s7 + $0x2a0] sm:$0xff] %v1156_v20  ;;  %v1164_v24 = vld [vmem:[%s6267_s6 + $0x840] sm:$0xff]  ;;  %v1166_v25 = vld [vmem:[%s6267_s6 + $0x858] sm:$0xff] }
  0x41   : > { %1159 = vst [vmem:[%s6275_s7 + $0x2a8] sm:$0xff] %v1158_v21  ;;  %1161 = vst [vmem:[%s6275_s7 + $0x2b0] sm:$0xff] %v1160_v22  ;;  %v1168_v26 = vld [vmem:[%s6267_s6 + $0x870] sm:$0xff]  ;;  %v1170_v27 = vld [vmem:[%s6267_s6 + $0x888] sm:$0xff] }
  0x42   : > { %1163 = vst [vmem:[%s6275_s7 + $0x2b8] sm:$0xff] %v1162_v23  ;;  %1165 = vst [vmem:[%s6275_s7 + $0x2c0] sm:$0xff] %v1164_v24  ;;  %v1172_v28 = vld [vmem:[%s6267_s6 + $0x8a0] sm:$0xff]  ;;  %v1174_v29 = vld [vmem:[%s6267_s6 + $0x8b8] sm:$0xff] }
  0x43   : > { %1167 = vst [vmem:[%s6275_s7 + $0x2c8] sm:$0xff] %v1166_v25  ;;  %1169 = vst [vmem:[%s6275_s7 + $0x2d0] sm:$0xff] %v1168_v26  ;;  %v1176_v30 = vld [vmem:[%s6267_s6 + $0x8d0] sm:$0xff]  ;;  %v1178_v31 = vld [vmem:[%s6267_s6 + $0x8e8] sm:$0xff] }
  0x44   : > { %1171 = vst [vmem:[%s6275_s7 + $0x2d8] sm:$0xff] %v1170_v27  ;;  %1173 = vst [vmem:[%s6275_s7 + $0x2e0] sm:$0xff] %v1172_v28  ;;  %v1180_v32 = vld [vmem:[%s6267_s6 + $0x900] sm:$0xff]  ;;  %v1182_v33 = vld [vmem:[%s6267_s6 + $0x918] sm:$0xff] }
  0x45   : > { %1175 = vst [vmem:[%s6275_s7 + $0x2e8] sm:$0xff] %v1174_v29  ;;  %1177 = vst [vmem:[%s6275_s7 + $0x2f0] sm:$0xff] %v1176_v30  ;;  %v1184_v34 = vld [vmem:[%s6267_s6 + $0x930] sm:$0xff]  ;;  %v1186_v35 = vld [vmem:[%s6267_s6 + $0x948] sm:$0xff] }
  0x46   : > { %1179 = vst [vmem:[%s6275_s7 + $0x2f8] sm:$0xff] %v1178_v31  ;;  %1181 = vst [vmem:[%s6275_s7 + $0x300] sm:$0xff] %v1180_v32  ;;  %v1188_v36 = vld [vmem:[%s6267_s6 + $0x960] sm:$0xff]  ;;  %v1190_v37 = vld [vmem:[%s6267_s6 + $0x978] sm:$0xff] }
  0x47   : > { %1183 = vst [vmem:[%s6275_s7 + $0x308] sm:$0xff] %v1182_v33  ;;  %1185 = vst [vmem:[%s6275_s7 + $0x310] sm:$0xff] %v1184_v34  ;;  %v1192_v38 = vld [vmem:[%s6267_s6 + $0x990] sm:$0xff]  ;;  %v1194_v39 = vld [vmem:[%s6267_s6 + $0x9a8] sm:$0xff] }
  0x48   : > { %1187 = vst [vmem:[%s6275_s7 + $0x318] sm:$0xff] %v1186_v35  ;;  %1189 = vst [vmem:[%s6275_s7 + $0x320] sm:$0xff] %v1188_v36  ;;  %v1196_v40 = vld [vmem:[%s6267_s6 + $0x9c0] sm:$0xff]  ;;  %v1198_v41 = vld [vmem:[%s6267_s6 + $0x9d8] sm:$0xff] }
  0x49   : > { %1191 = vst [vmem:[%s6275_s7 + $0x328] sm:$0xff] %v1190_v37  ;;  %1193 = vst [vmem:[%s6275_s7 + $0x330] sm:$0xff] %v1192_v38  ;;  %v1200_v42 = vld [vmem:[%s6267_s6 + $0x9f0] sm:$0xff]  ;;  %v1202_v43 = vld [vmem:[%s6267_s6 + $0xa08] sm:$0xff] }
  0x4a   : > { %1195 = vst [vmem:[%s6275_s7 + $0x338] sm:$0xff] %v1194_v39  ;;  %1197 = vst [vmem:[%s6275_s7 + $0x340] sm:$0xff] %v1196_v40  ;;  %v1204_v44 = vld [vmem:[%s6267_s6 + $0xa20] sm:$0xff]  ;;  %v1206_v45 = vld [vmem:[%s6267_s6 + $0xa38] sm:$0xff] }
  0x4b   : > { %1199 = vst [vmem:[%s6275_s7 + $0x348] sm:$0xff] %v1198_v41  ;;  %1201 = vst [vmem:[%s6275_s7 + $0x350] sm:$0xff] %v1200_v42  ;;  %v1208_v46 = vld [vmem:[%s6267_s6 + $0xa50] sm:$0xff]  ;;  %v1210_v47 = vld [vmem:[%s6267_s6 + $0xa68] sm:$0xff] }
  0x4c   : > { %1203 = vst [vmem:[%s6275_s7 + $0x358] sm:$0xff] %v1202_v43  ;;  %1205 = vst [vmem:[%s6275_s7 + $0x360] sm:$0xff] %v1204_v44  ;;  %v1212_v48 = vld [vmem:[%s6267_s6 + $0xa80] sm:$0xff]  ;;  %v1214_v49 = vld [vmem:[%s6267_s6 + $0xa98] sm:$0xff] }
  0x4d   : > { %1207 = vst [vmem:[%s6275_s7 + $0x368] sm:$0xff] %v1206_v45  ;;  %1209 = vst [vmem:[%s6275_s7 + $0x370] sm:$0xff] %v1208_v46  ;;  %v1216_v50 = vld [vmem:[%s6267_s6 + $0xab0] sm:$0xff]  ;;  %v1218_v51 = vld [vmem:[%s6267_s6 + $0xac8] sm:$0xff] }
  0x4e   : > { %1211 = vst [vmem:[%s6275_s7 + $0x378] sm:$0xff] %v1210_v47  ;;  %1213 = vst [vmem:[%s6275_s7 + $0x380] sm:$0xff] %v1212_v48  ;;  %v1220_v52 = vld [vmem:[%s6267_s6 + $0xae0] sm:$0xff]  ;;  %v1222_v53 = vld [vmem:[%s6267_s6 + $0xaf8] sm:$0xff] }
  0x4f   : > { %1215 = vst [vmem:[%s6275_s7 + $0x388] sm:$0xff] %v1214_v49  ;;  %1217 = vst [vmem:[%s6275_s7 + $0x390] sm:$0xff] %v1216_v50  ;;  %v1224_v54 = vld [vmem:[%s6267_s6 + $0xb10] sm:$0xff]  ;;  %v1226_v55 = vld [vmem:[%s6267_s6 + $0xb28] sm:$0xff] }
  0x50   : > { %1219 = vst [vmem:[%s6275_s7 + $0x398] sm:$0xff] %v1218_v51  ;;  %1221 = vst [vmem:[%s6275_s7 + $0x3a0] sm:$0xff] %v1220_v52  ;;  %v1228_v56 = vld [vmem:[%s6267_s6 + $0xb40] sm:$0xff]  ;;  %v1230_v57 = vld [vmem:[%s6267_s6 + $0xb58] sm:$0xff] }
  0x51   : > { %1223 = vst [vmem:[%s6275_s7 + $0x3a8] sm:$0xff] %v1222_v53  ;;  %1225 = vst [vmem:[%s6275_s7 + $0x3b0] sm:$0xff] %v1224_v54  ;;  %v1232_v58 = vld [vmem:[%s6267_s6 + $0xb70] sm:$0xff]  ;;  %v1234_v59 = vld [vmem:[%s6267_s6 + $0xb88] sm:$0xff] }
  0x52   : > { %1227 = vst [vmem:[%s6275_s7 + $0x3b8] sm:$0xff] %v1226_v55  ;;  %1229 = vst [vmem:[%s6275_s7 + $0x3c0] sm:$0xff] %v1228_v56  ;;  %v1236_v60 = vld [vmem:[%s6267_s6 + $0xba0] sm:$0xff]  ;;  %v1238_v61 = vld [vmem:[%s6267_s6 + $0xbb8] sm:$0xff] }
  0x53   : > { %1231 = vst [vmem:[%s6275_s7 + $0x3c8] sm:$0xff] %v1230_v57  ;;  %1233 = vst [vmem:[%s6275_s7 + $0x3d0] sm:$0xff] %v1232_v58  ;;  %v1240_v62 = vld [vmem:[%s6267_s6 + $0xbd0] sm:$0xff]  ;;  %v1242_v63 = vld [vmem:[%s6267_s6 + $0xbe8] sm:$0xff] }
  0x54   : > { %1235 = vst [vmem:[%s6275_s7 + $0x3d8] sm:$0xff] %v1234_v59  ;;  %1237 = vst [vmem:[%s6275_s7 + $0x3e0] sm:$0xff] %v1236_v60  ;;  %v1244_v0 = vld [vmem:[%s6267_s6 + $0xc00] sm:$0xff]  ;;  %v1246_v1 = vld [vmem:[%s6267_s6 + $0xc18] sm:$0xff] }
  0x55   : > { %1239 = vst [vmem:[%s6275_s7 + $0x3e8] sm:$0xff] %v1238_v61  ;;  %1241 = vst [vmem:[%s6275_s7 + $0x3f0] sm:$0xff] %v1240_v62  ;;  %v1248_v2 = vld [vmem:[%s6267_s6 + $0xc30] sm:$0xff]  ;;  %v1250_v3 = vld [vmem:[%s6267_s6 + $0xc48] sm:$0xff] }
  0x56   : > { %1243 = vst [vmem:[%s6275_s7 + $0x3f8] sm:$0xff] %v1242_v63  ;;  %1245 = vst [vmem:[%s6275_s7 + $0x400] sm:$0xff] %v1244_v0  ;;  %v1252_v4 = vld [vmem:[%s6267_s6 + $0xc60] sm:$0xff]  ;;  %v1254_v5 = vld [vmem:[%s6267_s6 + $0xc78] sm:$0xff] }
  0x57   : > { %1247 = vst [vmem:[%s6275_s7 + $0x408] sm:$0xff] %v1246_v1  ;;  %1249 = vst [vmem:[%s6275_s7 + $0x410] sm:$0xff] %v1248_v2  ;;  %v1256_v6 = vld [vmem:[%s6267_s6 + $0xc90] sm:$0xff]  ;;  %v1258_v7 = vld [vmem:[%s6267_s6 + $0xca8] sm:$0xff] }
  0x58   : > { %1251 = vst [vmem:[%s6275_s7 + $0x418] sm:$0xff] %v1250_v3  ;;  %1253 = vst [vmem:[%s6275_s7 + $0x420] sm:$0xff] %v1252_v4  ;;  %v1260_v8 = vld [vmem:[%s6267_s6 + $0xcc0] sm:$0xff]  ;;  %v1262_v9 = vld [vmem:[%s6267_s6 + $0xcd8] sm:$0xff] }
  0x59   : > { %1255 = vst [vmem:[%s6275_s7 + $0x428] sm:$0xff] %v1254_v5  ;;  %1257 = vst [vmem:[%s6275_s7 + $0x430] sm:$0xff] %v1256_v6  ;;  %v1264_v10 = vld [vmem:[%s6267_s6 + $0xcf0] sm:$0xff]  ;;  %v1266_v11 = vld [vmem:[%s6267_s6 + $0xd08] sm:$0xff] }
  0x5a   : > { %1259 = vst [vmem:[%s6275_s7 + $0x438] sm:$0xff] %v1258_v7  ;;  %1261 = vst [vmem:[%s6275_s7 + $0x440] sm:$0xff] %v1260_v8  ;;  %v1268_v12 = vld [vmem:[%s6267_s6 + $0xd20] sm:$0xff]  ;;  %v1270_v13 = vld [vmem:[%s6267_s6 + $0xd38] sm:$0xff] }
  0x5b   : > { %1263 = vst [vmem:[%s6275_s7 + $0x448] sm:$0xff] %v1262_v9  ;;  %1265 = vst [vmem:[%s6275_s7 + $0x450] sm:$0xff] %v1264_v10  ;;  %v1272_v14 = vld [vmem:[%s6267_s6 + $0xd50] sm:$0xff]  ;;  %v1274_v15 = vld [vmem:[%s6267_s6 + $0xd68] sm:$0xff] }
  0x5c   : > { %1267 = vst [vmem:[%s6275_s7 + $0x458] sm:$0xff] %v1266_v11  ;;  %1269 = vst [vmem:[%s6275_s7 + $0x460] sm:$0xff] %v1268_v12  ;;  %v1276_v16 = vld [vmem:[%s6267_s6 + $0xd80] sm:$0xff]  ;;  %v1278_v17 = vld [vmem:[%s6267_s6 + $0xd98] sm:$0xff] }
  0x5d   : > { %1271 = vst [vmem:[%s6275_s7 + $0x468] sm:$0xff] %v1270_v13  ;;  %1273 = vst [vmem:[%s6275_s7 + $0x470] sm:$0xff] %v1272_v14  ;;  %v1280_v18 = vld [vmem:[%s6267_s6 + $0xdb0] sm:$0xff]  ;;  %v1282_v19 = vld [vmem:[%s6267_s6 + $0xdc8] sm:$0xff] }
  0x5e   : > { %1275 = vst [vmem:[%s6275_s7 + $0x478] sm:$0xff] %v1274_v15  ;;  %1277 = vst [vmem:[%s6275_s7 + $0x480] sm:$0xff] %v1276_v16  ;;  %v1284_v20 = vld [vmem:[%s6267_s6 + $0xde0] sm:$0xff]  ;;  %v1286_v21 = vld [vmem:[%s6267_s6 + $0xdf8] sm:$0xff] }
  0x5f   : > { %1279 = vst [vmem:[%s6275_s7 + $0x488] sm:$0xff] %v1278_v17  ;;  %1281 = vst [vmem:[%s6275_s7 + $0x490] sm:$0xff] %v1280_v18  ;;  %v1288_v22 = vld [vmem:[%s6267_s6 + $0xe10] sm:$0xff]  ;;  %v1290_v23 = vld [vmem:[%s6267_s6 + $0xe28] sm:$0xff] }
  0x60   : > { %1283 = vst [vmem:[%s6275_s7 + $0x498] sm:$0xff] %v1282_v19  ;;  %1285 = vst [vmem:[%s6275_s7 + $0x4a0] sm:$0xff] %v1284_v20  ;;  %v1292_v24 = vld [vmem:[%s6267_s6 + $0xe40] sm:$0xff]  ;;  %v1294_v25 = vld [vmem:[%s6267_s6 + $0xe58] sm:$0xff] }
  0x61   : > { %1287 = vst [vmem:[%s6275_s7 + $0x4a8] sm:$0xff] %v1286_v21  ;;  %1289 = vst [vmem:[%s6275_s7 + $0x4b0] sm:$0xff] %v1288_v22  ;;  %v1296_v26 = vld [vmem:[%s6267_s6 + $0xe70] sm:$0xff]  ;;  %v1298_v27 = vld [vmem:[%s6267_s6 + $0xe88] sm:$0xff] }
  0x62   : > { %1291 = vst [vmem:[%s6275_s7 + $0x4b8] sm:$0xff] %v1290_v23  ;;  %1293 = vst [vmem:[%s6275_s7 + $0x4c0] sm:$0xff] %v1292_v24  ;;  %v1300_v28 = vld [vmem:[%s6267_s6 + $0xea0] sm:$0xff]  ;;  %v1302_v29 = vld [vmem:[%s6267_s6 + $0xeb8] sm:$0xff] }
  0x63   : > { %1295 = vst [vmem:[%s6275_s7 + $0x4c8] sm:$0xff] %v1294_v25  ;;  %1297 = vst [vmem:[%s6275_s7 + $0x4d0] sm:$0xff] %v1296_v26  ;;  %v1304_v30 = vld [vmem:[%s6267_s6 + $0xed0] sm:$0xff]  ;;  %v1306_v31 = vld [vmem:[%s6267_s6 + $0xee8] sm:$0xff] }
  0x64   : > { %1299 = vst [vmem:[%s6275_s7 + $0x4d8] sm:$0xff] %v1298_v27  ;;  %1301 = vst [vmem:[%s6275_s7 + $0x4e0] sm:$0xff] %v1300_v28  ;;  %v1308_v32 = vld [vmem:[%s6267_s6 + $0xf00] sm:$0xff]  ;;  %v1310_v33 = vld [vmem:[%s6267_s6 + $0xf18] sm:$0xff] }
  0x65   : > { %1303 = vst [vmem:[%s6275_s7 + $0x4e8] sm:$0xff] %v1302_v29  ;;  %1305 = vst [vmem:[%s6275_s7 + $0x4f0] sm:$0xff] %v1304_v30  ;;  %v1312_v34 = vld [vmem:[%s6267_s6 + $0xf30] sm:$0xff]  ;;  %v1314_v35 = vld [vmem:[%s6267_s6 + $0xf48] sm:$0xff] }
  0x66   : > { %1307 = vst [vmem:[%s6275_s7 + $0x4f8] sm:$0xff] %v1306_v31  ;;  %1309 = vst [vmem:[%s6275_s7 + $0x500] sm:$0xff] %v1308_v32  ;;  %v1316_v36 = vld [vmem:[%s6267_s6 + $0xf60] sm:$0xff]  ;;  %v1318_v37 = vld [vmem:[%s6267_s6 + $0xf78] sm:$0xff] }
  0x67   : > { %1311 = vst [vmem:[%s6275_s7 + $0x508] sm:$0xff] %v1310_v33  ;;  %1313 = vst [vmem:[%s6275_s7 + $0x510] sm:$0xff] %v1312_v34  ;;  %v1320_v38 = vld [vmem:[%s6267_s6 + $0xf90] sm:$0xff]  ;;  %v1322_v39 = vld [vmem:[%s6267_s6 + $0xfa8] sm:$0xff] }
  0x68   : > { %1315 = vst [vmem:[%s6275_s7 + $0x518] sm:$0xff] %v1314_v35  ;;  %1317 = vst [vmem:[%s6275_s7 + $0x520] sm:$0xff] %v1316_v36  ;;  %v1324_v40 = vld [vmem:[%s6267_s6 + $0xfc0] sm:$0xff]  ;;  %v1326_v41 = vld [vmem:[%s6267_s6 + $0xfd8] sm:$0xff] }
  0x69   : > { %1319 = vst [vmem:[%s6275_s7 + $0x528] sm:$0xff] %v1318_v37  ;;  %1321 = vst [vmem:[%s6275_s7 + $0x530] sm:$0xff] %v1320_v38  ;;  %v1328_v42 = vld [vmem:[%s6267_s6 + $0xff0] sm:$0xff]  ;;  %v1330_v43 = vld [vmem:[%s6267_s6 + $0x1008] sm:$0xff] }
  0x6a   : > { %1323 = vst [vmem:[%s6275_s7 + $0x538] sm:$0xff] %v1322_v39  ;;  %1325 = vst [vmem:[%s6275_s7 + $0x540] sm:$0xff] %v1324_v40  ;;  %v1332_v44 = vld [vmem:[%s6267_s6 + $0x1020] sm:$0xff]  ;;  %v1334_v45 = vld [vmem:[%s6267_s6 + $0x1038] sm:$0xff] }
  0x6b   : > { %1327 = vst [vmem:[%s6275_s7 + $0x548] sm:$0xff] %v1326_v41  ;;  %1329 = vst [vmem:[%s6275_s7 + $0x550] sm:$0xff] %v1328_v42  ;;  %v1336_v46 = vld [vmem:[%s6267_s6 + $0x1050] sm:$0xff]  ;;  %v1338_v47 = vld [vmem:[%s6267_s6 + $0x1068] sm:$0xff] }
  0x6c   : > { %1331 = vst [vmem:[%s6275_s7 + $0x558] sm:$0xff] %v1330_v43  ;;  %1333 = vst [vmem:[%s6275_s7 + $0x560] sm:$0xff] %v1332_v44  ;;  %v1340_v48 = vld [vmem:[%s6267_s6 + $0x1080] sm:$0xff]  ;;  %v1342_v49 = vld [vmem:[%s6267_s6 + $0x1098] sm:$0xff] }
  0x6d   : > { %1335 = vst [vmem:[%s6275_s7 + $0x568] sm:$0xff] %v1334_v45  ;;  %1337 = vst [vmem:[%s6275_s7 + $0x570] sm:$0xff] %v1336_v46  ;;  %v1344_v50 = vld [vmem:[%s6267_s6 + $0x10b0] sm:$0xff]  ;;  %v1346_v51 = vld [vmem:[%s6267_s6 + $0x10c8] sm:$0xff] }
  0x6e   : > { %1339 = vst [vmem:[%s6275_s7 + $0x578] sm:$0xff] %v1338_v47  ;;  %1341 = vst [vmem:[%s6275_s7 + $0x580] sm:$0xff] %v1340_v48  ;;  %v1348_v52 = vld [vmem:[%s6267_s6 + $0x10e0] sm:$0xff]  ;;  %v1350_v53 = vld [vmem:[%s6267_s6 + $0x10f8] sm:$0xff] }
  0x6f   : > { %1343 = vst [vmem:[%s6275_s7 + $0x588] sm:$0xff] %v1342_v49  ;;  %1345 = vst [vmem:[%s6275_s7 + $0x590] sm:$0xff] %v1344_v50  ;;  %v1352_v54 = vld [vmem:[%s6267_s6 + $0x1110] sm:$0xff]  ;;  %v1354_v55 = vld [vmem:[%s6267_s6 + $0x1128] sm:$0xff] }
  0x70   : > { %1347 = vst [vmem:[%s6275_s7 + $0x598] sm:$0xff] %v1346_v51  ;;  %1349 = vst [vmem:[%s6275_s7 + $0x5a0] sm:$0xff] %v1348_v52  ;;  %v1356_v56 = vld [vmem:[%s6267_s6 + $0x1140] sm:$0xff]  ;;  %v1358_v57 = vld [vmem:[%s6267_s6 + $0x1158] sm:$0xff] }
  0x71   : > { %1351 = vst [vmem:[%s6275_s7 + $0x5a8] sm:$0xff] %v1350_v53  ;;  %1353 = vst [vmem:[%s6275_s7 + $0x5b0] sm:$0xff] %v1352_v54  ;;  %v1360_v58 = vld [vmem:[%s6267_s6 + $0x1170] sm:$0xff]  ;;  %v1362_v59 = vld [vmem:[%s6267_s6 + $0x1188] sm:$0xff] }
  0x72   : > { %1355 = vst [vmem:[%s6275_s7 + $0x5b8] sm:$0xff] %v1354_v55  ;;  %1357 = vst [vmem:[%s6275_s7 + $0x5c0] sm:$0xff] %v1356_v56  ;;  %v1364_v60 = vld [vmem:[%s6267_s6 + $0x11a0] sm:$0xff]  ;;  %v1366_v61 = vld [vmem:[%s6267_s6 + $0x11b8] sm:$0xff] }
  0x73   : > { %1359 = vst [vmem:[%s6275_s7 + $0x5c8] sm:$0xff] %v1358_v57  ;;  %1361 = vst [vmem:[%s6275_s7 + $0x5d0] sm:$0xff] %v1360_v58  ;;  %v1368_v62 = vld [vmem:[%s6267_s6 + $0x11d0] sm:$0xff]  ;;  %v1370_v63 = vld [vmem:[%s6267_s6 + $0x11e8] sm:$0xff] }
  0x74   : > { %1363 = vst [vmem:[%s6275_s7 + $0x5d8] sm:$0xff] %v1362_v59  ;;  %1365 = vst [vmem:[%s6275_s7 + $0x5e0] sm:$0xff] %v1364_v60  ;;  %v1372_v0 = vld [vmem:[%s6267_s6 + $0x1200] sm:$0xff]  ;;  %v1374_v1 = vld [vmem:[%s6267_s6 + $0x1218] sm:$0xff] }
  0x75   : > { %1367 = vst [vmem:[%s6275_s7 + $0x5e8] sm:$0xff] %v1366_v61  ;;  %1369 = vst [vmem:[%s6275_s7 + $0x5f0] sm:$0xff] %v1368_v62  ;;  %v1376_v2 = vld [vmem:[%s6267_s6 + $0x1230] sm:$0xff]  ;;  %v1378_v3 = vld [vmem:[%s6267_s6 + $0x1248] sm:$0xff] }
  0x76   : > { %1371 = vst [vmem:[%s6275_s7 + $0x5f8] sm:$0xff] %v1370_v63  ;;  %1373 = vst [vmem:[%s6275_s7 + $0x600] sm:$0xff] %v1372_v0  ;;  %v1380_v4 = vld [vmem:[%s6267_s6 + $0x1260] sm:$0xff]  ;;  %v1382_v5 = vld [vmem:[%s6267_s6 + $0x1278] sm:$0xff] }
  0x77   : > { %1375 = vst [vmem:[%s6275_s7 + $0x608] sm:$0xff] %v1374_v1  ;;  %1377 = vst [vmem:[%s6275_s7 + $0x610] sm:$0xff] %v1376_v2  ;;  %v1384_v6 = vld [vmem:[%s6267_s6 + $0x1290] sm:$0xff]  ;;  %v1386_v7 = vld [vmem:[%s6267_s6 + $0x12a8] sm:$0xff] }
  0x78   : > { %1379 = vst [vmem:[%s6275_s7 + $0x618] sm:$0xff] %v1378_v3  ;;  %1381 = vst [vmem:[%s6275_s7 + $0x620] sm:$0xff] %v1380_v4  ;;  %v1388_v8 = vld [vmem:[%s6267_s6 + $0x12c0] sm:$0xff]  ;;  %v1390_v9 = vld [vmem:[%s6267_s6 + $0x12d8] sm:$0xff] }
  0x79   : > { %1383 = vst [vmem:[%s6275_s7 + $0x628] sm:$0xff] %v1382_v5  ;;  %1385 = vst [vmem:[%s6275_s7 + $0x630] sm:$0xff] %v1384_v6  ;;  %v1392_v10 = vld [vmem:[%s6267_s6 + $0x12f0] sm:$0xff]  ;;  %v1394_v11 = vld [vmem:[%s6267_s6 + $0x1308] sm:$0xff] }
  0x7a   : > { %1387 = vst [vmem:[%s6275_s7 + $0x638] sm:$0xff] %v1386_v7  ;;  %1389 = vst [vmem:[%s6275_s7 + $0x640] sm:$0xff] %v1388_v8  ;;  %v1396_v12 = vld [vmem:[%s6267_s6 + $0x1320] sm:$0xff]  ;;  %v1398_v13 = vld [vmem:[%s6267_s6 + $0x1338] sm:$0xff] }
  0x7b   : > { %1391 = vst [vmem:[%s6275_s7 + $0x648] sm:$0xff] %v1390_v9  ;;  %1393 = vst [vmem:[%s6275_s7 + $0x650] sm:$0xff] %v1392_v10  ;;  %v1400_v14 = vld [vmem:[%s6267_s6 + $0x1350] sm:$0xff]  ;;  %v1402_v15 = vld [vmem:[%s6267_s6 + $0x1368] sm:$0xff] }
  0x7c   : > { %1395 = vst [vmem:[%s6275_s7 + $0x658] sm:$0xff] %v1394_v11  ;;  %1397 = vst [vmem:[%s6275_s7 + $0x660] sm:$0xff] %v1396_v12  ;;  %v1404_v16 = vld [vmem:[%s6267_s6 + $0x1380] sm:$0xff]  ;;  %v1406_v17 = vld [vmem:[%s6267_s6 + $0x1398] sm:$0xff] }
  0x7d   : > { %1399 = vst [vmem:[%s6275_s7 + $0x668] sm:$0xff] %v1398_v13  ;;  %1401 = vst [vmem:[%s6275_s7 + $0x670] sm:$0xff] %v1400_v14  ;;  %v1408_v18 = vld [vmem:[%s6267_s6 + $0x13b0] sm:$0xff]  ;;  %v1410_v19 = vld [vmem:[%s6267_s6 + $0x13c8] sm:$0xff] }
  0x7e   : > { %1403 = vst [vmem:[%s6275_s7 + $0x678] sm:$0xff] %v1402_v15  ;;  %1405 = vst [vmem:[%s6275_s7 + $0x680] sm:$0xff] %v1404_v16  ;;  %v1412_v20 = vld [vmem:[%s6267_s6 + $0x13e0] sm:$0xff]  ;;  %v1414_v21 = vld [vmem:[%s6267_s6 + $0x13f8] sm:$0xff] }
  0x7f   : > { %1407 = vst [vmem:[%s6275_s7 + $0x688] sm:$0xff] %v1406_v17  ;;  %1409 = vst [vmem:[%s6275_s7 + $0x690] sm:$0xff] %v1408_v18  ;;  %v1416_v22 = vld [vmem:[%s6267_s6 + $0x1410] sm:$0xff]  ;;  %v1418_v23 = vld [vmem:[%s6267_s6 + $0x1428] sm:$0xff] }
  0x80   : > { %1411 = vst [vmem:[%s6275_s7 + $0x698] sm:$0xff] %v1410_v19  ;;  %1413 = vst [vmem:[%s6275_s7 + $0x6a0] sm:$0xff] %v1412_v20  ;;  %v1420_v24 = vld [vmem:[%s6267_s6 + $0x1440] sm:$0xff]  ;;  %v1422_v25 = vld [vmem:[%s6267_s6 + $0x1458] sm:$0xff] }
  0x81   : > { %1415 = vst [vmem:[%s6275_s7 + $0x6a8] sm:$0xff] %v1414_v21  ;;  %1417 = vst [vmem:[%s6275_s7 + $0x6b0] sm:$0xff] %v1416_v22  ;;  %v1424_v26 = vld [vmem:[%s6267_s6 + $0x1470] sm:$0xff]  ;;  %v1426_v27 = vld [vmem:[%s6267_s6 + $0x1488] sm:$0xff] }
  0x82   : > { %1419 = vst [vmem:[%s6275_s7 + $0x6b8] sm:$0xff] %v1418_v23  ;;  %1421 = vst [vmem:[%s6275_s7 + $0x6c0] sm:$0xff] %v1420_v24  ;;  %v1428_v28 = vld [vmem:[%s6267_s6 + $0x14a0] sm:$0xff]  ;;  %v1430_v29 = vld [vmem:[%s6267_s6 + $0x14b8] sm:$0xff] }
  0x83   : > { %1423 = vst [vmem:[%s6275_s7 + $0x6c8] sm:$0xff] %v1422_v25  ;;  %1425 = vst [vmem:[%s6275_s7 + $0x6d0] sm:$0xff] %v1424_v26  ;;  %v1432_v30 = vld [vmem:[%s6267_s6 + $0x14d0] sm:$0xff]  ;;  %v1434_v31 = vld [vmem:[%s6267_s6 + $0x14e8] sm:$0xff] }
  0x84   : > { %1427 = vst [vmem:[%s6275_s7 + $0x6d8] sm:$0xff] %v1426_v27  ;;  %1429 = vst [vmem:[%s6275_s7 + $0x6e0] sm:$0xff] %v1428_v28  ;;  %v1436_v32 = vld [vmem:[%s6267_s6 + $0x1500] sm:$0xff]  ;;  %v1438_v33 = vld [vmem:[%s6267_s6 + $0x1518] sm:$0xff] }
  0x85   : > { %1431 = vst [vmem:[%s6275_s7 + $0x6e8] sm:$0xff] %v1430_v29  ;;  %1433 = vst [vmem:[%s6275_s7 + $0x6f0] sm:$0xff] %v1432_v30  ;;  %v1440_v34 = vld [vmem:[%s6267_s6 + $0x1530] sm:$0xff]  ;;  %v1442_v35 = vld [vmem:[%s6267_s6 + $0x1548] sm:$0xff] }
  0x86   : > { %1435 = vst [vmem:[%s6275_s7 + $0x6f8] sm:$0xff] %v1434_v31  ;;  %1437 = vst [vmem:[%s6275_s7 + $0x700] sm:$0xff] %v1436_v32  ;;  %v1444_v36 = vld [vmem:[%s6267_s6 + $0x1560] sm:$0xff]  ;;  %v1446_v37 = vld [vmem:[%s6267_s6 + $0x1578] sm:$0xff] }
  0x87   : > { %1439 = vst [vmem:[%s6275_s7 + $0x708] sm:$0xff] %v1438_v33  ;;  %1441 = vst [vmem:[%s6275_s7 + $0x710] sm:$0xff] %v1440_v34  ;;  %v1448_v38 = vld [vmem:[%s6267_s6 + $0x1590] sm:$0xff]  ;;  %v1450_v39 = vld [vmem:[%s6267_s6 + $0x15a8] sm:$0xff] }
  0x88   : > { %1443 = vst [vmem:[%s6275_s7 + $0x718] sm:$0xff] %v1442_v35  ;;  %1445 = vst [vmem:[%s6275_s7 + $0x720] sm:$0xff] %v1444_v36  ;;  %v1452_v40 = vld [vmem:[%s6267_s6 + $0x15c0] sm:$0xff]  ;;  %v1454_v41 = vld [vmem:[%s6267_s6 + $0x15d8] sm:$0xff] }
  0x89   : > { %1447 = vst [vmem:[%s6275_s7 + $0x728] sm:$0xff] %v1446_v37  ;;  %1449 = vst [vmem:[%s6275_s7 + $0x730] sm:$0xff] %v1448_v38  ;;  %v1456_v42 = vld [vmem:[%s6267_s6 + $0x15f0] sm:$0xff]  ;;  %v1458_v43 = vld [vmem:[%s6267_s6 + $0x1608] sm:$0xff] }
  0x8a   : > { %1451 = vst [vmem:[%s6275_s7 + $0x738] sm:$0xff] %v1450_v39  ;;  %1453 = vst [vmem:[%s6275_s7 + $0x740] sm:$0xff] %v1452_v40  ;;  %v1460_v44 = vld [vmem:[%s6267_s6 + $0x1620] sm:$0xff]  ;;  %v1462_v45 = vld [vmem:[%s6267_s6 + $0x1638] sm:$0xff] }
  0x8b   : > { %1455 = vst [vmem:[%s6275_s7 + $0x748] sm:$0xff] %v1454_v41  ;;  %1457 = vst [vmem:[%s6275_s7 + $0x750] sm:$0xff] %v1456_v42  ;;  %v1464_v46 = vld [vmem:[%s6267_s6 + $0x1650] sm:$0xff]  ;;  %v1466_v47 = vld [vmem:[%s6267_s6 + $0x1668] sm:$0xff] }
  0x8c   : > { %1459 = vst [vmem:[%s6275_s7 + $0x758] sm:$0xff] %v1458_v43  ;;  %1461 = vst [vmem:[%s6275_s7 + $0x760] sm:$0xff] %v1460_v44  ;;  %v1468_v48 = vld [vmem:[%s6267_s6 + $0x1680] sm:$0xff]  ;;  %v1470_v49 = vld [vmem:[%s6267_s6 + $0x1698] sm:$0xff] }
  0x8d   : > { %1463 = vst [vmem:[%s6275_s7 + $0x768] sm:$0xff] %v1462_v45  ;;  %1465 = vst [vmem:[%s6275_s7 + $0x770] sm:$0xff] %v1464_v46  ;;  %v1472_v50 = vld [vmem:[%s6267_s6 + $0x16b0] sm:$0xff]  ;;  %v1474_v51 = vld [vmem:[%s6267_s6 + $0x16c8] sm:$0xff] }
  0x8e   : > { %1467 = vst [vmem:[%s6275_s7 + $0x778] sm:$0xff] %v1466_v47  ;;  %1469 = vst [vmem:[%s6275_s7 + $0x780] sm:$0xff] %v1468_v48  ;;  %v1476_v52 = vld [vmem:[%s6267_s6 + $0x16e0] sm:$0xff]  ;;  %v1478_v53 = vld [vmem:[%s6267_s6 + $0x16f8] sm:$0xff] }
  0x8f   : > { %1471 = vst [vmem:[%s6275_s7 + $0x788] sm:$0xff] %v1470_v49  ;;  %1473 = vst [vmem:[%s6275_s7 + $0x790] sm:$0xff] %v1472_v50  ;;  %v1480_v54 = vld [vmem:[%s6267_s6 + $0x1710] sm:$0xff]  ;;  %v1482_v55 = vld [vmem:[%s6267_s6 + $0x1728] sm:$0xff] }
  0x90   : > { %1475 = vst [vmem:[%s6275_s7 + $0x798] sm:$0xff] %v1474_v51  ;;  %1477 = vst [vmem:[%s6275_s7 + $0x7a0] sm:$0xff] %v1476_v52  ;;  %v1484_v56 = vld [vmem:[%s6267_s6 + $0x1740] sm:$0xff]  ;;  %v1486_v57 = vld [vmem:[%s6267_s6 + $0x1758] sm:$0xff] }
  0x91   : > { %1479 = vst [vmem:[%s6275_s7 + $0x7a8] sm:$0xff] %v1478_v53  ;;  %1481 = vst [vmem:[%s6275_s7 + $0x7b0] sm:$0xff] %v1480_v54  ;;  %v1488_v58 = vld [vmem:[%s6267_s6 + $0x1770] sm:$0xff]  ;;  %v1490_v59 = vld [vmem:[%s6267_s6 + $0x1788] sm:$0xff] }
  0x92   : > { %1483 = vst [vmem:[%s6275_s7 + $0x7b8] sm:$0xff] %v1482_v55  ;;  %1485 = vst [vmem:[%s6275_s7 + $0x7c0] sm:$0xff] %v1484_v56  ;;  %v1492_v60 = vld [vmem:[%s6267_s6 + $0x17a0] sm:$0xff]  ;;  %v1494_v61 = vld [vmem:[%s6267_s6 + $0x17b8] sm:$0xff] }
  0x93   : > { %1487 = vst [vmem:[%s6275_s7 + $0x7c8] sm:$0xff] %v1486_v57  ;;  %1489 = vst [vmem:[%s6275_s7 + $0x7d0] sm:$0xff] %v1488_v58  ;;  %v1496_v62 = vld [vmem:[%s6267_s6 + $0x17d0] sm:$0xff]  ;;  %v1498_v63 = vld [vmem:[%s6267_s6 + $0x17e8] sm:$0xff] }
  0x94   : > { %1491 = vst [vmem:[%s6275_s7 + $0x7d8] sm:$0xff] %v1490_v59  ;;  %1493 = vst [vmem:[%s6275_s7 + $0x7e0] sm:$0xff] %v1492_v60  ;;  %v1500_v0 = vld [vmem:[%s6267_s6 + $0x1800] sm:$0xff]  ;;  %v1502_v1 = vld [vmem:[%s6267_s6 + $0x1818] sm:$0xff] }
  0x95   : > { %1495 = vst [vmem:[%s6275_s7 + $0x7e8] sm:$0xff] %v1494_v61  ;;  %1497 = vst [vmem:[%s6275_s7 + $0x7f0] sm:$0xff] %v1496_v62  ;;  %v1504_v2 = vld [vmem:[%s6267_s6 + $0x1830] sm:$0xff]  ;;  %v1506_v3 = vld [vmem:[%s6267_s6 + $0x1848] sm:$0xff] }
  0x96   : > { %1499 = vst [vmem:[%s6275_s7 + $0x7f8] sm:$0xff] %v1498_v63  ;;  %1501 = vst [vmem:[%s6275_s7 + $0x800] sm:$0xff] %v1500_v0  ;;  %v1508_v4 = vld [vmem:[%s6267_s6 + $0x1860] sm:$0xff]  ;;  %v1510_v5 = vld [vmem:[%s6267_s6 + $0x1878] sm:$0xff] }
  0x97   : > { %1503 = vst [vmem:[%s6275_s7 + $0x808] sm:$0xff] %v1502_v1  ;;  %1505 = vst [vmem:[%s6275_s7 + $0x810] sm:$0xff] %v1504_v2  ;;  %v1512_v6 = vld [vmem:[%s6267_s6 + $0x1890] sm:$0xff]  ;;  %v1514_v7 = vld [vmem:[%s6267_s6 + $0x18a8] sm:$0xff] }
  0x98   : > { %1507 = vst [vmem:[%s6275_s7 + $0x818] sm:$0xff] %v1506_v3  ;;  %1509 = vst [vmem:[%s6275_s7 + $0x820] sm:$0xff] %v1508_v4  ;;  %v1516_v8 = vld [vmem:[%s6267_s6 + $0x18c0] sm:$0xff]  ;;  %v1518_v9 = vld [vmem:[%s6267_s6 + $0x18d8] sm:$0xff] }
  0x99   : > { %1511 = vst [vmem:[%s6275_s7 + $0x828] sm:$0xff] %v1510_v5  ;;  %1513 = vst [vmem:[%s6275_s7 + $0x830] sm:$0xff] %v1512_v6  ;;  %v1520_v10 = vld [vmem:[%s6267_s6 + $0x18f0] sm:$0xff]  ;;  %v1522_v11 = vld [vmem:[%s6267_s6 + $0x1908] sm:$0xff] }
  0x9a   : > { %1515 = vst [vmem:[%s6275_s7 + $0x838] sm:$0xff] %v1514_v7  ;;  %1517 = vst [vmem:[%s6275_s7 + $0x840] sm:$0xff] %v1516_v8  ;;  %v1524_v12 = vld [vmem:[%s6267_s6 + $0x1920] sm:$0xff]  ;;  %v1526_v13 = vld [vmem:[%s6267_s6 + $0x1938] sm:$0xff] }
  0x9b   : > { %1519 = vst [vmem:[%s6275_s7 + $0x848] sm:$0xff] %v1518_v9  ;;  %1521 = vst [vmem:[%s6275_s7 + $0x850] sm:$0xff] %v1520_v10  ;;  %v1528_v14 = vld [vmem:[%s6267_s6 + $0x1950] sm:$0xff]  ;;  %v1530_v15 = vld [vmem:[%s6267_s6 + $0x1968] sm:$0xff] }
  0x9c   : > { %1523 = vst [vmem:[%s6275_s7 + $0x858] sm:$0xff] %v1522_v11  ;;  %1525 = vst [vmem:[%s6275_s7 + $0x860] sm:$0xff] %v1524_v12  ;;  %v1532_v16 = vld [vmem:[%s6267_s6 + $0x1980] sm:$0xff]  ;;  %v1534_v17 = vld [vmem:[%s6267_s6 + $0x1998] sm:$0xff] }
  0x9d   : > { %1527 = vst [vmem:[%s6275_s7 + $0x868] sm:$0xff] %v1526_v13  ;;  %1529 = vst [vmem:[%s6275_s7 + $0x870] sm:$0xff] %v1528_v14  ;;  %v1536_v18 = vld [vmem:[%s6267_s6 + $0x19b0] sm:$0xff]  ;;  %v1538_v19 = vld [vmem:[%s6267_s6 + $0x19c8] sm:$0xff] }
  0x9e   : > { %1531 = vst [vmem:[%s6275_s7 + $0x878] sm:$0xff] %v1530_v15  ;;  %1533 = vst [vmem:[%s6275_s7 + $0x880] sm:$0xff] %v1532_v16  ;;  %v1540_v20 = vld [vmem:[%s6267_s6 + $0x19e0] sm:$0xff]  ;;  %v1542_v21 = vld [vmem:[%s6267_s6 + $0x19f8] sm:$0xff] }
  0x9f   : > { %1535 = vst [vmem:[%s6275_s7 + $0x888] sm:$0xff] %v1534_v17  ;;  %1537 = vst [vmem:[%s6275_s7 + $0x890] sm:$0xff] %v1536_v18  ;;  %v1544_v22 = vld [vmem:[%s6267_s6 + $0x1a10] sm:$0xff]  ;;  %v1546_v23 = vld [vmem:[%s6267_s6 + $0x1a28] sm:$0xff] }
  0xa0   : > { %1539 = vst [vmem:[%s6275_s7 + $0x898] sm:$0xff] %v1538_v19  ;;  %1541 = vst [vmem:[%s6275_s7 + $0x8a0] sm:$0xff] %v1540_v20  ;;  %v1548_v24 = vld [vmem:[%s6267_s6 + $0x1a40] sm:$0xff]  ;;  %v1550_v25 = vld [vmem:[%s6267_s6 + $0x1a58] sm:$0xff] }
  0xa1   : > { %1543 = vst [vmem:[%s6275_s7 + $0x8a8] sm:$0xff] %v1542_v21  ;;  %1545 = vst [vmem:[%s6275_s7 + $0x8b0] sm:$0xff] %v1544_v22  ;;  %v1552_v26 = vld [vmem:[%s6267_s6 + $0x1a70] sm:$0xff]  ;;  %v1554_v27 = vld [vmem:[%s6267_s6 + $0x1a88] sm:$0xff] }
  0xa2   : > { %1547 = vst [vmem:[%s6275_s7 + $0x8b8] sm:$0xff] %v1546_v23  ;;  %1549 = vst [vmem:[%s6275_s7 + $0x8c0] sm:$0xff] %v1548_v24  ;;  %v1556_v28 = vld [vmem:[%s6267_s6 + $0x1aa0] sm:$0xff]  ;;  %v1558_v29 = vld [vmem:[%s6267_s6 + $0x1ab8] sm:$0xff] }
  0xa3   : > { %1551 = vst [vmem:[%s6275_s7 + $0x8c8] sm:$0xff] %v1550_v25  ;;  %1553 = vst [vmem:[%s6275_s7 + $0x8d0] sm:$0xff] %v1552_v26  ;;  %v1560_v30 = vld [vmem:[%s6267_s6 + $0x1ad0] sm:$0xff]  ;;  %v1562_v31 = vld [vmem:[%s6267_s6 + $0x1ae8] sm:$0xff] }
  0xa4   : > { %1555 = vst [vmem:[%s6275_s7 + $0x8d8] sm:$0xff] %v1554_v27  ;;  %1557 = vst [vmem:[%s6275_s7 + $0x8e0] sm:$0xff] %v1556_v28  ;;  %v1564_v32 = vld [vmem:[%s6267_s6 + $0x1b00] sm:$0xff]  ;;  %v1566_v33 = vld [vmem:[%s6267_s6 + $0x1b18] sm:$0xff] }
  0xa5   : > { %1559 = vst [vmem:[%s6275_s7 + $0x8e8] sm:$0xff] %v1558_v29  ;;  %1561 = vst [vmem:[%s6275_s7 + $0x8f0] sm:$0xff] %v1560_v30  ;;  %v1568_v34 = vld [vmem:[%s6267_s6 + $0x1b30] sm:$0xff]  ;;  %v1570_v35 = vld [vmem:[%s6267_s6 + $0x1b48] sm:$0xff] }
  0xa6   : > { %1563 = vst [vmem:[%s6275_s7 + $0x8f8] sm:$0xff] %v1562_v31  ;;  %1565 = vst [vmem:[%s6275_s7 + $0x900] sm:$0xff] %v1564_v32  ;;  %v1572_v36 = vld [vmem:[%s6267_s6 + $0x1b60] sm:$0xff]  ;;  %v1574_v37 = vld [vmem:[%s6267_s6 + $0x1b78] sm:$0xff] }
  0xa7   : > { %1567 = vst [vmem:[%s6275_s7 + $0x908] sm:$0xff] %v1566_v33  ;;  %1569 = vst [vmem:[%s6275_s7 + $0x910] sm:$0xff] %v1568_v34  ;;  %v1576_v38 = vld [vmem:[%s6267_s6 + $0x1b90] sm:$0xff]  ;;  %v1578_v39 = vld [vmem:[%s6267_s6 + $0x1ba8] sm:$0xff] }
  0xa8   : > { %1571 = vst [vmem:[%s6275_s7 + $0x918] sm:$0xff] %v1570_v35  ;;  %1573 = vst [vmem:[%s6275_s7 + $0x920] sm:$0xff] %v1572_v36  ;;  %v1580_v40 = vld [vmem:[%s6267_s6 + $0x1bc0] sm:$0xff]  ;;  %v1582_v41 = vld [vmem:[%s6267_s6 + $0x1bd8] sm:$0xff] }
  0xa9   : > { %1575 = vst [vmem:[%s6275_s7 + $0x928] sm:$0xff] %v1574_v37  ;;  %1577 = vst [vmem:[%s6275_s7 + $0x930] sm:$0xff] %v1576_v38  ;;  %v1584_v42 = vld [vmem:[%s6267_s6 + $0x1bf0] sm:$0xff]  ;;  %v1586_v43 = vld [vmem:[%s6267_s6 + $0x1c08] sm:$0xff] }
  0xaa   : > { %1579 = vst [vmem:[%s6275_s7 + $0x938] sm:$0xff] %v1578_v39  ;;  %1581 = vst [vmem:[%s6275_s7 + $0x940] sm:$0xff] %v1580_v40  ;;  %v1588_v44 = vld [vmem:[%s6267_s6 + $0x1c20] sm:$0xff]  ;;  %v1590_v45 = vld [vmem:[%s6267_s6 + $0x1c38] sm:$0xff] }
  0xab   : > { %1583 = vst [vmem:[%s6275_s7 + $0x948] sm:$0xff] %v1582_v41  ;;  %1585 = vst [vmem:[%s6275_s7 + $0x950] sm:$0xff] %v1584_v42  ;;  %v1592_v46 = vld [vmem:[%s6267_s6 + $0x1c50] sm:$0xff]  ;;  %v1594_v47 = vld [vmem:[%s6267_s6 + $0x1c68] sm:$0xff] }
  0xac   : > { %1587 = vst [vmem:[%s6275_s7 + $0x958] sm:$0xff] %v1586_v43  ;;  %1589 = vst [vmem:[%s6275_s7 + $0x960] sm:$0xff] %v1588_v44  ;;  %v1596_v48 = vld [vmem:[%s6267_s6 + $0x1c80] sm:$0xff]  ;;  %v1598_v49 = vld [vmem:[%s6267_s6 + $0x1c98] sm:$0xff] }
  0xad   : > { %1591 = vst [vmem:[%s6275_s7 + $0x968] sm:$0xff] %v1590_v45  ;;  %1593 = vst [vmem:[%s6275_s7 + $0x970] sm:$0xff] %v1592_v46  ;;  %v1600_v50 = vld [vmem:[%s6267_s6 + $0x1cb0] sm:$0xff]  ;;  %v1602_v51 = vld [vmem:[%s6267_s6 + $0x1cc8] sm:$0xff] }
  0xae   : > { %1595 = vst [vmem:[%s6275_s7 + $0x978] sm:$0xff] %v1594_v47  ;;  %1597 = vst [vmem:[%s6275_s7 + $0x980] sm:$0xff] %v1596_v48  ;;  %v1604_v52 = vld [vmem:[%s6267_s6 + $0x1ce0] sm:$0xff]  ;;  %v1606_v53 = vld [vmem:[%s6267_s6 + $0x1cf8] sm:$0xff] }
  0xaf   : > { %1599 = vst [vmem:[%s6275_s7 + $0x988] sm:$0xff] %v1598_v49  ;;  %1601 = vst [vmem:[%s6275_s7 + $0x990] sm:$0xff] %v1600_v50  ;;  %v1608_v54 = vld [vmem:[%s6267_s6 + $0x1d10] sm:$0xff]  ;;  %v1610_v55 = vld [vmem:[%s6267_s6 + $0x1d28] sm:$0xff] }
  0xb0   : > { %1603 = vst [vmem:[%s6275_s7 + $0x998] sm:$0xff] %v1602_v51  ;;  %1605 = vst [vmem:[%s6275_s7 + $0x9a0] sm:$0xff] %v1604_v52  ;;  %v1612_v56 = vld [vmem:[%s6267_s6 + $0x1d40] sm:$0xff]  ;;  %v1614_v57 = vld [vmem:[%s6267_s6 + $0x1d58] sm:$0xff] }
  0xb1   : > { %1607 = vst [vmem:[%s6275_s7 + $0x9a8] sm:$0xff] %v1606_v53  ;;  %1609 = vst [vmem:[%s6275_s7 + $0x9b0] sm:$0xff] %v1608_v54  ;;  %v1616_v58 = vld [vmem:[%s6267_s6 + $0x1d70] sm:$0xff]  ;;  %v1618_v59 = vld [vmem:[%s6267_s6 + $0x1d88] sm:$0xff] }
  0xb2   : > { %1611 = vst [vmem:[%s6275_s7 + $0x9b8] sm:$0xff] %v1610_v55  ;;  %1613 = vst [vmem:[%s6275_s7 + $0x9c0] sm:$0xff] %v1612_v56  ;;  %v1620_v60 = vld [vmem:[%s6267_s6 + $0x1da0] sm:$0xff]  ;;  %v1622_v61 = vld [vmem:[%s6267_s6 + $0x1db8] sm:$0xff] }
  0xb3   : > { %1615 = vst [vmem:[%s6275_s7 + $0x9c8] sm:$0xff] %v1614_v57  ;;  %1617 = vst [vmem:[%s6275_s7 + $0x9d0] sm:$0xff] %v1616_v58  ;;  %v1624_v62 = vld [vmem:[%s6267_s6 + $0x1dd0] sm:$0xff]  ;;  %v1626_v63 = vld [vmem:[%s6267_s6 + $0x1de8] sm:$0xff] }
  0xb4   : > { %1619 = vst [vmem:[%s6275_s7 + $0x9d8] sm:$0xff] %v1618_v59  ;;  %1621 = vst [vmem:[%s6275_s7 + $0x9e0] sm:$0xff] %v1620_v60  ;;  %v1628_v0 = vld [vmem:[%s6267_s6 + $0x1e00] sm:$0xff]  ;;  %v1630_v1 = vld [vmem:[%s6267_s6 + $0x1e18] sm:$0xff] }
  0xb5   : > { %1623 = vst [vmem:[%s6275_s7 + $0x9e8] sm:$0xff] %v1622_v61  ;;  %1625 = vst [vmem:[%s6275_s7 + $0x9f0] sm:$0xff] %v1624_v62  ;;  %v1632_v2 = vld [vmem:[%s6267_s6 + $0x1e30] sm:$0xff]  ;;  %v1634_v3 = vld [vmem:[%s6267_s6 + $0x1e48] sm:$0xff] }
  0xb6   : > { %1627 = vst [vmem:[%s6275_s7 + $0x9f8] sm:$0xff] %v1626_v63  ;;  %1629 = vst [vmem:[%s6275_s7 + $0xa00] sm:$0xff] %v1628_v0  ;;  %v1636_v4 = vld [vmem:[%s6267_s6 + $0x1e60] sm:$0xff]  ;;  %v1638_v5 = vld [vmem:[%s6267_s6 + $0x1e78] sm:$0xff] }
  0xb7   : > { %1631 = vst [vmem:[%s6275_s7 + $0xa08] sm:$0xff] %v1630_v1  ;;  %1633 = vst [vmem:[%s6275_s7 + $0xa10] sm:$0xff] %v1632_v2  ;;  %v1640_v6 = vld [vmem:[%s6267_s6 + $0x1e90] sm:$0xff]  ;;  %v1642_v7 = vld [vmem:[%s6267_s6 + $0x1ea8] sm:$0xff] }
  0xb8   : > { %1635 = vst [vmem:[%s6275_s7 + $0xa18] sm:$0xff] %v1634_v3  ;;  %1637 = vst [vmem:[%s6275_s7 + $0xa20] sm:$0xff] %v1636_v4  ;;  %v1644_v8 = vld [vmem:[%s6267_s6 + $0x1ec0] sm:$0xff]  ;;  %v1646_v9 = vld [vmem:[%s6267_s6 + $0x1ed8] sm:$0xff] }
  0xb9   : > { %1639 = vst [vmem:[%s6275_s7 + $0xa28] sm:$0xff] %v1638_v5  ;;  %1641 = vst [vmem:[%s6275_s7 + $0xa30] sm:$0xff] %v1640_v6  ;;  %v1648_v10 = vld [vmem:[%s6267_s6 + $0x1ef0] sm:$0xff]  ;;  %v1650_v11 = vld [vmem:[%s6267_s6 + $0x1f08] sm:$0xff] }
  0xba   : > { %1643 = vst [vmem:[%s6275_s7 + $0xa38] sm:$0xff] %v1642_v7  ;;  %1645 = vst [vmem:[%s6275_s7 + $0xa40] sm:$0xff] %v1644_v8  ;;  %v1652_v12 = vld [vmem:[%s6267_s6 + $0x1f20] sm:$0xff]  ;;  %v1654_v13 = vld [vmem:[%s6267_s6 + $0x1f38] sm:$0xff] }
  0xbb   : > { %1647 = vst [vmem:[%s6275_s7 + $0xa48] sm:$0xff] %v1646_v9  ;;  %1649 = vst [vmem:[%s6275_s7 + $0xa50] sm:$0xff] %v1648_v10  ;;  %v1656_v14 = vld [vmem:[%s6267_s6 + $0x1f50] sm:$0xff]  ;;  %v1658_v15 = vld [vmem:[%s6267_s6 + $0x1f68] sm:$0xff] }
  0xbc   : > { %1651 = vst [vmem:[%s6275_s7 + $0xa58] sm:$0xff] %v1650_v11  ;;  %1653 = vst [vmem:[%s6275_s7 + $0xa60] sm:$0xff] %v1652_v12  ;;  %v1660_v16 = vld [vmem:[%s6267_s6 + $0x1f80] sm:$0xff]  ;;  %v1662_v17 = vld [vmem:[%s6267_s6 + $0x1f98] sm:$0xff] }
  0xbd   : > { %1655 = vst [vmem:[%s6275_s7 + $0xa68] sm:$0xff] %v1654_v13  ;;  %1657 = vst [vmem:[%s6275_s7 + $0xa70] sm:$0xff] %v1656_v14  ;;  %v1664_v18 = vld [vmem:[%s6267_s6 + $0x1fb0] sm:$0xff]  ;;  %v1666_v19 = vld [vmem:[%s6267_s6 + $0x1fc8] sm:$0xff] }
  0xbe   : > { %1659 = vst [vmem:[%s6275_s7 + $0xa78] sm:$0xff] %v1658_v15  ;;  %1661 = vst [vmem:[%s6275_s7 + $0xa80] sm:$0xff] %v1660_v16  ;;  %v1668_v20 = vld [vmem:[%s6267_s6 + $0x1fe0] sm:$0xff]  ;;  %v1670_v21 = vld [vmem:[%s6267_s6 + $0x1ff8] sm:$0xff] }
  0xbf   : > { %1663 = vst [vmem:[%s6275_s7 + $0xa88] sm:$0xff] %v1662_v17  ;;  %1665 = vst [vmem:[%s6275_s7 + $0xa90] sm:$0xff] %v1664_v18  ;;  %v1672_v22 = vld [vmem:[%s6267_s6 + $0x2010] sm:$0xff]  ;;  %v1674_v23 = vld [vmem:[%s6267_s6 + $0x2028] sm:$0xff] }
  0xc0   : > { %1667 = vst [vmem:[%s6275_s7 + $0xa98] sm:$0xff] %v1666_v19  ;;  %1669 = vst [vmem:[%s6275_s7 + $0xaa0] sm:$0xff] %v1668_v20  ;;  %v1676_v24 = vld [vmem:[%s6267_s6 + $0x2040] sm:$0xff]  ;;  %v1678_v25 = vld [vmem:[%s6267_s6 + $0x2058] sm:$0xff] }
  0xc1   : > { %1671 = vst [vmem:[%s6275_s7 + $0xaa8] sm:$0xff] %v1670_v21  ;;  %1673 = vst [vmem:[%s6275_s7 + $0xab0] sm:$0xff] %v1672_v22  ;;  %v1680_v26 = vld [vmem:[%s6267_s6 + $0x2070] sm:$0xff]  ;;  %v1682_v27 = vld [vmem:[%s6267_s6 + $0x2088] sm:$0xff] }
  0xc2   : > { %1675 = vst [vmem:[%s6275_s7 + $0xab8] sm:$0xff] %v1674_v23  ;;  %1677 = vst [vmem:[%s6275_s7 + $0xac0] sm:$0xff] %v1676_v24  ;;  %v1684_v28 = vld [vmem:[%s6267_s6 + $0x20a0] sm:$0xff]  ;;  %v1686_v29 = vld [vmem:[%s6267_s6 + $0x20b8] sm:$0xff] }
  0xc3   : > { %1679 = vst [vmem:[%s6275_s7 + $0xac8] sm:$0xff] %v1678_v25  ;;  %1681 = vst [vmem:[%s6275_s7 + $0xad0] sm:$0xff] %v1680_v26  ;;  %v1688_v30 = vld [vmem:[%s6267_s6 + $0x20d0] sm:$0xff]  ;;  %v1690_v31 = vld [vmem:[%s6267_s6 + $0x20e8] sm:$0xff] }
  0xc4   : > { %1683 = vst [vmem:[%s6275_s7 + $0xad8] sm:$0xff] %v1682_v27  ;;  %1685 = vst [vmem:[%s6275_s7 + $0xae0] sm:$0xff] %v1684_v28  ;;  %v1692_v32 = vld [vmem:[%s6267_s6 + $0x2100] sm:$0xff]  ;;  %v1694_v33 = vld [vmem:[%s6267_s6 + $0x2118] sm:$0xff] }
  0xc5   : > { %1687 = vst [vmem:[%s6275_s7 + $0xae8] sm:$0xff] %v1686_v29  ;;  %1689 = vst [vmem:[%s6275_s7 + $0xaf0] sm:$0xff] %v1688_v30  ;;  %v1696_v34 = vld [vmem:[%s6267_s6 + $0x2130] sm:$0xff]  ;;  %v1698_v35 = vld [vmem:[%s6267_s6 + $0x2148] sm:$0xff] }
  0xc6   : > { %1691 = vst [vmem:[%s6275_s7 + $0xaf8] sm:$0xff] %v1690_v31  ;;  %1693 = vst [vmem:[%s6275_s7 + $0xb00] sm:$0xff] %v1692_v32  ;;  %v1700_v36 = vld [vmem:[%s6267_s6 + $0x2160] sm:$0xff]  ;;  %v1702_v37 = vld [vmem:[%s6267_s6 + $0x2178] sm:$0xff] }
  0xc7   : > { %1695 = vst [vmem:[%s6275_s7 + $0xb08] sm:$0xff] %v1694_v33  ;;  %1697 = vst [vmem:[%s6275_s7 + $0xb10] sm:$0xff] %v1696_v34  ;;  %v1704_v38 = vld [vmem:[%s6267_s6 + $0x2190] sm:$0xff]  ;;  %v1706_v39 = vld [vmem:[%s6267_s6 + $0x21a8] sm:$0xff] }
  0xc8   : > { %1699 = vst [vmem:[%s6275_s7 + $0xb18] sm:$0xff] %v1698_v35  ;;  %1701 = vst [vmem:[%s6275_s7 + $0xb20] sm:$0xff] %v1700_v36  ;;  %v1708_v40 = vld [vmem:[%s6267_s6 + $0x21c0] sm:$0xff]  ;;  %v1710_v41 = vld [vmem:[%s6267_s6 + $0x21d8] sm:$0xff] }
  0xc9   : > { %1703 = vst [vmem:[%s6275_s7 + $0xb28] sm:$0xff] %v1702_v37  ;;  %1705 = vst [vmem:[%s6275_s7 + $0xb30] sm:$0xff] %v1704_v38  ;;  %v1712_v42 = vld [vmem:[%s6267_s6 + $0x21f0] sm:$0xff]  ;;  %v1714_v43 = vld [vmem:[%s6267_s6 + $0x2208] sm:$0xff] }
  0xca   : > { %1707 = vst [vmem:[%s6275_s7 + $0xb38] sm:$0xff] %v1706_v39  ;;  %1709 = vst [vmem:[%s6275_s7 + $0xb40] sm:$0xff] %v1708_v40  ;;  %v1716_v44 = vld [vmem:[%s6267_s6 + $0x2220] sm:$0xff]  ;;  %v1718_v45 = vld [vmem:[%s6267_s6 + $0x2238] sm:$0xff] }
  0xcb   : > { %1711 = vst [vmem:[%s6275_s7 + $0xb48] sm:$0xff] %v1710_v41  ;;  %1713 = vst [vmem:[%s6275_s7 + $0xb50] sm:$0xff] %v1712_v42  ;;  %v1720_v46 = vld [vmem:[%s6267_s6 + $0x2250] sm:$0xff]  ;;  %v1722_v47 = vld [vmem:[%s6267_s6 + $0x2268] sm:$0xff] }
  0xcc   : > { %1715 = vst [vmem:[%s6275_s7 + $0xb58] sm:$0xff] %v1714_v43  ;;  %1717 = vst [vmem:[%s6275_s7 + $0xb60] sm:$0xff] %v1716_v44  ;;  %v1724_v48 = vld [vmem:[%s6267_s6 + $0x2280] sm:$0xff]  ;;  %v1726_v49 = vld [vmem:[%s6267_s6 + $0x2298] sm:$0xff] }
  0xcd   : > { %1719 = vst [vmem:[%s6275_s7 + $0xb68] sm:$0xff] %v1718_v45  ;;  %1721 = vst [vmem:[%s6275_s7 + $0xb70] sm:$0xff] %v1720_v46  ;;  %v1728_v50 = vld [vmem:[%s6267_s6 + $0x22b0] sm:$0xff]  ;;  %v1730_v51 = vld [vmem:[%s6267_s6 + $0x22c8] sm:$0xff] }
  0xce   : > { %1723 = vst [vmem:[%s6275_s7 + $0xb78] sm:$0xff] %v1722_v47  ;;  %1725 = vst [vmem:[%s6275_s7 + $0xb80] sm:$0xff] %v1724_v48  ;;  %v1732_v52 = vld [vmem:[%s6267_s6 + $0x22e0] sm:$0xff]  ;;  %v1734_v53 = vld [vmem:[%s6267_s6 + $0x22f8] sm:$0xff] }
  0xcf   : > { %1727 = vst [vmem:[%s6275_s7 + $0xb88] sm:$0xff] %v1726_v49  ;;  %1729 = vst [vmem:[%s6275_s7 + $0xb90] sm:$0xff] %v1728_v50  ;;  %v1736_v54 = vld [vmem:[%s6267_s6 + $0x2310] sm:$0xff]  ;;  %v1738_v55 = vld [vmem:[%s6267_s6 + $0x2328] sm:$0xff] }
  0xd0   : > { %1731 = vst [vmem:[%s6275_s7 + $0xb98] sm:$0xff] %v1730_v51  ;;  %1733 = vst [vmem:[%s6275_s7 + $0xba0] sm:$0xff] %v1732_v52  ;;  %v1740_v56 = vld [vmem:[%s6267_s6 + $0x2340] sm:$0xff]  ;;  %v1742_v57 = vld [vmem:[%s6267_s6 + $0x2358] sm:$0xff] }
  0xd1   : > { %1735 = vst [vmem:[%s6275_s7 + $0xba8] sm:$0xff] %v1734_v53  ;;  %1737 = vst [vmem:[%s6275_s7 + $0xbb0] sm:$0xff] %v1736_v54  ;;  %v1744_v58 = vld [vmem:[%s6267_s6 + $0x2370] sm:$0xff]  ;;  %v1746_v59 = vld [vmem:[%s6267_s6 + $0x2388] sm:$0xff] }
  0xd2   : > { %1739 = vst [vmem:[%s6275_s7 + $0xbb8] sm:$0xff] %v1738_v55  ;;  %1741 = vst [vmem:[%s6275_s7 + $0xbc0] sm:$0xff] %v1740_v56  ;;  %v1748_v60 = vld [vmem:[%s6267_s6 + $0x23a0] sm:$0xff]  ;;  %v1750_v61 = vld [vmem:[%s6267_s6 + $0x23b8] sm:$0xff] }
  0xd3   : > { %1743 = vst [vmem:[%s6275_s7 + $0xbc8] sm:$0xff] %v1742_v57  ;;  %1745 = vst [vmem:[%s6275_s7 + $0xbd0] sm:$0xff] %v1744_v58  ;;  %v1752_v62 = vld [vmem:[%s6267_s6 + $0x23d0] sm:$0xff]  ;;  %v1754_v63 = vld [vmem:[%s6267_s6 + $0x23e8] sm:$0xff] }
  0xd4   : > { %1747 = vst [vmem:[%s6275_s7 + $0xbd8] sm:$0xff] %v1746_v59  ;;  %1749 = vst [vmem:[%s6275_s7 + $0xbe0] sm:$0xff] %v1748_v60 }
  0xd5   : > { %1751 = vst [vmem:[%s6275_s7 + $0xbe8] sm:$0xff] %v1750_v61  ;;  %1753 = vst [vmem:[%s6275_s7 + $0xbf0] sm:$0xff] %v1752_v62 }
  0xd6   : > { %1755 = vst [vmem:[%s6275_s7 + $0xbf8] sm:$0xff] %v1754_v63 }
  0xd7 PF: > { %1769 = sbr.rel (!%p6245_p3) target bundleno = 222 (0xde), region = 66  ;;  %s1771_s8 = sand.u32 (%p6245_p3), 1, %s6174_s16  }
  0xd8   : > { %s5478_s9 = sshll.u32 (%p6245_p3), %s6182_s18, 3  ;;  %s5055_s10 = sshll.u32 (%p6245_p3), %s1771_s8, 4 }
  0xd9   : > { %s1779_s13 = scalar_lea.vmem (%p6245_p3), %s7645_s3, %s5478_s9  ;;  %s1773_s14 = scalar_lea.vmem (%p6245_p3), [#allocation3], %s5055_s10 }
  0xda   : > { %v1809_v0 = vld [vmem:[%s1779_s13] sm:$0xff] (%p6245_p3)  ;;  %v1811_v1 = vld [vmem:[%s1779_s13 + $0x18] sm:$0xff] (%p6245_p3) }
  0xdb   : > { %1810 = vst [vmem:[%s1773_s14] sm:$0xff] (%p6245_p3), %v1809_v0  ;;  %1812 = vst [vmem:[%s1773_s14 + $0x8] sm:$0xff] (%p6245_p3), %v1811_v1 }
  0xde PF: > { %p5058_p8 = scmp.ge.s32.totalorder %s6186_s19, 1  ;;  %p1817_p9 = scmp.lt.s32.totalorder %s6186_s19, 4 }
  0xe0   : > { %p1818_p10 = pnand %p5058_p8, %p1817_p9 }
  0xe1   : > { %s1824_s21 = sand.u32 (!%p1818_p10), 1, %s6170_s15   ;;  %v7052_v2 = vld [vmem:[%s7642_s0] sm:$0xff] (!%p1818_p10)  ;;  %v7062_v4 = vld [vmem:[%s7642_s0 + $0x30] sm:$0xff] (!%p1818_p10)  ;;  %s5061_s23 = sshll.u32 (!%p1818_p10), %s6178_s17, 1 }
  0xe2   : > { %1821 = sbr.rel (%p1818_p10) target bundleno = 847 (0x34f), region = 104  ;;  %v7057_v3 = vld [vmem:[%s7642_s0 + $0x60] sm:$0x11] (!%p1818_p10)  ;;  %v7073_v7 = vld [vmem:[%s7642_s0 + $0x90] sm:$0x11] (!%p1818_p10)  ;;  %p1878_p11 = scmp.lt.s32.totalorder (!%p1818_p10), %s5061_s23, 5 }
  0xe3   : > { %s5531_s30 = smul.u32 (!%p1818_p10), 3072, %s1824_s21  ;;  %v5062_v5 = vcombine.low (!%p1818_p10), %v7052_v2, %v7057_v3  ;;  %v5063_v6 = vcombine.high (!%p1818_p10), %v7052_v2, %v7057_v3  ;;  %v5074_v8 = vcombine.low (!%p1818_p10), %v7062_v4, %v7073_v7  ;;  %v5075_v9 = vcombine.high (!%p1818_p10), %v7062_v4, %v7073_v7  ;;  %s7617_s28 = sshll.u32 (!%p1818_p10), %s1824_s21, 4 }
  0xe4   : > { %s1833_s29 = scalar_lea.vmem (!%p1818_p10), [#allocation3], %s7617_s28  ;;  %s1868_s15 = scalar_lea.vmem (!%p1818_p10), [#allocation4], %s7617_s28 }
  0xe5   : > { %4378 = vmatprep.mubr.bf16.mxu1 (!%p1818_p10), %v5063_v6  ;;  %s7079_s7 = scalar_lea.vmem (!%p1818_p10), [#allocation2], %s5531_s30  ;;  %4636 = vmatprep.mubr.bf16.mxu0 (!%p1818_p10), %v5075_v9 }
  0xe6   : > { %v5572_v10 = vld [vmem:[%s7079_s7 + $0x4] ss:$8 sps:$4 sm:$0xff] (!%p1818_p10)   ;;  %v5576_v12 = vld [vmem:[%s7079_s7] ss:$8 sps:$4 sm:$0xff] (!%p1818_p10)   ;;  %v5578_v14 = vld [vmem:[%s7079_s7 + $0x14] ss:$8 sps:$4 sm:$0xff] (!%p1818_p10)  }
  0xe7   : > { %v5574_v11 = vld [vmem:[%s7079_s7 + $0x604] ss:$8 sps:$4 sm:$0xff] (!%p1818_p10)   ;;  %4346 = vmatprep.subr.bf16.mxu1 (!%p1818_p10), %v5572_v10  ;;  %v5577_v13 = vld [vmem:[%s7079_s7 + $0x600] ss:$8 sps:$4 sm:$0xff] (!%p1818_p10)   ;;  %v5580_v15 = vld [vmem:[%s7079_s7 + $0x614] ss:$8 sps:$4 sm:$0xff] (!%p1818_p10)  }
  0xe8   : > { %4604 = vmatprep.subr.bf16.mxu0 (!%p1818_p10), %v5574_v11  ;;  %4347 = vmatpush1.bf16.msra.mxu1 (!%p1818_p10), %v5576_v12  ;;  %v5582_v16 = vld [vmem:[%s7079_s7 + $0x10] ss:$8 sps:$4 sm:$0xff] (!%p1818_p10)   ;;  %v5584_v18 = vld [vmem:[%s7079_s7 + $0x24] ss:$8 sps:$4 sm:$0xff] (!%p1818_p10)   ;;  %v5588_v20 = vld [vmem:[%s7079_s7 + $0x20] ss:$8 sps:$4 sm:$0xff] (!%p1818_p10)  }
  0xe9   : > { %4605 = vmatpush1.bf16.msra.mxu0 %v5577_v13  ;;  %4348 = vmatprep.subr.bf16.mxu1 %v5578_v14  ;;  %v5583_v17 = vld [vmem:[%s7079_s7 + $0x610] ss:$8 sps:$4 sm:$0xff]   ;;  %v5586_v19 = vld [vmem:[%s7079_s7 + $0x624] ss:$8 sps:$4 sm:$0xff]   ;;  %v5589_v21 = vld [vmem:[%s7079_s7 + $0x620] ss:$8 sps:$4 sm:$0xff]  }
  0xea   : > { %4606 = vmatprep.subr.bf16.mxu0 %v5580_v15  ;;  %v5590_v22 = vld [vmem:[%s7079_s7 + $0x34] ss:$8 sps:$4 sm:$0xff]   ;;  %v5594_v24 = vld [vmem:[%s7079_s7 + $0x30] ss:$8 sps:$4 sm:$0xff]   ;;  %v5596_v26 = vld [vmem:[%s7079_s7 + $0x44] ss:$8 sps:$4 sm:$0xff]  }
  0xeb   : > { %v5592_v23 = vld [vmem:[%s7079_s7 + $0x634] ss:$8 sps:$4 sm:$0xff]   ;;  %v5595_v25 = vld [vmem:[%s7079_s7 + $0x630] ss:$8 sps:$4 sm:$0xff]   ;;  %v5598_v27 = vld [vmem:[%s7079_s7 + $0x644] ss:$8 sps:$4 sm:$0xff]  }
  0xec   : > { %4349 = vmatpush1.bf16.msra.mxu1 %v5582_v16  ;;  %v5600_v28 = vld [vmem:[%s7079_s7 + $0x40] ss:$8 sps:$4 sm:$0xff]   ;;  %v5602_v30 = vld [vmem:[%s7079_s7 + $0x54] ss:$8 sps:$4 sm:$0xff]   ;;  %v5606_v32 = vld [vmem:[%s7079_s7 + $0x50] ss:$8 sps:$4 sm:$0xff]  }
  0xed   : > { %4607 = vmatpush1.bf16.msra.mxu0 %v5583_v17  ;;  %4350 = vmatprep.subr.bf16.mxu1 %v5584_v18  ;;  %v5601_v29 = vld [vmem:[%s7079_s7 + $0x640] ss:$8 sps:$4 sm:$0xff]   ;;  %v5604_v31 = vld [vmem:[%s7079_s7 + $0x654] ss:$8 sps:$4 sm:$0xff]   ;;  %v5607_v33 = vld [vmem:[%s7079_s7 + $0x650] ss:$8 sps:$4 sm:$0xff]  }
  0xee   : > { %4608 = vmatprep.subr.bf16.mxu0 %v5586_v19  ;;  %v5608_v34 = vld [vmem:[%s7079_s7 + $0x64] ss:$8 sps:$4 sm:$0xff]   ;;  %v5612_v36 = vld [vmem:[%s7079_s7 + $0x60] ss:$8 sps:$4 sm:$0xff]   ;;  %v5614_v38 = vld [vmem:[%s7079_s7 + $0x74] ss:$8 sps:$4 sm:$0xff]  }
  0xef   : > { %v5610_v35 = vld [vmem:[%s7079_s7 + $0x664] ss:$8 sps:$4 sm:$0xff]   ;;  %v5613_v37 = vld [vmem:[%s7079_s7 + $0x660] ss:$8 sps:$4 sm:$0xff]   ;;  %v5616_v39 = vld [vmem:[%s7079_s7 + $0x674] ss:$8 sps:$4 sm:$0xff]  }
  0xf0   : > { %4351 = vmatpush1.bf16.msra.mxu1 %v5588_v20  ;;  %v5618_v40 = vld [vmem:[%s7079_s7 + $0x70] ss:$8 sps:$4 sm:$0xff]   ;;  %v5620_v42 = vld [vmem:[%s7079_s7 + $0x84] ss:$8 sps:$4 sm:$0xff]   ;;  %v5624_v44 = vld [vmem:[%s7079_s7 + $0x80] ss:$8 sps:$4 sm:$0xff]  }
  0xf1   : > { %4609 = vmatpush1.bf16.msra.mxu0 %v5589_v21  ;;  %4352 = vmatprep.subr.bf16.mxu1 %v5590_v22  ;;  %v5619_v41 = vld [vmem:[%s7079_s7 + $0x670] ss:$8 sps:$4 sm:$0xff]   ;;  %v5622_v43 = vld [vmem:[%s7079_s7 + $0x684] ss:$8 sps:$4 sm:$0xff]   ;;  %v5625_v45 = vld [vmem:[%s7079_s7 + $0x680] ss:$8 sps:$4 sm:$0xff]  }
  0xf2   : > { %4610 = vmatprep.subr.bf16.mxu0 %v5592_v23  ;;  %v5626_v46 = vld [vmem:[%s7079_s7 + $0x94] ss:$8 sps:$4 sm:$0xff]   ;;  %v5630_v48 = vld [vmem:[%s7079_s7 + $0x90] ss:$8 sps:$4 sm:$0xff]   ;;  %v5632_v50 = vld [vmem:[%s7079_s7 + $0xa4] ss:$8 sps:$4 sm:$0xff]  }
  0xf3   : > { %v5628_v47 = vld [vmem:[%s7079_s7 + $0x694] ss:$8 sps:$4 sm:$0xff]   ;;  %v5631_v49 = vld [vmem:[%s7079_s7 + $0x690] ss:$8 sps:$4 sm:$0xff]   ;;  %v5634_v51 = vld [vmem:[%s7079_s7 + $0x6a4] ss:$8 sps:$4 sm:$0xff]  }
  0xf4   : > { %4353 = vmatpush1.bf16.msra.mxu1 %v5594_v24  ;;  %v5636_v52 = vld [vmem:[%s7079_s7 + $0xa0] ss:$8 sps:$4 sm:$0xff]   ;;  %v5638_v54 = vld [vmem:[%s7079_s7 + $0xb4] ss:$8 sps:$4 sm:$0xff]   ;;  %v5642_v56 = vld [vmem:[%s7079_s7 + $0xb0] ss:$8 sps:$4 sm:$0xff]  }
  0xf5   : > { %4611 = vmatpush1.bf16.msra.mxu0 %v5595_v25  ;;  %4354 = vmatprep.subr.bf16.mxu1 %v5596_v26  ;;  %v5637_v53 = vld [vmem:[%s7079_s7 + $0x6a0] ss:$8 sps:$4 sm:$0xff]   ;;  %v5640_v55 = vld [vmem:[%s7079_s7 + $0x6b4] ss:$8 sps:$4 sm:$0xff]   ;;  %v5643_v57 = vld [vmem:[%s7079_s7 + $0x6b0] ss:$8 sps:$4 sm:$0xff]  }
  0xf6   : > { %4612 = vmatprep.subr.bf16.mxu0 %v5598_v27  ;;  %v5644_v58 = vld [vmem:[%s7079_s7 + $0xc4] ss:$8 sps:$4 sm:$0xff]   ;;  %v5648_v60 = vld [vmem:[%s7079_s7 + $0xc0] ss:$8 sps:$4 sm:$0xff]   ;;  %v5650_v62 = vld [vmem:[%s7079_s7 + $0xd4] ss:$8 sps:$4 sm:$0xff]  }
  0xf7   : > { %v5646_v59 = vld [vmem:[%s7079_s7 + $0x6c4] ss:$8 sps:$4 sm:$0xff]   ;;  %v5649_v61 = vld [vmem:[%s7079_s7 + $0x6c0] ss:$8 sps:$4 sm:$0xff]   ;;  %v5652_v63 = vld [vmem:[%s7079_s7 + $0x6d4] ss:$8 sps:$4 sm:$0xff]  }
  0xf8   : > { %4355 = vmatpush1.bf16.msra.mxu1 %v5600_v28  ;;  %v5654_v0 = vld [vmem:[%s7079_s7 + $0xd0] ss:$8 sps:$4 sm:$0xff]   ;;  %v5656_v6 = vld [vmem:[%s7079_s7 + $0xe4] ss:$8 sps:$4 sm:$0xff]   ;;  %v5660_v10 = vld [vmem:[%s7079_s7 + $0xe0] ss:$8 sps:$4 sm:$0xff]  }
  0xf9   : > { %4613 = vmatpush1.bf16.msra.mxu0 %v5601_v29  ;;  %4356 = vmatprep.subr.bf16.mxu1 %v5602_v30  ;;  %v5655_v1 = vld [vmem:[%s7079_s7 + $0x6d0] ss:$8 sps:$4 sm:$0xff]   ;;  %v5658_v9 = vld [vmem:[%s7079_s7 + $0x6e4] ss:$8 sps:$4 sm:$0xff]   ;;  %v5661_v11 = vld [vmem:[%s7079_s7 + $0x6e0] ss:$8 sps:$4 sm:$0xff]  }
  0xfa   : > { %4614 = vmatprep.subr.bf16.mxu0 %v5604_v31  ;;  %v5662_v12 = vld [vmem:[%s7079_s7 + $0xf4] ss:$8 sps:$4 sm:$0xff]   ;;  %v5666_v14 = vld [vmem:[%s7079_s7 + $0xf0] ss:$8 sps:$4 sm:$0xff]   ;;  %v5670_v16 = vld [vmem:[%s7079_s7 + $0x104] ss:$8 sps:$4 sm:$0xff]  }
  0xfb   : > { %v5664_v13 = vld [vmem:[%s7079_s7 + $0x6f4] ss:$8 sps:$4 sm:$0xff]   ;;  %v5667_v15 = vld [vmem:[%s7079_s7 + $0x6f0] ss:$8 sps:$4 sm:$0xff]   ;;  %v5673_v17 = vld [vmem:[%s7079_s7 + $0x704] ss:$8 sps:$4 sm:$0xff]  }
  0xfc   : > { %4357 = vmatpush1.bf16.msra.mxu1 %v5606_v32  ;;  %v5668_v18 = vld [vmem:[%s7079_s7 + $0x100] ss:$8 sps:$4 sm:$0xff]   ;;  %v5676_v20 = vld [vmem:[%s7079_s7 + $0x114] ss:$8 sps:$4 sm:$0xff]   ;;  %v5674_v22 = vld [vmem:[%s7079_s7 + $0x110] ss:$8 sps:$4 sm:$0xff]  }
  0xfd   : > { %4615 = vmatpush1.bf16.msra.mxu0 %v5607_v33  ;;  %4358 = vmatprep.subr.bf16.mxu1 %v5608_v34  ;;  %v5671_v19 = vld [vmem:[%s7079_s7 + $0x700] ss:$8 sps:$4 sm:$0xff]   ;;  %v5679_v21 = vld [vmem:[%s7079_s7 + $0x714] ss:$8 sps:$4 sm:$0xff]   ;;  %v5677_v23 = vld [vmem:[%s7079_s7 + $0x710] ss:$8 sps:$4 sm:$0xff]  }
  0xfe   : > { %4616 = vmatprep.subr.bf16.mxu0 %v5610_v35  ;;  %v5682_v24 = vld [vmem:[%s7079_s7 + $0x124] ss:$8 sps:$4 sm:$0xff]   ;;  %v5680_v26 = vld [vmem:[%s7079_s7 + $0x120] ss:$8 sps:$4 sm:$0xff]   ;;  %v5688_v3 = vld [vmem:[%s7079_s7 + $0x134] ss:$8 sps:$4 sm:$0xff]  }
  0xff   : > { %v5685_v25 = vld [vmem:[%s7079_s7 + $0x724] ss:$8 sps:$4 sm:$0xff]   ;;  %v5683_v2 = vld [vmem:[%s7079_s7 + $0x720] ss:$8 sps:$4 sm:$0xff]   ;;  %v5691_v4 = vld [vmem:[%s7079_s7 + $0x734] ss:$8 sps:$4 sm:$0xff]  }
 0x100   : > { %4359 = vmatpush1.bf16.msra.mxu1 %v5612_v36  ;;  %v5689_v7 = vld [vmem:[%s7079_s7 + $0x730] ss:$8 sps:$4 sm:$0xff]   ;;  %v5697_v27 = vld [vmem:[%s7079_s7 + $0x744] ss:$8 sps:$4 sm:$0xff]   ;;  %v5692_v28 = vld [vmem:[%s7079_s7 + $0x140] ss:$8 sps:$4 sm:$0xff]  }
 0x101   : > { %4617 = vmatpush1.bf16.msra.mxu0 %v5613_v37  ;;  %4360 = vmatprep.subr.bf16.mxu1 %v5614_v38  ;;  %v5695_v29 = vld [vmem:[%s7079_s7 + $0x740] ss:$8 sps:$4 sm:$0xff]   ;;  %v5700_v30 = vld [vmem:[%s7079_s7 + $0x154] ss:$8 sps:$4 sm:$0xff]   ;;  %v5698_v32 = vld [vmem:[%s7079_s7 + $0x150] ss:$8 sps:$4 sm:$0xff]  }
 0x102   : > { %4618 = vmatprep.subr.bf16.mxu0 %v5616_v39  ;;  %v5703_v31 = vld [vmem:[%s7079_s7 + $0x754] ss:$8 sps:$4 sm:$0xff]   ;;  %v5701_v33 = vld [vmem:[%s7079_s7 + $0x750] ss:$8 sps:$4 sm:$0xff]   ;;  %v5706_v34 = vld [vmem:[%s7079_s7 + $0x164] ss:$8 sps:$4 sm:$0xff]  }
 0x103   : > { %v5709_v35 = vld [vmem:[%s7079_s7 + $0x764] ss:$8 sps:$4 sm:$0xff]   ;;  %v7180_v36 = vld [vmem:[%s7642_s0 + $0x8] sm:$0xff]  ;;  %v5704_v38 = vld [vmem:[%s7079_s7 + $0x160] ss:$8 sps:$4 sm:$0xff]   ;;  %s7656_s23 = smov (!%p1878_p11, %s5061_s23), 5 }
 0x104   : > { %4361 = vmatpush1.bf16.msra.mxu1 %v5618_v40  ;;  %v7185_v37 = vld [vmem:[%s7642_s0 + $0x68] sm:$0x11]  ;;  %v5707_v40 = vld [vmem:[%s7079_s7 + $0x760] ss:$8 sps:$4 sm:$0xff]   ;;  %s5481_s21 = sshll.u32 (%p6252_p6), %s6178_s17, 3 }
 0x105   : > { %4619 = vmatpush1.bf16.msra.mxu0 %v5619_v41  ;;  %4362 = vmatprep.subr.bf16.mxu1 %v5620_v42  ;;  %v5065_v39 = vcombine.high %v7180_v36, %v7185_v37  ;;  %v7194_v41 = vld [vmem:[%s7642_s0 + $0x38] sm:$0xff]  ;;  %s4898_s6 = scalar_lea.vmem (%p6252_p6), %s7646_s4, %s5481_s21 }
 0x106   : > { %4620 = vmatprep.subr.bf16.mxu0 %v5622_v43  ;;  %v7199_v42 = vld [vmem:[%s7642_s0 + $0x98] sm:$0x11]  ;;  %v5712_v43 = vld [vmem:[%s7079_s7 + $0x174] ss:$8 sps:$4 sm:$0xff]  }
 0x108   : > { %4363 = vmatpush1.bf16.msra.mxu1 %v5624_v44  ;;  %v5077_v44 = vcombine.high %v7194_v41, %v7199_v42 }
 0x109   : > { %4621 = vmatpush1.bf16.msra.mxu0 %v5625_v45  ;;  %4364 = vmatprep.subr.bf16.mxu1 %v5626_v46  ;;  %v5715_v45 = vld [vmem:[%s7079_s7 + $0x774] ss:$8 sps:$4 sm:$0xff]   ;;  %v5710_v46 = vld [vmem:[%s7079_s7 + $0x170] ss:$8 sps:$4 sm:$0xff]  }
 0x10a   : > { %4622 = vmatprep.subr.bf16.mxu0 %v5628_v47  ;;  %v5713_v47 = vld [vmem:[%s7079_s7 + $0x770] ss:$8 sps:$4 sm:$0xff]  }
 0x10c   : > { %4365 = vmatpush1.bf16.msra.mxu1 %v5630_v48  ;;  %v5718_v48 = vld [vmem:[%s7079_s7 + $0x184] ss:$8 sps:$4 sm:$0xff]  }
 0x10d   : > { %4623 = vmatpush1.bf16.msra.mxu0 %v5631_v49  ;;  %4366 = vmatprep.subr.bf16.mxu1 %v5632_v50  ;;  %v5721_v49 = vld [vmem:[%s7079_s7 + $0x784] ss:$8 sps:$4 sm:$0xff]   ;;  %v5716_v50 = vld [vmem:[%s7079_s7 + $0x180] ss:$8 sps:$4 sm:$0xff]  }
 0x10e   : > { %4624 = vmatprep.subr.bf16.mxu0 %v5634_v51  ;;  %v5719_v51 = vld [vmem:[%s7079_s7 + $0x780] ss:$8 sps:$4 sm:$0xff]  }
 0x110   : > { %4367 = vmatpush1.bf16.msra.mxu1 %v5636_v52  ;;  %v5724_v52 = vld [vmem:[%s7079_s7 + $0x194] ss:$8 sps:$4 sm:$0xff]  }
 0x111   : > { %4625 = vmatpush1.bf16.msra.mxu0 %v5637_v53  ;;  %4368 = vmatprep.subr.bf16.mxu1 %v5638_v54  ;;  %v5727_v53 = vld [vmem:[%s7079_s7 + $0x794] ss:$8 sps:$4 sm:$0xff]   ;;  %v5722_v54 = vld [vmem:[%s7079_s7 + $0x190] ss:$8 sps:$4 sm:$0xff]  }
 0x112   : > { %4626 = vmatprep.subr.bf16.mxu0 %v5640_v55  ;;  %v5725_v55 = vld [vmem:[%s7079_s7 + $0x790] ss:$8 sps:$4 sm:$0xff]  }
 0x114   : > { %4369 = vmatpush1.bf16.msra.mxu1 %v5642_v56  ;;  %v5730_v56 = vld [vmem:[%s7079_s7 + $0x1a4] ss:$8 sps:$4 sm:$0xff]  }
 0x115   : > { %4627 = vmatpush1.bf16.msra.mxu0 %v5643_v57  ;;  %4370 = vmatprep.subr.bf16.mxu1 %v5644_v58  ;;  %v5733_v57 = vld [vmem:[%s7079_s7 + $0x7a4] ss:$8 sps:$4 sm:$0xff]   ;;  %v5728_v58 = vld [vmem:[%s7079_s7 + $0x1a0] ss:$8 sps:$4 sm:$0xff]  }
 0x116   : > { %4628 = vmatprep.subr.bf16.mxu0 %v5646_v59  ;;  %v5731_v59 = vld [vmem:[%s7079_s7 + $0x7a0] ss:$8 sps:$4 sm:$0xff]  }
 0x118   : > { %4371 = vmatpush1.bf16.msra.mxu1 %v5648_v60  ;;  %v5736_v60 = vld [vmem:[%s7079_s7 + $0x1b4] ss:$8 sps:$4 sm:$0xff]  }
 0x119   : > { %4629 = vmatpush1.bf16.msra.mxu0 %v5649_v61  ;;  %4372 = vmatprep.subr.bf16.mxu1 %v5650_v62  ;;  %v5739_v61 = vld [vmem:[%s7079_s7 + $0x7b4] ss:$8 sps:$4 sm:$0xff]   ;;  %v5734_v62 = vld [vmem:[%s7079_s7 + $0x1b0] ss:$8 sps:$4 sm:$0xff]  }
 0x11a   : > { %4630 = vmatprep.subr.bf16.mxu0 %v5652_v63  ;;  %v5737_v63 = vld [vmem:[%s7079_s7 + $0x7b0] ss:$8 sps:$4 sm:$0xff]  }
 0x11c   : > { %4373 = vmatpush1.bf16.msra.mxu1 %v5654_v0  ;;  %v5742_v0 = vld [vmem:[%s7079_s7 + $0x1c4] ss:$8 sps:$4 sm:$0xff]  }
 0x11d   : > { %4631 = vmatpush1.bf16.msra.mxu0 %v5655_v1  ;;  %4374 = vmatprep.subr.bf16.mxu1 %v5656_v6  ;;  %v5745_v1 = vld [vmem:[%s7079_s7 + $0x7c4] ss:$8 sps:$4 sm:$0xff]   ;;  %v5740_v6 = vld [vmem:[%s7079_s7 + $0x1c0] ss:$8 sps:$4 sm:$0xff]  }
 0x11e   : > { %4632 = vmatprep.subr.bf16.mxu0 %v5658_v9  ;;  %v5743_v9 = vld [vmem:[%s7079_s7 + $0x7c0] ss:$8 sps:$4 sm:$0xff]  }
 0x120   : > { %4375 = vmatpush1.bf16.msra.mxu1 %v5660_v10  ;;  %v5748_v10 = vld [vmem:[%s7079_s7 + $0x1d4] ss:$8 sps:$4 sm:$0xff]  }
 0x121   : > { %4633 = vmatpush1.bf16.msra.mxu0 %v5661_v11  ;;  %4376 = vmatprep.subr.bf16.mxu1 %v5662_v12  ;;  %v5751_v11 = vld [vmem:[%s7079_s7 + $0x7d4] ss:$8 sps:$4 sm:$0xff]   ;;  %v5746_v12 = vld [vmem:[%s7079_s7 + $0x1d0] ss:$8 sps:$4 sm:$0xff]  }
 0x122   : > { %4634 = vmatprep.subr.bf16.mxu0 %v5664_v13  ;;  %v5749_v13 = vld [vmem:[%s7079_s7 + $0x7d0] ss:$8 sps:$4 sm:$0xff]  }
 0x124   : > { %4377 = vmatpush1.bf16.msra.mxu1 %v5666_v14  ;;  %v5754_v14 = vld [vmem:[%s7079_s7 + $0x1e4] ss:$8 sps:$4 sm:$0xff]  }
 0x125   : > { %4635 = vmatpush1.bf16.msra.mxu0 %v5667_v15  ;;  %4389 = vmatprep.subr.bf16.mxu1 %v5670_v16  ;;  %v5757_v15 = vld [vmem:[%s7079_s7 + $0x7e4] ss:$8 sps:$4 sm:$0xff]   ;;  %v5752_v16 = vld [vmem:[%s7079_s7 + $0x1e0] ss:$8 sps:$4 sm:$0xff]  }
 0x126   : > { %4647 = vmatprep.subr.bf16.mxu0 %v5673_v17  ;;  %v5755_v17 = vld [vmem:[%s7079_s7 + $0x7e0] ss:$8 sps:$4 sm:$0xff]  }
 0x127   : > { %4379 = vmatmul.mubr.bf16.vlgmr.msra.gmra.mrb[0].mxu1 %v5062_v5  ;;  %v5686_v5 = vld [vmem:[%s7079_s7 + $0x130] ss:$8 sps:$4 sm:$0xff]  }
 0x128   : > { %4637 = vmatmul.mubr.bf16.vlgmr.msra.gmra.mrb[0].mxu0 %v5074_v8  ;;  %4390 = vmatpush1.bf16.msra.mxu1 %v5668_v18  ;;  %v5694_v8 = vld [vmem:[%s7079_s7 + $0x144] ss:$8 sps:$4 sm:$0xff]   ;;  %v5760_v18 = vld [vmem:[%s7079_s7 + $0x1f4] ss:$8 sps:$4 sm:$0xff]  }
 0x129   : > { %4648 = vmatpush1.bf16.msra.mxu0 %v5671_v19  ;;  %4391 = vmatprep.subr.bf16.mxu1 %v5676_v20  ;;  %v5763_v19 = vld [vmem:[%s7079_s7 + $0x7f4] ss:$8 sps:$4 sm:$0xff]   ;;  %v5758_v20 = vld [vmem:[%s7079_s7 + $0x1f0] ss:$8 sps:$4 sm:$0xff]  }
 0x12a   : > { %4649 = vmatprep.subr.bf16.mxu0 %v5679_v21  ;;  %4421 = vmatprep.mubr.bf16.mxu1 %v5065_v39  ;;  %v5761_v21 = vld [vmem:[%s7079_s7 + $0x7f0] ss:$8 sps:$4 sm:$0xff]  }
 0x12b   : > { %4679 = vmatprep.mubr.bf16.mxu0 %v5077_v44  ;;  %v5785_v39 = vld [vmem:[%s7079_s7 + $0x830] ss:$8 sps:$4 sm:$0xff]   ;;  %v5796_v44 = vld [vmem:[%s7079_s7 + $0x254] ss:$8 sps:$4 sm:$0xff]  }
 0x12c   : > { %4392 = vmatpush1.bf16.msra.mxu1 %v5674_v22  ;;  %v5766_v22 = vld [vmem:[%s7079_s7 + $0x204] ss:$8 sps:$4 sm:$0xff]  }
 0x12d   : > { %4650 = vmatpush1.bf16.msra.mxu0 %v5677_v23  ;;  %4393 = vmatprep.subr.bf16.mxu1 %v5682_v24  ;;  %v5769_v23 = vld [vmem:[%s7079_s7 + $0x804] ss:$8 sps:$4 sm:$0xff]   ;;  %v5064_v24 = vcombine.low %v7180_v36, %v7185_v37  ;;  %v5784_v36 = vld [vmem:[%s7079_s7 + $0x234] ss:$8 sps:$4 sm:$0xff]  }
 0x12e   : > { %4651 = vmatprep.subr.bf16.mxu0 %v5685_v25  ;;  %v5764_v25 = vld [vmem:[%s7079_s7 + $0x200] ss:$8 sps:$4 sm:$0xff]   ;;  %v5787_v37 = vld [vmem:[%s7079_s7 + $0x834] ss:$8 sps:$4 sm:$0xff]  }
 0x130   : > { %4394 = vmatpush1.bf16.msra.mxu1 %v5680_v26  ;;  %v5076_v26 = vcombine.low %v7194_v41, %v7199_v42  ;;  %v5793_v41 = vld [vmem:[%s7079_s7 + $0x844] ss:$8 sps:$4 sm:$0xff]   ;;  %v5788_v42 = vld [vmem:[%s7079_s7 + $0x240] ss:$8 sps:$4 sm:$0xff]  }
 0x131   : > { %4652 = vmatpush1.bf16.msra.mxu0 %v5683_v2  ;;  %4395 = vmatprep.subr.bf16.mxu1 %v5688_v3  ;;  %v5767_v2 = vld [vmem:[%s7079_s7 + $0x800] ss:$8 sps:$4 sm:$0xff]   ;;  %v5772_v3 = vld [vmem:[%s7079_s7 + $0x214] ss:$8 sps:$4 sm:$0xff]  }
 0x132   : > { %4653 = vmatprep.subr.bf16.mxu0 %v5691_v4  ;;  %v5775_v4 = vld [vmem:[%s7079_s7 + $0x814] ss:$8 sps:$4 sm:$0xff]  }
 0x134   : > { %4396 = vmatpush1.bf16.msra.mxu1 %v5686_v5  ;;  %v7252_v5 = vld [vmem:[%s7642_s0 + $0x10] sm:$0xff] }
 0x135   : > { %4654 = vmatpush1.bf16.msra.mxu0 %v5689_v7  ;;  %4397 = vmatprep.subr.bf16.mxu1 %v5694_v8  ;;  %v7257_v7 = vld [vmem:[%s7642_s0 + $0x70] sm:$0x11]  ;;  %v5770_v8 = vld [vmem:[%s7079_s7 + $0x210] ss:$8 sps:$4 sm:$0xff]  }
 0x136   : > { %4655 = vmatprep.subr.bf16.mxu0 %v5697_v27  ;;  %v5067_v27 = vcombine.high %v7252_v5, %v7257_v7 }
 0x138   : > { %4398 = vmatpush1.bf16.msra.mxu1 %v5692_v28  ;;  %v5773_v28 = vld [vmem:[%s7079_s7 + $0x810] ss:$8 sps:$4 sm:$0xff]  }
 0x139   : > { %4656 = vmatpush1.bf16.msra.mxu0 %v5695_v29  ;;  %4399 = vmatprep.subr.bf16.mxu1 %v5700_v30  ;;  %v7266_v29 = vld [vmem:[%s7642_s0 + $0x40] sm:$0xff] }
 0x13a   : > { %4657 = vmatprep.subr.bf16.mxu0 %v5703_v31  ;;  %v7271_v30 = vld [vmem:[%s7642_s0 + $0xa0] sm:$0x11]  ;;  %v5778_v31 = vld [vmem:[%s7079_s7 + $0x224] ss:$8 sps:$4 sm:$0xff]  }
 0x13c   : > { %4400 = vmatpush1.bf16.msra.mxu1 %v5698_v32  ;;  %v5079_v32 = vcombine.high %v7266_v29, %v7271_v30 }
 0x13d   : > { %4658 = vmatpush1.bf16.msra.mxu0 %v5701_v33  ;;  %4401 = vmatprep.subr.bf16.mxu1 %v5706_v34  ;;  %v5781_v33 = vld [vmem:[%s7079_s7 + $0x824] ss:$8 sps:$4 sm:$0xff]   ;;  %v5776_v34 = vld [vmem:[%s7079_s7 + $0x220] ss:$8 sps:$4 sm:$0xff]  }
 0x13e   : > { %4659 = vmatprep.subr.bf16.mxu0 %v5709_v35  ;;  %v5779_v35 = vld [vmem:[%s7079_s7 + $0x820] ss:$8 sps:$4 sm:$0xff]  }
 0x140   : > { %4402 = vmatpush1.bf16.msra.mxu1 %v5704_v38  ;;  %v5782_v38 = vld [vmem:[%s7079_s7 + $0x230] ss:$8 sps:$4 sm:$0xff]  }
 0x141   : > { %4660 = vmatpush1.bf16.msra.mxu0 %v5707_v40  ;;  %4403 = vmatprep.subr.bf16.mxu1 %v5712_v43  ;;  %v5790_v40 = vld [vmem:[%s7079_s7 + $0x244] ss:$8 sps:$4 sm:$0xff]   ;;  %v5791_v43 = vld [vmem:[%s7079_s7 + $0x840] ss:$8 sps:$4 sm:$0xff]  }
 0x142   : > { %4661 = vmatprep.subr.bf16.mxu0 %v5715_v45  ;;  %v5799_v45 = vld [vmem:[%s7079_s7 + $0x854] ss:$8 sps:$4 sm:$0xff]  }
 0x144   : > { %4404 = vmatpush1.bf16.msra.mxu1 %v5710_v46  ;;  %v5794_v46 = vld [vmem:[%s7079_s7 + $0x250] ss:$8 sps:$4 sm:$0xff]  }
 0x145   : > { %4662 = vmatpush1.bf16.msra.mxu0 %v5713_v47  ;;  %4405 = vmatprep.subr.bf16.mxu1 %v5718_v48  ;;  %v5797_v47 = vld [vmem:[%s7079_s7 + $0x850] ss:$8 sps:$4 sm:$0xff]   ;;  %v5802_v48 = vld [vmem:[%s7079_s7 + $0x264] ss:$8 sps:$4 sm:$0xff]  }
 0x146   : > { %4663 = vmatprep.subr.bf16.mxu0 %v5721_v49  ;;  %v5805_v49 = vld [vmem:[%s7079_s7 + $0x864] ss:$8 sps:$4 sm:$0xff]  }
 0x148   : > { %4406 = vmatpush1.bf16.msra.mxu1 %v5716_v50  ;;  %v5800_v50 = vld [vmem:[%s7079_s7 + $0x260] ss:$8 sps:$4 sm:$0xff]  }
 0x149   : > { %4664 = vmatpush1.bf16.msra.mxu0 %v5719_v51  ;;  %4407 = vmatprep.subr.bf16.mxu1 %v5724_v52  ;;  %v5803_v51 = vld [vmem:[%s7079_s7 + $0x860] ss:$8 sps:$4 sm:$0xff]   ;;  %v5808_v52 = vld [vmem:[%s7079_s7 + $0x274] ss:$8 sps:$4 sm:$0xff]  }
 0x14a   : > { %4665 = vmatprep.subr.bf16.mxu0 %v5727_v53  ;;  %v5811_v53 = vld [vmem:[%s7079_s7 + $0x874] ss:$8 sps:$4 sm:$0xff]  }
 0x14c   : > { %4408 = vmatpush1.bf16.msra.mxu1 %v5722_v54  ;;  %v5806_v54 = vld [vmem:[%s7079_s7 + $0x270] ss:$8 sps:$4 sm:$0xff]  }
 0x14d   : > { %4666 = vmatpush1.bf16.msra.mxu0 %v5725_v55  ;;  %4409 = vmatprep.subr.bf16.mxu1 %v5730_v56  ;;  %v5809_v55 = vld [vmem:[%s7079_s7 + $0x870] ss:$8 sps:$4 sm:$0xff]   ;;  %v5814_v56 = vld [vmem:[%s7079_s7 + $0x284] ss:$8 sps:$4 sm:$0xff]  }
 0x14e   : > { %4667 = vmatprep.subr.bf16.mxu0 %v5733_v57  ;;  %v5817_v57 = vld [vmem:[%s7079_s7 + $0x884] ss:$8 sps:$4 sm:$0xff]  }
 0x150   : > { %4410 = vmatpush1.bf16.msra.mxu1 %v5728_v58  ;;  %v5812_v58 = vld [vmem:[%s7079_s7 + $0x280] ss:$8 sps:$4 sm:$0xff]  }
 0x151   : > { %4668 = vmatpush1.bf16.msra.mxu0 %v5731_v59  ;;  %4411 = vmatprep.subr.bf16.mxu1 %v5736_v60  ;;  %v5815_v59 = vld [vmem:[%s7079_s7 + $0x880] ss:$8 sps:$4 sm:$0xff]   ;;  %v5820_v60 = vld [vmem:[%s7079_s7 + $0x294] ss:$8 sps:$4 sm:$0xff]  }
 0x152   : > { %4669 = vmatprep.subr.bf16.mxu0 %v5739_v61  ;;  %v5823_v61 = vld [vmem:[%s7079_s7 + $0x894] ss:$8 sps:$4 sm:$0xff]  }
 0x154   : > { %4412 = vmatpush1.bf16.msra.mxu1 %v5734_v62  ;;  %v5818_v62 = vld [vmem:[%s7079_s7 + $0x290] ss:$8 sps:$4 sm:$0xff]  }
 0x155   : > { %4670 = vmatpush1.bf16.msra.mxu0 %v5737_v63  ;;  %4413 = vmatprep.subr.bf16.mxu1 %v5742_v0  ;;  %v5821_v63 = vld [vmem:[%s7079_s7 + $0x890] ss:$8 sps:$4 sm:$0xff]   ;;  %v5826_v0 = vld [vmem:[%s7079_s7 + $0x2a4] ss:$8 sps:$4 sm:$0xff]  }
 0x156   : > { %4671 = vmatprep.subr.bf16.mxu0 %v5745_v1  ;;  %v5829_v1 = vld [vmem:[%s7079_s7 + $0x8a4] ss:$8 sps:$4 sm:$0xff]  }
 0x158   : > { %4414 = vmatpush1.bf16.msra.mxu1 %v5740_v6  ;;  %v5824_v6 = vld [vmem:[%s7079_s7 + $0x2a0] ss:$8 sps:$4 sm:$0xff]  }
 0x159   : > { %4672 = vmatpush1.bf16.msra.mxu0 %v5743_v9  ;;  %4415 = vmatprep.subr.bf16.mxu1 %v5748_v10  ;;  %v5827_v9 = vld [vmem:[%s7079_s7 + $0x8a0] ss:$8 sps:$4 sm:$0xff]   ;;  %v5832_v10 = vld [vmem:[%s7079_s7 + $0x2b4] ss:$8 sps:$4 sm:$0xff]  }
 0x15a   : > { %4673 = vmatprep.subr.bf16.mxu0 %v5751_v11  ;;  %v5835_v11 = vld [vmem:[%s7079_s7 + $0x8b4] ss:$8 sps:$4 sm:$0xff]  }
 0x15c   : > { %4416 = vmatpush1.bf16.msra.mxu1 %v5746_v12  ;;  %v5830_v12 = vld [vmem:[%s7079_s7 + $0x2b0] ss:$8 sps:$4 sm:$0xff]  }
 0x15d   : > { %4674 = vmatpush1.bf16.msra.mxu0 %v5749_v13  ;;  %4417 = vmatprep.subr.bf16.mxu1 %v5754_v14  ;;  %v5833_v13 = vld [vmem:[%s7079_s7 + $0x8b0] ss:$8 sps:$4 sm:$0xff]   ;;  %v5838_v14 = vld [vmem:[%s7079_s7 + $0x2c4] ss:$8 sps:$4 sm:$0xff]  }
 0x15e   : > { %4675 = vmatprep.subr.bf16.mxu0 %v5757_v15  ;;  %v5841_v15 = vld [vmem:[%s7079_s7 + $0x8c4] ss:$8 sps:$4 sm:$0xff]  }
 0x160   : > { %4418 = vmatpush1.bf16.msra.mxu1 %v5752_v16  ;;  %v5836_v16 = vld [vmem:[%s7079_s7 + $0x2c0] ss:$8 sps:$4 sm:$0xff]  }
 0x161   : > { %4676 = vmatpush1.bf16.msra.mxu0 %v5755_v17  ;;  %4419 = vmatprep.subr.bf16.mxu1 %v5760_v18  ;;  %v5839_v17 = vld [vmem:[%s7079_s7 + $0x8c0] ss:$8 sps:$4 sm:$0xff]   ;;  %v5844_v18 = vld [vmem:[%s7079_s7 + $0x2d4] ss:$8 sps:$4 sm:$0xff]  }
 0x162   : > { %4677 = vmatprep.subr.bf16.mxu0 %v5763_v19  ;;  %v5847_v19 = vld [vmem:[%s7079_s7 + $0x8d4] ss:$8 sps:$4 sm:$0xff]  }
 0x164   : > { %4420 = vmatpush1.bf16.msra.mxu1 %v5758_v20  ;;  %v5842_v20 = vld [vmem:[%s7079_s7 + $0x2d0] ss:$8 sps:$4 sm:$0xff]  }
 0x165   : > { %4678 = vmatpush1.bf16.msra.mxu0 %v5761_v21  ;;  %4432 = vmatprep.subr.bf16.mxu1 %v5766_v22  ;;  %v5845_v21 = vld [vmem:[%s7079_s7 + $0x8d0] ss:$8 sps:$4 sm:$0xff]   ;;  %v5850_v22 = vld [vmem:[%s7079_s7 + $0x2e4] ss:$8 sps:$4 sm:$0xff]  }
 0x166   : > { %4690 = vmatprep.subr.bf16.mxu0 %v5769_v23  ;;  %v5853_v23 = vld [vmem:[%s7079_s7 + $0x8e4] ss:$8 sps:$4 sm:$0xff]  }
 0x167   : > { %4422 = vmatmul.mubr.bf16.vlgmr.msra.gmra.mrb[0].mxu1 %v5064_v24  ;;  %v5848_v24 = vld [vmem:[%s7079_s7 + $0x2e0] ss:$8 sps:$4 sm:$0xff]  }
 0x168   : > { %4680 = vmatmul.mubr.bf16.vlgmr.msra.gmra.mrb[0].mxu0 %v5076_v26  ;;  %4433 = vmatpush1.bf16.msra.mxu1 %v5764_v25  ;;  %v5851_v25 = vld [vmem:[%s7079_s7 + $0x8e0] ss:$8 sps:$4 sm:$0xff]   ;;  %v5856_v26 = vld [vmem:[%s7079_s7 + $0x2f4] ss:$8 sps:$4 sm:$0xff]  }
 0x169   : > { %4691 = vmatpush1.bf16.msra.mxu0 %v5767_v2  ;;  %4434 = vmatprep.subr.bf16.mxu1 %v5772_v3  ;;  %v5859_v2 = vld [vmem:[%s7079_s7 + $0x8f4] ss:$8 sps:$4 sm:$0xff]   ;;  %v5854_v3 = vld [vmem:[%s7079_s7 + $0x2f0] ss:$8 sps:$4 sm:$0xff]  }
 0x16a   : > { %4692 = vmatprep.subr.bf16.mxu0 %v5775_v4  ;;  %4464 = vmatprep.mubr.bf16.mxu1 %v5067_v27  ;;  %v5857_v4 = vld [vmem:[%s7079_s7 + $0x8f0] ss:$8 sps:$4 sm:$0xff]   ;;  %v5865_v27 = vld [vmem:[%s7079_s7 + $0x904] ss:$8 sps:$4 sm:$0xff]  }
 0x16b   : > { %4722 = vmatprep.mubr.bf16.mxu0 %v5079_v32  ;;  %v7338_v32 = vld [vmem:[%s7642_s0 + $0x18] sm:$0xff] }
 0x16c   : > { %4435 = vmatpush1.bf16.msra.mxu1 %v5770_v8  ;;  %v5862_v8 = vld [vmem:[%s7079_s7 + $0x304] ss:$8 sps:$4 sm:$0xff]  }
 0x16d   : > { %4693 = vmatpush1.bf16.msra.mxu0 %v5773_v28  ;;  %4436 = vmatprep.subr.bf16.mxu1 %v5778_v31  ;;  %v5860_v28 = vld [vmem:[%s7079_s7 + $0x300] ss:$8 sps:$4 sm:$0xff]  }
 0x16e   : > { %4694 = vmatprep.subr.bf16.mxu0 %v5781_v33  ;;  %v5863_v31 = vld [vmem:[%s7079_s7 + $0x900] ss:$8 sps:$4 sm:$0xff]  }
 0x16f   : > { %v7343_v33 = vld [vmem:[%s7642_s0 + $0x78] sm:$0x11] }
 0x170   : > { %4437 = vmatpush1.bf16.msra.mxu1 %v5776_v34  ;;  %v5066_v34 = vcombine.low %v7252_v5, %v7257_v7  ;;  %v5871_v5 = vld [vmem:[%s7079_s7 + $0x914] ss:$8 sps:$4 sm:$0xff]   ;;  %v5069_v7 = vcombine.high %v7338_v32, %v7343_v33 }
 0x171   : > { %4695 = vmatpush1.bf16.msra.mxu0 %v5779_v35  ;;  %4438 = vmatprep.subr.bf16.mxu1 %v5784_v36  ;;  %v5078_v35 = vcombine.low %v7266_v29, %v7271_v30  ;;  %v7352_v36 = vld [vmem:[%s7642_s0 + $0x48] sm:$0xff] }
 0x172   : > { %4696 = vmatprep.subr.bf16.mxu0 %v5787_v37  ;;  %v7357_v37 = vld [vmem:[%s7642_s0 + $0xa8] sm:$0x11] }
 0x173   : > { %v5081_v29 = vcombine.high %v7352_v36, %v7357_v37  ;;  %v5866_v30 = vld [vmem:[%s7079_s7 + $0x310] ss:$8 sps:$4 sm:$0xff]  }
 0x174   : > { %4439 = vmatpush1.bf16.msra.mxu1 %v5782_v38  ;;  %v5868_v38 = vld [vmem:[%s7079_s7 + $0x314] ss:$8 sps:$4 sm:$0xff]  }
 0x175   : > { %4697 = vmatpush1.bf16.msra.mxu0 %v5785_v39  ;;  %4440 = vmatprep.subr.bf16.mxu1 %v5790_v40  ;;  %v5869_v39 = vld [vmem:[%s7079_s7 + $0x910] ss:$8 sps:$4 sm:$0xff]   ;;  %v5874_v40 = vld [vmem:[%s7079_s7 + $0x324] ss:$8 sps:$4 sm:$0xff]  }
 0x176   : > { %4698 = vmatprep.subr.bf16.mxu0 %v5793_v41  ;;  %v5877_v41 = vld [vmem:[%s7079_s7 + $0x924] ss:$8 sps:$4 sm:$0xff]  }
 0x178   : > { %4441 = vmatpush1.bf16.msra.mxu1 %v5788_v42  ;;  %v5872_v42 = vld [vmem:[%s7079_s7 + $0x320] ss:$8 sps:$4 sm:$0xff]  }
 0x179   : > { %4699 = vmatpush1.bf16.msra.mxu0 %v5791_v43  ;;  %4442 = vmatprep.subr.bf16.mxu1 %v5796_v44  ;;  %v5875_v43 = vld [vmem:[%s7079_s7 + $0x920] ss:$8 sps:$4 sm:$0xff]   ;;  %v5880_v44 = vld [vmem:[%s7079_s7 + $0x334] ss:$8 sps:$4 sm:$0xff]  }
 0x17a   : > { %4700 = vmatprep.subr.bf16.mxu0 %v5799_v45  ;;  %v5883_v45 = vld [vmem:[%s7079_s7 + $0x934] ss:$8 sps:$4 sm:$0xff]  }
 0x17c   : > { %4443 = vmatpush1.bf16.msra.mxu1 %v5794_v46  ;;  %v5878_v46 = vld [vmem:[%s7079_s7 + $0x330] ss:$8 sps:$4 sm:$0xff]  }
 0x17d   : > { %4701 = vmatpush1.bf16.msra.mxu0 %v5797_v47  ;;  %4444 = vmatprep.subr.bf16.mxu1 %v5802_v48  ;;  %v5881_v47 = vld [vmem:[%s7079_s7 + $0x930] ss:$8 sps:$4 sm:$0xff]   ;;  %v5886_v48 = vld [vmem:[%s7079_s7 + $0x344] ss:$8 sps:$4 sm:$0xff]  }
 0x17e   : > { %4702 = vmatprep.subr.bf16.mxu0 %v5805_v49  ;;  %v5889_v49 = vld [vmem:[%s7079_s7 + $0x944] ss:$8 sps:$4 sm:$0xff]  }
 0x180   : > { %4445 = vmatpush1.bf16.msra.mxu1 %v5800_v50  ;;  %v5884_v50 = vld [vmem:[%s7079_s7 + $0x340] ss:$8 sps:$4 sm:$0xff]  }
 0x181   : > { %4703 = vmatpush1.bf16.msra.mxu0 %v5803_v51  ;;  %4446 = vmatprep.subr.bf16.mxu1 %v5808_v52  ;;  %v5887_v51 = vld [vmem:[%s7079_s7 + $0x940] ss:$8 sps:$4 sm:$0xff]   ;;  %v5892_v52 = vld [vmem:[%s7079_s7 + $0x354] ss:$8 sps:$4 sm:$0xff]  }
 0x182   : > { %4704 = vmatprep.subr.bf16.mxu0 %v5811_v53  ;;  %v5895_v53 = vld [vmem:[%s7079_s7 + $0x954] ss:$8 sps:$4 sm:$0xff]  }
 0x184   : > { %4447 = vmatpush1.bf16.msra.mxu1 %v5806_v54  ;;  %v5890_v54 = vld [vmem:[%s7079_s7 + $0x350] ss:$8 sps:$4 sm:$0xff]  }
 0x185   : > { %4705 = vmatpush1.bf16.msra.mxu0 %v5809_v55  ;;  %4448 = vmatprep.subr.bf16.mxu1 %v5814_v56  ;;  %v5893_v55 = vld [vmem:[%s7079_s7 + $0x950] ss:$8 sps:$4 sm:$0xff]   ;;  %v5898_v56 = vld [vmem:[%s7079_s7 + $0x364] ss:$8 sps:$4 sm:$0xff]  }
 0x186   : > { %4706 = vmatprep.subr.bf16.mxu0 %v5817_v57  ;;  %v5901_v57 = vld [vmem:[%s7079_s7 + $0x964] ss:$8 sps:$4 sm:$0xff]  }
 0x188   : > { %4449 = vmatpush1.bf16.msra.mxu1 %v5812_v58  ;;  %v5896_v58 = vld [vmem:[%s7079_s7 + $0x360] ss:$8 sps:$4 sm:$0xff]  }
 0x189   : > { %4707 = vmatpush1.bf16.msra.mxu0 %v5815_v59  ;;  %4450 = vmatprep.subr.bf16.mxu1 %v5820_v60  ;;  %v5899_v59 = vld [vmem:[%s7079_s7 + $0x960] ss:$8 sps:$4 sm:$0xff]   ;;  %v5904_v60 = vld [vmem:[%s7079_s7 + $0x374] ss:$8 sps:$4 sm:$0xff]  }
 0x18a   : > { %4708 = vmatprep.subr.bf16.mxu0 %v5823_v61  ;;  %v5907_v61 = vld [vmem:[%s7079_s7 + $0x974] ss:$8 sps:$4 sm:$0xff]  }
 0x18c   : > { %4451 = vmatpush1.bf16.msra.mxu1 %v5818_v62  ;;  %v5902_v62 = vld [vmem:[%s7079_s7 + $0x370] ss:$8 sps:$4 sm:$0xff]  }
 0x18d   : > { %4709 = vmatpush1.bf16.msra.mxu0 %v5821_v63  ;;  %4452 = vmatprep.subr.bf16.mxu1 %v5826_v0  ;;  %v5905_v63 = vld [vmem:[%s7079_s7 + $0x970] ss:$8 sps:$4 sm:$0xff]   ;;  %v5910_v0 = vld [vmem:[%s7079_s7 + $0x384] ss:$8 sps:$4 sm:$0xff]  }
 0x18e   : > { %4710 = vmatprep.subr.bf16.mxu0 %v5829_v1  ;;  %v5913_v1 = vld [vmem:[%s7079_s7 + $0x984] ss:$8 sps:$4 sm:$0xff]  }
 0x190   : > { %4453 = vmatpush1.bf16.msra.mxu1 %v5824_v6  ;;  %v5908_v6 = vld [vmem:[%s7079_s7 + $0x380] ss:$8 sps:$4 sm:$0xff]  }
 0x191   : > { %4711 = vmatpush1.bf16.msra.mxu0 %v5827_v9  ;;  %4454 = vmatprep.subr.bf16.mxu1 %v5832_v10  ;;  %v5911_v9 = vld [vmem:[%s7079_s7 + $0x980] ss:$8 sps:$4 sm:$0xff]   ;;  %v5916_v10 = vld [vmem:[%s7079_s7 + $0x394] ss:$8 sps:$4 sm:$0xff]  }
 0x192   : > { %4712 = vmatprep.subr.bf16.mxu0 %v5835_v11  ;;  %v5919_v11 = vld [vmem:[%s7079_s7 + $0x994] ss:$8 sps:$4 sm:$0xff]  }
 0x194   : > { %4455 = vmatpush1.bf16.msra.mxu1 %v5830_v12  ;;  %v5914_v12 = vld [vmem:[%s7079_s7 + $0x390] ss:$8 sps:$4 sm:$0xff]  }
 0x195   : > { %4713 = vmatpush1.bf16.msra.mxu0 %v5833_v13  ;;  %4456 = vmatprep.subr.bf16.mxu1 %v5838_v14  ;;  %v5917_v13 = vld [vmem:[%s7079_s7 + $0x990] ss:$8 sps:$4 sm:$0xff]   ;;  %v5922_v14 = vld [vmem:[%s7079_s7 + $0x3a4] ss:$8 sps:$4 sm:$0xff]  }
 0x196   : > { %4714 = vmatprep.subr.bf16.mxu0 %v5841_v15  ;;  %v5925_v15 = vld [vmem:[%s7079_s7 + $0x9a4] ss:$8 sps:$4 sm:$0xff]  }
 0x198   : > { %4457 = vmatpush1.bf16.msra.mxu1 %v5836_v16  ;;  %v5920_v16 = vld [vmem:[%s7079_s7 + $0x3a0] ss:$8 sps:$4 sm:$0xff]  }
 0x199   : > { %4715 = vmatpush1.bf16.msra.mxu0 %v5839_v17  ;;  %4458 = vmatprep.subr.bf16.mxu1 %v5844_v18  ;;  %v5923_v17 = vld [vmem:[%s7079_s7 + $0x9a0] ss:$8 sps:$4 sm:$0xff]   ;;  %v5928_v18 = vld [vmem:[%s7079_s7 + $0x3b4] ss:$8 sps:$4 sm:$0xff]  }
 0x19a   : > { %4716 = vmatprep.subr.bf16.mxu0 %v5847_v19  ;;  %v5931_v19 = vld [vmem:[%s7079_s7 + $0x9b4] ss:$8 sps:$4 sm:$0xff]  }
 0x19c   : > { %4459 = vmatpush1.bf16.msra.mxu1 %v5842_v20  ;;  %v5926_v20 = vld [vmem:[%s7079_s7 + $0x3b0] ss:$8 sps:$4 sm:$0xff]  }
 0x19d   : > { %4717 = vmatpush1.bf16.msra.mxu0 %v5845_v21  ;;  %4460 = vmatprep.subr.bf16.mxu1 %v5850_v22  ;;  %v5929_v21 = vld [vmem:[%s7079_s7 + $0x9b0] ss:$8 sps:$4 sm:$0xff]   ;;  %v5934_v22 = vld [vmem:[%s7079_s7 + $0x3c4] ss:$8 sps:$4 sm:$0xff]  }
 0x19e   : > { %4718 = vmatprep.subr.bf16.mxu0 %v5853_v23  ;;  %v5937_v23 = vld [vmem:[%s7079_s7 + $0x9c4] ss:$8 sps:$4 sm:$0xff]  }
 0x1a0   : > { %4461 = vmatpush1.bf16.msra.mxu1 %v5848_v24  ;;  %v5932_v24 = vld [vmem:[%s7079_s7 + $0x3c0] ss:$8 sps:$4 sm:$0xff]  }
 0x1a1   : > { %4719 = vmatpush1.bf16.msra.mxu0 %v5851_v25  ;;  %4462 = vmatprep.subr.bf16.mxu1 %v5856_v26  ;;  %v5935_v25 = vld [vmem:[%s7079_s7 + $0x9c0] ss:$8 sps:$4 sm:$0xff]   ;;  %v5940_v26 = vld [vmem:[%s7079_s7 + $0x3d4] ss:$8 sps:$4 sm:$0xff]  }
 0x1a2   : > { %4720 = vmatprep.subr.bf16.mxu0 %v5859_v2  ;;  %v5943_v2 = vld [vmem:[%s7079_s7 + $0x9d4] ss:$8 sps:$4 sm:$0xff]  }
 0x1a4   : > { %4463 = vmatpush1.bf16.msra.mxu1 %v5854_v3  ;;  %v5938_v3 = vld [vmem:[%s7079_s7 + $0x3d0] ss:$8 sps:$4 sm:$0xff]  }
 0x1a5   : > { %4721 = vmatpush1.bf16.msra.mxu0 %v5857_v4  ;;  %4475 = vmatprep.subr.bf16.mxu1 %v5862_v8  ;;  %v5941_v4 = vld [vmem:[%s7079_s7 + $0x9d0] ss:$8 sps:$4 sm:$0xff]   ;;  %v5946_v8 = vld [vmem:[%s7079_s7 + $0x3e4] ss:$8 sps:$4 sm:$0xff]  }
 0x1a6   : > { %4733 = vmatprep.subr.bf16.mxu0 %v5865_v27  ;;  %v5949_v27 = vld [vmem:[%s7079_s7 + $0x9e4] ss:$8 sps:$4 sm:$0xff]  }
 0x1a7   : > { %4465 = vmatmul.mubr.bf16.vlgmr.msra.gmra.mrb[0].mxu1 %v5066_v34  ;;  %v5952_v34 = vld [vmem:[%s7079_s7 + $0x3f4] ss:$8 sps:$4 sm:$0xff]  }
 0x1a8   : > { %4723 = vmatmul.mubr.bf16.vlgmr.msra.gmra.mrb[0].mxu0 %v5078_v35  ;;  %4476 = vmatpush1.bf16.msra.mxu1 %v5860_v28  ;;  %v5944_v28 = vld [vmem:[%s7079_s7 + $0x3e0] ss:$8 sps:$4 sm:$0xff]   ;;  %v5955_v35 = vld [vmem:[%s7079_s7 + $0x9f4] ss:$8 sps:$4 sm:$0xff]  }
 0x1a9   : > { %4734 = vmatpush1.bf16.msra.mxu0 %v5863_v31  ;;  %4477 = vmatprep.subr.bf16.mxu1 %v5868_v38  ;;  %v5947_v31 = vld [vmem:[%s7079_s7 + $0x9e0] ss:$8 sps:$4 sm:$0xff]   ;;  %v5950_v38 = vld [vmem:[%s7079_s7 + $0x3f0] ss:$8 sps:$4 sm:$0xff]  }
 0x1aa   : > { %4735 = vmatprep.subr.bf16.mxu0 %v5871_v5  ;;  %4507 = vmatprep.mubr.bf16.mxu1 %v5069_v7  ;;  %v5953_v5 = vld [vmem:[%s7079_s7 + $0x9f0] ss:$8 sps:$4 sm:$0xff]   ;;  %v5958_v7 = vld [vmem:[%s7079_s7 + $0x404] ss:$8 sps:$4 sm:$0xff]  }
 0x1ab   : > { %4765 = vmatprep.mubr.bf16.mxu0 %v5081_v29  ;;  %v5961_v29 = vld [vmem:[%s7079_s7 + $0xa04] ss:$8 sps:$4 sm:$0xff]  }
 0x1ac   : > { %4478 = vmatpush1.bf16.msra.mxu1 %v5866_v30  ;;  %v5956_v30 = vld [vmem:[%s7079_s7 + $0x400] ss:$8 sps:$4 sm:$0xff]  }
 0x1ad   : > { %4736 = vmatpush1.bf16.msra.mxu0 %v5869_v39  ;;  %4479 = vmatprep.subr.bf16.mxu1 %v5874_v40  ;;  %v5959_v39 = vld [vmem:[%s7079_s7 + $0xa00] ss:$8 sps:$4 sm:$0xff]   ;;  %v7430_v40 = vld [vmem:[%s7642_s0 + $0x20] sm:$0xff] }
 0x1ae   : > { %4737 = vmatprep.subr.bf16.mxu0 %v5877_v41  ;;  %v7435_v41 = vld [vmem:[%s7642_s0 + $0x80] sm:$0x11] }
 0x1b0   : > { %4480 = vmatpush1.bf16.msra.mxu1 %v5872_v42  ;;  %v5068_v42 = vcombine.low %v7338_v32, %v7343_v33  ;;  %v5967_v32 = vld [vmem:[%s7079_s7 + $0xa14] ss:$8 sps:$4 sm:$0xff]   ;;  %v5071_v33 = vcombine.high %v7430_v40, %v7435_v41 }
 0x1b1   : > { %4738 = vmatpush1.bf16.msra.mxu0 %v5875_v43  ;;  %4481 = vmatprep.subr.bf16.mxu1 %v5880_v44  ;;  %v5080_v43 = vcombine.low %v7352_v36, %v7357_v37  ;;  %v7444_v44 = vld [vmem:[%s7642_s0 + $0x50] sm:$0xff]  ;;  %v5962_v37 = vld [vmem:[%s7079_s7 + $0x410] ss:$8 sps:$4 sm:$0xff]  }
 0x1b2   : > { %4739 = vmatprep.subr.bf16.mxu0 %v5883_v45  ;;  %v7449_v45 = vld [vmem:[%s7642_s0 + $0xb0] sm:$0x11] }
 0x1b3   : > { %v5083_v36 = vcombine.high %v7444_v44, %v7449_v45 }
 0x1b4   : > { %4482 = vmatpush1.bf16.msra.mxu1 %v5878_v46  ;;  %v5964_v46 = vld [vmem:[%s7079_s7 + $0x414] ss:$8 sps:$4 sm:$0xff]  }
 0x1b5   : > { %4740 = vmatpush1.bf16.msra.mxu0 %v5881_v47  ;;  %4483 = vmatprep.subr.bf16.mxu1 %v5886_v48  ;;  %v5965_v47 = vld [vmem:[%s7079_s7 + $0xa10] ss:$8 sps:$4 sm:$0xff]   ;;  %v5970_v48 = vld [vmem:[%s7079_s7 + $0x424] ss:$8 sps:$4 sm:$0xff]  }
 0x1b6   : > { %4741 = vmatprep.subr.bf16.mxu0 %v5889_v49  ;;  %v5973_v49 = vld [vmem:[%s7079_s7 + $0xa24] ss:$8 sps:$4 sm:$0xff]  }
 0x1b8   : > { %4484 = vmatpush1.bf16.msra.mxu1 %v5884_v50  ;;  %v5968_v50 = vld [vmem:[%s7079_s7 + $0x420] ss:$8 sps:$4 sm:$0xff]  }
 0x1b9   : > { %4742 = vmatpush1.bf16.msra.mxu0 %v5887_v51  ;;  %4485 = vmatprep.subr.bf16.mxu1 %v5892_v52  ;;  %v5971_v51 = vld [vmem:[%s7079_s7 + $0xa20] ss:$8 sps:$4 sm:$0xff]   ;;  %v5976_v52 = vld [vmem:[%s7079_s7 + $0x434] ss:$8 sps:$4 sm:$0xff]  }
 0x1ba   : > { %4743 = vmatprep.subr.bf16.mxu0 %v5895_v53  ;;  %v5979_v53 = vld [vmem:[%s7079_s7 + $0xa34] ss:$8 sps:$4 sm:$0xff]  }
 0x1bc   : > { %4486 = vmatpush1.bf16.msra.mxu1 %v5890_v54  ;;  %v5974_v54 = vld [vmem:[%s7079_s7 + $0x430] ss:$8 sps:$4 sm:$0xff]  }
 0x1bd   : > { %4744 = vmatpush1.bf16.msra.mxu0 %v5893_v55  ;;  %4487 = vmatprep.subr.bf16.mxu1 %v5898_v56  ;;  %v5977_v55 = vld [vmem:[%s7079_s7 + $0xa30] ss:$8 sps:$4 sm:$0xff]   ;;  %v5982_v56 = vld [vmem:[%s7079_s7 + $0x444] ss:$8 sps:$4 sm:$0xff]  }
 0x1be   : > { %4745 = vmatprep.subr.bf16.mxu0 %v5901_v57  ;;  %v5985_v57 = vld [vmem:[%s7079_s7 + $0xa44] ss:$8 sps:$4 sm:$0xff]  }
 0x1c0   : > { %4488 = vmatpush1.bf16.msra.mxu1 %v5896_v58  ;;  %v5980_v58 = vld [vmem:[%s7079_s7 + $0x440] ss:$8 sps:$4 sm:$0xff]  }
 0x1c1   : > { %4746 = vmatpush1.bf16.msra.mxu0 %v5899_v59  ;;  %4489 = vmatprep.subr.bf16.mxu1 %v5904_v60  ;;  %v5983_v59 = vld [vmem:[%s7079_s7 + $0xa40] ss:$8 sps:$4 sm:$0xff]   ;;  %v5988_v60 = vld [vmem:[%s7079_s7 + $0x454] ss:$8 sps:$4 sm:$0xff]  }
 0x1c2   : > { %4747 = vmatprep.subr.bf16.mxu0 %v5907_v61  ;;  %v5991_v61 = vld [vmem:[%s7079_s7 + $0xa54] ss:$8 sps:$4 sm:$0xff]  }
 0x1c4   : > { %4490 = vmatpush1.bf16.msra.mxu1 %v5902_v62  ;;  %v5986_v62 = vld [vmem:[%s7079_s7 + $0x450] ss:$8 sps:$4 sm:$0xff]  }
 0x1c5   : > { %4748 = vmatpush1.bf16.msra.mxu0 %v5905_v63  ;;  %4491 = vmatprep.subr.bf16.mxu1 %v5910_v0  ;;  %v5989_v63 = vld [vmem:[%s7079_s7 + $0xa50] ss:$8 sps:$4 sm:$0xff]   ;;  %v5994_v0 = vld [vmem:[%s7079_s7 + $0x464] ss:$8 sps:$4 sm:$0xff]  }
 0x1c6   : > { %4749 = vmatprep.subr.bf16.mxu0 %v5913_v1  ;;  %v5997_v1 = vld [vmem:[%s7079_s7 + $0xa64] ss:$8 sps:$4 sm:$0xff]  }
 0x1c8   : > { %4492 = vmatpush1.bf16.msra.mxu1 %v5908_v6  ;;  %v5992_v6 = vld [vmem:[%s7079_s7 + $0x460] ss:$8 sps:$4 sm:$0xff]  }
 0x1c9   : > { %4750 = vmatpush1.bf16.msra.mxu0 %v5911_v9  ;;  %4493 = vmatprep.subr.bf16.mxu1 %v5916_v10  ;;  %v5995_v9 = vld [vmem:[%s7079_s7 + $0xa60] ss:$8 sps:$4 sm:$0xff]   ;;  %v6000_v10 = vld [vmem:[%s7079_s7 + $0x474] ss:$8 sps:$4 sm:$0xff]  }
 0x1ca   : > { %4751 = vmatprep.subr.bf16.mxu0 %v5919_v11  ;;  %v6003_v11 = vld [vmem:[%s7079_s7 + $0xa74] ss:$8 sps:$4 sm:$0xff]  }
 0x1cc   : > { %4494 = vmatpush1.bf16.msra.mxu1 %v5914_v12  ;;  %v5998_v12 = vld [vmem:[%s7079_s7 + $0x470] ss:$8 sps:$4 sm:$0xff]  }
 0x1cd   : > { %4752 = vmatpush1.bf16.msra.mxu0 %v5917_v13  ;;  %4495 = vmatprep.subr.bf16.mxu1 %v5922_v14  ;;  %v6001_v13 = vld [vmem:[%s7079_s7 + $0xa70] ss:$8 sps:$4 sm:$0xff]   ;;  %v6006_v14 = vld [vmem:[%s7079_s7 + $0x484] ss:$8 sps:$4 sm:$0xff]  }
 0x1ce   : > { %4753 = vmatprep.subr.bf16.mxu0 %v5925_v15  ;;  %v6009_v15 = vld [vmem:[%s7079_s7 + $0xa84] ss:$8 sps:$4 sm:$0xff]  }
 0x1d0   : > { %4496 = vmatpush1.bf16.msra.mxu1 %v5920_v16  ;;  %v6004_v16 = vld [vmem:[%s7079_s7 + $0x480] ss:$8 sps:$4 sm:$0xff]  }
 0x1d1   : > { %4754 = vmatpush1.bf16.msra.mxu0 %v5923_v17  ;;  %4497 = vmatprep.subr.bf16.mxu1 %v5928_v18  ;;  %v6007_v17 = vld [vmem:[%s7079_s7 + $0xa80] ss:$8 sps:$4 sm:$0xff]   ;;  %v6012_v18 = vld [vmem:[%s7079_s7 + $0x494] ss:$8 sps:$4 sm:$0xff]  }
 0x1d2   : > { %4755 = vmatprep.subr.bf16.mxu0 %v5931_v19  ;;  %v6015_v19 = vld [vmem:[%s7079_s7 + $0xa94] ss:$8 sps:$4 sm:$0xff]  }
 0x1d4   : > { %4498 = vmatpush1.bf16.msra.mxu1 %v5926_v20  ;;  %v6010_v20 = vld [vmem:[%s7079_s7 + $0x490] ss:$8 sps:$4 sm:$0xff]  }
 0x1d5   : > { %4756 = vmatpush1.bf16.msra.mxu0 %v5929_v21  ;;  %4499 = vmatprep.subr.bf16.mxu1 %v5934_v22  ;;  %v6013_v21 = vld [vmem:[%s7079_s7 + $0xa90] ss:$8 sps:$4 sm:$0xff]   ;;  %v6018_v22 = vld [vmem:[%s7079_s7 + $0x4a4] ss:$8 sps:$4 sm:$0xff]  }
 0x1d6   : > { %4757 = vmatprep.subr.bf16.mxu0 %v5937_v23  ;;  %v6021_v23 = vld [vmem:[%s7079_s7 + $0xaa4] ss:$8 sps:$4 sm:$0xff]  }
 0x1d8   : > { %4500 = vmatpush1.bf16.msra.mxu1 %v5932_v24  ;;  %v6016_v24 = vld [vmem:[%s7079_s7 + $0x4a0] ss:$8 sps:$4 sm:$0xff]  }
 0x1d9   : > { %4758 = vmatpush1.bf16.msra.mxu0 %v5935_v25  ;;  %4501 = vmatprep.subr.bf16.mxu1 %v5940_v26  ;;  %v6019_v25 = vld [vmem:[%s7079_s7 + $0xaa0] ss:$8 sps:$4 sm:$0xff]   ;;  %v6024_v26 = vld [vmem:[%s7079_s7 + $0x4b4] ss:$8 sps:$4 sm:$0xff]  }
 0x1da   : > { %4759 = vmatprep.subr.bf16.mxu0 %v5943_v2  ;;  %v6027_v2 = vld [vmem:[%s7079_s7 + $0xab4] ss:$8 sps:$4 sm:$0xff]  }
 0x1dc   : > { %4502 = vmatpush1.bf16.msra.mxu1 %v5938_v3  ;;  %v6022_v3 = vld [vmem:[%s7079_s7 + $0x4b0] ss:$8 sps:$4 sm:$0xff]  }
 0x1dd   : > { %4760 = vmatpush1.bf16.msra.mxu0 %v5941_v4  ;;  %4503 = vmatprep.subr.bf16.mxu1 %v5946_v8  ;;  %v6025_v4 = vld [vmem:[%s7079_s7 + $0xab0] ss:$8 sps:$4 sm:$0xff]   ;;  %v6030_v8 = vld [vmem:[%s7079_s7 + $0x4c4] ss:$8 sps:$4 sm:$0xff]  }
 0x1de   : > { %4761 = vmatprep.subr.bf16.mxu0 %v5949_v27  ;;  %v6033_v27 = vld [vmem:[%s7079_s7 + $0xac4] ss:$8 sps:$4 sm:$0xff]  }
 0x1e0   : > { %4504 = vmatpush1.bf16.msra.mxu1 %v5944_v28  ;;  %v6028_v28 = vld [vmem:[%s7079_s7 + $0x4c0] ss:$8 sps:$4 sm:$0xff]  }
 0x1e1   : > { %4762 = vmatpush1.bf16.msra.mxu0 %v5947_v31  ;;  %4505 = vmatprep.subr.bf16.mxu1 %v5952_v34  ;;  %v6031_v31 = vld [vmem:[%s7079_s7 + $0xac0] ss:$8 sps:$4 sm:$0xff]   ;;  %v6036_v34 = vld [vmem:[%s7079_s7 + $0x4d4] ss:$8 sps:$4 sm:$0xff]  }
 0x1e2   : > { %4763 = vmatprep.subr.bf16.mxu0 %v5955_v35  ;;  %v6039_v35 = vld [vmem:[%s7079_s7 + $0xad4] ss:$8 sps:$4 sm:$0xff]  }
 0x1e4   : > { %4506 = vmatpush1.bf16.msra.mxu1 %v5950_v38  ;;  %v6034_v38 = vld [vmem:[%s7079_s7 + $0x4d0] ss:$8 sps:$4 sm:$0xff]  }
 0x1e5   : > { %4764 = vmatpush1.bf16.msra.mxu0 %v5953_v5  ;;  %4518 = vmatprep.subr.bf16.mxu1 %v5958_v7  ;;  %v6037_v5 = vld [vmem:[%s7079_s7 + $0xad0] ss:$8 sps:$4 sm:$0xff]   ;;  %v6042_v7 = vld [vmem:[%s7079_s7 + $0x4e4] ss:$8 sps:$4 sm:$0xff]  }
 0x1e6   : > { %4776 = vmatprep.subr.bf16.mxu0 %v5961_v29  ;;  %v6045_v29 = vld [vmem:[%s7079_s7 + $0xae4] ss:$8 sps:$4 sm:$0xff]  }
 0x1e7   : > { %4508 = vmatmul.mubr.bf16.vlgmr.msra.gmra.mrb[0].mxu1 %v5068_v42  ;;  %v6048_v42 = vld [vmem:[%s7079_s7 + $0x4f4] ss:$8 sps:$4 sm:$0xff]  }
 0x1e8   : > { %4766 = vmatmul.mubr.bf16.vlgmr.msra.gmra.mrb[0].mxu0 %v5080_v43  ;;  %4519 = vmatpush1.bf16.msra.mxu1 %v5956_v30  ;;  %v6040_v30 = vld [vmem:[%s7079_s7 + $0x4e0] ss:$8 sps:$4 sm:$0xff]   ;;  %v6051_v43 = vld [vmem:[%s7079_s7 + $0xaf4] ss:$8 sps:$4 sm:$0xff]  }
 0x1e9   : > { %4777 = vmatpush1.bf16.msra.mxu0 %v5959_v39  ;;  %4520 = vmatprep.subr.bf16.mxu1 %v5964_v46  ;;  %v6043_v39 = vld [vmem:[%s7079_s7 + $0xae0] ss:$8 sps:$4 sm:$0xff]   ;;  %v6046_v46 = vld [vmem:[%s7079_s7 + $0x4f0] ss:$8 sps:$4 sm:$0xff]  }
 0x1ea   : > { %4778 = vmatprep.subr.bf16.mxu0 %v5967_v32  ;;  %4550 = vmatprep.mubr.bf16.mxu1 %v5071_v33  ;;  %v6049_v32 = vld [vmem:[%s7079_s7 + $0xaf0] ss:$8 sps:$4 sm:$0xff]   ;;  %v6054_v33 = vld [vmem:[%s7079_s7 + $0x504] ss:$8 sps:$4 sm:$0xff]  }
 0x1eb   : > { %4808 = vmatprep.mubr.bf16.mxu0 %v5083_v36  ;;  %v6057_v36 = vld [vmem:[%s7079_s7 + $0xb04] ss:$8 sps:$4 sm:$0xff]  }
 0x1ec   : > { %4521 = vmatpush1.bf16.msra.mxu1 %v5962_v37  ;;  %v7520_v37 = vld [vmem:[%s7642_s0 + $0x28] sm:$0xff] }
 0x1ed   : > { %4779 = vmatpush1.bf16.msra.mxu0 %v5965_v47  ;;  %4522 = vmatprep.subr.bf16.mxu1 %v5970_v48  ;;  %v5070_v47 = vcombine.low %v7430_v40, %v7435_v41  ;;  %v5082_v48 = vcombine.low %v7444_v44, %v7449_v45  ;;  %v6052_v40 = vld [vmem:[%s7079_s7 + $0x500] ss:$8 sps:$4 sm:$0xff]   ;;  %v6060_v44 = vld [vmem:[%s7079_s7 + $0x514] ss:$8 sps:$4 sm:$0xff]  }
 0x1ee   : > { %4780 = vmatprep.subr.bf16.mxu0 %v5973_v49  ;;  %v7529_v49 = vld [vmem:[%s7642_s0 + $0x88] sm:$0x11]  ;;  %v6055_v41 = vld [vmem:[%s7079_s7 + $0xb00] ss:$8 sps:$4 sm:$0xff]  }
 0x1ef   : > { %v6063_v45 = vld [vmem:[%s7079_s7 + $0xb14] ss:$8 sps:$4 sm:$0xff]  }
 0x1f0   : > { %4523 = vmatpush1.bf16.msra.mxu1 %v5968_v50  ;;  %v7534_v50 = vld [vmem:[%s7642_s0 + $0x58] sm:$0xff] }
 0x1f1   : > { %4781 = vmatpush1.bf16.msra.mxu0 %v5971_v51  ;;  %4524 = vmatprep.subr.bf16.mxu1 %v5976_v52  ;;  %v7539_v51 = vld [vmem:[%s7642_s0 + $0xb8] sm:$0x11]  ;;  %v5073_v52 = vcombine.high %v7520_v37, %v7529_v49 }
 0x1f2   : > { %4782 = vmatprep.subr.bf16.mxu0 %v5979_v53  ;;  %v5085_v53 = vcombine.high %v7534_v50, %v7539_v51 }
 0x1f4   : > { %4525 = vmatpush1.bf16.msra.mxu1 %v5974_v54  ;;  %v6058_v54 = vld [vmem:[%s7079_s7 + $0x510] ss:$8 sps:$4 sm:$0xff]  }
 0x1f5   : > { %4783 = vmatpush1.bf16.msra.mxu0 %v5977_v55  ;;  %4526 = vmatprep.subr.bf16.mxu1 %v5982_v56  ;;  %v6061_v55 = vld [vmem:[%s7079_s7 + $0xb10] ss:$8 sps:$4 sm:$0xff]   ;;  %v6066_v56 = vld [vmem:[%s7079_s7 + $0x524] ss:$8 sps:$4 sm:$0xff]  }
 0x1f6   : > { %4784 = vmatprep.subr.bf16.mxu0 %v5985_v57  ;;  %v6069_v57 = vld [vmem:[%s7079_s7 + $0xb24] ss:$8 sps:$4 sm:$0xff]  }
 0x1f8   : > { %4527 = vmatpush1.bf16.msra.mxu1 %v5980_v58  ;;  %v6064_v58 = vld [vmem:[%s7079_s7 + $0x520] ss:$8 sps:$4 sm:$0xff]  }
 0x1f9   : > { %4785 = vmatpush1.bf16.msra.mxu0 %v5983_v59  ;;  %4528 = vmatprep.subr.bf16.mxu1 %v5988_v60  ;;  %v6067_v59 = vld [vmem:[%s7079_s7 + $0xb20] ss:$8 sps:$4 sm:$0xff]   ;;  %v6072_v60 = vld [vmem:[%s7079_s7 + $0x534] ss:$8 sps:$4 sm:$0xff]  }
 0x1fa   : > { %4786 = vmatprep.subr.bf16.mxu0 %v5991_v61  ;;  %v6075_v61 = vld [vmem:[%s7079_s7 + $0xb34] ss:$8 sps:$4 sm:$0xff]  }
 0x1fc   : > { %4529 = vmatpush1.bf16.msra.mxu1 %v5986_v62  ;;  %v6070_v62 = vld [vmem:[%s7079_s7 + $0x530] ss:$8 sps:$4 sm:$0xff]  }
 0x1fd   : > { %4787 = vmatpush1.bf16.msra.mxu0 %v5989_v63  ;;  %4530 = vmatprep.subr.bf16.mxu1 %v5994_v0  ;;  %v6073_v63 = vld [vmem:[%s7079_s7 + $0xb30] ss:$8 sps:$4 sm:$0xff]   ;;  %v6078_v0 = vld [vmem:[%s7079_s7 + $0x544] ss:$8 sps:$4 sm:$0xff]  }
 0x1fe   : > { %4788 = vmatprep.subr.bf16.mxu0 %v5997_v1  ;;  %v6081_v1 = vld [vmem:[%s7079_s7 + $0xb44] ss:$8 sps:$4 sm:$0xff]  }
 0x200   : > { %4531 = vmatpush1.bf16.msra.mxu1 %v5992_v6  ;;  %v6076_v6 = vld [vmem:[%s7079_s7 + $0x540] ss:$8 sps:$4 sm:$0xff]  }
 0x201   : > { %4789 = vmatpush1.bf16.msra.mxu0 %v5995_v9  ;;  %4532 = vmatprep.subr.bf16.mxu1 %v6000_v10  ;;  %v6079_v9 = vld [vmem:[%s7079_s7 + $0xb40] ss:$8 sps:$4 sm:$0xff]   ;;  %v6084_v10 = vld [vmem:[%s7079_s7 + $0x554] ss:$8 sps:$4 sm:$0xff]  }
 0x202   : > { %4790 = vmatprep.subr.bf16.mxu0 %v6003_v11  ;;  %v6087_v11 = vld [vmem:[%s7079_s7 + $0xb54] ss:$8 sps:$4 sm:$0xff]  }
 0x204   : > { %4533 = vmatpush1.bf16.msra.mxu1 %v5998_v12  ;;  %v6082_v12 = vld [vmem:[%s7079_s7 + $0x550] ss:$8 sps:$4 sm:$0xff]  }
 0x205   : > { %4791 = vmatpush1.bf16.msra.mxu0 %v6001_v13  ;;  %4534 = vmatprep.subr.bf16.mxu1 %v6006_v14  ;;  %v6085_v13 = vld [vmem:[%s7079_s7 + $0xb50] ss:$8 sps:$4 sm:$0xff]   ;;  %v6090_v14 = vld [vmem:[%s7079_s7 + $0x564] ss:$8 sps:$4 sm:$0xff]  }
 0x206   : > { %4792 = vmatprep.subr.bf16.mxu0 %v6009_v15  ;;  %v6093_v15 = vld [vmem:[%s7079_s7 + $0xb64] ss:$8 sps:$4 sm:$0xff]  }
 0x208   : > { %4535 = vmatpush1.bf16.msra.mxu1 %v6004_v16  ;;  %v6088_v16 = vld [vmem:[%s7079_s7 + $0x560] ss:$8 sps:$4 sm:$0xff]  }
 0x209   : > { %4793 = vmatpush1.bf16.msra.mxu0 %v6007_v17  ;;  %4536 = vmatprep.subr.bf16.mxu1 %v6012_v18  ;;  %v6091_v17 = vld [vmem:[%s7079_s7 + $0xb60] ss:$8 sps:$4 sm:$0xff]   ;;  %v6096_v18 = vld [vmem:[%s7079_s7 + $0x574] ss:$8 sps:$4 sm:$0xff]  }
 0x20a   : > { %4794 = vmatprep.subr.bf16.mxu0 %v6015_v19  ;;  %v6099_v19 = vld [vmem:[%s7079_s7 + $0xb74] ss:$8 sps:$4 sm:$0xff]  }
 0x20c   : > { %4537 = vmatpush1.bf16.msra.mxu1 %v6010_v20  ;;  %v6094_v20 = vld [vmem:[%s7079_s7 + $0x570] ss:$8 sps:$4 sm:$0xff]  }
 0x20d   : > { %4795 = vmatpush1.bf16.msra.mxu0 %v6013_v21  ;;  %4538 = vmatprep.subr.bf16.mxu1 %v6018_v22  ;;  %v6097_v21 = vld [vmem:[%s7079_s7 + $0xb70] ss:$8 sps:$4 sm:$0xff]   ;;  %v6102_v22 = vld [vmem:[%s7079_s7 + $0x584] ss:$8 sps:$4 sm:$0xff]  }
 0x20e   : > { %4796 = vmatprep.subr.bf16.mxu0 %v6021_v23  ;;  %v6105_v23 = vld [vmem:[%s7079_s7 + $0xb84] ss:$8 sps:$4 sm:$0xff]  }
 0x210   : > { %4539 = vmatpush1.bf16.msra.mxu1 %v6016_v24  ;;  %v6100_v24 = vld [vmem:[%s7079_s7 + $0x580] ss:$8 sps:$4 sm:$0xff]  }
 0x211   : > { %4797 = vmatpush1.bf16.msra.mxu0 %v6019_v25  ;;  %4540 = vmatprep.subr.bf16.mxu1 %v6024_v26  ;;  %v6103_v25 = vld [vmem:[%s7079_s7 + $0xb80] ss:$8 sps:$4 sm:$0xff]   ;;  %v6108_v26 = vld [vmem:[%s7079_s7 + $0x594] ss:$8 sps:$4 sm:$0xff]  }
 0x212   : > { %4798 = vmatprep.subr.bf16.mxu0 %v6027_v2  ;;  %v6111_v2 = vld [vmem:[%s7079_s7 + $0xb94] ss:$8 sps:$4 sm:$0xff]  }
 0x214   : > { %4541 = vmatpush1.bf16.msra.mxu1 %v6022_v3  ;;  %v6106_v3 = vld [vmem:[%s7079_s7 + $0x590] ss:$8 sps:$4 sm:$0xff]  }
 0x215   : > { %4799 = vmatpush1.bf16.msra.mxu0 %v6025_v4  ;;  %4542 = vmatprep.subr.bf16.mxu1 %v6030_v8  ;;  %v6109_v4 = vld [vmem:[%s7079_s7 + $0xb90] ss:$8 sps:$4 sm:$0xff]   ;;  %v6114_v8 = vld [vmem:[%s7079_s7 + $0x5a4] ss:$8 sps:$4 sm:$0xff]  }
 0x216   : > { %4800 = vmatprep.subr.bf16.mxu0 %v6033_v27  ;;  %v6117_v27 = vld [vmem:[%s7079_s7 + $0xba4] ss:$8 sps:$4 sm:$0xff]  }
 0x218   : > { %4543 = vmatpush1.bf16.msra.mxu1 %v6028_v28  ;;  %v6112_v28 = vld [vmem:[%s7079_s7 + $0x5a0] ss:$8 sps:$4 sm:$0xff]  }
 0x219   : > { %4801 = vmatpush1.bf16.msra.mxu0 %v6031_v31  ;;  %4544 = vmatprep.subr.bf16.mxu1 %v6036_v34  ;;  %v6115_v31 = vld [vmem:[%s7079_s7 + $0xba0] ss:$8 sps:$4 sm:$0xff]   ;;  %v6120_v34 = vld [vmem:[%s7079_s7 + $0x5b4] ss:$8 sps:$4 sm:$0xff]  }
 0x21a   : > { %4802 = vmatprep.subr.bf16.mxu0 %v6039_v35  ;;  %v6123_v35 = vld [vmem:[%s7079_s7 + $0xbb4] ss:$8 sps:$4 sm:$0xff]  }
 0x21c   : > { %4545 = vmatpush1.bf16.msra.mxu1 %v6034_v38  ;;  %v6118_v38 = vld [vmem:[%s7079_s7 + $0x5b0] ss:$8 sps:$4 sm:$0xff]  }
 0x21d   : > { %4803 = vmatpush1.bf16.msra.mxu0 %v6037_v5  ;;  %4546 = vmatprep.subr.bf16.mxu1 %v6042_v7  ;;  %v6121_v5 = vld [vmem:[%s7079_s7 + $0xbb0] ss:$8 sps:$4 sm:$0xff]   ;;  %v6126_v7 = vld [vmem:[%s7079_s7 + $0x5c4] ss:$8 sps:$4 sm:$0xff]  }
 0x21e   : > { %4804 = vmatprep.subr.bf16.mxu0 %v6045_v29  ;;  %v6129_v29 = vld [vmem:[%s7079_s7 + $0xbc4] ss:$8 sps:$4 sm:$0xff]  }
 0x220   : > { %4547 = vmatpush1.bf16.msra.mxu1 %v6040_v30  ;;  %v6124_v30 = vld [vmem:[%s7079_s7 + $0x5c0] ss:$8 sps:$4 sm:$0xff]  }
 0x221   : > { %4805 = vmatpush1.bf16.msra.mxu0 %v6043_v39  ;;  %4548 = vmatprep.subr.bf16.mxu1 %v6048_v42  ;;  %v6127_v39 = vld [vmem:[%s7079_s7 + $0xbc0] ss:$8 sps:$4 sm:$0xff]   ;;  %v6132_v42 = vld [vmem:[%s7079_s7 + $0x5d4] ss:$8 sps:$4 sm:$0xff]  }
 0x222   : > { %4806 = vmatprep.subr.bf16.mxu0 %v6051_v43  ;;  %v6135_v43 = vld [vmem:[%s7079_s7 + $0xbd4] ss:$8 sps:$4 sm:$0xff]  }
 0x224   : > { %4549 = vmatpush1.bf16.msra.mxu1 %v6046_v46  ;;  %v6130_v46 = vld [vmem:[%s7079_s7 + $0x5d0] ss:$8 sps:$4 sm:$0xff]  }
 0x225   : > { %4807 = vmatpush1.bf16.msra.mxu0 %v6049_v32  ;;  %4561 = vmatprep.subr.bf16.mxu1 %v6054_v33  ;;  %v6133_v32 = vld [vmem:[%s7079_s7 + $0xbd0] ss:$8 sps:$4 sm:$0xff]   ;;  %v6138_v33 = vld [vmem:[%s7079_s7 + $0x5e4] ss:$8 sps:$4 sm:$0xff]  }
 0x226   : > { %4819 = vmatprep.subr.bf16.mxu0 %v6057_v36  ;;  %v6141_v36 = vld [vmem:[%s7079_s7 + $0xbe4] ss:$8 sps:$4 sm:$0xff]  }
 0x227   : > { %4551 = vmatmul.mubr.bf16.vlgmr.msra.gmra.mrb[0].mxu1 %v5070_v47  ;;  %v6136_v47 = vld [vmem:[%s7079_s7 + $0x5e0] ss:$8 sps:$4 sm:$0xff]  }
 0x228   : > { %4809 = vmatmul.mubr.bf16.vlgmr.msra.gmra.mrb[0].mxu0 %v5082_v48  ;;  %4562 = vmatpush1.bf16.msra.mxu1 %v6052_v40  ;;  %v6139_v48 = vld [vmem:[%s7079_s7 + $0xbe0] ss:$8 sps:$4 sm:$0xff]   ;;  %v6144_v40 = vld [vmem:[%s7079_s7 + $0x5f4] ss:$8 sps:$4 sm:$0xff]  }
 0x229   : > { %4820 = vmatpush1.bf16.msra.mxu0 %v6055_v41  ;;  %4563 = vmatprep.subr.bf16.mxu1 %v6060_v44  ;;  %v6147_v41 = vld [vmem:[%s7079_s7 + $0xbf4] ss:$8 sps:$4 sm:$0xff]   ;;  %v6142_v44 = vld [vmem:[%s7079_s7 + $0x5f0] ss:$8 sps:$4 sm:$0xff]  }
 0x22a   : > { %4821 = vmatprep.subr.bf16.mxu0 %v6063_v45  ;;  %4593 = vmatprep.mubr.bf16.mxu1 %v5073_v52  ;;  %v6145_v45 = vld [vmem:[%s7079_s7 + $0xbf0] ss:$8 sps:$4 sm:$0xff]   ;;  %v5072_v52 = vcombine.low %v7520_v37, %v7529_v49  ;;  %s1880_s7 = scalar_lea.vmem %s7644_s2, %s7656_s23 }
 0x22b   : > { %4851 = vmatprep.mubr.bf16.mxu0 %v5085_v53  ;;  %v5084_v53 = vcombine.low %v7534_v50, %v7539_v51  ;;  %v2294_v49 = vld [vmem:[%s1880_s7] sm:$0x3] }
 0x22c   : > { %4564 = vmatpush1.bf16.msra.mxu1 %v6058_v54  ;;  %v2296_v54 = vlaneseq }
 0x22d   : > { %4822 = vmatpush1.bf16.msra.mxu0 %v6061_v55  ;;  %4565 = vmatprep.subr.bf16.mxu1 %v6066_v56  ;;  %v4862_v56 = vld [vmem:[%s1833_s29] sm:$0xff] }
 0x22e   : > { %4823 = vmatprep.subr.bf16.mxu0 %v6069_v57  ;;  %v2297_v55 = vshrl.u32 %v2296_v54, 7 }
 0x230   : > { %4566 = vmatpush1.bf16.msra.mxu1 %v6064_v58  ;;  %v2298_v37 = vsub.s32 0, %v2297_v55  ;;  %v2302_v50 = vsub.s32 1, %v2297_v55 }
 0x231   : > { %4824 = vmatpush1.bf16.msra.mxu0 %v6067_v59  ;;  %4567 = vmatprep.subr.bf16.mxu1 %v6072_v60  ;;  %v4863_v60 = vld [vmem:[%s1833_s29 + $0x8] sm:$0x11] }
 0x232   : > { %4825 = vmatprep.subr.bf16.mxu0 %v6075_v61  ;;  %v2299_v51 = vrot.slane %v2294_v49, %v2298_v37  ;;  %v2303_v57 = vrot.slane %v2294_v49, %v2302_v50 }
 0x234   : > { %4568 = vmatpush1.bf16.msra.mxu1 %v6070_v62  ;;  %v4864_v62 = vunpack.c.l.bf16 %v4862_v56 }
 0x235   : > { %4826 = vmatpush1.bf16.msra.mxu0 %v6073_v63  ;;  %4569 = vmatprep.subr.bf16.mxu1 %v6078_v0 }
 0x236   : > { %4827 = vmatprep.subr.bf16.mxu0 %v6081_v1 }
 0x238   : > { %4570 = vmatpush1.bf16.msra.mxu1 %v6076_v6  ;;  %v4865_v6 = vunpack.c.h.bf16 %v4862_v56 }
 0x239   : > { %4828 = vmatpush1.bf16.msra.mxu0 %v6079_v9  ;;  %4571 = vmatprep.subr.bf16.mxu1 %v6084_v10 }
 0x23a   : > { %4829 = vmatprep.subr.bf16.mxu0 %v6087_v11 }
 0x23c   : > { %4572 = vmatpush1.bf16.msra.mxu1 %v6082_v12 }
 0x23d   : > { %4830 = vmatpush1.bf16.msra.mxu0 %v6085_v13  ;;  %4573 = vmatprep.subr.bf16.mxu1 %v6090_v14  ;;  %v4866_v13 = vunpack.c.l.bf16 %v4863_v60 }
 0x23e   : > { %4831 = vmatprep.subr.bf16.mxu0 %v6093_v15 }
 0x240   : > { %4574 = vmatpush1.bf16.msra.mxu1 %v6088_v16 }
 0x241   : > { %4832 = vmatpush1.bf16.msra.mxu0 %v6091_v17  ;;  %4575 = vmatprep.subr.bf16.mxu1 %v6096_v18  ;;  %v4867_v18 = vunpack.c.h.bf16 %v4863_v60 }
 0x242   : > { %4833 = vmatprep.subr.bf16.mxu0 %v6099_v19 }
 0x244   : > { %4576 = vmatpush1.bf16.msra.mxu1 %v6094_v20 }
 0x245   : > { %4834 = vmatpush1.bf16.msra.mxu0 %v6097_v21  ;;  %4577 = vmatprep.subr.bf16.mxu1 %v6102_v22 }
 0x246   : > { %4835 = vmatprep.subr.bf16.mxu0 %v6105_v23 }
 0x248   : > { %4578 = vmatpush1.bf16.msra.mxu1 %v6100_v24 }
 0x249   : > { %4836 = vmatpush1.bf16.msra.mxu0 %v6103_v25  ;;  %4579 = vmatprep.subr.bf16.mxu1 %v6108_v26 }
 0x24a   : > { %4837 = vmatprep.subr.bf16.mxu0 %v6111_v2 }
 0x24c   : > { %4580 = vmatpush1.bf16.msra.mxu1 %v6106_v3 }
 0x24d   : > { %4838 = vmatpush1.bf16.msra.mxu0 %v6109_v4  ;;  %4581 = vmatprep.subr.bf16.mxu1 %v6114_v8 }
 0x24e   : > { %4839 = vmatprep.subr.bf16.mxu0 %v6117_v27 }
 0x250   : > { %4582 = vmatpush1.bf16.msra.mxu1 %v6112_v28 }
 0x251   : > { %4840 = vmatpush1.bf16.msra.mxu0 %v6115_v31  ;;  %4583 = vmatprep.subr.bf16.mxu1 %v6120_v34 }
 0x252   : > { %4841 = vmatprep.subr.bf16.mxu0 %v6123_v35 }
 0x254   : > { %4584 = vmatpush1.bf16.msra.mxu1 %v6118_v38 }
 0x255   : > { %4842 = vmatpush1.bf16.msra.mxu0 %v6121_v5  ;;  %4585 = vmatprep.subr.bf16.mxu1 %v6126_v7 }
 0x256   : > { %4843 = vmatprep.subr.bf16.mxu0 %v6129_v29 }
 0x258   : > { %4586 = vmatpush1.bf16.msra.mxu1 %v6124_v30 }
 0x259   : > { %4844 = vmatpush1.bf16.msra.mxu0 %v6127_v39  ;;  %4587 = vmatprep.subr.bf16.mxu1 %v6132_v42 }
 0x25a   : > { %4845 = vmatprep.subr.bf16.mxu0 %v6135_v43 }
 0x25c   : > { %4588 = vmatpush1.bf16.msra.mxu1 %v6130_v46 }
 0x25d   : > { %4846 = vmatpush1.bf16.msra.mxu0 %v6133_v32  ;;  %4589 = vmatprep.subr.bf16.mxu1 %v6138_v33 }
 0x25e   : > { %4847 = vmatprep.subr.bf16.mxu0 %v6141_v36 }
 0x260   : > { %4590 = vmatpush1.bf16.msra.mxu1 %v6136_v47 }
 0x261   : > { %4848 = vmatpush1.bf16.msra.mxu0 %v6139_v48  ;;  %4591 = vmatprep.subr.bf16.mxu1 %v6144_v40 }
 0x262   : > { %4849 = vmatprep.subr.bf16.mxu0 %v6147_v41 }
 0x264   : > { %4592 = vmatpush1.bf16.msra.mxu1 %v6142_v44 }
 0x265   : > { %4850 = vmatpush1.bf16.msra.mxu0 %v6145_v45 }
 0x267   : > { %4594 = vmatmul.mubr.bf16.vlgmr.msra.gmra.mrb[0].mxu1 %v5072_v52 }
 0x268   : > { %4852 = vmatmul.mubr.bf16.vlgmr.msra.gmra.mrb[0].mxu0 %v5084_v53 }
 0x33a   : > { %v4595_v58 = vpop.f32.mrb[0].mxu1 }
 0x33b   : > { %v4853_v59 = vpop.f32.mrb[0].mxu0  ;;  %v5482_v61 = vadd.f32 %v4595_v58, %v2299_v51  ;;  %v4597_v63 = vpop.f32.mrb[1].mxu1 }
 0x33c   : > { %v4855_v0 = vpop.f32.mrb[1].mxu0  ;;  %v5484_v1 = vadd.f32 %v4597_v63, %v2303_v57  ;;  %v4599_v9 = vpop.f32.mrb[2].mxu1 }
 0x33d   : > { %v4857_v10 = vpop.f32.mrb[2].mxu0  ;;  %v5483_v11 = vadd.f32 %v5482_v61, %v4853_v59  ;;  %v5486_v12 = vadd.f32 %v4599_v9, %v2299_v51  ;;  %v4601_v14 = vpop.f32.mrb[3].mxu1 }
 0x33e   : > { %v4859_v15 = vpop.f32.mrb[3].mxu0  ;;  %v5485_v16 = vadd.f32 %v5484_v1, %v4855_v0  ;;  %v5488_v17 = vadd.f32 %v4601_v14, %v2303_v57 }
 0x33f   : > { %v4868_v19 = vadd.f32 %v5483_v11, %v4864_v62  ;;  %v5487_v20 = vadd.f32 %v5486_v12, %v4857_v10 }
 0x340   : > { %v4869_v21 = vadd.f32 %v5485_v16, %v4865_v6  ;;  %v5489_v22 = vadd.f32 %v5488_v17, %v4859_v15  ;;  %4892 = sbr.rel (!%p6252_p6) target bundleno = 847 (0x34f), region = 116 }
 0x341   : > { %v4870_v23 = vadd.f32 %v5487_v20, %v4866_v13 }
 0x342   : > { %v5479_v24 = vpack.c.bf16 %v4869_v21, %v4868_v19  ;;  %v4871_v25 = vadd.f32 %v5489_v22, %v4867_v18 }
 0x344   : > { %4884 = vst [vmem:[%s1868_s15] sm:$0xff] %v5479_v24  ;;  %v5480_v26 = vpack.c.bf16 %v4871_v25, %v4870_v23 }
 0x346   : > { %4885 = vst [vmem:[%s1868_s15 + $0x8] sm:$0x11] %v5480_v26 }
 0x34b   : > { %v4928_v2 = vld [vmem:[%s1868_s15] sm:$0xff] }
 0x34c   : > { %4929 = vst [vmem:[%s4898_s6] sm:$0xff] %v4928_v2 }
 0x34d   : > { %v4930_v3 = vld [vmem:[%s1868_s15 + $0x8] sm:$0xff] }
 0x34e   : > { %4931 = vst [vmem:[%s4898_s6 + $0x18] sm:$0xff] %v4930_v3 }
 0x34f PF: > { %s14_s19 = sadd.s32 1, %s6186_s19   ;;  %s7649_s15 = smov %s6174_s16 }
 0x350   : > { %p11_p12 = scmp.ge.s32.totalorder %s14_s19, 5   ;;  %s7650_s16 = smov %s6257_s26 }
 0x351   : > { %s7651_s17 = smov %s6182_s18  ;;  %s7652_s18 = smov %s7654_s20 }
 0x352   :  { %13 = sbr.rel (!%p11_p12) target bundleno = 3 (0x3), region = 199 }

// kernel: aux_vit_forward.3
= control target key start
LH: loop header
LB: loop body
LE: loop exit
PB: predicated region body
PF: predicated region fallthrough
CT: control target
= control target key end

     0   :  { %v30_v0 = vlaneseq  ;;  %v978_v2 = vmov 1983009808   ;;  %vm57_vm0 = vcmask 1041408   ;;  %v979_v29 = vmov 269488144   ;;  %s1222_s0 = inlined_call_operand.vmem [shape: bf16[2,768], index: 0, kind: input, shape index: {}]   ;;  %s1223_s3 = inlined_call_operand.vmem [shape: bf16[768,128], index: 3, kind: input, shape index: {}]   ;;  %s1224_s1 = inlined_call_operand.vmem [shape: f32[1,768], index: 1, kind: input, shape index: {}]   ;;  %s1225_s2 = inlined_call_operand.vmem [shape: f32[1,768], index: 2, kind: input, shape index: {}]   ;;  %s1226_s4 = inlined_call_operand.vmem [shape: f32[1,128], index: 4, kind: input, shape index: {}]   ;;  %s1227_s5 = inlined_call_operand.vmem [shape: f32[2,128], index: 5, kind: output, shape index: {}]  }
   0x1   :  { %v21_v1 = vld [vmem:[%s1222_s0] sm:$0x3f]  ;;  %v28_v3 = vunpack.c.l.s4 %v978_v2  ;;  %v75_v30 = vunpack.c.l.s4 %v979_v29  ;;  %v931_v59 = vld [vmem:[%s1223_s3 + $0x48] sm:$0xff]   ;;  %v935_v63 = vld [vmem:[%s1223_s3 + $0x50] sm:$0xff]  }
   0x2   :  { %v22_v4 = vunpack.c.l.bf16 %v21_v1  ;;  %v1013_v5 = vshrl.u32 %v30_v0, 7  ;;  %v23_v8 = vunpack.c.h.bf16 %v21_v1  ;;  %v928_v27 = vld [vmem:[%s1223_s3 + $0x40] sm:$0xff]   ;;  %v933_v61 = vld [vmem:[%s1223_s3 + $0x8] sm:$0xff]   ;;  %v937_v1 = vld [vmem:[%s1223_s3 + $0x10] sm:$0xff]  }
   0x3   :  { %v29_v6 = vunpack.c.0.s8 %v28_v3  ;;  %v929_v28 = vld [vmem:[%s1223_s3] sm:$0xff]   ;;  %860 = vmatprep.subr.bf16.mxu0 %v928_v27  ;;  %v76_v31 = vunpack.c.0.s8 %v75_v30  ;;  %v934_v62 = vld [vmem:[%s1223_s3 + $0xc8] sm:$0xff]   ;;  %v938_v2 = vld [vmem:[%s1223_s3 + $0xd0] sm:$0xff]  }
   0x4   :  { %v26_v7 = vcombine.high %v22_v4, %v22_v4  ;;  %861 = vmatpush3.bf16.msra.mxu0 %v929_v28  ;;  %v930_v58 = vld [vmem:[%s1223_s3 + $0xc0] sm:$0xff]   ;;  %v936_v0 = vld [vmem:[%s1223_s3 + $0x88] sm:$0xff]   ;;  %v939_v3 = vld [vmem:[%s1223_s3 + $0x58] sm:$0xff]   ;;  %v150_v28 = vsub.s32 0, %v1013_v5  ;;  %v154_v29 = vsub.s32 1, %v1013_v5  ;;  %v158_v30 = vsub.s32 2, %v1013_v5 }
   0x5   :  { %v1016_v9 = vsub.s32 %v29_v6, %v1013_v5  ;;  %v1034_v32 = vsub.s32 %v76_v31, %v1013_v5  ;;  %v932_v60 = vld [vmem:[%s1223_s3 + $0x80] sm:$0xff]   ;;  %882 = vmatprep.subr.bf16.mxu1 %v930_v58  ;;  %862 = vmatprep.subr.bf16.mxu0 %v931_v59  ;;  %v941_v6 = vld [vmem:[%s1223_s3 + $0x18] sm:$0xff]   ;;  %v162_v31 = vsub.s32 3, %v1013_v5 }
   0x6   :  { %883 = vmatpush3.bf16.msra.mxu1 %v932_v60 }
   0x7   :  { %v33_v10 = vrot.slane %v22_v4, %v1016_v9  ;;  %v40_v11 = vrot.slane %v26_v7, %v1016_v9  ;;  %v49_v14 = vrot.slane %v23_v8, %v1016_v9  ;;  %884 = vmatprep.subr.bf16.mxu1 %v934_v62  ;;  %v942_v7 = vld [vmem:[%s1223_s3 + $0xd8] sm:$0xff]  }
   0x8   :  { %863 = vmatpush3.bf16.msra.mxu0 %v933_v61 }
   0x9   :  { %v41_v12 = vcombine.high %v33_v10, %v33_v10  ;;  %v42_v13 = vcombine.high %v40_v11, %v40_v11  ;;  %v58_v15 = vsel %vm57_vm0, %v33_v10, 0.0  ;;  %v61_v17 = vsel %vm57_vm0, %v40_v11, 0.0  ;;  %864 = vmatprep.subr.bf16.mxu0 %v935_v63  ;;  %v944_v10 = vld [vmem:[%s1223_s3 + $0x98] sm:$0xff]   ;;  %v945_v11 = vld [vmem:[%s1223_s3 + $0x20] sm:$0xff]  }
   0xa   :  { %v50_v19 = vcombine.high %v49_v14, %v49_v14  ;;  %v65_v22 = vsel %vm57_vm0, %v49_v14, 0.0  ;;  %885 = vmatpush3.bf16.msra.mxu1 %v936_v0  ;;  %v948_v14 = vld [vmem:[%s1223_s3 + $0xa0] sm:$0xff]  }
   0xb   :  { %v59_v16 = vsel %vm57_vm0, %v41_v12, 0.0  ;;  %v63_v20 = vsel %vm57_vm0, %v42_v13, 0.0  ;;  %886 = vmatprep.subr.bf16.mxu1 %v938_v2  ;;  %v946_v12 = vld [vmem:[%s1223_s3 + $0xe0] sm:$0xff]   ;;  %v947_v13 = vld [vmem:[%s1223_s3 + $0x68] sm:$0xff]  }
   0xc   :  { %v60_v18 = vadd.f32 %v59_v16, %v58_v15  ;;  %v67_v24 = vsel %vm57_vm0, %v50_v19, 0.0  ;;  %865 = vmatpush3.bf16.msra.mxu0 %v937_v1  ;;  %v949_v15 = vld [vmem:[%s1223_s3 + $0x28] sm:$0xff]   ;;  %v953_v19 = vld [vmem:[%s1223_s3 + $0x30] sm:$0xff]  }
   0xd   :  { %866 = vmatprep.subr.bf16.mxu0 %v939_v3  ;;  %v950_v16 = vld [vmem:[%s1223_s3 + $0xe8] sm:$0xff]  }
   0xe   :  { %v62_v21 = vadd.f32 %v61_v17, %v60_v18  ;;  %v951_v17 = vld [vmem:[%s1223_s3 + $0x70] sm:$0xff]   ;;  %v952_v18 = vld [vmem:[%s1223_s3 + $0xa8] sm:$0xff]  }
  0x10   :  { %v64_v23 = vadd.f32 %v63_v20, %v62_v21  ;;  %867 = vmatpush3.bf16.msra.mxu0 %v941_v6  ;;  %v954_v20 = vld [vmem:[%s1223_s3 + $0xf0] sm:$0xff]   ;;  %v955_v21 = vld [vmem:[%s1223_s3 + $0x78] sm:$0xff]  }
  0x12   :  { %v66_v25 = vadd.f32 %v65_v22, %v64_v23  ;;  %v956_v22 = vld [vmem:[%s1223_s3 + $0xb0] sm:$0xff]   ;;  %v957_v23 = vld [vmem:[%s1223_s3 + $0x38] sm:$0xff]  }
  0x14   :  { %v68_v26 = vadd.f32 %v67_v24, %v66_v25  ;;  %v958_v24 = vld [vmem:[%s1223_s3 + $0xf8] sm:$0xff]  }
  0x15   :  { %v959_v25 = vld [vmem:[%s1223_s3 + $0xb8] sm:$0xff]  }
  0x16   :  { %69 = vadd.xlane.f32.xlu0 %v68_v26  ;;  %v960_v26 = vld [vmem:[%s1223_s3 + $0x140] sm:$0xff]  }
  0xa3   :  { %v70_v33 = vpop.xlane.xlu0 %69 }
  0xa4   :  { %v72_v34 = vmul.f32 0.0013020834, %v70_v33 }
  0xa6   :  { %v80_v35 = vrot.slane %v72_v34, %v1034_v32  ;;  %v146_v34 = vld [vmem:[%s1224_s1] sm:$0x3f] }
  0xa8   :  { %v1037_v36 = vsub.f32 %v22_v4, %v80_v35  ;;  %v1039_v37 = vsub.f32 %v23_v8, %v80_v35  ;;  %v940_v4 = vld [vmem:[%s1223_s3 + $0x90] sm:$0xff]   ;;  %v943_v8 = vld [vmem:[%s1223_s3 + $0x60] sm:$0xff]  }
  0xa9   :  { %887 = vmatpush3.bf16.msra.mxu1 %v940_v4  ;;  %868 = vmatprep.subr.bf16.mxu0 %v943_v8 }
  0xaa   :  { %v84_v38 = vmul.f32 %v1037_v36, %v1037_v36  ;;  %v85_v39 = vmul.f32 %v1039_v37, %v1039_v37  ;;  %888 = vmatprep.subr.bf16.mxu1 %v942_v7  ;;  %869 = vmatpush3.bf16.msra.mxu0 %v945_v11 }
  0xab   :  { %870 = vmatprep.subr.bf16.mxu0 %v947_v13 }
  0xac   :  { %v88_v40 = vcombine.high %v84_v38, %v84_v38  ;;  %v95_v41 = vrot.slane %v84_v38, %v1016_v9  ;;  %v111_v45 = vrot.slane %v85_v39, %v1016_v9  ;;  %v201_v38 = vld [vmem:[%s1225_s2] sm:$0x3f]  ;;  %v166_v39 = vsub.s32 4, %v1013_v5 }
  0xad   :  { %889 = vmatpush3.bf16.msra.mxu1 %v944_v10 }
  0xae   :  { %v103_v42 = vcombine.high %v95_v41, %v95_v41  ;;  %v102_v43 = vrot.slane %v88_v40, %v1016_v9  ;;  %v119_v46 = vsel %vm57_vm0, %v95_v41, 0.0  ;;  %v112_v51 = vcombine.high %v111_v45, %v111_v45  ;;  %890 = vmatprep.subr.bf16.mxu1 %v946_v12  ;;  %871 = vmatpush3.bf16.msra.mxu0 %v949_v15 }
  0xaf   :  { %v126_v54 = vsel %vm57_vm0, %v111_v45, 0.0  ;;  %872 = vmatprep.subr.bf16.mxu0 %v951_v17  ;;  %v170_v40 = vsub.s32 5, %v1013_v5  ;;  %v151_v41 = vrot.slane %v146_v34, %v150_v28  ;;  %v206_v45 = vrot.slane %v201_v38, %v150_v28  ;;  %v969_v28 = vld [vmem:[%s1223_s3 + $0x120] sm:$0xff]  }
  0xb0   :  { %v104_v44 = vcombine.high %v102_v43, %v102_v43  ;;  %v120_v47 = vsel %vm57_vm0, %v103_v42, 0.0  ;;  %v122_v49 = vsel %vm57_vm0, %v102_v43, 0.0  ;;  %v128_v56 = vsel %vm57_vm0, %v112_v51, 0.0 }
  0xb1   :  { %v121_v48 = vadd.f32 %v120_v47, %v119_v46  ;;  %891 = vmatpush3.bf16.msra.mxu1 %v948_v14  ;;  %v155_v42 = vrot.slane %v146_v34, %v154_v29  ;;  %v159_v43 = vrot.slane %v146_v34, %v158_v30  ;;  %v210_v46 = vrot.slane %v201_v38, %v154_v29  ;;  %v970_v29 = vld [vmem:[%s1223_s3 + $0x168] sm:$0xff]  }
  0xb2   :  { %v124_v52 = vsel %vm57_vm0, %v104_v44, 0.0  ;;  %892 = vmatprep.subr.bf16.mxu1 %v950_v16  ;;  %873 = vmatpush3.bf16.msra.mxu0 %v953_v19  ;;  %v163_v44 = vrot.slane %v146_v34, %v162_v31  ;;  %v214_v47 = vrot.slane %v201_v38, %v158_v30  ;;  %v167_v51 = vrot.slane %v146_v34, %v166_v39  ;;  %v971_v30 = vld [vmem:[%s1223_s3 + $0x128] sm:$0xff]  }
  0xb3   :  { %v123_v50 = vadd.f32 %v122_v49, %v121_v48  ;;  %874 = vmatprep.subr.bf16.mxu0 %v955_v21  ;;  %v218_v48 = vrot.slane %v201_v38, %v162_v31  ;;  %v172_v49 = vcombine.low %v151_v41, %v155_v42  ;;  %v972_v31 = vld [vmem:[%s1223_s3 + $0x170] sm:$0xff]  }
  0xb5   :  { %v125_v53 = vadd.f32 %v124_v52, %v123_v50  ;;  %893 = vmatpush3.bf16.msra.mxu1 %v952_v18  ;;  %v173_v50 = vcombine.low %v159_v43, %v163_v44  ;;  %v171_v52 = vrot.slane %v146_v34, %v170_v40  ;;  %v974_v34 = vld [vmem:[%s1223_s3 + $0x178] sm:$0xff]  }
  0xb6   :  { %894 = vmatprep.subr.bf16.mxu1 %v954_v20  ;;  %875 = vmatpush3.bf16.msra.mxu0 %v957_v23  ;;  %v962_v20 = vld [vmem:[%s1223_s3 + $0x148] sm:$0xff]   ;;  %v964_v23 = vld [vmem:[%s1223_s3 + $0x150] sm:$0xff]  }
  0xb7   :  { %v127_v55 = vadd.f32 %v126_v54, %v125_v53  ;;  %904 = vmatprep.subr.bf16.mxu0 %v960_v26  ;;  %v227_v53 = vcombine.low %v206_v45, %v210_v46  ;;  %v228_v54 = vcombine.low %v214_v47, %v218_v48  ;;  %v187_v5 = vrot.slane %v173_v50, %v1016_v9  ;;  %v967_v26 = vld [vmem:[%s1223_s3 + $0x118] sm:$0xff]  }
  0xb8   :  { %v189_v58 = vcombine.low %v167_v51, %v171_v52 }
  0xb9   :  { %v129_v57 = vadd.f32 %v128_v56, %v127_v55  ;;  %895 = vmatpush3.bf16.msra.mxu1 %v956_v22  ;;  %v222_v55 = vrot.slane %v201_v38, %v166_v39  ;;  %v226_v56 = vrot.slane %v201_v38, %v170_v40  ;;  %v235_v59 = vrot.slane %v227_v53, %v1016_v9  ;;  %v811_v40 = vld [vmem:[%s1226_s4] ss:$0 sm:$0xff] }
  0xba   :  { %896 = vmatprep.subr.bf16.mxu1 %v958_v24  ;;  %v242_v60 = vrot.slane %v228_v54, %v1016_v9  ;;  %v196_v1 = vrot.slane %v189_v58, %v1016_v9  ;;  %v965_v24 = vld [vmem:[%s1223_s3 + $0x110] sm:$0xff]  }
  0xbb   :  { %130 = vadd.xlane.f32.xlu0 %v129_v57  ;;  %v180_v57 = vrot.slane %v172_v49, %v1016_v9  ;;  %v244_v61 = vcombine.low %v222_v55, %v226_v56 }
  0xbc   :  { %v243_v3 = vcombine.low %v235_v59, %v242_v60 }
  0xbd   :  { %897 = vmatpush3.bf16.msra.mxu1 %v959_v25  ;;  %v188_v0 = vcombine.low %v180_v57, %v187_v5  ;;  %v251_v6 = vrot.slane %v244_v61, %v1016_v9  ;;  %v966_v25 = vld [vmem:[%s1223_s3 + $0x158] sm:$0xff]  }
 0x148   :  { %v131_v27 = vpop.xlane.xlu0 %130 }
 0x149   :  { %v132_v33 = vmul.f32 0.0013020834, %v131_v27  ;;  %v968_v27 = vld [vmem:[%s1223_s3 + $0x160] sm:$0xff]  }
 0x14b   :  { %v133_v35 = vadd.f32 1e-06, %v132_v33  ;;  %v973_v33 = vld [vmem:[%s1223_s3 + $0x130] sm:$0xff]  }
 0x14d   :  { %976 = vrsqrt.f32 %v133_v35  ;;  %v975_v35 = vld [vmem:[%s1223_s3 + $0x138] sm:$0xff]  }
 0x157   :  { %v977_v62 = vpop.eup %976 }
 0x158   :  { %v142_v63 = vrot.slane %v977_v62, %v1034_v32 }
 0x15a   :  { %v144_v2 = vmul.f32 %v142_v63, %v1037_v36  ;;  %v145_v4 = vmul.f32 %v142_v63, %v1039_v37  ;;  %v961_v36 = vld [vmem:[%s1223_s3 + $0x100] sm:$0xff]  }
 0x15c   :  { %v199_v7 = vmul.f32 %v188_v0, %v144_v2  ;;  %v200_v8 = vmul.f32 %v196_v1, %v145_v4 }
 0x15e   :  { %v254_v10 = vadd.f32 %v243_v3, %v199_v7  ;;  %v255_v11 = vadd.f32 %v251_v6, %v200_v8 }
 0x160   :  { %v265_v12 = vrot.slane %v254_v10, %v1016_v9  ;;  %v258_v13 = vcombine.high %v254_v10, %v254_v10  ;;  %v281_v14 = vrot.slane %v255_v11, %v1016_v9 }
 0x162   :  { %v273_v32 = vcombine.high %v265_v12, %v265_v12  ;;  %v272_v15 = vrot.slane %v258_v13, %v1016_v9  ;;  %v282_v16 = vcombine.high %v281_v14, %v281_v14  ;;  %v289_v18 = vpack.c.bf16 %v265_v12, %v265_v12  ;;  %v963_v9 = vld [vmem:[%s1223_s3 + $0x108] sm:$0xff]  }
 0x163   :  { %v293_v38 = vpack.c.bf16 %v281_v14, %v281_v14 }
 0x164   :  { %v290_v17 = vpack.c.bf16 %v273_v32, %v273_v32  ;;  %v274_v37 = vcombine.high %v272_v15, %v272_v15  ;;  %v294_v21 = vpack.c.bf16 %v282_v16, %v282_v16  ;;  %v291_v22 = vpack.c.bf16 %v272_v15, %v272_v15 }
 0x166   :  { %718 = vmatprep.mubr.bf16.mxu0 %v290_v17  ;;  %v292_v19 = vpack.c.bf16 %v274_v37, %v274_v37 }
 0x167   :  { %719 = vmatmul.mubr.bf16.vlgmr.msra.gmra.mrb[0].mxu0 %v289_v18 }
 0x168   :  { %905 = vmatpush3.bf16.msra.mxu0 %v961_v36  ;;  %758 = vmatprep.mubr.bf16.mxu1 %v292_v19 }
 0x169   :  { %798 = vmatprep.mubr.bf16.mxu0 %v294_v21  ;;  %759 = vmatmul.mubr.bf16.vlgmr.msra.gmra.mrb[0].mxu1 %v291_v22 }
 0x16a   :  { %906 = vmatprep.subr.bf16.mxu0 %v962_v20 }
 0x16c   :  { %907 = vmatpush3.bf16.msra.mxu0 %v963_v9 }
 0x16d   :  { %908 = vmatprep.subr.bf16.mxu0 %v964_v23 }
 0x170   :  { %909 = vmatpush3.bf16.msra.mxu0 %v965_v24 }
 0x171   :  { %910 = vmatprep.subr.bf16.mxu0 %v966_v25 }
 0x174   :  { %911 = vmatpush3.bf16.msra.mxu0 %v967_v26 }
 0x175   :  { %912 = vmatprep.subr.bf16.mxu0 %v968_v27 }
 0x178   :  { %913 = vmatpush3.bf16.msra.mxu0 %v969_v28 }
 0x179   :  { %914 = vmatprep.subr.bf16.mxu0 %v970_v29 }
 0x17c   :  { %915 = vmatpush3.bf16.msra.mxu0 %v971_v30 }
 0x17d   :  { %916 = vmatprep.subr.bf16.mxu0 %v972_v31 }
 0x180   :  { %917 = vmatpush3.bf16.msra.mxu0 %v973_v33 }
 0x181   :  { %918 = vmatprep.subr.bf16.mxu0 %v974_v34 }
 0x184   :  { %919 = vmatpush3.bf16.msra.mxu0 %v975_v35 }
 0x187   :  { %799 = vmatmul.mubr.bf16.vlgmr.msra.gmra.mrb[4].mxu0 %v293_v38 }
 0x23a   :  { %v876_v39 = vpop.f32.mrb[0].mxu0 }
 0x23b   :  { %v877_v41 = vpop.f32.mrb[1].mxu0 }
 0x23c   :  { %v878_v42 = vadd.f32 %v877_v41, %v876_v39  ;;  %v879_v43 = vpop.f32.mrb[2].mxu0  ;;  %v898_v44 = vpop.f32.mrb[0].mxu1 }
 0x23d   :  { %v880_v45 = vpop.f32.mrb[3].mxu0  ;;  %v899_v46 = vpop.f32.mrb[1].mxu1 }
 0x23e   :  { %v721_v47 = vadd.f32 %v878_v42, %v811_v40  ;;  %v900_v48 = vadd.f32 %v899_v46, %v898_v44  ;;  %v901_v49 = vpop.f32.mrb[2].mxu1 }
 0x23f   :  { %v902_v50 = vpop.f32.mrb[3].mxu1 }
 0x240   :  { %v761_v51 = vadd.f32 %v900_v48, %v721_v47 }
 0x25a   :  { %v920_v52 = vpop.f32.mrb[4].mxu0 }
 0x25b   :  { %v921_v53 = vpop.f32.mrb[5].mxu0 }
 0x25c   :  { %v922_v54 = vadd.f32 %v921_v53, %v920_v52  ;;  %v923_v55 = vpop.f32.mrb[6].mxu0 }
 0x25d   :  { %v924_v56 = vpop.f32.mrb[7].mxu0 }
 0x25e   :  { %v801_v57 = vadd.f32 %v922_v54, %v761_v51 }
 0x260   :  { %806 = vst [vmem:[%s1227_s5] sm:$0x3] %v801_v57 }

</bundles_post_ra>
